<compile_context>
chip_gen: v5e
topology: v5e:2x2
jax: 0.10.0
libtpu: 0.0.40
codegen_flags: <defaults>
</compile_context>

<pallas_src>
import jax
import jax.numpy as jnp
from jax.experimental import pallas as pl
from jax.experimental.pallas import tpu as pltpu

_NB = 128  # images per grid step == lane width


# ----------------------------------------------------------------------------
# In-kernel building blocks
# ----------------------------------------------------------------------------
def _pool2x2(in_ref, out_ref):
    """MaxPool2d(2, 2), floor mode: (Hi, Wi, C, NB) -> (Hp, Wp, C, NB)."""
    hp, wp, c, nb = out_ref.shape

    @pl.loop(0, hp)
    def _row(a):
        m = jnp.maximum(in_ref[2 * a], in_ref[2 * a + 1])   # (Wi, C, NB)
        m = m[: 2 * wp]                                     # drop odd trailing col
        m = m.reshape(wp, 2, c, nb)                         # leading-dim split only
        out_ref[a] = jnp.maximum(m[:, 0], m[:, 1])          # (Wp, C, NB)


def _conv3x3_relu(in_ref, w_ref, b_ref, out_ref):
    """3x3 valid conv + bias + ReLU via in-VMEM im2col and the MXU.

    in_ref:  (Hi, Wi, Cin, NB)
    w_ref:   (Cout, 9*Cin), columns ordered (dy, dx, ci)
    b_ref:   (Cout, 1)
    out_ref: (Ho, Wo, Cout, NB)
    """
    ho, wo = out_ref.shape[0], out_ref.shape[1]
    wt = w_ref[...]
    b = b_ref[...]

    @pl.loop(0, ho)
    def _row(h):
        for w in range(wo):  # static unroll across one output row
            taps = [in_ref[h + dy, w + dx] for dy in range(3) for dx in range(3)]
            patch = jnp.concatenate(taps, axis=0)            # (9*Cin, NB)
            acc = jnp.dot(wt, patch, preferred_element_type=jnp.float32) + b
            out_ref[h, w] = jnp.maximum(acc, 0.0)


def _fashion_kernel(x_ref, w1_ref, b1_ref, w2_ref, b2_ref, w3_ref, b3_ref,
                    wfc1_ref, bfc1_ref, wfc2_ref, bfc2_ref, out_ref,
                    c1_ref, p1_ref, c2_ref, p2_ref, c3_ref):
    # ---- conv1 (1 -> 16) + ReLU: Cin == 1, so a row-wise VPU broadcast-FMA ----
    w1 = w1_ref[...]                      # (9, 16, 1)
    b1 = b1_ref[...]                      # (16, 1)

    @pl.loop(0, 26)
    def _c1_row(h):
        acc = None
        for dy in range(3):
            row = x_ref[h + dy]                            # (28, 1, NB)
            for dx in range(3):
                term = row[dx:dx + 26] * w1[dy * 3 + dx]   # (26,1,NB)*(16,1)->(26,16,NB)
                acc = term if acc is None else acc + term
        c1_ref[h] = jnp.maximum(acc + b1, 0.0)             # (26, 16, NB)

    _pool2x2(c1_ref, p1_ref)                               # (26,26,16,NB)->(13,13,16,NB)
    _conv3x3_relu(p1_ref, w2_ref, b2_ref, c2_ref)          # -> (11,11,16,NB)
    _pool2x2(c2_ref, p2_ref)                               # -> (5,5,16,NB)
    _conv3x3_relu(p2_ref, w3_ref, b3_ref, c3_ref)          # -> (3,3,16,NB)

    # ---- fc1 (144 -> 128, no ReLU): 9 blocked (128,16)@(16,NB) MXU matmuls ----
    acc = None
    for hh in range(3):
        for ww in range(3):
            t = jnp.dot(wfc1_ref[hh, ww], c3_ref[hh, ww],
                        preferred_element_type=jnp.float32)    # (128, NB)
            acc = t if acc is None else acc + t
    h1 = acc + bfc1_ref[...]                                   # (128, NB)

    # ---- fc2 (128 -> 10, rows padded to 16): lane-dense (16, NB) store ----
    out_ref[...] = (jnp.dot(wfc2_ref[...], h1, preferred_element_type=jnp.float32)
                    + bfc2_ref[...])


# ----------------------------------------------------------------------------
# Host-side wrapper: parameter re-layout (one-time, cheap) + pallas_call
# ----------------------------------------------------------------------------
def _const_index_map(ndim):
    def index_map(i):
        return (0,) * ndim
    return index_map


def _prep_params(params):
    # Conv weights -> (Cout, 9*Cin) with column order (dy, dx, ci); conv1 -> (9,16,1).
    w1r = jnp.transpose(params["w1"][:, 0], (1, 2, 0)).reshape(9, 16)[:, :, None]
    w2t = jnp.transpose(params["w2"], (0, 2, 3, 1)).reshape(16, 144)
    w3t = jnp.transpose(params["w3"], (0, 2, 3, 1)).reshape(16, 144)
    # fc1 weight permuted to (h, w, out, cin) so no runtime flatten-transpose is needed
    # (PyTorch flatten order for NCHW is c*9 + h*3 + w).
    wfc1r = jnp.transpose(params["wfc1"].reshape(128, 16, 3, 3), (2, 3, 0, 1))
    # fc2 padded to 16 output rows for a tile-aligned, lane-dense final store.
    wfc2p = jnp.zeros((16, 128), jnp.float32).at[:10].set(params["wfc2"])
    bfc2p = jnp.zeros((16, 1), jnp.float32).at[:10, 0].set(params["bfc2"])
    return (w1r, params["b1"].reshape(16, 1),
            w2t, params["b2"].reshape(16, 1),
            w3t, params["b3"].reshape(16, 1),
            wfc1r, params["bfc1"].reshape(128, 1),
            wfc2p, bfc2p)


def fashion_classifier_forward(x_nchw, params):
    n = x_nchw.shape[0]
    npad = ((n + _NB - 1) // _NB) * _NB
    xp = jnp.pad(x_nchw.astype(jnp.float32),
                 ((0, npad - n), (0, 0), (0, 0), (0, 0)))
    x_hwcn = jnp.transpose(xp, (2, 3, 1, 0))               # (28, 28, 1, Npad)
    prepped = _prep_params(params)

    in_specs = [pl.BlockSpec((28, 28, 1, _NB), lambda i: (0, 0, 0, i))]
    in_specs += [pl.BlockSpec(p.shape, _const_index_map(p.ndim)) for p in prepped]

    out = pl.pallas_call(
        _fashion_kernel,
        out_shape=jax.ShapeDtypeStruct((16, npad), jnp.float32),
        grid_spec=pltpu.PrefetchScalarGridSpec(
            num_scalar_prefetch=0,
            grid=(npad // _NB,),
            in_specs=in_specs,
            out_specs=pl.BlockSpec((16, _NB), lambda i: (0, i)),
            scratch_shapes=[
                pltpu.VMEM((26, 26, 16, _NB), jnp.float32),   # conv1 out
                pltpu.VMEM((13, 13, 16, _NB), jnp.float32),   # pool1 out
                pltpu.VMEM((11, 11, 16, _NB), jnp.float32),   # conv2 out
                pltpu.VMEM((5, 5, 16, _NB), jnp.float32),     # pool2 out
                pltpu.VMEM((3, 3, 16, _NB), jnp.float32),     # conv3 out (features)
            ]),
        compiler_params=pltpu.CompilerParams(
            dimension_semantics=("parallel",),
            vmem_limit_bytes=32 * 1024 * 1024),
    )(x_hwcn, *prepped)

    return jnp.transpose(out[:10, :n])                      # (N, 10)


# ----------------------------------------------------------------------------
# Deterministic parameter init (PyTorch shapes: Conv2d OIHW, Linear (out, in))
# ----------------------------------------------------------------------------
def init_params(key):
    ks = jax.random.split(key, 10)

    def u(k, shape, fan_in):
        bound = 1.0 / jnp.sqrt(jnp.float32(fan_in))
        return jax.random.uniform(k, shape, jnp.float32, -bound, bound)

    return {
        "w1": u(ks[0], (16, 1, 3, 3), 1 * 9),
        "b1": u(ks[1], (16,), 1 * 9),
        "w2": u(ks[2], (16, 16, 3, 3), 16 * 9),
        "b2": u(ks[3], (16,), 16 * 9),
        "w3": u(ks[4], (16, 16, 3, 3), 16 * 9),
        "b3": u(ks[5], (16,), 16 * 9),
        "wfc1": u(ks[6], (128, 144), 144),
        "bfc1": u(ks[7], (128,), 144),
        "wfc2": u(ks[8], (10, 128), 128),
        "bfc2": u(ks[9], (10,), 128),
    }


# ----------------------------------------------------------------------------
# Pure-JAX reference (matches the PyTorch module) for a correctness check
# ----------------------------------------------------------------------------
def _reference_forward(x, params):
    def conv(y, w, b):
        y = jax.lax.conv_general_dilated(
            y, w, window_strides=(1, 1), padding="VALID",
            dimension_numbers=("NCHW", "OIHW", "NCHW"))
        return y + b.reshape(1, -1, 1, 1)

    def mp(y):
        return jax.lax.reduce_window(y, -jnp.inf, jax.lax.max,
                                     (1, 1, 2, 2), (1, 1, 2, 2), "VALID")

    y = mp(jax.nn.relu(conv(x, params["w1"], params["b1"])))
    y = mp(jax.nn.relu(conv(y, params["w2"], params["b2"])))
    y = jax.nn.relu(conv(y, params["w3"], params["b3"]))
    y = y.reshape(y.shape[0], -1)                       # NCHW flatten (c, h, w)
    y = y @ params["wfc1"].T + params["bfc1"]
    y = y @ params["wfc2"].T + params["bfc2"]
    return y


if __name__ == "__main__":
    key = jax.random.PRNGKey(0)
    pkey, xkey = jax.random.split(key)
    params = init_params(pkey)
    # The forward pass implies 1x28x28 inputs (fc1 expects 16*3*3 features).
    x = jax.random.normal(xkey, (2, 1, 28, 28), jnp.float32)

    logits = jax.jit(fashion_classifier_forward)(x, params)
    jax.block_until_ready(logits)
    assert logits.shape == (2, 10), logits.shape
    assert logits.dtype == jnp.float32

    ref = _reference_forward(x, params)
    if not jnp.allclose(logits, ref, rtol=2e-2, atol=2e-2):
        raise AssertionError(
            "mismatch vs reference: max abs err "
            f"{float(jnp.max(jnp.abs(logits - ref))):.3e}")
    print("KERNEL_OK")
</pallas_src>

<mosaic_0001>
module attributes {stable_mosaic.version = 11 : i64} {
  func.func @_fashion_kernel(%arg0: i32, %arg1: memref<28x28x1x128xf32, #tpu.memory_space<vmem>>, %arg2: memref<9x16x1xf32, #tpu.memory_space<vmem>>, %arg3: memref<16x1xf32, #tpu.memory_space<vmem>>, %arg4: memref<16x144xf32, #tpu.memory_space<vmem>>, %arg5: memref<16x1xf32, #tpu.memory_space<vmem>>, %arg6: memref<16x144xf32, #tpu.memory_space<vmem>>, %arg7: memref<16x1xf32, #tpu.memory_space<vmem>>, %arg8: memref<3x3x128x16xf32, #tpu.memory_space<vmem>>, %arg9: memref<128x1xf32, #tpu.memory_space<vmem>>, %arg10: memref<16x128xf32, #tpu.memory_space<vmem>>, %arg11: memref<16x1xf32, #tpu.memory_space<vmem>>, %arg12: memref<16x128xf32, #tpu.memory_space<vmem>>, %arg13: memref<26x26x16x128xf32, #tpu.memory_space<vmem>>, %arg14: memref<13x13x16x128xf32, #tpu.memory_space<vmem>>, %arg15: memref<11x11x16x128xf32, #tpu.memory_space<vmem>>, %arg16: memref<5x5x16x128xf32, #tpu.memory_space<vmem>>, %arg17: memref<3x3x16x128xf32, #tpu.memory_space<vmem>>) attributes {dimension_semantics = [#tpu.dimension_semantics<parallel>], iteration_bounds = array<i64: 1>, scalar_prefetch = 0 : i64, scratch_operands = 5 : i64, tpu.core_type = #tpu.core_type<tc>, window_params = [{transform_indices = @transform_0, window_bounds = array<i64: 28, 28, 1, 128>}, {pipeline_mode = #tpu.pipeline_mode<synchronous>, transform_indices = @transform_1, window_bounds = array<i64: 9, 16, 1>}, {pipeline_mode = #tpu.pipeline_mode<synchronous>, transform_indices = @transform_2, window_bounds = array<i64: 16, 1>}, {pipeline_mode = #tpu.pipeline_mode<synchronous>, transform_indices = @transform_3, window_bounds = array<i64: 16, 144>}, {pipeline_mode = #tpu.pipeline_mode<synchronous>, transform_indices = @transform_4, window_bounds = array<i64: 16, 1>}, {pipeline_mode = #tpu.pipeline_mode<synchronous>, transform_indices = @transform_5, window_bounds = array<i64: 16, 144>}, {pipeline_mode = #tpu.pipeline_mode<synchronous>, transform_indices = @transform_6, window_bounds = array<i64: 16, 1>}, {pipeline_mode = #tpu.pipeline_mode<synchronous>, transform_indices = @transform_7, window_bounds = array<i64: 3, 3, 128, 16>}, {pipeline_mode = #tpu.pipeline_mode<synchronous>, transform_indices = @transform_8, window_bounds = array<i64: 128, 1>}, {pipeline_mode = #tpu.pipeline_mode<synchronous>, transform_indices = @transform_9, window_bounds = array<i64: 16, 128>}, {pipeline_mode = #tpu.pipeline_mode<synchronous>, transform_indices = @transform_10, window_bounds = array<i64: 16, 1>}, {transform_indices = @transform_11, window_bounds = array<i64: 16, 128>}]} {
    %c0 = arith.constant 0 : index
    %c0_0 = arith.constant 0 : index
    %c0_1 = arith.constant 0 : index
    %0 = vector.load %arg2[%c0, %c0_0, %c0_1] : memref<9x16x1xf32, #tpu.memory_space<vmem>>, vector<9x16x1xf32>
    %c0_2 = arith.constant 0 : index
    %c0_3 = arith.constant 0 : index
    %1 = vector.load %arg3[%c0_2, %c0_3] : memref<16x1xf32, #tpu.memory_space<vmem>>, vector<16x1xf32>
    %c0_i32 = arith.constant 0 : i32
    %c26_i32 = arith.constant 26 : i32
    %2 = arith.addi %c0_i32, %c26_i32 : i32
    %c1_i32 = arith.constant 1 : i32
    scf.for %arg18 = %c0_i32 to %2 step %c1_i32  : i32 {
      %c1_i32_112 = arith.constant 1 : i32
      %73 = arith.muli %arg18, %c1_i32_112 : i32
      %c0_i32_113 = arith.constant 0 : i32
      %74 = arith.addi %c0_i32_113, %73 : i32
      %c0_i32_114 = arith.constant 0 : i32
      %75 = arith.addi %74, %c0_i32_114 : i32
      %76 = arith.index_cast %75 : i32 to index
      %c0_115 = arith.constant 0 : index
      %c0_116 = arith.constant 0 : index
      %c0_117 = arith.constant 0 : index
      %77 = vector.load %arg1[%76, %c0_115, %c0_116, %c0_117] : memref<28x28x1x128xf32, #tpu.memory_space<vmem>>, vector<1x28x1x128xf32>
      %78 = vector.shape_cast %77 : vector<1x28x1x128xf32> to vector<28x1x128xf32>
      %79 = vector.extract_strided_slice %78 {offsets = [0, 0, 0], sizes = [26, 1, 128], strides = [1, 1, 1]} : vector<28x1x128xf32> to vector<26x1x128xf32>
      %80 = vector.extract_strided_slice %0 {offsets = [0, 0, 0], sizes = [1, 16, 1], strides = [1, 1, 1]} : vector<9x16x1xf32> to vector<1x16x1xf32>
      %81 = vector.shape_cast %80 : vector<1x16x1xf32> to vector<16x1xf32>
      %82 = vector.shape_cast %81 : vector<16x1xf32> to vector<1x16x1xf32>
      %83 = vector.broadcast %79 : vector<26x1x128xf32> to vector<26x16x128xf32>
      %84 = vector.broadcast %82 : vector<1x16x1xf32> to vector<26x16x128xf32>
      %85 = arith.mulf %83, %84 : vector<26x16x128xf32>
      %86 = vector.extract_strided_slice %78 {offsets = [1, 0, 0], sizes = [26, 1, 128], strides = [1, 1, 1]} : vector<28x1x128xf32> to vector<26x1x128xf32>
      %87 = vector.extract_strided_slice %0 {offsets = [1, 0, 0], sizes = [1, 16, 1], strides = [1, 1, 1]} : vector<9x16x1xf32> to vector<1x16x1xf32>
      %88 = vector.shape_cast %87 : vector<1x16x1xf32> to vector<16x1xf32>
      %89 = vector.shape_cast %88 : vector<16x1xf32> to vector<1x16x1xf32>
      %90 = vector.broadcast %86 : vector<26x1x128xf32> to vector<26x16x128xf32>
      %91 = vector.broadcast %89 : vector<1x16x1xf32> to vector<26x16x128xf32>
      %92 = arith.mulf %90, %91 : vector<26x16x128xf32>
      %93 = arith.addf %85, %92 : vector<26x16x128xf32>
      %94 = vector.extract_strided_slice %78 {offsets = [2, 0, 0], sizes = [26, 1, 128], strides = [1, 1, 1]} : vector<28x1x128xf32> to vector<26x1x128xf32>
      %95 = vector.extract_strided_slice %0 {offsets = [2, 0, 0], sizes = [1, 16, 1], strides = [1, 1, 1]} : vector<9x16x1xf32> to vector<1x16x1xf32>
      %96 = vector.shape_cast %95 : vector<1x16x1xf32> to vector<16x1xf32>
      %97 = vector.shape_cast %96 : vector<16x1xf32> to vector<1x16x1xf32>
      %98 = vector.broadcast %94 : vector<26x1x128xf32> to vector<26x16x128xf32>
      %99 = vector.broadcast %97 : vector<1x16x1xf32> to vector<26x16x128xf32>
      %100 = arith.mulf %98, %99 : vector<26x16x128xf32>
      %101 = arith.addf %93, %100 : vector<26x16x128xf32>
      %c1_i32_118 = arith.constant 1 : i32
      %102 = arith.addi %74, %c1_i32_118 : i32
      %103 = arith.index_cast %102 : i32 to index
      %c0_119 = arith.constant 0 : index
      %c0_120 = arith.constant 0 : index
      %c0_121 = arith.constant 0 : index
      %104 = vector.load %arg1[%103, %c0_119, %c0_120, %c0_121] : memref<28x28x1x128xf32, #tpu.memory_space<vmem>>, vector<1x28x1x128xf32>
      %105 = vector.shape_cast %104 : vector<1x28x1x128xf32> to vector<28x1x128xf32>
      %106 = vector.extract_strided_slice %105 {offsets = [0, 0, 0], sizes = [26, 1, 128], strides = [1, 1, 1]} : vector<28x1x128xf32> to vector<26x1x128xf32>
      %107 = vector.extract_strided_slice %0 {offsets = [3, 0, 0], sizes = [1, 16, 1], strides = [1, 1, 1]} : vector<9x16x1xf32> to vector<1x16x1xf32>
      %108 = vector.shape_cast %107 : vector<1x16x1xf32> to vector<16x1xf32>
      %109 = vector.shape_cast %108 : vector<16x1xf32> to vector<1x16x1xf32>
      %110 = vector.broadcast %106 : vector<26x1x128xf32> to vector<26x16x128xf32>
      %111 = vector.broadcast %109 : vector<1x16x1xf32> to vector<26x16x128xf32>
      %112 = arith.mulf %110, %111 : vector<26x16x128xf32>
      %113 = arith.addf %101, %112 : vector<26x16x128xf32>
      %114 = vector.extract_strided_slice %105 {offsets = [1, 0, 0], sizes = [26, 1, 128], strides = [1, 1, 1]} : vector<28x1x128xf32> to vector<26x1x128xf32>
      %115 = vector.extract_strided_slice %0 {offsets = [4, 0, 0], sizes = [1, 16, 1], strides = [1, 1, 1]} : vector<9x16x1xf32> to vector<1x16x1xf32>
      %116 = vector.shape_cast %115 : vector<1x16x1xf32> to vector<16x1xf32>
      %117 = vector.shape_cast %116 : vector<16x1xf32> to vector<1x16x1xf32>
      %118 = vector.broadcast %114 : vector<26x1x128xf32> to vector<26x16x128xf32>
      %119 = vector.broadcast %117 : vector<1x16x1xf32> to vector<26x16x128xf32>
      %120 = arith.mulf %118, %119 : vector<26x16x128xf32>
      %121 = arith.addf %113, %120 : vector<26x16x128xf32>
      %122 = vector.extract_strided_slice %105 {offsets = [2, 0, 0], sizes = [26, 1, 128], strides = [1, 1, 1]} : vector<28x1x128xf32> to vector<26x1x128xf32>
      %123 = vector.extract_strided_slice %0 {offsets = [5, 0, 0], sizes = [1, 16, 1], strides = [1, 1, 1]} : vector<9x16x1xf32> to vector<1x16x1xf32>
      %124 = vector.shape_cast %123 : vector<1x16x1xf32> to vector<16x1xf32>
      %125 = vector.shape_cast %124 : vector<16x1xf32> to vector<1x16x1xf32>
      %126 = vector.broadcast %122 : vector<26x1x128xf32> to vector<26x16x128xf32>
      %127 = vector.broadcast %125 : vector<1x16x1xf32> to vector<26x16x128xf32>
      %128 = arith.mulf %126, %127 : vector<26x16x128xf32>
      %129 = arith.addf %121, %128 : vector<26x16x128xf32>
      %c2_i32 = arith.constant 2 : i32
      %130 = arith.addi %74, %c2_i32 : i32
      %131 = arith.index_cast %130 : i32 to index
      %c0_122 = arith.constant 0 : index
      %c0_123 = arith.constant 0 : index
      %c0_124 = arith.constant 0 : index
      %132 = vector.load %arg1[%131, %c0_122, %c0_123, %c0_124] : memref<28x28x1x128xf32, #tpu.memory_space<vmem>>, vector<1x28x1x128xf32>
      %133 = vector.shape_cast %132 : vector<1x28x1x128xf32> to vector<28x1x128xf32>
      %134 = vector.extract_strided_slice %133 {offsets = [0, 0, 0], sizes = [26, 1, 128], strides = [1, 1, 1]} : vector<28x1x128xf32> to vector<26x1x128xf32>
      %135 = vector.extract_strided_slice %0 {offsets = [6, 0, 0], sizes = [1, 16, 1], strides = [1, 1, 1]} : vector<9x16x1xf32> to vector<1x16x1xf32>
      %136 = vector.shape_cast %135 : vector<1x16x1xf32> to vector<16x1xf32>
      %137 = vector.shape_cast %136 : vector<16x1xf32> to vector<1x16x1xf32>
      %138 = vector.broadcast %134 : vector<26x1x128xf32> to vector<26x16x128xf32>
      %139 = vector.broadcast %137 : vector<1x16x1xf32> to vector<26x16x128xf32>
      %140 = arith.mulf %138, %139 : vector<26x16x128xf32>
      %141 = arith.addf %129, %140 : vector<26x16x128xf32>
      %142 = vector.extract_strided_slice %133 {offsets = [1, 0, 0], sizes = [26, 1, 128], strides = [1, 1, 1]} : vector<28x1x128xf32> to vector<26x1x128xf32>
      %143 = vector.extract_strided_slice %0 {offsets = [7, 0, 0], sizes = [1, 16, 1], strides = [1, 1, 1]} : vector<9x16x1xf32> to vector<1x16x1xf32>
      %144 = vector.shape_cast %143 : vector<1x16x1xf32> to vector<16x1xf32>
      %145 = vector.shape_cast %144 : vector<16x1xf32> to vector<1x16x1xf32>
      %146 = vector.broadcast %142 : vector<26x1x128xf32> to vector<26x16x128xf32>
      %147 = vector.broadcast %145 : vector<1x16x1xf32> to vector<26x16x128xf32>
      %148 = arith.mulf %146, %147 : vector<26x16x128xf32>
      %149 = arith.addf %141, %148 : vector<26x16x128xf32>
      %150 = vector.extract_strided_slice %133 {offsets = [2, 0, 0], sizes = [26, 1, 128], strides = [1, 1, 1]} : vector<28x1x128xf32> to vector<26x1x128xf32>
      %151 = vector.extract_strided_slice %0 {offsets = [8, 0, 0], sizes = [1, 16, 1], strides = [1, 1, 1]} : vector<9x16x1xf32> to vector<1x16x1xf32>
      %152 = vector.shape_cast %151 : vector<1x16x1xf32> to vector<16x1xf32>
      %153 = vector.shape_cast %152 : vector<16x1xf32> to vector<1x16x1xf32>
      %154 = vector.broadcast %150 : vector<26x1x128xf32> to vector<26x16x128xf32>
      %155 = vector.broadcast %153 : vector<1x16x1xf32> to vector<26x16x128xf32>
      %156 = arith.mulf %154, %155 : vector<26x16x128xf32>
      %157 = arith.addf %149, %156 : vector<26x16x128xf32>
      %158 = vector.shape_cast %1 : vector<16x1xf32> to vector<1x16x1xf32>
      %159 = vector.broadcast %158 : vector<1x16x1xf32> to vector<26x16x128xf32>
      %160 = arith.addf %157, %159 : vector<26x16x128xf32>
      %cst_125 = arith.constant 0.000000e+00 : f32
      %161 = vector.broadcast %cst_125 : f32 to vector<26x16x128xf32>
      %162 = arith.maximumf %160, %161 : vector<26x16x128xf32>
      %163 = arith.index_cast %74 : i32 to index
      %c0_126 = arith.constant 0 : index
      %c0_127 = arith.constant 0 : index
      %c0_128 = arith.constant 0 : index
      %164 = vector.load %arg13[%163, %c0_126, %c0_127, %c0_128] : memref<26x26x16x128xf32, #tpu.memory_space<vmem>>, vector<1x26x16x128xf32>
      %165 = vector.shape_cast %164 : vector<1x26x16x128xf32> to vector<26x16x128xf32>
      %166 = vector.shape_cast %162 : vector<26x16x128xf32> to vector<1x26x16x128xf32>
      tpu.vector_store %arg13[%163, %c0_126, %c0_127, %c0_128], %166 {strides = array<i32>} : memref<26x26x16x128xf32, #tpu.memory_space<vmem>>, vector<1x26x16x128xf32>,
    }
    %c26_i32_4 = arith.constant 26 : i32
    %c0_i32_5 = arith.constant 0 : i32
    %c13_i32 = arith.constant 13 : i32
    %3 = arith.addi %c0_i32_5, %c13_i32 : i32
    %c1_i32_6 = arith.constant 1 : i32
    scf.for %arg18 = %c0_i32_5 to %3 step %c1_i32_6  : i32 {
      %c1_i32_112 = arith.constant 1 : i32
      %73 = arith.muli %arg18, %c1_i32_112 : i32
      %c0_i32_113 = arith.constant 0 : i32
      %74 = arith.addi %c0_i32_113, %73 : i32
      %c2_i32 = arith.constant 2 : i32
      %75 = arith.muli %c2_i32, %74 : i32
      %76 = arith.index_cast %75 : i32 to index
      %c0_114 = arith.constant 0 : index
      %c0_115 = arith.constant 0 : index
      %c0_116 = arith.constant 0 : index
      %77 = vector.load %arg13[%76, %c0_114, %c0_115, %c0_116] : memref<26x26x16x128xf32, #tpu.memory_space<vmem>>, vector<1x26x16x128xf32>
      %78 = vector.shape_cast %77 : vector<1x26x16x128xf32> to vector<26x16x128xf32>
      %c2_i32_117 = arith.constant 2 : i32
      %79 = arith.muli %c2_i32_117, %74 : i32
      %c1_i32_118 = arith.constant 1 : i32
      %80 = arith.addi %79, %c1_i32_118 : i32
      %81 = arith.index_cast %80 : i32 to index
      %c0_119 = arith.constant 0 : index
      %c0_120 = arith.constant 0 : index
      %c0_121 = arith.constant 0 : index
      %82 = vector.load %arg13[%81, %c0_119, %c0_120, %c0_121] : memref<26x26x16x128xf32, #tpu.memory_space<vmem>>, vector<1x26x16x128xf32>
      %83 = vector.shape_cast %82 : vector<1x26x16x128xf32> to vector<26x16x128xf32>
      %84 = arith.maximumf %78, %83 : vector<26x16x128xf32>
      %85 = vector.shape_cast %84 : vector<26x16x128xf32> to vector<13x2x16x128xf32>
      %86 = vector.extract_strided_slice %85 {offsets = [0, 0, 0, 0], sizes = [13, 1, 16, 128], strides = [1, 1, 1, 1]} : vector<13x2x16x128xf32> to vector<13x1x16x128xf32>
      %87 = vector.shape_cast %86 : vector<13x1x16x128xf32> to vector<13x16x128xf32>
      %88 = vector.extract_strided_slice %85 {offsets = [0, 1, 0, 0], sizes = [13, 1, 16, 128], strides = [1, 1, 1, 1]} : vector<13x2x16x128xf32> to vector<13x1x16x128xf32>
      %89 = vector.shape_cast %88 : vector<13x1x16x128xf32> to vector<13x16x128xf32>
      %90 = arith.maximumf %87, %89 : vector<13x16x128xf32>
      %91 = arith.index_cast %74 : i32 to index
      %c0_122 = arith.constant 0 : index
      %c0_123 = arith.constant 0 : index
      %c0_124 = arith.constant 0 : index
      %92 = vector.load %arg14[%91, %c0_122, %c0_123, %c0_124] : memref<13x13x16x128xf32, #tpu.memory_space<vmem>>, vector<1x13x16x128xf32>
      %93 = vector.shape_cast %92 : vector<1x13x16x128xf32> to vector<13x16x128xf32>
      %94 = vector.shape_cast %90 : vector<13x16x128xf32> to vector<1x13x16x128xf32>
      tpu.vector_store %arg14[%91, %c0_122, %c0_123, %c0_124], %94 {strides = array<i32>} : memref<13x13x16x128xf32, #tpu.memory_space<vmem>>, vector<1x13x16x128xf32>,
    }
    %c13_i32_7 = arith.constant 13 : i32
    %c0_8 = arith.constant 0 : index
    %c0_9 = arith.constant 0 : index
    %4 = vector.load %arg4[%c0_8, %c0_9] : memref<16x144xf32, #tpu.memory_space<vmem>>, vector<16x144xf32>
    %c0_10 = arith.constant 0 : index
    %c0_11 = arith.constant 0 : index
    %5 = vector.load %arg5[%c0_10, %c0_11] : memref<16x1xf32, #tpu.memory_space<vmem>>, vector<16x1xf32>
    %c0_i32_12 = arith.constant 0 : i32
    %c11_i32 = arith.constant 11 : i32
    %6 = arith.addi %c0_i32_12, %c11_i32 : i32
    %c1_i32_13 = arith.constant 1 : i32
    scf.for %arg18 = %c0_i32_12 to %6 step %c1_i32_13  : i32 {
      %c1_i32_112 = arith.constant 1 : i32
      %73 = arith.muli %arg18, %c1_i32_112 : i32
      %c0_i32_113 = arith.constant 0 : i32
      %74 = arith.addi %c0_i32_113, %73 : i32
      %c0_i32_114 = arith.constant 0 : i32
      %75 = arith.addi %74, %c0_i32_114 : i32
      %76 = arith.index_cast %75 : i32 to index
      %c0_115 = arith.constant 0 : index
      %c0_116 = arith.constant 0 : index
      %c0_117 = arith.constant 0 : index
      %77 = vector.load %arg14[%76, %c0_115, %c0_116, %c0_117] : memref<13x13x16x128xf32, #tpu.memory_space<vmem>>, vector<1x1x16x128xf32>
      %78 = vector.shape_cast %77 : vector<1x1x16x128xf32> to vector<16x128xf32>
      %c0_i32_118 = arith.constant 0 : i32
      %79 = arith.addi %74, %c0_i32_118 : i32
      %80 = arith.index_cast %79 : i32 to index
      %c1_119 = arith.constant 1 : index
      %c0_120 = arith.constant 0 : index
      %c0_121 = arith.constant 0 : index
      %81 = vector.load %arg14[%80, %c1_119, %c0_120, %c0_121] : memref<13x13x16x128xf32, #tpu.memory_space<vmem>>, vector<1x1x16x128xf32>
      %82 = vector.shape_cast %81 : vector<1x1x16x128xf32> to vector<16x128xf32>
      %c0_i32_122 = arith.constant 0 : i32
      %83 = arith.addi %74, %c0_i32_122 : i32
      %84 = arith.index_cast %83 : i32 to index
      %c2_123 = arith.constant 2 : index
      %c0_124 = arith.constant 0 : index
      %c0_125 = arith.constant 0 : index
      %85 = vector.load %arg14[%84, %c2_123, %c0_124, %c0_125] : memref<13x13x16x128xf32, #tpu.memory_space<vmem>>, vector<1x1x16x128xf32>
      %86 = vector.shape_cast %85 : vector<1x1x16x128xf32> to vector<16x128xf32>
      %c1_i32_126 = arith.constant 1 : i32
      %87 = arith.addi %74, %c1_i32_126 : i32
      %88 = arith.index_cast %87 : i32 to index
      %c0_127 = arith.constant 0 : index
      %c0_128 = arith.constant 0 : index
      %c0_129 = arith.constant 0 : index
      %89 = vector.load %arg14[%88, %c0_127, %c0_128, %c0_129] : memref<13x13x16x128xf32, #tpu.memory_space<vmem>>, vector<1x1x16x128xf32>
      %90 = vector.shape_cast %89 : vector<1x1x16x128xf32> to vector<16x128xf32>
      %c1_i32_130 = arith.constant 1 : i32
      %91 = arith.addi %74, %c1_i32_130 : i32
      %92 = arith.index_cast %91 : i32 to index
      %c1_131 = arith.constant 1 : index
      %c0_132 = arith.constant 0 : index
      %c0_133 = arith.constant 0 : index
      %93 = vector.load %arg14[%92, %c1_131, %c0_132, %c0_133] : memref<13x13x16x128xf32, #tpu.memory_space<vmem>>, vector<1x1x16x128xf32>
      %94 = vector.shape_cast %93 : vector<1x1x16x128xf32> to vector<16x128xf32>
      %c1_i32_134 = arith.constant 1 : i32
      %95 = arith.addi %74, %c1_i32_134 : i32
      %96 = arith.index_cast %95 : i32 to index
      %c2_135 = arith.constant 2 : index
      %c0_136 = arith.constant 0 : index
      %c0_137 = arith.constant 0 : index
      %97 = vector.load %arg14[%96, %c2_135, %c0_136, %c0_137] : memref<13x13x16x128xf32, #tpu.memory_space<vmem>>, vector<1x1x16x128xf32>
      %98 = vector.shape_cast %97 : vector<1x1x16x128xf32> to vector<16x128xf32>
      %c2_i32 = arith.constant 2 : i32
      %99 = arith.addi %74, %c2_i32 : i32
      %100 = arith.index_cast %99 : i32 to index
      %c0_138 = arith.constant 0 : index
      %c0_139 = arith.constant 0 : index
      %c0_140 = arith.constant 0 : index
      %101 = vector.load %arg14[%100, %c0_138, %c0_139, %c0_140] : memref<13x13x16x128xf32, #tpu.memory_space<vmem>>, vector<1x1x16x128xf32>
      %102 = vector.shape_cast %101 : vector<1x1x16x128xf32> to vector<16x128xf32>
      %c2_i32_141 = arith.constant 2 : i32
      %103 = arith.addi %74, %c2_i32_141 : i32
      %104 = arith.index_cast %103 : i32 to index
      %c1_142 = arith.constant 1 : index
      %c0_143 = arith.constant 0 : index
      %c0_144 = arith.constant 0 : index
      %105 = vector.load %arg14[%104, %c1_142, %c0_143, %c0_144] : memref<13x13x16x128xf32, #tpu.memory_space<vmem>>, vector<1x1x16x128xf32>
      %106 = vector.shape_cast %105 : vector<1x1x16x128xf32> to vector<16x128xf32>
      %c2_i32_145 = arith.constant 2 : i32
      %107 = arith.addi %74, %c2_i32_145 : i32
      %108 = arith.index_cast %107 : i32 to index
      %c2_146 = arith.constant 2 : index
      %c0_147 = arith.constant 0 : index
      %c0_148 = arith.constant 0 : index
      %109 = vector.load %arg14[%108, %c2_146, %c0_147, %c0_148] : memref<13x13x16x128xf32, #tpu.memory_space<vmem>>, vector<1x1x16x128xf32>
      %110 = vector.shape_cast %109 : vector<1x1x16x128xf32> to vector<16x128xf32>
      %111 = tpu.concatenate %78, %82, %86, %90, %94, %98, %102, %106, %110 in 0 : vector<16x128xf32>, vector<16x128xf32>, vector<16x128xf32>, vector<16x128xf32>, vector<16x128xf32>, vector<16x128xf32>, vector<16x128xf32>, vector<16x128xf32>, vector<16x128xf32> -> vector<144x128xf32>
      %cst_149 = arith.constant dense<0.000000e+00> : vector<16x128xf32>
      %112 = tpu.matmul %4, %111, %cst_149 {dimension_numbers = #tpu.dot_dimension_numbers<[1], [0], [0], [1], [0, 0, 1, 1], [], []>} : vector<16x144xf32>, vector<144x128xf32>, vector<16x128xf32> -> vector<16x128xf32>
      %113 = vector.broadcast %5 : vector<16x1xf32> to vector<16x128xf32>
      %114 = arith.addf %112, %113 : vector<16x128xf32>
      %cst_150 = arith.constant 0.000000e+00 : f32
      %115 = vector.broadcast %cst_150 : f32 to vector<16x128xf32>
      %116 = arith.maximumf %114, %115 : vector<16x128xf32>
      %117 = arith.index_cast %74 : i32 to index
      %c0_151 = arith.constant 0 : index
      %c0_152 = arith.constant 0 : index
      %c0_153 = arith.constant 0 : index
      %118 = vector.load %arg15[%117, %c0_151, %c0_152, %c0_153] : memref<11x11x16x128xf32, #tpu.memory_space<vmem>>, vector<1x1x16x128xf32>
      %119 = vector.shape_cast %118 : vector<1x1x16x128xf32> to vector<16x128xf32>
      %120 = vector.shape_cast %116 : vector<16x128xf32> to vector<1x1x16x128xf32>
      tpu.vector_store %arg15[%117, %c0_151, %c0_152, %c0_153], %120 {strides = array<i32>} : memref<11x11x16x128xf32, #tpu.memory_space<vmem>>, vector<1x1x16x128xf32>,
      %c0_i32_154 = arith.constant 0 : i32
      %121 = arith.addi %74, %c0_i32_154 : i32
      %122 = arith.index_cast %121 : i32 to index
      %c1_155 = arith.constant 1 : index
      %c0_156 = arith.constant 0 : index
      %c0_157 = arith.constant 0 : index
      %123 = vector.load %arg14[%122, %c1_155, %c0_156, %c0_157] : memref<13x13x16x128xf32, #tpu.memory_space<vmem>>, vector<1x1x16x128xf32>
      %124 = vector.shape_cast %123 : vector<1x1x16x128xf32> to vector<16x128xf32>
      %c0_i32_158 = arith.constant 0 : i32
      %125 = arith.addi %74, %c0_i32_158 : i32
      %126 = arith.index_cast %125 : i32 to index
      %c2_159 = arith.constant 2 : index
      %c0_160 = arith.constant 0 : index
      %c0_161 = arith.constant 0 : index
      %127 = vector.load %arg14[%126, %c2_159, %c0_160, %c0_161] : memref<13x13x16x128xf32, #tpu.memory_space<vmem>>, vector<1x1x16x128xf32>
      %128 = vector.shape_cast %127 : vector<1x1x16x128xf32> to vector<16x128xf32>
      %c0_i32_162 = arith.constant 0 : i32
      %129 = arith.addi %74, %c0_i32_162 : i32
      %130 = arith.index_cast %129 : i32 to index
      %c3 = arith.constant 3 : index
      %c0_163 = arith.constant 0 : index
      %c0_164 = arith.constant 0 : index
      %131 = vector.load %arg14[%130, %c3, %c0_163, %c0_164] : memref<13x13x16x128xf32, #tpu.memory_space<vmem>>, vector<1x1x16x128xf32>
      %132 = vector.shape_cast %131 : vector<1x1x16x128xf32> to vector<16x128xf32>
      %c1_i32_165 = arith.constant 1 : i32
      %133 = arith.addi %74, %c1_i32_165 : i32
      %134 = arith.index_cast %133 : i32 to index
      %c1_166 = arith.constant 1 : index
      %c0_167 = arith.constant 0 : index
      %c0_168 = arith.constant 0 : index
      %135 = vector.load %arg14[%134, %c1_166, %c0_167, %c0_168] : memref<13x13x16x128xf32, #tpu.memory_space<vmem>>, vector<1x1x16x128xf32>
      %136 = vector.shape_cast %135 : vector<1x1x16x128xf32> to vector<16x128xf32>
      %c1_i32_169 = arith.constant 1 : i32
      %137 = arith.addi %74, %c1_i32_169 : i32
      %138 = arith.index_cast %137 : i32 to index
      %c2_170 = arith.constant 2 : index
      %c0_171 = arith.constant 0 : index
      %c0_172 = arith.constant 0 : index
      %139 = vector.load %arg14[%138, %c2_170, %c0_171, %c0_172] : memref<13x13x16x128xf32, #tpu.memory_space<vmem>>, vector<1x1x16x128xf32>
      %140 = vector.shape_cast %139 : vector<1x1x16x128xf32> to vector<16x128xf32>
      %c1_i32_173 = arith.constant 1 : i32
      %141 = arith.addi %74, %c1_i32_173 : i32
      %142 = arith.index_cast %141 : i32 to index
      %c3_174 = arith.constant 3 : index
      %c0_175 = arith.constant 0 : index
      %c0_176 = arith.constant 0 : index
      %143 = vector.load %arg14[%142, %c3_174, %c0_175, %c0_176] : memref<13x13x16x128xf32, #tpu.memory_space<vmem>>, vector<1x1x16x128xf32>
      %144 = vector.shape_cast %143 : vector<1x1x16x128xf32> to vector<16x128xf32>
      %c2_i32_177 = arith.constant 2 : i32
      %145 = arith.addi %74, %c2_i32_177 : i32
      %146 = arith.index_cast %145 : i32 to index
      %c1_178 = arith.constant 1 : index
      %c0_179 = arith.constant 0 : index
      %c0_180 = arith.constant 0 : index
      %147 = vector.load %arg14[%146, %c1_178, %c0_179, %c0_180] : memref<13x13x16x128xf32, #tpu.memory_space<vmem>>, vector<1x1x16x128xf32>
      %148 = vector.shape_cast %147 : vector<1x1x16x128xf32> to vector<16x128xf32>
      %c2_i32_181 = arith.constant 2 : i32
      %149 = arith.addi %74, %c2_i32_181 : i32
      %150 = arith.index_cast %149 : i32 to index
      %c2_182 = arith.constant 2 : index
      %c0_183 = arith.constant 0 : index
      %c0_184 = arith.constant 0 : index
      %151 = vector.load %arg14[%150, %c2_182, %c0_183, %c0_184] : memref<13x13x16x128xf32, #tpu.memory_space<vmem>>, vector<1x1x16x128xf32>
      %152 = vector.shape_cast %151 : vector<1x1x16x128xf32> to vector<16x128xf32>
      %c2_i32_185 = arith.constant 2 : i32
      %153 = arith.addi %74, %c2_i32_185 : i32
      %154 = arith.index_cast %153 : i32 to index
      %c3_186 = arith.constant 3 : index
      %c0_187 = arith.constant 0 : index
      %c0_188 = arith.constant 0 : index
      %155 = vector.load %arg14[%154, %c3_186, %c0_187, %c0_188] : memref<13x13x16x128xf32, #tpu.memory_space<vmem>>, vector<1x1x16x128xf32>
      %156 = vector.shape_cast %155 : vector<1x1x16x128xf32> to vector<16x128xf32>
      %157 = tpu.concatenate %124, %128, %132, %136, %140, %144, %148, %152, %156 in 0 : vector<16x128xf32>, vector<16x128xf32>, vector<16x128xf32>, vector<16x128xf32>, vector<16x128xf32>, vector<16x128xf32>, vector<16x128xf32>, vector<16x128xf32>, vector<16x128xf32> -> vector<144x128xf32>
      %cst_189 = arith.constant dense<0.000000e+00> : vector<16x128xf32>
      %158 = tpu.matmul %4, %157, %cst_189 {dimension_numbers = #tpu.dot_dimension_numbers<[1], [0], [0], [1], [0, 0, 1, 1], [], []>} : vector<16x144xf32>, vector<144x128xf32>, vector<16x128xf32> -> vector<16x128xf32>
      %159 = vector.broadcast %5 : vector<16x1xf32> to vector<16x128xf32>
      %160 = arith.addf %158, %159 : vector<16x128xf32>
      %cst_190 = arith.constant 0.000000e+00 : f32
      %161 = vector.broadcast %cst_190 : f32 to vector<16x128xf32>
      %162 = arith.maximumf %160, %161 : vector<16x128xf32>
      %163 = arith.index_cast %74 : i32 to index
      %c1_191 = arith.constant 1 : index
      %c0_192 = arith.constant 0 : index
      %c0_193 = arith.constant 0 : index
      %164 = vector.load %arg15[%163, %c1_191, %c0_192, %c0_193] : memref<11x11x16x128xf32, #tpu.memory_space<vmem>>, vector<1x1x16x128xf32>
      %165 = vector.shape_cast %164 : vector<1x1x16x128xf32> to vector<16x128xf32>
      %166 = vector.shape_cast %162 : vector<16x128xf32> to vector<1x1x16x128xf32>
      tpu.vector_store %arg15[%163, %c1_191, %c0_192, %c0_193], %166 {strides = array<i32>} : memref<11x11x16x128xf32, #tpu.memory_space<vmem>>, vector<1x1x16x128xf32>,
      %c0_i32_194 = arith.constant 0 : i32
      %167 = arith.addi %74, %c0_i32_194 : i32
      %168 = arith.index_cast %167 : i32 to index
      %c2_195 = arith.constant 2 : index
      %c0_196 = arith.constant 0 : index
      %c0_197 = arith.constant 0 : index
      %169 = vector.load %arg14[%168, %c2_195, %c0_196, %c0_197] : memref<13x13x16x128xf32, #tpu.memory_space<vmem>>, vector<1x1x16x128xf32>
      %170 = vector.shape_cast %169 : vector<1x1x16x128xf32> to vector<16x128xf32>
      %c0_i32_198 = arith.constant 0 : i32
      %171 = arith.addi %74, %c0_i32_198 : i32
      %172 = arith.index_cast %171 : i32 to index
      %c3_199 = arith.constant 3 : index
      %c0_200 = arith.constant 0 : index
      %c0_201 = arith.constant 0 : index
      %173 = vector.load %arg14[%172, %c3_199, %c0_200, %c0_201] : memref<13x13x16x128xf32, #tpu.memory_space<vmem>>, vector<1x1x16x128xf32>
      %174 = vector.shape_cast %173 : vector<1x1x16x128xf32> to vector<16x128xf32>
      %c0_i32_202 = arith.constant 0 : i32
      %175 = arith.addi %74, %c0_i32_202 : i32
      %176 = arith.index_cast %175 : i32 to index
      %c4 = arith.constant 4 : index
      %c0_203 = arith.constant 0 : index
      %c0_204 = arith.constant 0 : index
      %177 = vector.load %arg14[%176, %c4, %c0_203, %c0_204] : memref<13x13x16x128xf32, #tpu.memory_space<vmem>>, vector<1x1x16x128xf32>
      %178 = vector.shape_cast %177 : vector<1x1x16x128xf32> to vector<16x128xf32>
      %c1_i32_205 = arith.constant 1 : i32
      %179 = arith.addi %74, %c1_i32_205 : i32
      %180 = arith.index_cast %179 : i32 to index
      %c2_206 = arith.constant 2 : index
      %c0_207 = arith.constant 0 : index
      %c0_208 = arith.constant 0 : index
      %181 = vector.load %arg14[%180, %c2_206, %c0_207, %c0_208] : memref<13x13x16x128xf32, #tpu.memory_space<vmem>>, vector<1x1x16x128xf32>
      %182 = vector.shape_cast %181 : vector<1x1x16x128xf32> to vector<16x128xf32>
      %c1_i32_209 = arith.constant 1 : i32
      %183 = arith.addi %74, %c1_i32_209 : i32
      %184 = arith.index_cast %183 : i32 to index
      %c3_210 = arith.constant 3 : index
      %c0_211 = arith.constant 0 : index
      %c0_212 = arith.constant 0 : index
      %185 = vector.load %arg14[%184, %c3_210, %c0_211, %c0_212] : memref<13x13x16x128xf32, #tpu.memory_space<vmem>>, vector<1x1x16x128xf32>
      %186 = vector.shape_cast %185 : vector<1x1x16x128xf32> to vector<16x128xf32>
      %c1_i32_213 = arith.constant 1 : i32
      %187 = arith.addi %74, %c1_i32_213 : i32
      %188 = arith.index_cast %187 : i32 to index
      %c4_214 = arith.constant 4 : index
      %c0_215 = arith.constant 0 : index
      %c0_216 = arith.constant 0 : index
      %189 = vector.load %arg14[%188, %c4_214, %c0_215, %c0_216] : memref<13x13x16x128xf32, #tpu.memory_space<vmem>>, vector<1x1x16x128xf32>
      %190 = vector.shape_cast %189 : vector<1x1x16x128xf32> to vector<16x128xf32>
      %c2_i32_217 = arith.constant 2 : i32
      %191 = arith.addi %74, %c2_i32_217 : i32
      %192 = arith.index_cast %191 : i32 to index
      %c2_218 = arith.constant 2 : index
      %c0_219 = arith.constant 0 : index
      %c0_220 = arith.constant 0 : index
      %193 = vector.load %arg14[%192, %c2_218, %c0_219, %c0_220] : memref<13x13x16x128xf32, #tpu.memory_space<vmem>>, vector<1x1x16x128xf32>
      %194 = vector.shape_cast %193 : vector<1x1x16x128xf32> to vector<16x128xf32>
      %c2_i32_221 = arith.constant 2 : i32
      %195 = arith.addi %74, %c2_i32_221 : i32
      %196 = arith.index_cast %195 : i32 to index
      %c3_222 = arith.constant 3 : index
      %c0_223 = arith.constant 0 : index
      %c0_224 = arith.constant 0 : index
      %197 = vector.load %arg14[%196, %c3_222, %c0_223, %c0_224] : memref<13x13x16x128xf32, #tpu.memory_space<vmem>>, vector<1x1x16x128xf32>
      %198 = vector.shape_cast %197 : vector<1x1x16x128xf32> to vector<16x128xf32>
      %c2_i32_225 = arith.constant 2 : i32
      %199 = arith.addi %74, %c2_i32_225 : i32
      %200 = arith.index_cast %199 : i32 to index
      %c4_226 = arith.constant 4 : index
      %c0_227 = arith.constant 0 : index
      %c0_228 = arith.constant 0 : index
      %201 = vector.load %arg14[%200, %c4_226, %c0_227, %c0_228] : memref<13x13x16x128xf32, #tpu.memory_space<vmem>>, vector<1x1x16x128xf32>
      %202 = vector.shape_cast %201 : vector<1x1x16x128xf32> to vector<16x128xf32>
      %203 = tpu.concatenate %170, %174, %178, %182, %186, %190, %194, %198, %202 in 0 : vector<16x128xf32>, vector<16x128xf32>, vector<16x128xf32>, vector<16x128xf32>, vector<16x128xf32>, vector<16x128xf32>, vector<16x128xf32>, vector<16x128xf32>, vector<16x128xf32> -> vector<144x128xf32>
      %cst_229 = arith.constant dense<0.000000e+00> : vector<16x128xf32>
      %204 = tpu.matmul %4, %203, %cst_229 {dimension_numbers = #tpu.dot_dimension_numbers<[1], [0], [0], [1], [0, 0, 1, 1], [], []>} : vector<16x144xf32>, vector<144x128xf32>, vector<16x128xf32> -> vector<16x128xf32>
      %205 = vector.broadcast %5 : vector<16x1xf32> to vector<16x128xf32>
      %206 = arith.addf %204, %205 : vector<16x128xf32>
      %cst_230 = arith.constant 0.000000e+00 : f32
      %207 = vector.broadcast %cst_230 : f32 to vector<16x128xf32>
      %208 = arith.maximumf %206, %207 : vector<16x128xf32>
      %209 = arith.index_cast %74 : i32 to index
      %c2_231 = arith.constant 2 : index
      %c0_232 = arith.constant 0 : index
      %c0_233 = arith.constant 0 : index
      %210 = vector.load %arg15[%209, %c2_231, %c0_232, %c0_233] : memref<11x11x16x128xf32, #tpu.memory_space<vmem>>, vector<1x1x16x128xf32>
      %211 = vector.shape_cast %210 : vector<1x1x16x128xf32> to vector<16x128xf32>
      %212 = vector.shape_cast %208 : vector<16x128xf32> to vector<1x1x16x128xf32>
      tpu.vector_store %arg15[%209, %c2_231, %c0_232, %c0_233], %212 {strides = array<i32>} : memref<11x11x16x128xf32, #tpu.memory_space<vmem>>, vector<1x1x16x128xf32>,
      %c0_i32_234 = arith.constant 0 : i32
      %213 = arith.addi %74, %c0_i32_234 : i32
      %214 = arith.index_cast %213 : i32 to index
      %c3_235 = arith.constant 3 : index
      %c0_236 = arith.constant 0 : index
      %c0_237 = arith.constant 0 : index
      %215 = vector.load %arg14[%214, %c3_235, %c0_236, %c0_237] : memref<13x13x16x128xf32, #tpu.memory_space<vmem>>, vector<1x1x16x128xf32>
      %216 = vector.shape_cast %215 : vector<1x1x16x128xf32> to vector<16x128xf32>
      %c0_i32_238 = arith.constant 0 : i32
      %217 = arith.addi %74, %c0_i32_238 : i32
      %218 = arith.index_cast %217 : i32 to index
      %c4_239 = arith.constant 4 : index
      %c0_240 = arith.constant 0 : index
      %c0_241 = arith.constant 0 : index
      %219 = vector.load %arg14[%218, %c4_239, %c0_240, %c0_241] : memref<13x13x16x128xf32, #tpu.memory_space<vmem>>, vector<1x1x16x128xf32>
      %220 = vector.shape_cast %219 : vector<1x1x16x128xf32> to vector<16x128xf32>
      %c0_i32_242 = arith.constant 0 : i32
      %221 = arith.addi %74, %c0_i32_242 : i32
      %222 = arith.index_cast %221 : i32 to index
      %c5 = arith.constant 5 : index
      %c0_243 = arith.constant 0 : index
      %c0_244 = arith.constant 0 : index
      %223 = vector.load %arg14[%222, %c5, %c0_243, %c0_244] : memref<13x13x16x128xf32, #tpu.memory_space<vmem>>, vector<1x1x16x128xf32>
      %224 = vector.shape_cast %223 : vector<1x1x16x128xf32> to vector<16x128xf32>
      %c1_i32_245 = arith.constant 1 : i32
      %225 = arith.addi %74, %c1_i32_245 : i32
      %226 = arith.index_cast %225 : i32 to index
      %c3_246 = arith.constant 3 : index
      %c0_247 = arith.constant 0 : index
      %c0_248 = arith.constant 0 : index
      %227 = vector.load %arg14[%226, %c3_246, %c0_247, %c0_248] : memref<13x13x16x128xf32, #tpu.memory_space<vmem>>, vector<1x1x16x128xf32>
      %228 = vector.shape_cast %227 : vector<1x1x16x128xf32> to vector<16x128xf32>
      %c1_i32_249 = arith.constant 1 : i32
      %229 = arith.addi %74, %c1_i32_249 : i32
      %230 = arith.index_cast %229 : i32 to index
      %c4_250 = arith.constant 4 : index
      %c0_251 = arith.constant 0 : index
      %c0_252 = arith.constant 0 : index
      %231 = vector.load %arg14[%230, %c4_250, %c0_251, %c0_252] : memref<13x13x16x128xf32, #tpu.memory_space<vmem>>, vector<1x1x16x128xf32>
      %232 = vector.shape_cast %231 : vector<1x1x16x128xf32> to vector<16x128xf32>
      %c1_i32_253 = arith.constant 1 : i32
      %233 = arith.addi %74, %c1_i32_253 : i32
      %234 = arith.index_cast %233 : i32 to index
      %c5_254 = arith.constant 5 : index
      %c0_255 = arith.constant 0 : index
      %c0_256 = arith.constant 0 : index
      %235 = vector.load %arg14[%234, %c5_254, %c0_255, %c0_256] : memref<13x13x16x128xf32, #tpu.memory_space<vmem>>, vector<1x1x16x128xf32>
      %236 = vector.shape_cast %235 : vector<1x1x16x128xf32> to vector<16x128xf32>
      %c2_i32_257 = arith.constant 2 : i32
      %237 = arith.addi %74, %c2_i32_257 : i32
      %238 = arith.index_cast %237 : i32 to index
      %c3_258 = arith.constant 3 : index
      %c0_259 = arith.constant 0 : index
      %c0_260 = arith.constant 0 : index
      %239 = vector.load %arg14[%238, %c3_258, %c0_259, %c0_260] : memref<13x13x16x128xf32, #tpu.memory_space<vmem>>, vector<1x1x16x128xf32>
      %240 = vector.shape_cast %239 : vector<1x1x16x128xf32> to vector<16x128xf32>
      %c2_i32_261 = arith.constant 2 : i32
      %241 = arith.addi %74, %c2_i32_261 : i32
      %242 = arith.index_cast %241 : i32 to index
      %c4_262 = arith.constant 4 : index
      %c0_263 = arith.constant 0 : index
      %c0_264 = arith.constant 0 : index
      %243 = vector.load %arg14[%242, %c4_262, %c0_263, %c0_264] : memref<13x13x16x128xf32, #tpu.memory_space<vmem>>, vector<1x1x16x128xf32>
      %244 = vector.shape_cast %243 : vector<1x1x16x128xf32> to vector<16x128xf32>
      %c2_i32_265 = arith.constant 2 : i32
      %245 = arith.addi %74, %c2_i32_265 : i32
      %246 = arith.index_cast %245 : i32 to index
      %c5_266 = arith.constant 5 : index
      %c0_267 = arith.constant 0 : index
      %c0_268 = arith.constant 0 : index
      %247 = vector.load %arg14[%246, %c5_266, %c0_267, %c0_268] : memref<13x13x16x128xf32, #tpu.memory_space<vmem>>, vector<1x1x16x128xf32>
      %248 = vector.shape_cast %247 : vector<1x1x16x128xf32> to vector<16x128xf32>
      %249 = tpu.concatenate %216, %220, %224, %228, %232, %236, %240, %244, %248 in 0 : vector<16x128xf32>, vector<16x128xf32>, vector<16x128xf32>, vector<16x128xf32>, vector<16x128xf32>, vector<16x128xf32>, vector<16x128xf32>, vector<16x128xf32>, vector<16x128xf32> -> vector<144x128xf32>
      %cst_269 = arith.constant dense<0.000000e+00> : vector<16x128xf32>
      %250 = tpu.matmul %4, %249, %cst_269 {dimension_numbers = #tpu.dot_dimension_numbers<[1], [0], [0], [1], [0, 0, 1, 1], [], []>} : vector<16x144xf32>, vector<144x128xf32>, vector<16x128xf32> -> vector<16x128xf32>
      %251 = vector.broadcast %5 : vector<16x1xf32> to vector<16x128xf32>
      %252 = arith.addf %250, %251 : vector<16x128xf32>
      %cst_270 = arith.constant 0.000000e+00 : f32
      %253 = vector.broadcast %cst_270 : f32 to vector<16x128xf32>
      %254 = arith.maximumf %252, %253 : vector<16x128xf32>
      %255 = arith.index_cast %74 : i32 to index
      %c3_271 = arith.constant 3 : index
      %c0_272 = arith.constant 0 : index
      %c0_273 = arith.constant 0 : index
      %256 = vector.load %arg15[%255, %c3_271, %c0_272, %c0_273] : memref<11x11x16x128xf32, #tpu.memory_space<vmem>>, vector<1x1x16x128xf32>
      %257 = vector.shape_cast %256 : vector<1x1x16x128xf32> to vector<16x128xf32>
      %258 = vector.shape_cast %254 : vector<16x128xf32> to vector<1x1x16x128xf32>
      tpu.vector_store %arg15[%255, %c3_271, %c0_272, %c0_273], %258 {strides = array<i32>} : memref<11x11x16x128xf32, #tpu.memory_space<vmem>>, vector<1x1x16x128xf32>,
      %c0_i32_274 = arith.constant 0 : i32
      %259 = arith.addi %74, %c0_i32_274 : i32
      %260 = arith.index_cast %259 : i32 to index
      %c4_275 = arith.constant 4 : index
      %c0_276 = arith.constant 0 : index
      %c0_277 = arith.constant 0 : index
      %261 = vector.load %arg14[%260, %c4_275, %c0_276, %c0_277] : memref<13x13x16x128xf32, #tpu.memory_space<vmem>>, vector<1x1x16x128xf32>
      %262 = vector.shape_cast %261 : vector<1x1x16x128xf32> to vector<16x128xf32>
      %c0_i32_278 = arith.constant 0 : i32
      %263 = arith.addi %74, %c0_i32_278 : i32
      %264 = arith.index_cast %263 : i32 to index
      %c5_279 = arith.constant 5 : index
      %c0_280 = arith.constant 0 : index
      %c0_281 = arith.constant 0 : index
      %265 = vector.load %arg14[%264, %c5_279, %c0_280, %c0_281] : memref<13x13x16x128xf32, #tpu.memory_space<vmem>>, vector<1x1x16x128xf32>
      %266 = vector.shape_cast %265 : vector<1x1x16x128xf32> to vector<16x128xf32>
      %c0_i32_282 = arith.constant 0 : i32
      %267 = arith.addi %74, %c0_i32_282 : i32
      %268 = arith.index_cast %267 : i32 to index
      %c6 = arith.constant 6 : index
      %c0_283 = arith.constant 0 : index
      %c0_284 = arith.constant 0 : index
      %269 = vector.load %arg14[%268, %c6, %c0_283, %c0_284] : memref<13x13x16x128xf32, #tpu.memory_space<vmem>>, vector<1x1x16x128xf32>
      %270 = vector.shape_cast %269 : vector<1x1x16x128xf32> to vector<16x128xf32>
      %c1_i32_285 = arith.constant 1 : i32
      %271 = arith.addi %74, %c1_i32_285 : i32
      %272 = arith.index_cast %271 : i32 to index
      %c4_286 = arith.constant 4 : index
      %c0_287 = arith.constant 0 : index
      %c0_288 = arith.constant 0 : index
      %273 = vector.load %arg14[%272, %c4_286, %c0_287, %c0_288] : memref<13x13x16x128xf32, #tpu.memory_space<vmem>>, vector<1x1x16x128xf32>
      %274 = vector.shape_cast %273 : vector<1x1x16x128xf32> to vector<16x128xf32>
      %c1_i32_289 = arith.constant 1 : i32
      %275 = arith.addi %74, %c1_i32_289 : i32
      %276 = arith.index_cast %275 : i32 to index
      %c5_290 = arith.constant 5 : index
      %c0_291 = arith.constant 0 : index
      %c0_292 = arith.constant 0 : index
      %277 = vector.load %arg14[%276, %c5_290, %c0_291, %c0_292] : memref<13x13x16x128xf32, #tpu.memory_space<vmem>>, vector<1x1x16x128xf32>
      %278 = vector.shape_cast %277 : vector<1x1x16x128xf32> to vector<16x128xf32>
      %c1_i32_293 = arith.constant 1 : i32
      %279 = arith.addi %74, %c1_i32_293 : i32
      %280 = arith.index_cast %279 : i32 to index
      %c6_294 = arith.constant 6 : index
      %c0_295 = arith.constant 0 : index
      %c0_296 = arith.constant 0 : index
      %281 = vector.load %arg14[%280, %c6_294, %c0_295, %c0_296] : memref<13x13x16x128xf32, #tpu.memory_space<vmem>>, vector<1x1x16x128xf32>
      %282 = vector.shape_cast %281 : vector<1x1x16x128xf32> to vector<16x128xf32>
      %c2_i32_297 = arith.constant 2 : i32
      %283 = arith.addi %74, %c2_i32_297 : i32
      %284 = arith.index_cast %283 : i32 to index
      %c4_298 = arith.constant 4 : index
      %c0_299 = arith.constant 0 : index
      %c0_300 = arith.constant 0 : index
      %285 = vector.load %arg14[%284, %c4_298, %c0_299, %c0_300] : memref<13x13x16x128xf32, #tpu.memory_space<vmem>>, vector<1x1x16x128xf32>
      %286 = vector.shape_cast %285 : vector<1x1x16x128xf32> to vector<16x128xf32>
      %c2_i32_301 = arith.constant 2 : i32
      %287 = arith.addi %74, %c2_i32_301 : i32
      %288 = arith.index_cast %287 : i32 to index
      %c5_302 = arith.constant 5 : index
      %c0_303 = arith.constant 0 : index
      %c0_304 = arith.constant 0 : index
      %289 = vector.load %arg14[%288, %c5_302, %c0_303, %c0_304] : memref<13x13x16x128xf32, #tpu.memory_space<vmem>>, vector<1x1x16x128xf32>
      %290 = vector.shape_cast %289 : vector<1x1x16x128xf32> to vector<16x128xf32>
      %c2_i32_305 = arith.constant 2 : i32
      %291 = arith.addi %74, %c2_i32_305 : i32
      %292 = arith.index_cast %291 : i32 to index
      %c6_306 = arith.constant 6 : index
      %c0_307 = arith.constant 0 : index
      %c0_308 = arith.constant 0 : index
      %293 = vector.load %arg14[%292, %c6_306, %c0_307, %c0_308] : memref<13x13x16x128xf32, #tpu.memory_space<vmem>>, vector<1x1x16x128xf32>
      %294 = vector.shape_cast %293 : vector<1x1x16x128xf32> to vector<16x128xf32>
      %295 = tpu.concatenate %262, %266, %270, %274, %278, %282, %286, %290, %294 in 0 : vector<16x128xf32>, vector<16x128xf32>, vector<16x128xf32>, vector<16x128xf32>, vector<16x128xf32>, vector<16x128xf32>, vector<16x128xf32>, vector<16x128xf32>, vector<16x128xf32> -> vector<144x128xf32>
      %cst_309 = arith.constant dense<0.000000e+00> : vector<16x128xf32>
      %296 = tpu.matmul %4, %295, %cst_309 {dimension_numbers = #tpu.dot_dimension_numbers<[1], [0], [0], [1], [0, 0, 1, 1], [], []>} : vector<16x144xf32>, vector<144x128xf32>, vector<16x128xf32> -> vector<16x128xf32>
      %297 = vector.broadcast %5 : vector<16x1xf32> to vector<16x128xf32>
      %298 = arith.addf %296, %297 : vector<16x128xf32>
      %cst_310 = arith.constant 0.000000e+00 : f32
      %299 = vector.broadcast %cst_310 : f32 to vector<16x128xf32>
      %300 = arith.maximumf %298, %299 : vector<16x128xf32>
      %301 = arith.index_cast %74 : i32 to index
      %c4_311 = arith.constant 4 : index
      %c0_312 = arith.constant 0 : index
      %c0_313 = arith.constant 0 : index
      %302 = vector.load %arg15[%301, %c4_311, %c0_312, %c0_313] : memref<11x11x16x128xf32, #tpu.memory_space<vmem>>, vector<1x1x16x128xf32>
      %303 = vector.shape_cast %302 : vector<1x1x16x128xf32> to vector<16x128xf32>
      %304 = vector.shape_cast %300 : vector<16x128xf32> to vector<1x1x16x128xf32>
      tpu.vector_store %arg15[%301, %c4_311, %c0_312, %c0_313], %304 {strides = array<i32>} : memref<11x11x16x128xf32, #tpu.memory_space<vmem>>, vector<1x1x16x128xf32>,
      %c0_i32_314 = arith.constant 0 : i32
      %305 = arith.addi %74, %c0_i32_314 : i32
      %306 = arith.index_cast %305 : i32 to index
      %c5_315 = arith.constant 5 : index
      %c0_316 = arith.constant 0 : index
      %c0_317 = arith.constant 0 : index
      %307 = vector.load %arg14[%306, %c5_315, %c0_316, %c0_317] : memref<13x13x16x128xf32, #tpu.memory_space<vmem>>, vector<1x1x16x128xf32>
      %308 = vector.shape_cast %307 : vector<1x1x16x128xf32> to vector<16x128xf32>
      %c0_i32_318 = arith.constant 0 : i32
      %309 = arith.addi %74, %c0_i32_318 : i32
      %310 = arith.index_cast %309 : i32 to index
      %c6_319 = arith.constant 6 : index
      %c0_320 = arith.constant 0 : index
      %c0_321 = arith.constant 0 : index
      %311 = vector.load %arg14[%310, %c6_319, %c0_320, %c0_321] : memref<13x13x16x128xf32, #tpu.memory_space<vmem>>, vector<1x1x16x128xf32>
      %312 = vector.shape_cast %311 : vector<1x1x16x128xf32> to vector<16x128xf32>
      %c0_i32_322 = arith.constant 0 : i32
      %313 = arith.addi %74, %c0_i32_322 : i32
      %314 = arith.index_cast %313 : i32 to index
      %c7 = arith.constant 7 : index
      %c0_323 = arith.constant 0 : index
      %c0_324 = arith.constant 0 : index
      %315 = vector.load %arg14[%314, %c7, %c0_323, %c0_324] : memref<13x13x16x128xf32, #tpu.memory_space<vmem>>, vector<1x1x16x128xf32>
      %316 = vector.shape_cast %315 : vector<1x1x16x128xf32> to vector<16x128xf32>
      %c1_i32_325 = arith.constant 1 : i32
      %317 = arith.addi %74, %c1_i32_325 : i32
      %318 = arith.index_cast %317 : i32 to index
      %c5_326 = arith.constant 5 : index
      %c0_327 = arith.constant 0 : index
      %c0_328 = arith.constant 0 : index
      %319 = vector.load %arg14[%318, %c5_326, %c0_327, %c0_328] : memref<13x13x16x128xf32, #tpu.memory_space<vmem>>, vector<1x1x16x128xf32>
      %320 = vector.shape_cast %319 : vector<1x1x16x128xf32> to vector<16x128xf32>
      %c1_i32_329 = arith.constant 1 : i32
      %321 = arith.addi %74, %c1_i32_329 : i32
      %322 = arith.index_cast %321 : i32 to index
      %c6_330 = arith.constant 6 : index
      %c0_331 = arith.constant 0 : index
      %c0_332 = arith.constant 0 : index
      %323 = vector.load %arg14[%322, %c6_330, %c0_331, %c0_332] : memref<13x13x16x128xf32, #tpu.memory_space<vmem>>, vector<1x1x16x128xf32>
      %324 = vector.shape_cast %323 : vector<1x1x16x128xf32> to vector<16x128xf32>
      %c1_i32_333 = arith.constant 1 : i32
      %325 = arith.addi %74, %c1_i32_333 : i32
      %326 = arith.index_cast %325 : i32 to index
      %c7_334 = arith.constant 7 : index
      %c0_335 = arith.constant 0 : index
      %c0_336 = arith.constant 0 : index
      %327 = vector.load %arg14[%326, %c7_334, %c0_335, %c0_336] : memref<13x13x16x128xf32, #tpu.memory_space<vmem>>, vector<1x1x16x128xf32>
      %328 = vector.shape_cast %327 : vector<1x1x16x128xf32> to vector<16x128xf32>
      %c2_i32_337 = arith.constant 2 : i32
      %329 = arith.addi %74, %c2_i32_337 : i32
      %330 = arith.index_cast %329 : i32 to index
      %c5_338 = arith.constant 5 : index
      %c0_339 = arith.constant 0 : index
      %c0_340 = arith.constant 0 : index
      %331 = vector.load %arg14[%330, %c5_338, %c0_339, %c0_340] : memref<13x13x16x128xf32, #tpu.memory_space<vmem>>, vector<1x1x16x128xf32>
      %332 = vector.shape_cast %331 : vector<1x1x16x128xf32> to vector<16x128xf32>
      %c2_i32_341 = arith.constant 2 : i32
      %333 = arith.addi %74, %c2_i32_341 : i32
      %334 = arith.index_cast %333 : i32 to index
      %c6_342 = arith.constant 6 : index
      %c0_343 = arith.constant 0 : index
      %c0_344 = arith.constant 0 : index
      %335 = vector.load %arg14[%334, %c6_342, %c0_343, %c0_344] : memref<13x13x16x128xf32, #tpu.memory_space<vmem>>, vector<1x1x16x128xf32>
      %336 = vector.shape_cast %335 : vector<1x1x16x128xf32> to vector<16x128xf32>
      %c2_i32_345 = arith.constant 2 : i32
      %337 = arith.addi %74, %c2_i32_345 : i32
      %338 = arith.index_cast %337 : i32 to index
      %c7_346 = arith.constant 7 : index
      %c0_347 = arith.constant 0 : index
      %c0_348 = arith.constant 0 : index
      %339 = vector.load %arg14[%338, %c7_346, %c0_347, %c0_348] : memref<13x13x16x128xf32, #tpu.memory_space<vmem>>, vector<1x1x16x128xf32>
      %340 = vector.shape_cast %339 : vector<1x1x16x128xf32> to vector<16x128xf32>
      %341 = tpu.concatenate %308, %312, %316, %320, %324, %328, %332, %336, %340 in 0 : vector<16x128xf32>, vector<16x128xf32>, vector<16x128xf32>, vector<16x128xf32>, vector<16x128xf32>, vector<16x128xf32>, vector<16x128xf32>, vector<16x128xf32>, vector<16x128xf32> -> vector<144x128xf32>
      %cst_349 = arith.constant dense<0.000000e+00> : vector<16x128xf32>
      %342 = tpu.matmul %4, %341, %cst_349 {dimension_numbers = #tpu.dot_dimension_numbers<[1], [0], [0], [1], [0, 0, 1, 1], [], []>} : vector<16x144xf32>, vector<144x128xf32>, vector<16x128xf32> -> vector<16x128xf32>
      %343 = vector.broadcast %5 : vector<16x1xf32> to vector<16x128xf32>
      %344 = arith.addf %342, %343 : vector<16x128xf32>
      %cst_350 = arith.constant 0.000000e+00 : f32
      %345 = vector.broadcast %cst_350 : f32 to vector<16x128xf32>
      %346 = arith.maximumf %344, %345 : vector<16x128xf32>
      %347 = arith.index_cast %74 : i32 to index
      %c5_351 = arith.constant 5 : index
      %c0_352 = arith.constant 0 : index
      %c0_353 = arith.constant 0 : index
      %348 = vector.load %arg15[%347, %c5_351, %c0_352, %c0_353] : memref<11x11x16x128xf32, #tpu.memory_space<vmem>>, vector<1x1x16x128xf32>
      %349 = vector.shape_cast %348 : vector<1x1x16x128xf32> to vector<16x128xf32>
      %350 = vector.shape_cast %346 : vector<16x128xf32> to vector<1x1x16x128xf32>
      tpu.vector_store %arg15[%347, %c5_351, %c0_352, %c0_353], %350 {strides = array<i32>} : memref<11x11x16x128xf32, #tpu.memory_space<vmem>>, vector<1x1x16x128xf32>,
      %c0_i32_354 = arith.constant 0 : i32
      %351 = arith.addi %74, %c0_i32_354 : i32
      %352 = arith.index_cast %351 : i32 to index
      %c6_355 = arith.constant 6 : index
      %c0_356 = arith.constant 0 : index
      %c0_357 = arith.constant 0 : index
      %353 = vector.load %arg14[%352, %c6_355, %c0_356, %c0_357] : memref<13x13x16x128xf32, #tpu.memory_space<vmem>>, vector<1x1x16x128xf32>
      %354 = vector.shape_cast %353 : vector<1x1x16x128xf32> to vector<16x128xf32>
      %c0_i32_358 = arith.constant 0 : i32
      %355 = arith.addi %74, %c0_i32_358 : i32
      %356 = arith.index_cast %355 : i32 to index
      %c7_359 = arith.constant 7 : index
      %c0_360 = arith.constant 0 : index
      %c0_361 = arith.constant 0 : index
      %357 = vector.load %arg14[%356, %c7_359, %c0_360, %c0_361] : memref<13x13x16x128xf32, #tpu.memory_space<vmem>>, vector<1x1x16x128xf32>
      %358 = vector.shape_cast %357 : vector<1x1x16x128xf32> to vector<16x128xf32>
      %c0_i32_362 = arith.constant 0 : i32
      %359 = arith.addi %74, %c0_i32_362 : i32
      %360 = arith.index_cast %359 : i32 to index
      %c8 = arith.constant 8 : index
      %c0_363 = arith.constant 0 : index
      %c0_364 = arith.constant 0 : index
      %361 = vector.load %arg14[%360, %c8, %c0_363, %c0_364] : memref<13x13x16x128xf32, #tpu.memory_space<vmem>>, vector<1x1x16x128xf32>
      %362 = vector.shape_cast %361 : vector<1x1x16x128xf32> to vector<16x128xf32>
      %c1_i32_365 = arith.constant 1 : i32
      %363 = arith.addi %74, %c1_i32_365 : i32
      %364 = arith.index_cast %363 : i32 to index
      %c6_366 = arith.constant 6 : index
      %c0_367 = arith.constant 0 : index
      %c0_368 = arith.constant 0 : index
      %365 = vector.load %arg14[%364, %c6_366, %c0_367, %c0_368] : memref<13x13x16x128xf32, #tpu.memory_space<vmem>>, vector<1x1x16x128xf32>
      %366 = vector.shape_cast %365 : vector<1x1x16x128xf32> to vector<16x128xf32>
      %c1_i32_369 = arith.constant 1 : i32
      %367 = arith.addi %74, %c1_i32_369 : i32
      %368 = arith.index_cast %367 : i32 to index
      %c7_370 = arith.constant 7 : index
      %c0_371 = arith.constant 0 : index
      %c0_372 = arith.constant 0 : index
      %369 = vector.load %arg14[%368, %c7_370, %c0_371, %c0_372] : memref<13x13x16x128xf32, #tpu.memory_space<vmem>>, vector<1x1x16x128xf32>
      %370 = vector.shape_cast %369 : vector<1x1x16x128xf32> to vector<16x128xf32>
      %c1_i32_373 = arith.constant 1 : i32
      %371 = arith.addi %74, %c1_i32_373 : i32
      %372 = arith.index_cast %371 : i32 to index
      %c8_374 = arith.constant 8 : index
      %c0_375 = arith.constant 0 : index
      %c0_376 = arith.constant 0 : index
      %373 = vector.load %arg14[%372, %c8_374, %c0_375, %c0_376] : memref<13x13x16x128xf32, #tpu.memory_space<vmem>>, vector<1x1x16x128xf32>
      %374 = vector.shape_cast %373 : vector<1x1x16x128xf32> to vector<16x128xf32>
      %c2_i32_377 = arith.constant 2 : i32
      %375 = arith.addi %74, %c2_i32_377 : i32
      %376 = arith.index_cast %375 : i32 to index
      %c6_378 = arith.constant 6 : index
      %c0_379 = arith.constant 0 : index
      %c0_380 = arith.constant 0 : index
      %377 = vector.load %arg14[%376, %c6_378, %c0_379, %c0_380] : memref<13x13x16x128xf32, #tpu.memory_space<vmem>>, vector<1x1x16x128xf32>
      %378 = vector.shape_cast %377 : vector<1x1x16x128xf32> to vector<16x128xf32>
      %c2_i32_381 = arith.constant 2 : i32
      %379 = arith.addi %74, %c2_i32_381 : i32
      %380 = arith.index_cast %379 : i32 to index
      %c7_382 = arith.constant 7 : index
      %c0_383 = arith.constant 0 : index
      %c0_384 = arith.constant 0 : index
      %381 = vector.load %arg14[%380, %c7_382, %c0_383, %c0_384] : memref<13x13x16x128xf32, #tpu.memory_space<vmem>>, vector<1x1x16x128xf32>
      %382 = vector.shape_cast %381 : vector<1x1x16x128xf32> to vector<16x128xf32>
      %c2_i32_385 = arith.constant 2 : i32
      %383 = arith.addi %74, %c2_i32_385 : i32
      %384 = arith.index_cast %383 : i32 to index
      %c8_386 = arith.constant 8 : index
      %c0_387 = arith.constant 0 : index
      %c0_388 = arith.constant 0 : index
      %385 = vector.load %arg14[%384, %c8_386, %c0_387, %c0_388] : memref<13x13x16x128xf32, #tpu.memory_space<vmem>>, vector<1x1x16x128xf32>
      %386 = vector.shape_cast %385 : vector<1x1x16x128xf32> to vector<16x128xf32>
      %387 = tpu.concatenate %354, %358, %362, %366, %370, %374, %378, %382, %386 in 0 : vector<16x128xf32>, vector<16x128xf32>, vector<16x128xf32>, vector<16x128xf32>, vector<16x128xf32>, vector<16x128xf32>, vector<16x128xf32>, vector<16x128xf32>, vector<16x128xf32> -> vector<144x128xf32>
      %cst_389 = arith.constant dense<0.000000e+00> : vector<16x128xf32>
      %388 = tpu.matmul %4, %387, %cst_389 {dimension_numbers = #tpu.dot_dimension_numbers<[1], [0], [0], [1], [0, 0, 1, 1], [], []>} : vector<16x144xf32>, vector<144x128xf32>, vector<16x128xf32> -> vector<16x128xf32>
      %389 = vector.broadcast %5 : vector<16x1xf32> to vector<16x128xf32>
      %390 = arith.addf %388, %389 : vector<16x128xf32>
      %cst_390 = arith.constant 0.000000e+00 : f32
      %391 = vector.broadcast %cst_390 : f32 to vector<16x128xf32>
      %392 = arith.maximumf %390, %391 : vector<16x128xf32>
      %393 = arith.index_cast %74 : i32 to index
      %c6_391 = arith.constant 6 : index
      %c0_392 = arith.constant 0 : index
      %c0_393 = arith.constant 0 : index
      %394 = vector.load %arg15[%393, %c6_391, %c0_392, %c0_393] : memref<11x11x16x128xf32, #tpu.memory_space<vmem>>, vector<1x1x16x128xf32>
      %395 = vector.shape_cast %394 : vector<1x1x16x128xf32> to vector<16x128xf32>
      %396 = vector.shape_cast %392 : vector<16x128xf32> to vector<1x1x16x128xf32>
      tpu.vector_store %arg15[%393, %c6_391, %c0_392, %c0_393], %396 {strides = array<i32>} : memref<11x11x16x128xf32, #tpu.memory_space<vmem>>, vector<1x1x16x128xf32>,
      %c0_i32_394 = arith.constant 0 : i32
      %397 = arith.addi %74, %c0_i32_394 : i32
      %398 = arith.index_cast %397 : i32 to index
      %c7_395 = arith.constant 7 : index
      %c0_396 = arith.constant 0 : index
      %c0_397 = arith.constant 0 : index
      %399 = vector.load %arg14[%398, %c7_395, %c0_396, %c0_397] : memref<13x13x16x128xf32, #tpu.memory_space<vmem>>, vector<1x1x16x128xf32>
      %400 = vector.shape_cast %399 : vector<1x1x16x128xf32> to vector<16x128xf32>
      %c0_i32_398 = arith.constant 0 : i32
      %401 = arith.addi %74, %c0_i32_398 : i32
      %402 = arith.index_cast %401 : i32 to index
      %c8_399 = arith.constant 8 : index
      %c0_400 = arith.constant 0 : index
      %c0_401 = arith.constant 0 : index
      %403 = vector.load %arg14[%402, %c8_399, %c0_400, %c0_401] : memref<13x13x16x128xf32, #tpu.memory_space<vmem>>, vector<1x1x16x128xf32>
      %404 = vector.shape_cast %403 : vector<1x1x16x128xf32> to vector<16x128xf32>
      %c0_i32_402 = arith.constant 0 : i32
      %405 = arith.addi %74, %c0_i32_402 : i32
      %406 = arith.index_cast %405 : i32 to index
      %c9 = arith.constant 9 : index
      %c0_403 = arith.constant 0 : index
      %c0_404 = arith.constant 0 : index
      %407 = vector.load %arg14[%406, %c9, %c0_403, %c0_404] : memref<13x13x16x128xf32, #tpu.memory_space<vmem>>, vector<1x1x16x128xf32>
      %408 = vector.shape_cast %407 : vector<1x1x16x128xf32> to vector<16x128xf32>
      %c1_i32_405 = arith.constant 1 : i32
      %409 = arith.addi %74, %c1_i32_405 : i32
      %410 = arith.index_cast %409 : i32 to index
      %c7_406 = arith.constant 7 : index
      %c0_407 = arith.constant 0 : index
      %c0_408 = arith.constant 0 : index
      %411 = vector.load %arg14[%410, %c7_406, %c0_407, %c0_408] : memref<13x13x16x128xf32, #tpu.memory_space<vmem>>, vector<1x1x16x128xf32>
      %412 = vector.shape_cast %411 : vector<1x1x16x128xf32> to vector<16x128xf32>
      %c1_i32_409 = arith.constant 1 : i32
      %413 = arith.addi %74, %c1_i32_409 : i32
      %414 = arith.index_cast %413 : i32 to index
      %c8_410 = arith.constant 8 : index
      %c0_411 = arith.constant 0 : index
      %c0_412 = arith.constant 0 : index
      %415 = vector.load %arg14[%414, %c8_410, %c0_411, %c0_412] : memref<13x13x16x128xf32, #tpu.memory_space<vmem>>, vector<1x1x16x128xf32>
      %416 = vector.shape_cast %415 : vector<1x1x16x128xf32> to vector<16x128xf32>
      %c1_i32_413 = arith.constant 1 : i32
      %417 = arith.addi %74, %c1_i32_413 : i32
      %418 = arith.index_cast %417 : i32 to index
      %c9_414 = arith.constant 9 : index
      %c0_415 = arith.constant 0 : index
      %c0_416 = arith.constant 0 : index
      %419 = vector.load %arg14[%418, %c9_414, %c0_415, %c0_416] : memref<13x13x16x128xf32, #tpu.memory_space<vmem>>, vector<1x1x16x128xf32>
      %420 = vector.shape_cast %419 : vector<1x1x16x128xf32> to vector<16x128xf32>
      %c2_i32_417 = arith.constant 2 : i32
      %421 = arith.addi %74, %c2_i32_417 : i32
      %422 = arith.index_cast %421 : i32 to index
      %c7_418 = arith.constant 7 : index
      %c0_419 = arith.constant 0 : index
      %c0_420 = arith.constant 0 : index
      %423 = vector.load %arg14[%422, %c7_418, %c0_419, %c0_420] : memref<13x13x16x128xf32, #tpu.memory_space<vmem>>, vector<1x1x16x128xf32>
      %424 = vector.shape_cast %423 : vector<1x1x16x128xf32> to vector<16x128xf32>
      %c2_i32_421 = arith.constant 2 : i32
      %425 = arith.addi %74, %c2_i32_421 : i32
      %426 = arith.index_cast %425 : i32 to index
      %c8_422 = arith.constant 8 : index
      %c0_423 = arith.constant 0 : index
      %c0_424 = arith.constant 0 : index
      %427 = vector.load %arg14[%426, %c8_422, %c0_423, %c0_424] : memref<13x13x16x128xf32, #tpu.memory_space<vmem>>, vector<1x1x16x128xf32>
      %428 = vector.shape_cast %427 : vector<1x1x16x128xf32> to vector<16x128xf32>
      %c2_i32_425 = arith.constant 2 : i32
      %429 = arith.addi %74, %c2_i32_425 : i32
      %430 = arith.index_cast %429 : i32 to index
      %c9_426 = arith.constant 9 : index
      %c0_427 = arith.constant 0 : index
      %c0_428 = arith.constant 0 : index
      %431 = vector.load %arg14[%430, %c9_426, %c0_427, %c0_428] : memref<13x13x16x128xf32, #tpu.memory_space<vmem>>, vector<1x1x16x128xf32>
      %432 = vector.shape_cast %431 : vector<1x1x16x128xf32> to vector<16x128xf32>
      %433 = tpu.concatenate %400, %404, %408, %412, %416, %420, %424, %428, %432 in 0 : vector<16x128xf32>, vector<16x128xf32>, vector<16x128xf32>, vector<16x128xf32>, vector<16x128xf32>, vector<16x128xf32>, vector<16x128xf32>, vector<16x128xf32>, vector<16x128xf32> -> vector<144x128xf32>
      %cst_429 = arith.constant dense<0.000000e+00> : vector<16x128xf32>
      %434 = tpu.matmul %4, %433, %cst_429 {dimension_numbers = #tpu.dot_dimension_numbers<[1], [0], [0], [1], [0, 0, 1, 1], [], []>} : vector<16x144xf32>, vector<144x128xf32>, vector<16x128xf32> -> vector<16x128xf32>
      %435 = vector.broadcast %5 : vector<16x1xf32> to vector<16x128xf32>
      %436 = arith.addf %434, %435 : vector<16x128xf32>
      %cst_430 = arith.constant 0.000000e+00 : f32
      %437 = vector.broadcast %cst_430 : f32 to vector<16x128xf32>
      %438 = arith.maximumf %436, %437 : vector<16x128xf32>
      %439 = arith.index_cast %74 : i32 to index
      %c7_431 = arith.constant 7 : index
      %c0_432 = arith.constant 0 : index
      %c0_433 = arith.constant 0 : index
      %440 = vector.load %arg15[%439, %c7_431, %c0_432, %c0_433] : memref<11x11x16x128xf32, #tpu.memory_space<vmem>>, vector<1x1x16x128xf32>
      %441 = vector.shape_cast %440 : vector<1x1x16x128xf32> to vector<16x128xf32>
      %442 = vector.shape_cast %438 : vector<16x128xf32> to vector<1x1x16x128xf32>
      tpu.vector_store %arg15[%439, %c7_431, %c0_432, %c0_433], %442 {strides = array<i32>} : memref<11x11x16x128xf32, #tpu.memory_space<vmem>>, vector<1x1x16x128xf32>,
      %c0_i32_434 = arith.constant 0 : i32
      %443 = arith.addi %74, %c0_i32_434 : i32
      %444 = arith.index_cast %443 : i32 to index
      %c8_435 = arith.constant 8 : index
      %c0_436 = arith.constant 0 : index
      %c0_437 = arith.constant 0 : index
      %445 = vector.load %arg14[%444, %c8_435, %c0_436, %c0_437] : memref<13x13x16x128xf32, #tpu.memory_space<vmem>>, vector<1x1x16x128xf32>
      %446 = vector.shape_cast %445 : vector<1x1x16x128xf32> to vector<16x128xf32>
      %c0_i32_438 = arith.constant 0 : i32
      %447 = arith.addi %74, %c0_i32_438 : i32
      %448 = arith.index_cast %447 : i32 to index
      %c9_439 = arith.constant 9 : index
      %c0_440 = arith.constant 0 : index
      %c0_441 = arith.constant 0 : index
      %449 = vector.load %arg14[%448, %c9_439, %c0_440, %c0_441] : memref<13x13x16x128xf32, #tpu.memory_space<vmem>>, vector<1x1x16x128xf32>
      %450 = vector.shape_cast %449 : vector<1x1x16x128xf32> to vector<16x128xf32>
      %c0_i32_442 = arith.constant 0 : i32
      %451 = arith.addi %74, %c0_i32_442 : i32
      %452 = arith.index_cast %451 : i32 to index
      %c10 = arith.constant 10 : index
      %c0_443 = arith.constant 0 : index
      %c0_444 = arith.constant 0 : index
      %453 = vector.load %arg14[%452, %c10, %c0_443, %c0_444] : memref<13x13x16x128xf32, #tpu.memory_space<vmem>>, vector<1x1x16x128xf32>
      %454 = vector.shape_cast %453 : vector<1x1x16x128xf32> to vector<16x128xf32>
      %c1_i32_445 = arith.constant 1 : i32
      %455 = arith.addi %74, %c1_i32_445 : i32
      %456 = arith.index_cast %455 : i32 to index
      %c8_446 = arith.constant 8 : index
      %c0_447 = arith.constant 0 : index
      %c0_448 = arith.constant 0 : index
      %457 = vector.load %arg14[%456, %c8_446, %c0_447, %c0_448] : memref<13x13x16x128xf32, #tpu.memory_space<vmem>>, vector<1x1x16x128xf32>
      %458 = vector.shape_cast %457 : vector<1x1x16x128xf32> to vector<16x128xf32>
      %c1_i32_449 = arith.constant 1 : i32
      %459 = arith.addi %74, %c1_i32_449 : i32
      %460 = arith.index_cast %459 : i32 to index
      %c9_450 = arith.constant 9 : index
      %c0_451 = arith.constant 0 : index
      %c0_452 = arith.constant 0 : index
      %461 = vector.load %arg14[%460, %c9_450, %c0_451, %c0_452] : memref<13x13x16x128xf32, #tpu.memory_space<vmem>>, vector<1x1x16x128xf32>
      %462 = vector.shape_cast %461 : vector<1x1x16x128xf32> to vector<16x128xf32>
      %c1_i32_453 = arith.constant 1 : i32
      %463 = arith.addi %74, %c1_i32_453 : i32
      %464 = arith.index_cast %463 : i32 to index
      %c10_454 = arith.constant 10 : index
      %c0_455 = arith.constant 0 : index
      %c0_456 = arith.constant 0 : index
      %465 = vector.load %arg14[%464, %c10_454, %c0_455, %c0_456] : memref<13x13x16x128xf32, #tpu.memory_space<vmem>>, vector<1x1x16x128xf32>
      %466 = vector.shape_cast %465 : vector<1x1x16x128xf32> to vector<16x128xf32>
      %c2_i32_457 = arith.constant 2 : i32
      %467 = arith.addi %74, %c2_i32_457 : i32
      %468 = arith.index_cast %467 : i32 to index
      %c8_458 = arith.constant 8 : index
      %c0_459 = arith.constant 0 : index
      %c0_460 = arith.constant 0 : index
      %469 = vector.load %arg14[%468, %c8_458, %c0_459, %c0_460] : memref<13x13x16x128xf32, #tpu.memory_space<vmem>>, vector<1x1x16x128xf32>
      %470 = vector.shape_cast %469 : vector<1x1x16x128xf32> to vector<16x128xf32>
      %c2_i32_461 = arith.constant 2 : i32
      %471 = arith.addi %74, %c2_i32_461 : i32
      %472 = arith.index_cast %471 : i32 to index
      %c9_462 = arith.constant 9 : index
      %c0_463 = arith.constant 0 : index
      %c0_464 = arith.constant 0 : index
      %473 = vector.load %arg14[%472, %c9_462, %c0_463, %c0_464] : memref<13x13x16x128xf32, #tpu.memory_space<vmem>>, vector<1x1x16x128xf32>
      %474 = vector.shape_cast %473 : vector<1x1x16x128xf32> to vector<16x128xf32>
      %c2_i32_465 = arith.constant 2 : i32
      %475 = arith.addi %74, %c2_i32_465 : i32
      %476 = arith.index_cast %475 : i32 to index
      %c10_466 = arith.constant 10 : index
      %c0_467 = arith.constant 0 : index
      %c0_468 = arith.constant 0 : index
      %477 = vector.load %arg14[%476, %c10_466, %c0_467, %c0_468] : memref<13x13x16x128xf32, #tpu.memory_space<vmem>>, vector<1x1x16x128xf32>
      %478 = vector.shape_cast %477 : vector<1x1x16x128xf32> to vector<16x128xf32>
      %479 = tpu.concatenate %446, %450, %454, %458, %462, %466, %470, %474, %478 in 0 : vector<16x128xf32>, vector<16x128xf32>, vector<16x128xf32>, vector<16x128xf32>, vector<16x128xf32>, vector<16x128xf32>, vector<16x128xf32>, vector<16x128xf32>, vector<16x128xf32> -> vector<144x128xf32>
      %cst_469 = arith.constant dense<0.000000e+00> : vector<16x128xf32>
      %480 = tpu.matmul %4, %479, %cst_469 {dimension_numbers = #tpu.dot_dimension_numbers<[1], [0], [0], [1], [0, 0, 1, 1], [], []>} : vector<16x144xf32>, vector<144x128xf32>, vector<16x128xf32> -> vector<16x128xf32>
      %481 = vector.broadcast %5 : vector<16x1xf32> to vector<16x128xf32>
      %482 = arith.addf %480, %481 : vector<16x128xf32>
      %cst_470 = arith.constant 0.000000e+00 : f32
      %483 = vector.broadcast %cst_470 : f32 to vector<16x128xf32>
      %484 = arith.maximumf %482, %483 : vector<16x128xf32>
      %485 = arith.index_cast %74 : i32 to index
      %c8_471 = arith.constant 8 : index
      %c0_472 = arith.constant 0 : index
      %c0_473 = arith.constant 0 : index
      %486 = vector.load %arg15[%485, %c8_471, %c0_472, %c0_473] : memref<11x11x16x128xf32, #tpu.memory_space<vmem>>, vector<1x1x16x128xf32>
      %487 = vector.shape_cast %486 : vector<1x1x16x128xf32> to vector<16x128xf32>
      %488 = vector.shape_cast %484 : vector<16x128xf32> to vector<1x1x16x128xf32>
      tpu.vector_store %arg15[%485, %c8_471, %c0_472, %c0_473], %488 {strides = array<i32>} : memref<11x11x16x128xf32, #tpu.memory_space<vmem>>, vector<1x1x16x128xf32>,
      %c0_i32_474 = arith.constant 0 : i32
      %489 = arith.addi %74, %c0_i32_474 : i32
      %490 = arith.index_cast %489 : i32 to index
      %c9_475 = arith.constant 9 : index
      %c0_476 = arith.constant 0 : index
      %c0_477 = arith.constant 0 : index
      %491 = vector.load %arg14[%490, %c9_475, %c0_476, %c0_477] : memref<13x13x16x128xf32, #tpu.memory_space<vmem>>, vector<1x1x16x128xf32>
      %492 = vector.shape_cast %491 : vector<1x1x16x128xf32> to vector<16x128xf32>
      %c0_i32_478 = arith.constant 0 : i32
      %493 = arith.addi %74, %c0_i32_478 : i32
      %494 = arith.index_cast %493 : i32 to index
      %c10_479 = arith.constant 10 : index
      %c0_480 = arith.constant 0 : index
      %c0_481 = arith.constant 0 : index
      %495 = vector.load %arg14[%494, %c10_479, %c0_480, %c0_481] : memref<13x13x16x128xf32, #tpu.memory_space<vmem>>, vector<1x1x16x128xf32>
      %496 = vector.shape_cast %495 : vector<1x1x16x128xf32> to vector<16x128xf32>
      %c0_i32_482 = arith.constant 0 : i32
      %497 = arith.addi %74, %c0_i32_482 : i32
      %498 = arith.index_cast %497 : i32 to index
      %c11 = arith.constant 11 : index
      %c0_483 = arith.constant 0 : index
      %c0_484 = arith.constant 0 : index
      %499 = vector.load %arg14[%498, %c11, %c0_483, %c0_484] : memref<13x13x16x128xf32, #tpu.memory_space<vmem>>, vector<1x1x16x128xf32>
      %500 = vector.shape_cast %499 : vector<1x1x16x128xf32> to vector<16x128xf32>
      %c1_i32_485 = arith.constant 1 : i32
      %501 = arith.addi %74, %c1_i32_485 : i32
      %502 = arith.index_cast %501 : i32 to index
      %c9_486 = arith.constant 9 : index
      %c0_487 = arith.constant 0 : index
      %c0_488 = arith.constant 0 : index
      %503 = vector.load %arg14[%502, %c9_486, %c0_487, %c0_488] : memref<13x13x16x128xf32, #tpu.memory_space<vmem>>, vector<1x1x16x128xf32>
      %504 = vector.shape_cast %503 : vector<1x1x16x128xf32> to vector<16x128xf32>
      %c1_i32_489 = arith.constant 1 : i32
      %505 = arith.addi %74, %c1_i32_489 : i32
      %506 = arith.index_cast %505 : i32 to index
      %c10_490 = arith.constant 10 : index
      %c0_491 = arith.constant 0 : index
      %c0_492 = arith.constant 0 : index
      %507 = vector.load %arg14[%506, %c10_490, %c0_491, %c0_492] : memref<13x13x16x128xf32, #tpu.memory_space<vmem>>, vector<1x1x16x128xf32>
      %508 = vector.shape_cast %507 : vector<1x1x16x128xf32> to vector<16x128xf32>
      %c1_i32_493 = arith.constant 1 : i32
      %509 = arith.addi %74, %c1_i32_493 : i32
      %510 = arith.index_cast %509 : i32 to index
      %c11_494 = arith.constant 11 : index
      %c0_495 = arith.constant 0 : index
      %c0_496 = arith.constant 0 : index
      %511 = vector.load %arg14[%510, %c11_494, %c0_495, %c0_496] : memref<13x13x16x128xf32, #tpu.memory_space<vmem>>, vector<1x1x16x128xf32>
      %512 = vector.shape_cast %511 : vector<1x1x16x128xf32> to vector<16x128xf32>
      %c2_i32_497 = arith.constant 2 : i32
      %513 = arith.addi %74, %c2_i32_497 : i32
      %514 = arith.index_cast %513 : i32 to index
      %c9_498 = arith.constant 9 : index
      %c0_499 = arith.constant 0 : index
      %c0_500 = arith.constant 0 : index
      %515 = vector.load %arg14[%514, %c9_498, %c0_499, %c0_500] : memref<13x13x16x128xf32, #tpu.memory_space<vmem>>, vector<1x1x16x128xf32>
      %516 = vector.shape_cast %515 : vector<1x1x16x128xf32> to vector<16x128xf32>
      %c2_i32_501 = arith.constant 2 : i32
      %517 = arith.addi %74, %c2_i32_501 : i32
      %518 = arith.index_cast %517 : i32 to index
      %c10_502 = arith.constant 10 : index
      %c0_503 = arith.constant 0 : index
      %c0_504 = arith.constant 0 : index
      %519 = vector.load %arg14[%518, %c10_502, %c0_503, %c0_504] : memref<13x13x16x128xf32, #tpu.memory_space<vmem>>, vector<1x1x16x128xf32>
      %520 = vector.shape_cast %519 : vector<1x1x16x128xf32> to vector<16x128xf32>
      %c2_i32_505 = arith.constant 2 : i32
      %521 = arith.addi %74, %c2_i32_505 : i32
      %522 = arith.index_cast %521 : i32 to index
      %c11_506 = arith.constant 11 : index
      %c0_507 = arith.constant 0 : index
      %c0_508 = arith.constant 0 : index
      %523 = vector.load %arg14[%522, %c11_506, %c0_507, %c0_508] : memref<13x13x16x128xf32, #tpu.memory_space<vmem>>, vector<1x1x16x128xf32>
      %524 = vector.shape_cast %523 : vector<1x1x16x128xf32> to vector<16x128xf32>
      %525 = tpu.concatenate %492, %496, %500, %504, %508, %512, %516, %520, %524 in 0 : vector<16x128xf32>, vector<16x128xf32>, vector<16x128xf32>, vector<16x128xf32>, vector<16x128xf32>, vector<16x128xf32>, vector<16x128xf32>, vector<16x128xf32>, vector<16x128xf32> -> vector<144x128xf32>
      %cst_509 = arith.constant dense<0.000000e+00> : vector<16x128xf32>
      %526 = tpu.matmul %4, %525, %cst_509 {dimension_numbers = #tpu.dot_dimension_numbers<[1], [0], [0], [1], [0, 0, 1, 1], [], []>} : vector<16x144xf32>, vector<144x128xf32>, vector<16x128xf32> -> vector<16x128xf32>
      %527 = vector.broadcast %5 : vector<16x1xf32> to vector<16x128xf32>
      %528 = arith.addf %526, %527 : vector<16x128xf32>
      %cst_510 = arith.constant 0.000000e+00 : f32
      %529 = vector.broadcast %cst_510 : f32 to vector<16x128xf32>
      %530 = arith.maximumf %528, %529 : vector<16x128xf32>
      %531 = arith.index_cast %74 : i32 to index
      %c9_511 = arith.constant 9 : index
      %c0_512 = arith.constant 0 : index
      %c0_513 = arith.constant 0 : index
      %532 = vector.load %arg15[%531, %c9_511, %c0_512, %c0_513] : memref<11x11x16x128xf32, #tpu.memory_space<vmem>>, vector<1x1x16x128xf32>
      %533 = vector.shape_cast %532 : vector<1x1x16x128xf32> to vector<16x128xf32>
      %534 = vector.shape_cast %530 : vector<16x128xf32> to vector<1x1x16x128xf32>
      tpu.vector_store %arg15[%531, %c9_511, %c0_512, %c0_513], %534 {strides = array<i32>} : memref<11x11x16x128xf32, #tpu.memory_space<vmem>>, vector<1x1x16x128xf32>,
      %c0_i32_514 = arith.constant 0 : i32
      %535 = arith.addi %74, %c0_i32_514 : i32
      %536 = arith.index_cast %535 : i32 to index
      %c10_515 = arith.constant 10 : index
      %c0_516 = arith.constant 0 : index
      %c0_517 = arith.constant 0 : index
      %537 = vector.load %arg14[%536, %c10_515, %c0_516, %c0_517] : memref<13x13x16x128xf32, #tpu.memory_space<vmem>>, vector<1x1x16x128xf32>
      %538 = vector.shape_cast %537 : vector<1x1x16x128xf32> to vector<16x128xf32>
      %c0_i32_518 = arith.constant 0 : i32
      %539 = arith.addi %74, %c0_i32_518 : i32
      %540 = arith.index_cast %539 : i32 to index
      %c11_519 = arith.constant 11 : index
      %c0_520 = arith.constant 0 : index
      %c0_521 = arith.constant 0 : index
      %541 = vector.load %arg14[%540, %c11_519, %c0_520, %c0_521] : memref<13x13x16x128xf32, #tpu.memory_space<vmem>>, vector<1x1x16x128xf32>
      %542 = vector.shape_cast %541 : vector<1x1x16x128xf32> to vector<16x128xf32>
      %c0_i32_522 = arith.constant 0 : i32
      %543 = arith.addi %74, %c0_i32_522 : i32
      %544 = arith.index_cast %543 : i32 to index
      %c12 = arith.constant 12 : index
      %c0_523 = arith.constant 0 : index
      %c0_524 = arith.constant 0 : index
      %545 = vector.load %arg14[%544, %c12, %c0_523, %c0_524] : memref<13x13x16x128xf32, #tpu.memory_space<vmem>>, vector<1x1x16x128xf32>
      %546 = vector.shape_cast %545 : vector<1x1x16x128xf32> to vector<16x128xf32>
      %c1_i32_525 = arith.constant 1 : i32
      %547 = arith.addi %74, %c1_i32_525 : i32
      %548 = arith.index_cast %547 : i32 to index
      %c10_526 = arith.constant 10 : index
      %c0_527 = arith.constant 0 : index
      %c0_528 = arith.constant 0 : index
      %549 = vector.load %arg14[%548, %c10_526, %c0_527, %c0_528] : memref<13x13x16x128xf32, #tpu.memory_space<vmem>>, vector<1x1x16x128xf32>
      %550 = vector.shape_cast %549 : vector<1x1x16x128xf32> to vector<16x128xf32>
      %c1_i32_529 = arith.constant 1 : i32
      %551 = arith.addi %74, %c1_i32_529 : i32
      %552 = arith.index_cast %551 : i32 to index
      %c11_530 = arith.constant 11 : index
      %c0_531 = arith.constant 0 : index
      %c0_532 = arith.constant 0 : index
      %553 = vector.load %arg14[%552, %c11_530, %c0_531, %c0_532] : memref<13x13x16x128xf32, #tpu.memory_space<vmem>>, vector<1x1x16x128xf32>
      %554 = vector.shape_cast %553 : vector<1x1x16x128xf32> to vector<16x128xf32>
      %c1_i32_533 = arith.constant 1 : i32
      %555 = arith.addi %74, %c1_i32_533 : i32
      %556 = arith.index_cast %555 : i32 to index
      %c12_534 = arith.constant 12 : index
      %c0_535 = arith.constant 0 : index
      %c0_536 = arith.constant 0 : index
      %557 = vector.load %arg14[%556, %c12_534, %c0_535, %c0_536] : memref<13x13x16x128xf32, #tpu.memory_space<vmem>>, vector<1x1x16x128xf32>
      %558 = vector.shape_cast %557 : vector<1x1x16x128xf32> to vector<16x128xf32>
      %c2_i32_537 = arith.constant 2 : i32
      %559 = arith.addi %74, %c2_i32_537 : i32
      %560 = arith.index_cast %559 : i32 to index
      %c10_538 = arith.constant 10 : index
      %c0_539 = arith.constant 0 : index
      %c0_540 = arith.constant 0 : index
      %561 = vector.load %arg14[%560, %c10_538, %c0_539, %c0_540] : memref<13x13x16x128xf32, #tpu.memory_space<vmem>>, vector<1x1x16x128xf32>
      %562 = vector.shape_cast %561 : vector<1x1x16x128xf32> to vector<16x128xf32>
      %c2_i32_541 = arith.constant 2 : i32
      %563 = arith.addi %74, %c2_i32_541 : i32
      %564 = arith.index_cast %563 : i32 to index
      %c11_542 = arith.constant 11 : index
      %c0_543 = arith.constant 0 : index
      %c0_544 = arith.constant 0 : index
      %565 = vector.load %arg14[%564, %c11_542, %c0_543, %c0_544] : memref<13x13x16x128xf32, #tpu.memory_space<vmem>>, vector<1x1x16x128xf32>
      %566 = vector.shape_cast %565 : vector<1x1x16x128xf32> to vector<16x128xf32>
      %c2_i32_545 = arith.constant 2 : i32
      %567 = arith.addi %74, %c2_i32_545 : i32
      %568 = arith.index_cast %567 : i32 to index
      %c12_546 = arith.constant 12 : index
      %c0_547 = arith.constant 0 : index
      %c0_548 = arith.constant 0 : index
      %569 = vector.load %arg14[%568, %c12_546, %c0_547, %c0_548] : memref<13x13x16x128xf32, #tpu.memory_space<vmem>>, vector<1x1x16x128xf32>
      %570 = vector.shape_cast %569 : vector<1x1x16x128xf32> to vector<16x128xf32>
      %571 = tpu.concatenate %538, %542, %546, %550, %554, %558, %562, %566, %570 in 0 : vector<16x128xf32>, vector<16x128xf32>, vector<16x128xf32>, vector<16x128xf32>, vector<16x128xf32>, vector<16x128xf32>, vector<16x128xf32>, vector<16x128xf32>, vector<16x128xf32> -> vector<144x128xf32>
      %cst_549 = arith.constant dense<0.000000e+00> : vector<16x128xf32>
      %572 = tpu.matmul %4, %571, %cst_549 {dimension_numbers = #tpu.dot_dimension_numbers<[1], [0], [0], [1], [0, 0, 1, 1], [], []>} : vector<16x144xf32>, vector<144x128xf32>, vector<16x128xf32> -> vector<16x128xf32>
      %573 = vector.broadcast %5 : vector<16x1xf32> to vector<16x128xf32>
      %574 = arith.addf %572, %573 : vector<16x128xf32>
      %cst_550 = arith.constant 0.000000e+00 : f32
      %575 = vector.broadcast %cst_550 : f32 to vector<16x128xf32>
      %576 = arith.maximumf %574, %575 : vector<16x128xf32>
      %577 = arith.index_cast %74 : i32 to index
      %c10_551 = arith.constant 10 : index
      %c0_552 = arith.constant 0 : index
      %c0_553 = arith.constant 0 : index
      %578 = vector.load %arg15[%577, %c10_551, %c0_552, %c0_553] : memref<11x11x16x128xf32, #tpu.memory_space<vmem>>, vector<1x1x16x128xf32>
      %579 = vector.shape_cast %578 : vector<1x1x16x128xf32> to vector<16x128xf32>
      %580 = vector.shape_cast %576 : vector<16x128xf32> to vector<1x1x16x128xf32>
      tpu.vector_store %arg15[%577, %c10_551, %c0_552, %c0_553], %580 {strides = array<i32>} : memref<11x11x16x128xf32, #tpu.memory_space<vmem>>, vector<1x1x16x128xf32>,
    }
    %c11_i32_14 = arith.constant 11 : i32
    %c0_i32_15 = arith.constant 0 : i32
    %c5_i32 = arith.constant 5 : i32
    %7 = arith.addi %c0_i32_15, %c5_i32 : i32
    %c1_i32_16 = arith.constant 1 : i32
    scf.for %arg18 = %c0_i32_15 to %7 step %c1_i32_16  : i32 {
      %c1_i32_112 = arith.constant 1 : i32
      %73 = arith.muli %arg18, %c1_i32_112 : i32
      %c0_i32_113 = arith.constant 0 : i32
      %74 = arith.addi %c0_i32_113, %73 : i32
      %c2_i32 = arith.constant 2 : i32
      %75 = arith.muli %c2_i32, %74 : i32
      %76 = arith.index_cast %75 : i32 to index
      %c0_114 = arith.constant 0 : index
      %c0_115 = arith.constant 0 : index
      %c0_116 = arith.constant 0 : index
      %77 = vector.load %arg15[%76, %c0_114, %c0_115, %c0_116] : memref<11x11x16x128xf32, #tpu.memory_space<vmem>>, vector<1x11x16x128xf32>
      %78 = vector.shape_cast %77 : vector<1x11x16x128xf32> to vector<11x16x128xf32>
      %c2_i32_117 = arith.constant 2 : i32
      %79 = arith.muli %c2_i32_117, %74 : i32
      %c1_i32_118 = arith.constant 1 : i32
      %80 = arith.addi %79, %c1_i32_118 : i32
      %81 = arith.index_cast %80 : i32 to index
      %c0_119 = arith.constant 0 : index
      %c0_120 = arith.constant 0 : index
      %c0_121 = arith.constant 0 : index
      %82 = vector.load %arg15[%81, %c0_119, %c0_120, %c0_121] : memref<11x11x16x128xf32, #tpu.memory_space<vmem>>, vector<1x11x16x128xf32>
      %83 = vector.shape_cast %82 : vector<1x11x16x128xf32> to vector<11x16x128xf32>
      %84 = arith.maximumf %78, %83 : vector<11x16x128xf32>
      %85 = vector.extract_strided_slice %84 {offsets = [0, 0, 0], sizes = [10, 16, 128], strides = [1, 1, 1]} : vector<11x16x128xf32> to vector<10x16x128xf32>
      %86 = vector.shape_cast %85 : vector<10x16x128xf32> to vector<5x2x16x128xf32>
      %87 = vector.extract_strided_slice %86 {offsets = [0, 0, 0, 0], sizes = [5, 1, 16, 128], strides = [1, 1, 1, 1]} : vector<5x2x16x128xf32> to vector<5x1x16x128xf32>
      %88 = vector.shape_cast %87 : vector<5x1x16x128xf32> to vector<5x16x128xf32>
      %89 = vector.extract_strided_slice %86 {offsets = [0, 1, 0, 0], sizes = [5, 1, 16, 128], strides = [1, 1, 1, 1]} : vector<5x2x16x128xf32> to vector<5x1x16x128xf32>
      %90 = vector.shape_cast %89 : vector<5x1x16x128xf32> to vector<5x16x128xf32>
      %91 = arith.maximumf %88, %90 : vector<5x16x128xf32>
      %92 = arith.index_cast %74 : i32 to index
      %c0_122 = arith.constant 0 : index
      %c0_123 = arith.constant 0 : index
      %c0_124 = arith.constant 0 : index
      %93 = vector.load %arg16[%92, %c0_122, %c0_123, %c0_124] : memref<5x5x16x128xf32, #tpu.memory_space<vmem>>, vector<1x5x16x128xf32>
      %94 = vector.shape_cast %93 : vector<1x5x16x128xf32> to vector<5x16x128xf32>
      %95 = vector.shape_cast %91 : vector<5x16x128xf32> to vector<1x5x16x128xf32>
      tpu.vector_store %arg16[%92, %c0_122, %c0_123, %c0_124], %95 {strides = array<i32>} : memref<5x5x16x128xf32, #tpu.memory_space<vmem>>, vector<1x5x16x128xf32>,
    }
    %c5_i32_17 = arith.constant 5 : i32
    %c0_18 = arith.constant 0 : index
    %c0_19 = arith.constant 0 : index
    %8 = vector.load %arg6[%c0_18, %c0_19] : memref<16x144xf32, #tpu.memory_space<vmem>>, vector<16x144xf32>
    %c0_20 = arith.constant 0 : index
    %c0_21 = arith.constant 0 : index
    %9 = vector.load %arg7[%c0_20, %c0_21] : memref<16x1xf32, #tpu.memory_space<vmem>>, vector<16x1xf32>
    %c0_i32_22 = arith.constant 0 : i32
    %c3_i32 = arith.constant 3 : i32
    %10 = arith.addi %c0_i32_22, %c3_i32 : i32
    %c1_i32_23 = arith.constant 1 : i32
    scf.for %arg18 = %c0_i32_22 to %10 step %c1_i32_23  : i32 {
      %c1_i32_112 = arith.constant 1 : i32
      %73 = arith.muli %arg18, %c1_i32_112 : i32
      %c0_i32_113 = arith.constant 0 : i32
      %74 = arith.addi %c0_i32_113, %73 : i32
      %c0_i32_114 = arith.constant 0 : i32
      %75 = arith.addi %74, %c0_i32_114 : i32
      %76 = arith.index_cast %75 : i32 to index
      %c0_115 = arith.constant 0 : index
      %c0_116 = arith.constant 0 : index
      %c0_117 = arith.constant 0 : index
      %77 = vector.load %arg16[%76, %c0_115, %c0_116, %c0_117] : memref<5x5x16x128xf32, #tpu.memory_space<vmem>>, vector<1x1x16x128xf32>
      %78 = vector.shape_cast %77 : vector<1x1x16x128xf32> to vector<16x128xf32>
      %c0_i32_118 = arith.constant 0 : i32
      %79 = arith.addi %74, %c0_i32_118 : i32
      %80 = arith.index_cast %79 : i32 to index
      %c1_119 = arith.constant 1 : index
      %c0_120 = arith.constant 0 : index
      %c0_121 = arith.constant 0 : index
      %81 = vector.load %arg16[%80, %c1_119, %c0_120, %c0_121] : memref<5x5x16x128xf32, #tpu.memory_space<vmem>>, vector<1x1x16x128xf32>
      %82 = vector.shape_cast %81 : vector<1x1x16x128xf32> to vector<16x128xf32>
      %c0_i32_122 = arith.constant 0 : i32
      %83 = arith.addi %74, %c0_i32_122 : i32
      %84 = arith.index_cast %83 : i32 to index
      %c2_123 = arith.constant 2 : index
      %c0_124 = arith.constant 0 : index
      %c0_125 = arith.constant 0 : index
      %85 = vector.load %arg16[%84, %c2_123, %c0_124, %c0_125] : memref<5x5x16x128xf32, #tpu.memory_space<vmem>>, vector<1x1x16x128xf32>
      %86 = vector.shape_cast %85 : vector<1x1x16x128xf32> to vector<16x128xf32>
      %c1_i32_126 = arith.constant 1 : i32
      %87 = arith.addi %74, %c1_i32_126 : i32
      %88 = arith.index_cast %87 : i32 to index
      %c0_127 = arith.constant 0 : index
      %c0_128 = arith.constant 0 : index
      %c0_129 = arith.constant 0 : index
      %89 = vector.load %arg16[%88, %c0_127, %c0_128, %c0_129] : memref<5x5x16x128xf32, #tpu.memory_space<vmem>>, vector<1x1x16x128xf32>
      %90 = vector.shape_cast %89 : vector<1x1x16x128xf32> to vector<16x128xf32>
      %c1_i32_130 = arith.constant 1 : i32
      %91 = arith.addi %74, %c1_i32_130 : i32
      %92 = arith.index_cast %91 : i32 to index
      %c1_131 = arith.constant 1 : index
      %c0_132 = arith.constant 0 : index
      %c0_133 = arith.constant 0 : index
      %93 = vector.load %arg16[%92, %c1_131, %c0_132, %c0_133] : memref<5x5x16x128xf32, #tpu.memory_space<vmem>>, vector<1x1x16x128xf32>
      %94 = vector.shape_cast %93 : vector<1x1x16x128xf32> to vector<16x128xf32>
      %c1_i32_134 = arith.constant 1 : i32
      %95 = arith.addi %74, %c1_i32_134 : i32
      %96 = arith.index_cast %95 : i32 to index
      %c2_135 = arith.constant 2 : index
      %c0_136 = arith.constant 0 : index
      %c0_137 = arith.constant 0 : index
      %97 = vector.load %arg16[%96, %c2_135, %c0_136, %c0_137] : memref<5x5x16x128xf32, #tpu.memory_space<vmem>>, vector<1x1x16x128xf32>
      %98 = vector.shape_cast %97 : vector<1x1x16x128xf32> to vector<16x128xf32>
      %c2_i32 = arith.constant 2 : i32
      %99 = arith.addi %74, %c2_i32 : i32
      %100 = arith.index_cast %99 : i32 to index
      %c0_138 = arith.constant 0 : index
      %c0_139 = arith.constant 0 : index
      %c0_140 = arith.constant 0 : index
      %101 = vector.load %arg16[%100, %c0_138, %c0_139, %c0_140] : memref<5x5x16x128xf32, #tpu.memory_space<vmem>>, vector<1x1x16x128xf32>
      %102 = vector.shape_cast %101 : vector<1x1x16x128xf32> to vector<16x128xf32>
      %c2_i32_141 = arith.constant 2 : i32
      %103 = arith.addi %74, %c2_i32_141 : i32
      %104 = arith.index_cast %103 : i32 to index
      %c1_142 = arith.constant 1 : index
      %c0_143 = arith.constant 0 : index
      %c0_144 = arith.constant 0 : index
      %105 = vector.load %arg16[%104, %c1_142, %c0_143, %c0_144] : memref<5x5x16x128xf32, #tpu.memory_space<vmem>>, vector<1x1x16x128xf32>
      %106 = vector.shape_cast %105 : vector<1x1x16x128xf32> to vector<16x128xf32>
      %c2_i32_145 = arith.constant 2 : i32
      %107 = arith.addi %74, %c2_i32_145 : i32
      %108 = arith.index_cast %107 : i32 to index
      %c2_146 = arith.constant 2 : index
      %c0_147 = arith.constant 0 : index
      %c0_148 = arith.constant 0 : index
      %109 = vector.load %arg16[%108, %c2_146, %c0_147, %c0_148] : memref<5x5x16x128xf32, #tpu.memory_space<vmem>>, vector<1x1x16x128xf32>
      %110 = vector.shape_cast %109 : vector<1x1x16x128xf32> to vector<16x128xf32>
      %111 = tpu.concatenate %78, %82, %86, %90, %94, %98, %102, %106, %110 in 0 : vector<16x128xf32>, vector<16x128xf32>, vector<16x128xf32>, vector<16x128xf32>, vector<16x128xf32>, vector<16x128xf32>, vector<16x128xf32>, vector<16x128xf32>, vector<16x128xf32> -> vector<144x128xf32>
      %cst_149 = arith.constant dense<0.000000e+00> : vector<16x128xf32>
      %112 = tpu.matmul %8, %111, %cst_149 {dimension_numbers = #tpu.dot_dimension_numbers<[1], [0], [0], [1], [0, 0, 1, 1], [], []>} : vector<16x144xf32>, vector<144x128xf32>, vector<16x128xf32> -> vector<16x128xf32>
      %113 = vector.broadcast %9 : vector<16x1xf32> to vector<16x128xf32>
      %114 = arith.addf %112, %113 : vector<16x128xf32>
      %cst_150 = arith.constant 0.000000e+00 : f32
      %115 = vector.broadcast %cst_150 : f32 to vector<16x128xf32>
      %116 = arith.maximumf %114, %115 : vector<16x128xf32>
      %117 = arith.index_cast %74 : i32 to index
      %c0_151 = arith.constant 0 : index
      %c0_152 = arith.constant 0 : index
      %c0_153 = arith.constant 0 : index
      %118 = vector.load %arg17[%117, %c0_151, %c0_152, %c0_153] : memref<3x3x16x128xf32, #tpu.memory_space<vmem>>, vector<1x1x16x128xf32>
      %119 = vector.shape_cast %118 : vector<1x1x16x128xf32> to vector<16x128xf32>
      %120 = vector.shape_cast %116 : vector<16x128xf32> to vector<1x1x16x128xf32>
      tpu.vector_store %arg17[%117, %c0_151, %c0_152, %c0_153], %120 {strides = array<i32>} : memref<3x3x16x128xf32, #tpu.memory_space<vmem>>, vector<1x1x16x128xf32>,
      %c0_i32_154 = arith.constant 0 : i32
      %121 = arith.addi %74, %c0_i32_154 : i32
      %122 = arith.index_cast %121 : i32 to index
      %c1_155 = arith.constant 1 : index
      %c0_156 = arith.constant 0 : index
      %c0_157 = arith.constant 0 : index
      %123 = vector.load %arg16[%122, %c1_155, %c0_156, %c0_157] : memref<5x5x16x128xf32, #tpu.memory_space<vmem>>, vector<1x1x16x128xf32>
      %124 = vector.shape_cast %123 : vector<1x1x16x128xf32> to vector<16x128xf32>
      %c0_i32_158 = arith.constant 0 : i32
      %125 = arith.addi %74, %c0_i32_158 : i32
      %126 = arith.index_cast %125 : i32 to index
      %c2_159 = arith.constant 2 : index
      %c0_160 = arith.constant 0 : index
      %c0_161 = arith.constant 0 : index
      %127 = vector.load %arg16[%126, %c2_159, %c0_160, %c0_161] : memref<5x5x16x128xf32, #tpu.memory_space<vmem>>, vector<1x1x16x128xf32>
      %128 = vector.shape_cast %127 : vector<1x1x16x128xf32> to vector<16x128xf32>
      %c0_i32_162 = arith.constant 0 : i32
      %129 = arith.addi %74, %c0_i32_162 : i32
      %130 = arith.index_cast %129 : i32 to index
      %c3 = arith.constant 3 : index
      %c0_163 = arith.constant 0 : index
      %c0_164 = arith.constant 0 : index
      %131 = vector.load %arg16[%130, %c3, %c0_163, %c0_164] : memref<5x5x16x128xf32, #tpu.memory_space<vmem>>, vector<1x1x16x128xf32>
      %132 = vector.shape_cast %131 : vector<1x1x16x128xf32> to vector<16x128xf32>
      %c1_i32_165 = arith.constant 1 : i32
      %133 = arith.addi %74, %c1_i32_165 : i32
      %134 = arith.index_cast %133 : i32 to index
      %c1_166 = arith.constant 1 : index
      %c0_167 = arith.constant 0 : index
      %c0_168 = arith.constant 0 : index
      %135 = vector.load %arg16[%134, %c1_166, %c0_167, %c0_168] : memref<5x5x16x128xf32, #tpu.memory_space<vmem>>, vector<1x1x16x128xf32>
      %136 = vector.shape_cast %135 : vector<1x1x16x128xf32> to vector<16x128xf32>
      %c1_i32_169 = arith.constant 1 : i32
      %137 = arith.addi %74, %c1_i32_169 : i32
      %138 = arith.index_cast %137 : i32 to index
      %c2_170 = arith.constant 2 : index
      %c0_171 = arith.constant 0 : index
      %c0_172 = arith.constant 0 : index
      %139 = vector.load %arg16[%138, %c2_170, %c0_171, %c0_172] : memref<5x5x16x128xf32, #tpu.memory_space<vmem>>, vector<1x1x16x128xf32>
      %140 = vector.shape_cast %139 : vector<1x1x16x128xf32> to vector<16x128xf32>
      %c1_i32_173 = arith.constant 1 : i32
      %141 = arith.addi %74, %c1_i32_173 : i32
      %142 = arith.index_cast %141 : i32 to index
      %c3_174 = arith.constant 3 : index
      %c0_175 = arith.constant 0 : index
      %c0_176 = arith.constant 0 : index
      %143 = vector.load %arg16[%142, %c3_174, %c0_175, %c0_176] : memref<5x5x16x128xf32, #tpu.memory_space<vmem>>, vector<1x1x16x128xf32>
      %144 = vector.shape_cast %143 : vector<1x1x16x128xf32> to vector<16x128xf32>
      %c2_i32_177 = arith.constant 2 : i32
      %145 = arith.addi %74, %c2_i32_177 : i32
      %146 = arith.index_cast %145 : i32 to index
      %c1_178 = arith.constant 1 : index
      %c0_179 = arith.constant 0 : index
      %c0_180 = arith.constant 0 : index
      %147 = vector.load %arg16[%146, %c1_178, %c0_179, %c0_180] : memref<5x5x16x128xf32, #tpu.memory_space<vmem>>, vector<1x1x16x128xf32>
      %148 = vector.shape_cast %147 : vector<1x1x16x128xf32> to vector<16x128xf32>
      %c2_i32_181 = arith.constant 2 : i32
      %149 = arith.addi %74, %c2_i32_181 : i32
      %150 = arith.index_cast %149 : i32 to index
      %c2_182 = arith.constant 2 : index
      %c0_183 = arith.constant 0 : index
      %c0_184 = arith.constant 0 : index
      %151 = vector.load %arg16[%150, %c2_182, %c0_183, %c0_184] : memref<5x5x16x128xf32, #tpu.memory_space<vmem>>, vector<1x1x16x128xf32>
      %152 = vector.shape_cast %151 : vector<1x1x16x128xf32> to vector<16x128xf32>
      %c2_i32_185 = arith.constant 2 : i32
      %153 = arith.addi %74, %c2_i32_185 : i32
      %154 = arith.index_cast %153 : i32 to index
      %c3_186 = arith.constant 3 : index
      %c0_187 = arith.constant 0 : index
      %c0_188 = arith.constant 0 : index
      %155 = vector.load %arg16[%154, %c3_186, %c0_187, %c0_188] : memref<5x5x16x128xf32, #tpu.memory_space<vmem>>, vector<1x1x16x128xf32>
      %156 = vector.shape_cast %155 : vector<1x1x16x128xf32> to vector<16x128xf32>
      %157 = tpu.concatenate %124, %128, %132, %136, %140, %144, %148, %152, %156 in 0 : vector<16x128xf32>, vector<16x128xf32>, vector<16x128xf32>, vector<16x128xf32>, vector<16x128xf32>, vector<16x128xf32>, vector<16x128xf32>, vector<16x128xf32>, vector<16x128xf32> -> vector<144x128xf32>
      %cst_189 = arith.constant dense<0.000000e+00> : vector<16x128xf32>
      %158 = tpu.matmul %8, %157, %cst_189 {dimension_numbers = #tpu.dot_dimension_numbers<[1], [0], [0], [1], [0, 0, 1, 1], [], []>} : vector<16x144xf32>, vector<144x128xf32>, vector<16x128xf32> -> vector<16x128xf32>
      %159 = vector.broadcast %9 : vector<16x1xf32> to vector<16x128xf32>
      %160 = arith.addf %158, %159 : vector<16x128xf32>
      %cst_190 = arith.constant 0.000000e+00 : f32
      %161 = vector.broadcast %cst_190 : f32 to vector<16x128xf32>
      %162 = arith.maximumf %160, %161 : vector<16x128xf32>
      %163 = arith.index_cast %74 : i32 to index
      %c1_191 = arith.constant 1 : index
      %c0_192 = arith.constant 0 : index
      %c0_193 = arith.constant 0 : index
      %164 = vector.load %arg17[%163, %c1_191, %c0_192, %c0_193] : memref<3x3x16x128xf32, #tpu.memory_space<vmem>>, vector<1x1x16x128xf32>
      %165 = vector.shape_cast %164 : vector<1x1x16x128xf32> to vector<16x128xf32>
      %166 = vector.shape_cast %162 : vector<16x128xf32> to vector<1x1x16x128xf32>
      tpu.vector_store %arg17[%163, %c1_191, %c0_192, %c0_193], %166 {strides = array<i32>} : memref<3x3x16x128xf32, #tpu.memory_space<vmem>>, vector<1x1x16x128xf32>,
      %c0_i32_194 = arith.constant 0 : i32
      %167 = arith.addi %74, %c0_i32_194 : i32
      %168 = arith.index_cast %167 : i32 to index
      %c2_195 = arith.constant 2 : index
      %c0_196 = arith.constant 0 : index
      %c0_197 = arith.constant 0 : index
      %169 = vector.load %arg16[%168, %c2_195, %c0_196, %c0_197] : memref<5x5x16x128xf32, #tpu.memory_space<vmem>>, vector<1x1x16x128xf32>
      %170 = vector.shape_cast %169 : vector<1x1x16x128xf32> to vector<16x128xf32>
      %c0_i32_198 = arith.constant 0 : i32
      %171 = arith.addi %74, %c0_i32_198 : i32
      %172 = arith.index_cast %171 : i32 to index
      %c3_199 = arith.constant 3 : index
      %c0_200 = arith.constant 0 : index
      %c0_201 = arith.constant 0 : index
      %173 = vector.load %arg16[%172, %c3_199, %c0_200, %c0_201] : memref<5x5x16x128xf32, #tpu.memory_space<vmem>>, vector<1x1x16x128xf32>
      %174 = vector.shape_cast %173 : vector<1x1x16x128xf32> to vector<16x128xf32>
      %c0_i32_202 = arith.constant 0 : i32
      %175 = arith.addi %74, %c0_i32_202 : i32
      %176 = arith.index_cast %175 : i32 to index
      %c4 = arith.constant 4 : index
      %c0_203 = arith.constant 0 : index
      %c0_204 = arith.constant 0 : index
      %177 = vector.load %arg16[%176, %c4, %c0_203, %c0_204] : memref<5x5x16x128xf32, #tpu.memory_space<vmem>>, vector<1x1x16x128xf32>
      %178 = vector.shape_cast %177 : vector<1x1x16x128xf32> to vector<16x128xf32>
      %c1_i32_205 = arith.constant 1 : i32
      %179 = arith.addi %74, %c1_i32_205 : i32
      %180 = arith.index_cast %179 : i32 to index
      %c2_206 = arith.constant 2 : index
      %c0_207 = arith.constant 0 : index
      %c0_208 = arith.constant 0 : index
      %181 = vector.load %arg16[%180, %c2_206, %c0_207, %c0_208] : memref<5x5x16x128xf32, #tpu.memory_space<vmem>>, vector<1x1x16x128xf32>
      %182 = vector.shape_cast %181 : vector<1x1x16x128xf32> to vector<16x128xf32>
      %c1_i32_209 = arith.constant 1 : i32
      %183 = arith.addi %74, %c1_i32_209 : i32
      %184 = arith.index_cast %183 : i32 to index
      %c3_210 = arith.constant 3 : index
      %c0_211 = arith.constant 0 : index
      %c0_212 = arith.constant 0 : index
      %185 = vector.load %arg16[%184, %c3_210, %c0_211, %c0_212] : memref<5x5x16x128xf32, #tpu.memory_space<vmem>>, vector<1x1x16x128xf32>
      %186 = vector.shape_cast %185 : vector<1x1x16x128xf32> to vector<16x128xf32>
      %c1_i32_213 = arith.constant 1 : i32
      %187 = arith.addi %74, %c1_i32_213 : i32
      %188 = arith.index_cast %187 : i32 to index
      %c4_214 = arith.constant 4 : index
      %c0_215 = arith.constant 0 : index
      %c0_216 = arith.constant 0 : index
      %189 = vector.load %arg16[%188, %c4_214, %c0_215, %c0_216] : memref<5x5x16x128xf32, #tpu.memory_space<vmem>>, vector<1x1x16x128xf32>
      %190 = vector.shape_cast %189 : vector<1x1x16x128xf32> to vector<16x128xf32>
      %c2_i32_217 = arith.constant 2 : i32
      %191 = arith.addi %74, %c2_i32_217 : i32
      %192 = arith.index_cast %191 : i32 to index
      %c2_218 = arith.constant 2 : index
      %c0_219 = arith.constant 0 : index
      %c0_220 = arith.constant 0 : index
      %193 = vector.load %arg16[%192, %c2_218, %c0_219, %c0_220] : memref<5x5x16x128xf32, #tpu.memory_space<vmem>>, vector<1x1x16x128xf32>
      %194 = vector.shape_cast %193 : vector<1x1x16x128xf32> to vector<16x128xf32>
      %c2_i32_221 = arith.constant 2 : i32
      %195 = arith.addi %74, %c2_i32_221 : i32
      %196 = arith.index_cast %195 : i32 to index
      %c3_222 = arith.constant 3 : index
      %c0_223 = arith.constant 0 : index
      %c0_224 = arith.constant 0 : index
      %197 = vector.load %arg16[%196, %c3_222, %c0_223, %c0_224] : memref<5x5x16x128xf32, #tpu.memory_space<vmem>>, vector<1x1x16x128xf32>
      %198 = vector.shape_cast %197 : vector<1x1x16x128xf32> to vector<16x128xf32>
      %c2_i32_225 = arith.constant 2 : i32
      %199 = arith.addi %74, %c2_i32_225 : i32
      %200 = arith.index_cast %199 : i32 to index
      %c4_226 = arith.constant 4 : index
      %c0_227 = arith.constant 0 : index
      %c0_228 = arith.constant 0 : index
      %201 = vector.load %arg16[%200, %c4_226, %c0_227, %c0_228] : memref<5x5x16x128xf32, #tpu.memory_space<vmem>>, vector<1x1x16x128xf32>
      %202 = vector.shape_cast %201 : vector<1x1x16x128xf32> to vector<16x128xf32>
      %203 = tpu.concatenate %170, %174, %178, %182, %186, %190, %194, %198, %202 in 0 : vector<16x128xf32>, vector<16x128xf32>, vector<16x128xf32>, vector<16x128xf32>, vector<16x128xf32>, vector<16x128xf32>, vector<16x128xf32>, vector<16x128xf32>, vector<16x128xf32> -> vector<144x128xf32>
      %cst_229 = arith.constant dense<0.000000e+00> : vector<16x128xf32>
      %204 = tpu.matmul %8, %203, %cst_229 {dimension_numbers = #tpu.dot_dimension_numbers<[1], [0], [0], [1], [0, 0, 1, 1], [], []>} : vector<16x144xf32>, vector<144x128xf32>, vector<16x128xf32> -> vector<16x128xf32>
      %205 = vector.broadcast %9 : vector<16x1xf32> to vector<16x128xf32>
      %206 = arith.addf %204, %205 : vector<16x128xf32>
      %cst_230 = arith.constant 0.000000e+00 : f32
      %207 = vector.broadcast %cst_230 : f32 to vector<16x128xf32>
      %208 = arith.maximumf %206, %207 : vector<16x128xf32>
      %209 = arith.index_cast %74 : i32 to index
      %c2_231 = arith.constant 2 : index
      %c0_232 = arith.constant 0 : index
      %c0_233 = arith.constant 0 : index
      %210 = vector.load %arg17[%209, %c2_231, %c0_232, %c0_233] : memref<3x3x16x128xf32, #tpu.memory_space<vmem>>, vector<1x1x16x128xf32>
      %211 = vector.shape_cast %210 : vector<1x1x16x128xf32> to vector<16x128xf32>
      %212 = vector.shape_cast %208 : vector<16x128xf32> to vector<1x1x16x128xf32>
      tpu.vector_store %arg17[%209, %c2_231, %c0_232, %c0_233], %212 {strides = array<i32>} : memref<3x3x16x128xf32, #tpu.memory_space<vmem>>, vector<1x1x16x128xf32>,
    }
    %c3_i32_24 = arith.constant 3 : i32
    %c0_25 = arith.constant 0 : index
    %c0_26 = arith.constant 0 : index
    %c0_27 = arith.constant 0 : index
    %c0_28 = arith.constant 0 : index
    %11 = vector.load %arg8[%c0_25, %c0_26, %c0_27, %c0_28] : memref<3x3x128x16xf32, #tpu.memory_space<vmem>>, vector<1x1x128x16xf32>
    %12 = vector.shape_cast %11 : vector<1x1x128x16xf32> to vector<128x16xf32>
    %c0_29 = arith.constant 0 : index
    %c0_30 = arith.constant 0 : index
    %c0_31 = arith.constant 0 : index
    %c0_32 = arith.constant 0 : index
    %13 = vector.load %arg17[%c0_29, %c0_30, %c0_31, %c0_32] : memref<3x3x16x128xf32, #tpu.memory_space<vmem>>, vector<1x1x16x128xf32>
    %14 = vector.shape_cast %13 : vector<1x1x16x128xf32> to vector<16x128xf32>
    %cst = arith.constant dense<0.000000e+00> : vector<128x128xf32>
    %15 = tpu.matmul %12, %14, %cst {dimension_numbers = #tpu.dot_dimension_numbers<[1], [0], [0], [1], [0, 0, 1, 1], [], []>} : vector<128x16xf32>, vector<16x128xf32>, vector<128x128xf32> -> vector<128x128xf32>
    %c0_33 = arith.constant 0 : index
    %c1 = arith.constant 1 : index
    %c0_34 = arith.constant 0 : index
    %c0_35 = arith.constant 0 : index
    %16 = vector.load %arg8[%c0_33, %c1, %c0_34, %c0_35] : memref<3x3x128x16xf32, #tpu.memory_space<vmem>>, vector<1x1x128x16xf32>
    %17 = vector.shape_cast %16 : vector<1x1x128x16xf32> to vector<128x16xf32>
    %c0_36 = arith.constant 0 : index
    %c1_37 = arith.constant 1 : index
    %c0_38 = arith.constant 0 : index
    %c0_39 = arith.constant 0 : index
    %18 = vector.load %arg17[%c0_36, %c1_37, %c0_38, %c0_39] : memref<3x3x16x128xf32, #tpu.memory_space<vmem>>, vector<1x1x16x128xf32>
    %19 = vector.shape_cast %18 : vector<1x1x16x128xf32> to vector<16x128xf32>
    %cst_40 = arith.constant dense<0.000000e+00> : vector<128x128xf32>
    %20 = tpu.matmul %17, %19, %cst_40 {dimension_numbers = #tpu.dot_dimension_numbers<[1], [0], [0], [1], [0, 0, 1, 1], [], []>} : vector<128x16xf32>, vector<16x128xf32>, vector<128x128xf32> -> vector<128x128xf32>
    %21 = arith.addf %15, %20 : vector<128x128xf32>
    %c0_41 = arith.constant 0 : index
    %c2 = arith.constant 2 : index
    %c0_42 = arith.constant 0 : index
    %c0_43 = arith.constant 0 : index
    %22 = vector.load %arg8[%c0_41, %c2, %c0_42, %c0_43] : memref<3x3x128x16xf32, #tpu.memory_space<vmem>>, vector<1x1x128x16xf32>
    %23 = vector.shape_cast %22 : vector<1x1x128x16xf32> to vector<128x16xf32>
    %c0_44 = arith.constant 0 : index
    %c2_45 = arith.constant 2 : index
    %c0_46 = arith.constant 0 : index
    %c0_47 = arith.constant 0 : index
    %24 = vector.load %arg17[%c0_44, %c2_45, %c0_46, %c0_47] : memref<3x3x16x128xf32, #tpu.memory_space<vmem>>, vector<1x1x16x128xf32>
    %25 = vector.shape_cast %24 : vector<1x1x16x128xf32> to vector<16x128xf32>
    %cst_48 = arith.constant dense<0.000000e+00> : vector<128x128xf32>
    %26 = tpu.matmul %23, %25, %cst_48 {dimension_numbers = #tpu.dot_dimension_numbers<[1], [0], [0], [1], [0, 0, 1, 1], [], []>} : vector<128x16xf32>, vector<16x128xf32>, vector<128x128xf32> -> vector<128x128xf32>
    %27 = arith.addf %21, %26 : vector<128x128xf32>
    %c1_49 = arith.constant 1 : index
    %c0_50 = arith.constant 0 : index
    %c0_51 = arith.constant 0 : index
    %c0_52 = arith.constant 0 : index
    %28 = vector.load %arg8[%c1_49, %c0_50, %c0_51, %c0_52] : memref<3x3x128x16xf32, #tpu.memory_space<vmem>>, vector<1x1x128x16xf32>
    %29 = vector.shape_cast %28 : vector<1x1x128x16xf32> to vector<128x16xf32>
    %c1_53 = arith.constant 1 : index
    %c0_54 = arith.constant 0 : index
    %c0_55 = arith.constant 0 : index
    %c0_56 = arith.constant 0 : index
    %30 = vector.load %arg17[%c1_53, %c0_54, %c0_55, %c0_56] : memref<3x3x16x128xf32, #tpu.memory_space<vmem>>, vector<1x1x16x128xf32>
    %31 = vector.shape_cast %30 : vector<1x1x16x128xf32> to vector<16x128xf32>
    %cst_57 = arith.constant dense<0.000000e+00> : vector<128x128xf32>
    %32 = tpu.matmul %29, %31, %cst_57 {dimension_numbers = #tpu.dot_dimension_numbers<[1], [0], [0], [1], [0, 0, 1, 1], [], []>} : vector<128x16xf32>, vector<16x128xf32>, vector<128x128xf32> -> vector<128x128xf32>
    %33 = arith.addf %27, %32 : vector<128x128xf32>
    %c1_58 = arith.constant 1 : index
    %c1_59 = arith.constant 1 : index
    %c0_60 = arith.constant 0 : index
    %c0_61 = arith.constant 0 : index
    %34 = vector.load %arg8[%c1_58, %c1_59, %c0_60, %c0_61] : memref<3x3x128x16xf32, #tpu.memory_space<vmem>>, vector<1x1x128x16xf32>
    %35 = vector.shape_cast %34 : vector<1x1x128x16xf32> to vector<128x16xf32>
    %c1_62 = arith.constant 1 : index
    %c1_63 = arith.constant 1 : index
    %c0_64 = arith.constant 0 : index
    %c0_65 = arith.constant 0 : index
    %36 = vector.load %arg17[%c1_62, %c1_63, %c0_64, %c0_65] : memref<3x3x16x128xf32, #tpu.memory_space<vmem>>, vector<1x1x16x128xf32>
    %37 = vector.shape_cast %36 : vector<1x1x16x128xf32> to vector<16x128xf32>
    %cst_66 = arith.constant dense<0.000000e+00> : vector<128x128xf32>
    %38 = tpu.matmul %35, %37, %cst_66 {dimension_numbers = #tpu.dot_dimension_numbers<[1], [0], [0], [1], [0, 0, 1, 1], [], []>} : vector<128x16xf32>, vector<16x128xf32>, vector<128x128xf32> -> vector<128x128xf32>
    %39 = arith.addf %33, %38 : vector<128x128xf32>
    %c1_67 = arith.constant 1 : index
    %c2_68 = arith.constant 2 : index
    %c0_69 = arith.constant 0 : index
    %c0_70 = arith.constant 0 : index
    %40 = vector.load %arg8[%c1_67, %c2_68, %c0_69, %c0_70] : memref<3x3x128x16xf32, #tpu.memory_space<vmem>>, vector<1x1x128x16xf32>
    %41 = vector.shape_cast %40 : vector<1x1x128x16xf32> to vector<128x16xf32>
    %c1_71 = arith.constant 1 : index
    %c2_72 = arith.constant 2 : index
    %c0_73 = arith.constant 0 : index
    %c0_74 = arith.constant 0 : index
    %42 = vector.load %arg17[%c1_71, %c2_72, %c0_73, %c0_74] : memref<3x3x16x128xf32, #tpu.memory_space<vmem>>, vector<1x1x16x128xf32>
    %43 = vector.shape_cast %42 : vector<1x1x16x128xf32> to vector<16x128xf32>
    %cst_75 = arith.constant dense<0.000000e+00> : vector<128x128xf32>
    %44 = tpu.matmul %41, %43, %cst_75 {dimension_numbers = #tpu.dot_dimension_numbers<[1], [0], [0], [1], [0, 0, 1, 1], [], []>} : vector<128x16xf32>, vector<16x128xf32>, vector<128x128xf32> -> vector<128x128xf32>
    %45 = arith.addf %39, %44 : vector<128x128xf32>
    %c2_76 = arith.constant 2 : index
    %c0_77 = arith.constant 0 : index
    %c0_78 = arith.constant 0 : index
    %c0_79 = arith.constant 0 : index
    %46 = vector.load %arg8[%c2_76, %c0_77, %c0_78, %c0_79] : memref<3x3x128x16xf32, #tpu.memory_space<vmem>>, vector<1x1x128x16xf32>
    %47 = vector.shape_cast %46 : vector<1x1x128x16xf32> to vector<128x16xf32>
    %c2_80 = arith.constant 2 : index
    %c0_81 = arith.constant 0 : index
    %c0_82 = arith.constant 0 : index
    %c0_83 = arith.constant 0 : index
    %48 = vector.load %arg17[%c2_80, %c0_81, %c0_82, %c0_83] : memref<3x3x16x128xf32, #tpu.memory_space<vmem>>, vector<1x1x16x128xf32>
    %49 = vector.shape_cast %48 : vector<1x1x16x128xf32> to vector<16x128xf32>
    %cst_84 = arith.constant dense<0.000000e+00> : vector<128x128xf32>
    %50 = tpu.matmul %47, %49, %cst_84 {dimension_numbers = #tpu.dot_dimension_numbers<[1], [0], [0], [1], [0, 0, 1, 1], [], []>} : vector<128x16xf32>, vector<16x128xf32>, vector<128x128xf32> -> vector<128x128xf32>
    %51 = arith.addf %45, %50 : vector<128x128xf32>
    %c2_85 = arith.constant 2 : index
    %c1_86 = arith.constant 1 : index
    %c0_87 = arith.constant 0 : index
    %c0_88 = arith.constant 0 : index
    %52 = vector.load %arg8[%c2_85, %c1_86, %c0_87, %c0_88] : memref<3x3x128x16xf32, #tpu.memory_space<vmem>>, vector<1x1x128x16xf32>
    %53 = vector.shape_cast %52 : vector<1x1x128x16xf32> to vector<128x16xf32>
    %c2_89 = arith.constant 2 : index
    %c1_90 = arith.constant 1 : index
    %c0_91 = arith.constant 0 : index
    %c0_92 = arith.constant 0 : index
    %54 = vector.load %arg17[%c2_89, %c1_90, %c0_91, %c0_92] : memref<3x3x16x128xf32, #tpu.memory_space<vmem>>, vector<1x1x16x128xf32>
    %55 = vector.shape_cast %54 : vector<1x1x16x128xf32> to vector<16x128xf32>
    %cst_93 = arith.constant dense<0.000000e+00> : vector<128x128xf32>
    %56 = tpu.matmul %53, %55, %cst_93 {dimension_numbers = #tpu.dot_dimension_numbers<[1], [0], [0], [1], [0, 0, 1, 1], [], []>} : vector<128x16xf32>, vector<16x128xf32>, vector<128x128xf32> -> vector<128x128xf32>
    %57 = arith.addf %51, %56 : vector<128x128xf32>
    %c2_94 = arith.constant 2 : index
    %c2_95 = arith.constant 2 : index
    %c0_96 = arith.constant 0 : index
    %c0_97 = arith.constant 0 : index
    %58 = vector.load %arg8[%c2_94, %c2_95, %c0_96, %c0_97] : memref<3x3x128x16xf32, #tpu.memory_space<vmem>>, vector<1x1x128x16xf32>
    %59 = vector.shape_cast %58 : vector<1x1x128x16xf32> to vector<128x16xf32>
    %c2_98 = arith.constant 2 : index
    %c2_99 = arith.constant 2 : index
    %c0_100 = arith.constant 0 : index
    %c0_101 = arith.constant 0 : index
    %60 = vector.load %arg17[%c2_98, %c2_99, %c0_100, %c0_101] : memref<3x3x16x128xf32, #tpu.memory_space<vmem>>, vector<1x1x16x128xf32>
    %61 = vector.shape_cast %60 : vector<1x1x16x128xf32> to vector<16x128xf32>
    %cst_102 = arith.constant dense<0.000000e+00> : vector<128x128xf32>
    %62 = tpu.matmul %59, %61, %cst_102 {dimension_numbers = #tpu.dot_dimension_numbers<[1], [0], [0], [1], [0, 0, 1, 1], [], []>} : vector<128x16xf32>, vector<16x128xf32>, vector<128x128xf32> -> vector<128x128xf32>
    %63 = arith.addf %57, %62 : vector<128x128xf32>
    %c0_103 = arith.constant 0 : index
    %c0_104 = arith.constant 0 : index
    %64 = vector.load %arg9[%c0_103, %c0_104] : memref<128x1xf32, #tpu.memory_space<vmem>>, vector<128x1xf32>
    %65 = vector.broadcast %64 : vector<128x1xf32> to vector<128x128xf32>
    %66 = arith.addf %63, %65 : vector<128x128xf32>
    %c0_105 = arith.constant 0 : index
    %c0_106 = arith.constant 0 : index
    %67 = vector.load %arg10[%c0_105, %c0_106] : memref<16x128xf32, #tpu.memory_space<vmem>>, vector<16x128xf32>
    %cst_107 = arith.constant dense<0.000000e+00> : vector<16x128xf32>
    %68 = tpu.matmul %67, %66, %cst_107 {dimension_numbers = #tpu.dot_dimension_numbers<[1], [0], [0], [1], [0, 0, 1, 1], [], []>} : vector<16x128xf32>, vector<128x128xf32>, vector<16x128xf32> -> vector<16x128xf32>
    %c0_108 = arith.constant 0 : index
    %c0_109 = arith.constant 0 : index
    %69 = vector.load %arg11[%c0_108, %c0_109] : memref<16x1xf32, #tpu.memory_space<vmem>>, vector<16x1xf32>
    %70 = vector.broadcast %69 : vector<16x1xf32> to vector<16x128xf32>
    %71 = arith.addf %68, %70 : vector<16x128xf32>
    %c0_110 = arith.constant 0 : index
    %c0_111 = arith.constant 0 : index
    %72 = vector.load %arg12[%c0_110, %c0_111] : memref<16x128xf32, #tpu.memory_space<vmem>>, vector<16x128xf32>
    tpu.vector_store %arg12[%c0_110, %c0_111], %71 {strides = array<i32>} : memref<16x128xf32, #tpu.memory_space<vmem>>, vector<16x128xf32>,
    return
  }
  func.func @transform_0(%arg0: i32) -> (i32, i32, i32, i32) {
    %c0_i32 = arith.constant 0 : i32
    %c0_i32_0 = arith.constant 0 : i32
    %c0_i32_1 = arith.constant 0 : i32
    %c0_i32_2 = arith.constant 0 : i32
    return %c0_i32, %c0_i32_0, %c0_i32_1, %arg0 : i32, i32, i32, i32
  }
  func.func @transform_1(%arg0: i32) -> (i32, i32, i32) {
    %c0_i32 = arith.constant 0 : i32
    %c0_i32_0 = arith.constant 0 : i32
    %c0_i32_1 = arith.constant 0 : i32
    %c0_i32_2 = arith.constant 0 : i32
    return %c0_i32, %c0_i32_0, %c0_i32_1 : i32, i32, i32
  }
  func.func @transform_2(%arg0: i32) -> (i32, i32) {
    %c0_i32 = arith.constant 0 : i32
    %c0_i32_0 = arith.constant 0 : i32
    %c0_i32_1 = arith.constant 0 : i32
    return %c0_i32, %c0_i32_0 : i32, i32
  }
  func.func @transform_3(%arg0: i32) -> (i32, i32) {
    %c0_i32 = arith.constant 0 : i32
    %c0_i32_0 = arith.constant 0 : i32
    %c0_i32_1 = arith.constant 0 : i32
    return %c0_i32, %c0_i32_0 : i32, i32
  }
  func.func @transform_4(%arg0: i32) -> (i32, i32) {
    %c0_i32 = arith.constant 0 : i32
    %c0_i32_0 = arith.constant 0 : i32
    %c0_i32_1 = arith.constant 0 : i32
    return %c0_i32, %c0_i32_0 : i32, i32
  }
  func.func @transform_5(%arg0: i32) -> (i32, i32) {
    %c0_i32 = arith.constant 0 : i32
    %c0_i32_0 = arith.constant 0 : i32
    %c0_i32_1 = arith.constant 0 : i32
    return %c0_i32, %c0_i32_0 : i32, i32
  }
  func.func @transform_6(%arg0: i32) -> (i32, i32) {
    %c0_i32 = arith.constant 0 : i32
    %c0_i32_0 = arith.constant 0 : i32
    %c0_i32_1 = arith.constant 0 : i32
    return %c0_i32, %c0_i32_0 : i32, i32
  }
  func.func @transform_7(%arg0: i32) -> (i32, i32, i32, i32) {
    %c0_i32 = arith.constant 0 : i32
    %c0_i32_0 = arith.constant 0 : i32
    %c0_i32_1 = arith.constant 0 : i32
    %c0_i32_2 = arith.constant 0 : i32
    %c0_i32_3 = arith.constant 0 : i32
    return %c0_i32, %c0_i32_0, %c0_i32_1, %c0_i32_2 : i32, i32, i32, i32
  }
  func.func @transform_8(%arg0: i32) -> (i32, i32) {
    %c0_i32 = arith.constant 0 : i32
    %c0_i32_0 = arith.constant 0 : i32
    %c0_i32_1 = arith.constant 0 : i32
    return %c0_i32, %c0_i32_0 : i32, i32
  }
  func.func @transform_9(%arg0: i32) -> (i32, i32) {
    %c0_i32 = arith.constant 0 : i32
    %c0_i32_0 = arith.constant 0 : i32
    %c0_i32_1 = arith.constant 0 : i32
    return %c0_i32, %c0_i32_0 : i32, i32
  }
  func.func @transform_10(%arg0: i32) -> (i32, i32) {
    %c0_i32 = arith.constant 0 : i32
    %c0_i32_0 = arith.constant 0 : i32
    %c0_i32_1 = arith.constant 0 : i32
    return %c0_i32, %c0_i32_0 : i32, i32
  }
  func.func @transform_11(%arg0: i32) -> (i32, i32) {
    %c0_i32 = arith.constant 0 : i32
    %c0_i32_0 = arith.constant 0 : i32
    return %c0_i32, %arg0 : i32, i32
  }
}

</mosaic_0001>

<bundles_post_ra>
// kernel: fashion_classifier_forward.1
= control target key start
LH: loop header
LB: loop body
LE: loop exit
PB: predicated region body
PF: predicated region fallthrough
CT: control target
= control target key end

     0   :  { %s5835_s19 = smov 0   ;;  %s9394_s0 = inlined_call_operand.vmem [shape: f32[28,28,1,128], index: 0, kind: input, shape index: {}]   ;;  %s9395_s1 = inlined_call_operand.vmem [shape: f32[9,16,1], index: 1, kind: input, shape index: {}]   ;;  %s9396_s3 = inlined_call_operand.vmem [shape: f32[16,144], index: 3, kind: input, shape index: {}]   ;;  %s9397_s4 = inlined_call_operand.vmem [shape: f32[16,1], index: 4, kind: input, shape index: {}]   ;;  %s9398_s5 = inlined_call_operand.vmem [shape: f32[16,144], index: 5, kind: input, shape index: {}]   ;;  %s9399_s6 = inlined_call_operand.vmem [shape: f32[16,1], index: 6, kind: input, shape index: {}]   ;;  %s9400_s7 = inlined_call_operand.vmem [shape: f32[3,3,128,16], index: 7, kind: input, shape index: {}]   ;;  %s9401_s8 = inlined_call_operand.vmem [shape: f32[128,1], index: 8, kind: input, shape index: {}]   ;;  %s9402_s9 = inlined_call_operand.vmem [shape: f32[16,128], index: 9, kind: input, shape index: {}]   ;;  %s9403_s10 = inlined_call_operand.vmem [shape: f32[16,1], index: 10, kind: input, shape index: {}]   ;;  %s9404_s11 = inlined_call_operand.vmem [shape: f32[16,128], index: 11, kind: output, shape index: {}]   ;;  %s9405_s2 = inlined_call_operand.vmem [shape: f32[16,1], index: 2, kind: input, shape index: {}]  }
   0x1   :  { %v5738_v0 = vld [vmem:[%s9395_s1] sm:$0xff]  ;;  %v5743_v1 = vld [vmem:[%s9395_s1 + $0x8] sm:$0xff]  ;;  %v5748_v2 = vld [vmem:[%s9395_s1 + $0x10] sm:$0xff] }
   0x2   :  { %9612 = vst [vmem:[#allocation7_spill] sm:$0xff] %v5738_v0  ;;  %v5753_v3 = vld [vmem:[%s9395_s1 + $0x18] sm:$0xff]  ;;  %v5758_v4 = vld [vmem:[%s9395_s1 + $0x20] sm:$0xff]  ;;  %v5763_v5 = vld [vmem:[%s9395_s1 + $0x28] sm:$0xff] }
   0x3   :  { %9613 = vst [vmem:[#allocation8_spill] sm:$0xff] %v5743_v1  ;;  %v5768_v6 = vld [vmem:[%s9395_s1 + $0x30] sm:$0xff]  ;;  %v5773_v7 = vld [vmem:[%s9395_s1 + $0x38] sm:$0xff]  ;;  %v5778_v8 = vld [vmem:[%s9395_s1 + $0x40] sm:$0xff] }
   0x4   :  { %9614 = vst [vmem:[#allocation9_spill] sm:$0xff] %v5748_v2  ;;  %v5783_v9 = vld [vmem:[%s9395_s1 + $0x48] sm:$0xff]  ;;  %v5788_v10 = vld [vmem:[%s9395_s1 + $0x50] sm:$0xff]  ;;  %v5793_v11 = vld [vmem:[%s9395_s1 + $0x58] sm:$0xff] }
   0x5   :  { %9615 = vst [vmem:[#allocation10_spill] sm:$0xff] %v5753_v3  ;;  %v5798_v12 = vld [vmem:[%s9395_s1 + $0x60] sm:$0xff]  ;;  %v5803_v13 = vld [vmem:[%s9395_s1 + $0x68] sm:$0xff]  ;;  %v5808_v14 = vld [vmem:[%s9395_s1 + $0x70] sm:$0xff] }
   0x6   :  { %9616 = vst [vmem:[#allocation11_spill] sm:$0xff] %v5758_v4  ;;  %v5813_v15 = vld [vmem:[%s9395_s1 + $0x78] sm:$0xff]  ;;  %v5818_v16 = vld [vmem:[%s9395_s1 + $0x80] sm:$0xff]  ;;  %v5823_v17 = vld [vmem:[%s9395_s1 + $0x88] sm:$0xff] }
   0x7   :  { %9617 = vst [vmem:[#allocation12_spill] sm:$0xff] %v5763_v5  ;;  %v5828_v18 = vld [vmem:[%s9405_s2] sm:$0xff]  ;;  %v5833_v19 = vld [vmem:[%s9405_s2 + $0x8] sm:$0xff] }
   0x8   :  { %9618 = vst [vmem:[#allocation13_spill] sm:$0xff] %v5768_v6 }
   0x9   :  { %9619 = vst [vmem:[#allocation14_spill] sm:$0xff] %v5773_v7 }
   0xa   :  { %9620 = vst [vmem:[#allocation15_spill] sm:$0xff] %v5778_v8 }
   0xb   :  { %9621 = vst [vmem:[#allocation16_spill] sm:$0xff] %v5783_v9 }
   0xc   :  { %9622 = vst [vmem:[#allocation17_spill] sm:$0xff] %v5788_v10 }
   0xd   :  { %9623 = vst [vmem:[#allocation18_spill] sm:$0xff] %v5793_v11 }
   0xe   :  { %9624 = vst [vmem:[#allocation19_spill] sm:$0xff] %v5798_v12 }
   0xf   :  { %9625 = vst [vmem:[#allocation20_spill] sm:$0xff] %v5803_v13 }
  0x10   :  { %9626 = vst [vmem:[#allocation21_spill] sm:$0xff] %v5808_v14 }
  0x11   :  { %9627 = vst [vmem:[#allocation22_spill] sm:$0xff] %v5813_v15 }
  0x12   :  { %9628 = vst [vmem:[#allocation23_spill] sm:$0xff] %v5818_v16 }
  0x13   :  { %9629 = vst [vmem:[#allocation24_spill] sm:$0xff] %v5823_v17 }
  0x14   :  { %9630 = vst [vmem:[#allocation25_spill] sm:$0xff] %v5828_v18 }
  0x15   :  { %9631 = vst [vmem:[#allocation26_spill] sm:$0xff] %v5833_v19 }
  0x16 LB: > { %v5671_v20 = vmov 0   ;;  %v9632_v4 = vld [vmem:[#allocation11_spill] sm:$0xff]  ;;  %s64_s1 = smul.u32 28, %s5653_s19  ;;  %v9633_v2 = vld [vmem:[#allocation9_spill] sm:$0xff]  ;;  %v9635_v5 = vld [vmem:[#allocation12_spill] sm:$0xff]  ;;  %s5653_s19 = sphi %s5835_s19, %s63_s19  }
  0x17   : > { %5490 = vset.pattern.permute.xlu2 %v5671_v20  ;;  %5489 = vset.pattern.permute.xlu1 %v5671_v20  ;;  %v9634_v0 = vld [vmem:[#allocation7_spill] sm:$0xff]  ;;  %v9636_v3 = vld [vmem:[#allocation10_spill] sm:$0xff]  ;;  %v9637_v1 = vld [vmem:[#allocation8_spill] sm:$0xff]  ;;  %s1496_s22 = smul.u32 416, %s5653_s19  ;;  %s63_s19 = sadd.s32 1, %s5653_s19  }
  0x18   : > { %5488 = vset.pattern.permute.xlu0 %v5671_v20  ;;  %356 = vperm.xlu2 %5490, %v9632_v4   ;;  %s5847_s21 = scalar_lea.vmem %s9394_s0, %s64_s1  ;;  %v9638_v8 = vld [vmem:[#allocation15_spill] sm:$0xff]  ;;  %v9639_v7 = vld [vmem:[#allocation14_spill] sm:$0xff]  ;;  %v9640_v6 = vld [vmem:[#allocation13_spill] sm:$0xff]  ;;  %p60_p0 = scmp.ge.s32.totalorder %s63_s19, 26  }
  0x19   : > { %239 = vperm.xlu1 %5489, %v9633_v2   ;;  %174 = vperm.xlu0 %5488, %v9634_v0   ;;  %v9641_v11 = vld [vmem:[#allocation18_spill] sm:$0xff]  ;;  %v9642_v10 = vld [vmem:[#allocation17_spill] sm:$0xff]  ;;  %v9643_v9 = vld [vmem:[#allocation16_spill] sm:$0xff]  ;;  %s7090_s23 = scalar_lea.vmem [#allocation2], %s1496_s22  ;;  %s7894_s24 = smov (%p60_p0), 0  }
  0x1a   : > { %v9644_v14 = vld [vmem:[#allocation21_spill] sm:$0xff]  ;;  %v9645_v13 = vld [vmem:[#allocation20_spill] sm:$0xff]  ;;  %v9646_v12 = vld [vmem:[#allocation19_spill] sm:$0xff] }
  0x1b   : > { %v9647_v17 = vld [vmem:[#allocation24_spill] sm:$0xff]  ;;  %v9648_v16 = vld [vmem:[#allocation23_spill] sm:$0xff]  ;;  %v9649_v15 = vld [vmem:[#allocation22_spill] sm:$0xff] }
  0x1c   : > { %v9650_v19 = vld [vmem:[#allocation26_spill] sm:$0xff]  ;;  %v9651_v18 = vld [vmem:[#allocation25_spill] sm:$0xff]  ;;  %v5867_v21 = vld [vmem:[%s5847_s21 + $0x2] ss:$0 sm:$0xff] }
  0x1d   : > { %9652 = vst [vmem:[#allocation27_spill] sm:$0xff] %v5867_v21  ;;  %v5870_v22 = vld [vmem:[%s5847_s21 + $0x3] ss:$0 sm:$0xff]  ;;  %v5873_v23 = vld [vmem:[%s5847_s21 + $0x4] ss:$0 sm:$0xff] }
  0x1e   : > { %9653 = vst [vmem:[#allocation28_spill] sm:$0xff] %v5870_v22  ;;  %v5876_v24 = vld [vmem:[%s5847_s21 + $0x5] ss:$0 sm:$0xff]  ;;  %v5879_v25 = vld [vmem:[%s5847_s21 + $0x6] ss:$0 sm:$0xff] }
  0x1f   : > { %9654 = vst [vmem:[#allocation29_spill] sm:$0xff] %v5873_v23  ;;  %v5882_v26 = vld [vmem:[%s5847_s21 + $0x7] ss:$0 sm:$0xff]  ;;  %v5885_v27 = vld [vmem:[%s5847_s21 + $0x8] ss:$0 sm:$0xff] }
  0x20   : > { %361 = vperm.xlu2 %5490, %v9635_v5   ;;  %9655 = vst [vmem:[#allocation30_spill] sm:$0xff] %v5876_v24  ;;  %v5888_v28 = vld [vmem:[%s5847_s21 + $0x9] ss:$0 sm:$0xff]  ;;  %v5891_v29 = vld [vmem:[%s5847_s21 + $0xa] ss:$0 sm:$0xff] }
  0x21   : > { %244 = vperm.xlu1 %5489, %v9636_v3   ;;  %179 = vperm.xlu0 %5488, %v9637_v1   ;;  %9656 = vst [vmem:[#allocation31_spill] sm:$0xff] %v5879_v25  ;;  %v5894_v30 = vld [vmem:[%s5847_s21 + $0xb] ss:$0 sm:$0xff]  ;;  %v5897_v32 = vld [vmem:[%s5847_s21 + $0xc] ss:$0 sm:$0xff] }
  0x22   : > { %9657 = vst [vmem:[#allocation32_spill] sm:$0xff] %v5882_v26  ;;  %v5900_v33 = vld [vmem:[%s5847_s21 + $0xd] ss:$0 sm:$0xff]  ;;  %v5903_v34 = vld [vmem:[%s5847_s21 + $0xe] ss:$0 sm:$0xff] }
  0x23   : > { %9658 = vst [vmem:[#allocation33_spill] sm:$0xff] %v5885_v27  ;;  %v5906_v35 = vld [vmem:[%s5847_s21 + $0xf] ss:$0 sm:$0xff]  ;;  %v5909_v36 = vld [vmem:[%s5847_s21 + $0x10] ss:$0 sm:$0xff] }
  0x24   : > { %9659 = vst [vmem:[#allocation34_spill] sm:$0xff] %v5888_v28  ;;  %v5912_v37 = vld [vmem:[%s5847_s21 + $0x11] ss:$0 sm:$0xff]  ;;  %v5927_v42 = vld [vmem:[%s5847_s21 + $0x12] ss:$0 sm:$0xff] }
  0x25   : > { %9660 = vst [vmem:[#allocation35_spill] sm:$0xff] %v5891_v29  ;;  %v5930_v43 = vld [vmem:[%s5847_s21 + $0x13] ss:$0 sm:$0xff]  ;;  %v5933_v44 = vld [vmem:[%s5847_s21 + $0x14] ss:$0 sm:$0xff] }
  0x26   : > { %9661 = vst [vmem:[#allocation36_spill] sm:$0xff] %v5894_v30  ;;  %v5948_v49 = vld [vmem:[%s5847_s21 + $0x15] ss:$0 sm:$0xff]  ;;  %v5951_v50 = vld [vmem:[%s5847_s21 + $0x16] ss:$0 sm:$0xff] }
  0x27   : > { %9662 = vst [vmem:[#allocation37_spill] sm:$0xff] %v5897_v32  ;;  %v5954_v51 = vld [vmem:[%s5847_s21 + $0x1b] ss:$0 sm:$0xff]  ;;  %v5969_v56 = vld [vmem:[%s5847_s21 + $0x17] ss:$0 sm:$0xff] }
  0x28   : > { %696 = vperm.xlu2 %5490, %v9638_v8   ;;  %9663 = vst [vmem:[#allocation38_spill] sm:$0xff] %v5900_v33  ;;  %v5972_v57 = vld [vmem:[%s5847_s21 + $0x18] ss:$0 sm:$0xff]  ;;  %v5975_v58 = vld [vmem:[%s5847_s21 + $0x19] ss:$0 sm:$0xff] }
  0x29   : > { %584 = vperm.xlu1 %5489, %v9639_v7   ;;  %579 = vperm.xlu0 %5488, %v9640_v6   ;;  %9664 = vst [vmem:[#allocation39_spill] sm:$0xff] %v5903_v34  ;;  %v5990_v63 = vld [vmem:[%s5847_s21 + $0x1a] ss:$0 sm:$0xff] }
  0x2a   : > { %9665 = vst [vmem:[#allocation40_spill] sm:$0xff] %v5906_v35 }
  0x2b   : > { %9666 = vst [vmem:[#allocation41_spill] sm:$0xff] %v5909_v36 }
  0x2c   : > { %9667 = vst [vmem:[#allocation42_spill] sm:$0xff] %v5912_v37 }
  0x2d   : > { %9672 = vst [vmem:[#allocation47_spill] sm:$0xff] %v5927_v42 }
  0x2e   : > { %9673 = vst [vmem:[#allocation48_spill] sm:$0xff] %v5930_v43 }
  0x2f   : > { %9674 = vst [vmem:[#allocation49_spill] sm:$0xff] %v5933_v44 }
  0x30   : > { %818 = vperm.xlu2 %5490, %v9641_v11   ;;  %9679 = vst [vmem:[#allocation54_spill] sm:$0xff] %v5948_v49 }
  0x31   : > { %813 = vperm.xlu1 %5489, %v9642_v10   ;;  %701 = vperm.xlu0 %5488, %v9643_v9   ;;  %9680 = vst [vmem:[#allocation55_spill] sm:$0xff] %v5951_v50 }
  0x32   : > { %9681 = vst [vmem:[#allocation56_spill] sm:$0xff] %v5954_v51 }
  0x33   : > { %9686 = vst [vmem:[#allocation61_spill] sm:$0xff] %v5969_v56 }
  0x34   : > { %9687 = vst [vmem:[#allocation62_spill] sm:$0xff] %v5972_v57 }
  0x35   : > { %9692 = vst [vmem:[#allocation67_spill] sm:$0xff] %v5990_v63 }
  0x38   : > { %1153 = vperm.xlu2 %5490, %v9644_v14  }
  0x39   : > { %1041 = vperm.xlu1 %5489, %v9645_v13   ;;  %1036 = vperm.xlu0 %5488, %v9646_v12  }
  0x40   : > { %1275 = vperm.xlu2 %5490, %v9647_v17  }
  0x41   : > { %1270 = vperm.xlu1 %5489, %v9648_v16   ;;  %1158 = vperm.xlu0 %5488, %v9649_v15  }
  0x49   : > { %1389 = vperm.xlu1 %5489, %v9650_v19   ;;  %1384 = vperm.xlu0 %5488, %v9651_v18   ;;  %v6065_v19 = vld [vmem:[%s5847_s21 + $0x1] ss:$0 sm:$0xff] }
  0x4a   : > { %9714 = vst [vmem:[#allocation89_spill] sm:$0xff] %v6065_v19 }
  0x72   : > { %v357_v31 = vpop.permute.xlu2 %356 }
  0x73   : > { %v5915_v38 = vmul.f32 %v5867_v21, %v357_v31  ;;  %v5918_v39 = vmul.f32 %v5870_v22, %v357_v31  ;;  %v5921_v40 = vmul.f32 %v5873_v23, %v357_v31  ;;  %v5924_v41 = vmul.f32 %v5876_v24, %v357_v31 }
  0x74   : > { %v5936_v45 = vmul.f32 %v5879_v25, %v357_v31  ;;  %v5939_v46 = vmul.f32 %v5882_v26, %v357_v31  ;;  %v5942_v47 = vmul.f32 %v5885_v27, %v357_v31  ;;  %v5945_v48 = vmul.f32 %v5888_v28, %v357_v31 }
  0x75   : > { %9668 = vst [vmem:[#allocation43_spill] sm:$0xff] %v5915_v38  ;;  %v5957_v52 = vmul.f32 %v5891_v29, %v357_v31  ;;  %v5960_v53 = vmul.f32 %v5894_v30, %v357_v31  ;;  %v5963_v54 = vmul.f32 %v5897_v32, %v357_v31  ;;  %v5966_v55 = vmul.f32 %v5900_v33, %v357_v31  ;;  %v6128_v38 = vld [vmem:[%s5847_s21] ss:$0 sm:$0xff] }
  0x76   : > { %9669 = vst [vmem:[#allocation44_spill] sm:$0xff] %v5918_v39  ;;  %v5978_v59 = vmul.f32 %v5903_v34, %v357_v31  ;;  %v5981_v60 = vmul.f32 %v5906_v35, %v357_v31  ;;  %v5984_v61 = vmul.f32 %v5909_v36, %v357_v31  ;;  %v5987_v62 = vmul.f32 %v5912_v37, %v357_v31 }
  0x77   : > { %9670 = vst [vmem:[#allocation45_spill] sm:$0xff] %v5921_v40  ;;  %v5993_v20 = vmul.f32 %v5927_v42, %v357_v31  ;;  %v5996_v0 = vmul.f32 %v5930_v43, %v357_v31  ;;  %v5999_v1 = vmul.f32 %v5933_v44, %v357_v31  ;;  %v6002_v2 = vmul.f32 %v5948_v49, %v357_v31 }
  0x78   : > { %9671 = vst [vmem:[#allocation46_spill] sm:$0xff] %v5924_v41  ;;  %v6005_v3 = vmul.f32 %v5951_v50, %v357_v31  ;;  %v6008_v4 = vmul.f32 %v5969_v56, %v357_v31  ;;  %v6011_v5 = vmul.f32 %v5972_v57, %v357_v31  ;;  %v6014_v6 = vmul.f32 %v5975_v58, %v357_v31 }
  0x79   : > { %9675 = vst [vmem:[#allocation50_spill] sm:$0xff] %v5936_v45  ;;  %v6017_v7 = vmul.f32 %v5990_v63, %v357_v31  ;;  %v6020_v8 = vmul.f32 %v5954_v51, %v357_v31 }
  0x7a   : > { %9676 = vst [vmem:[#allocation51_spill] sm:$0xff] %v5939_v46  ;;  %v6022_v9 = vpop.permute.xlu2 %361 }
  0x7b   : > { %9677 = vst [vmem:[#allocation52_spill] sm:$0xff] %v5942_v47  ;;  %v6026_v10 = vmul.f32 %v5867_v21, %v6022_v9  ;;  %v6030_v11 = vmul.f32 %v5870_v22, %v6022_v9  ;;  %v6034_v12 = vmul.f32 %v5873_v23, %v6022_v9  ;;  %v6038_v13 = vmul.f32 %v5876_v24, %v6022_v9 }
  0x7c   : > { %9678 = vst [vmem:[#allocation53_spill] sm:$0xff] %v5945_v48  ;;  %v6042_v31 = vmul.f32 %v5879_v25, %v6022_v9  ;;  %v6046_v14 = vmul.f32 %v5882_v26, %v6022_v9  ;;  %v6050_v15 = vmul.f32 %v5885_v27, %v6022_v9  ;;  %v6054_v16 = vmul.f32 %v5888_v28, %v6022_v9 }
  0x7d   : > { %9682 = vst [vmem:[#allocation57_spill] sm:$0xff] %v5957_v52  ;;  %v6058_v17 = vmul.f32 %v5891_v29, %v6022_v9  ;;  %v6062_v18 = vmul.f32 %v5894_v30, %v6022_v9 }
  0x7e   : > { %9683 = vst [vmem:[#allocation58_spill] sm:$0xff] %v5960_v53 }
  0x7f   : > { %9684 = vst [vmem:[#allocation59_spill] sm:$0xff] %v5963_v54 }
  0x80   : > { %9685 = vst [vmem:[#allocation60_spill] sm:$0xff] %v5966_v55 }
  0x81   : > { %9688 = vst [vmem:[#allocation63_spill] sm:$0xff] %v5978_v59 }
  0x82   : > { %9689 = vst [vmem:[#allocation64_spill] sm:$0xff] %v5981_v60 }
  0x83   : > { %9690 = vst [vmem:[#allocation65_spill] sm:$0xff] %v5984_v61  ;;  %v6113_v61 = vmul.f32 %v5969_v56, %v6022_v9 }
  0x84   : > { %9691 = vst [vmem:[#allocation66_spill] sm:$0xff] %v5987_v62  ;;  %v6109_v62 = vmul.f32 %v5951_v50, %v6022_v9 }
  0x85   : > { %9693 = vst [vmem:[#allocation68_spill] sm:$0xff] %v5993_v20  ;;  %v6105_v20 = vmul.f32 %v5948_v49, %v6022_v9 }
  0x86   : > { %9694 = vst [vmem:[#allocation69_spill] sm:$0xff] %v5996_v0  ;;  %v6101_v0 = vmul.f32 %v5933_v44, %v6022_v9 }
  0x87   : > { %9695 = vst [vmem:[#allocation70_spill] sm:$0xff] %v5999_v1  ;;  %v6097_v1 = vmul.f32 %v5930_v43, %v6022_v9 }
  0x88   : > { %9696 = vst [vmem:[#allocation71_spill] sm:$0xff] %v6002_v2  ;;  %v6093_v2 = vmul.f32 %v5927_v42, %v6022_v9 }
  0x89   : > { %9697 = vst [vmem:[#allocation72_spill] sm:$0xff] %v6005_v3  ;;  %v6089_v3 = vmul.f32 %v5912_v37, %v6022_v9 }
  0x8a   : > { %9698 = vst [vmem:[#allocation73_spill] sm:$0xff] %v6008_v4  ;;  %v6085_v4 = vmul.f32 %v5909_v36, %v6022_v9 }
  0x8b   : > { %9699 = vst [vmem:[#allocation74_spill] sm:$0xff] %v6011_v5  ;;  %v6081_v5 = vmul.f32 %v5906_v35, %v6022_v9  ;;  %v240_v60 = vpop.permute.xlu1 %239 }
  0x8c   : > { %9700 = vst [vmem:[#allocation75_spill] sm:$0xff] %v6014_v6  ;;  %v6077_v6 = vmul.f32 %v5903_v34, %v6022_v9  ;;  %v247_v59 = vmul.f32 %v6065_v19, %v240_v60  ;;  %v249_v55 = vmul.f32 %v5867_v21, %v240_v60  ;;  %v251_v54 = vmul.f32 %v5870_v22, %v240_v60 }
  0x8d   : > { %9701 = vst [vmem:[#allocation76_spill] sm:$0xff] %v6017_v7  ;;  %v6073_v7 = vmul.f32 %v5900_v33, %v6022_v9  ;;  %v253_v53 = vmul.f32 %v5873_v23, %v240_v60  ;;  %v255_v52 = vmul.f32 %v5876_v24, %v240_v60  ;;  %v257_v48 = vmul.f32 %v5879_v25, %v240_v60 }
  0x8e   : > { %9702 = vst [vmem:[#allocation77_spill] sm:$0xff] %v6020_v8  ;;  %v6069_v8 = vmul.f32 %v5897_v32, %v6022_v9  ;;  %v259_v47 = vmul.f32 %v5882_v26, %v240_v60  ;;  %v261_v46 = vmul.f32 %v5885_v27, %v240_v60  ;;  %v263_v45 = vmul.f32 %v5888_v28, %v240_v60 }
  0x8f   : > { %9703 = vst [vmem:[#allocation78_spill] sm:$0xff] %v6022_v9  ;;  %v265_v41 = vmul.f32 %v5891_v29, %v240_v60  ;;  %v267_v40 = vmul.f32 %v5894_v30, %v240_v60  ;;  %v269_v39 = vmul.f32 %v5897_v32, %v240_v60 }
  0x90   : > { %9704 = vst [vmem:[#allocation79_spill] sm:$0xff] %v6026_v10 }
  0x91   : > { %9705 = vst [vmem:[#allocation80_spill] sm:$0xff] %v6030_v11 }
  0x92   : > { %9706 = vst [vmem:[#allocation81_spill] sm:$0xff] %v6034_v12 }
  0x93   : > { %9707 = vst [vmem:[#allocation82_spill] sm:$0xff] %v6038_v13 }
  0x94   : > { %9708 = vst [vmem:[#allocation83_spill] sm:$0xff] %v6042_v31  ;;  %v6146_v31 = vpop.permute.xlu2 %696 }
  0x95   : > { %9709 = vst [vmem:[#allocation84_spill] sm:$0xff] %v6046_v14 }
  0x96   : > { %9710 = vst [vmem:[#allocation85_spill] sm:$0xff] %v6050_v15 }
  0x97   : > { %9711 = vst [vmem:[#allocation86_spill] sm:$0xff] %v6054_v16  ;;  %v297_v16 = vmul.f32 %v5990_v63, %v240_v60 }
  0x98   : > { %9712 = vst [vmem:[#allocation87_spill] sm:$0xff] %v6058_v17  ;;  %v295_v17 = vmul.f32 %v5975_v58, %v240_v60 }
  0x99   : > { %9713 = vst [vmem:[#allocation88_spill] sm:$0xff] %v6062_v18  ;;  %v293_v18 = vmul.f32 %v5972_v57, %v240_v60 }
  0x9a   : > { %9715 = vst [vmem:[#allocation90_spill] sm:$0xff] %v6069_v8  ;;  %v291_v8 = vmul.f32 %v5969_v56, %v240_v60 }
  0x9b   : > { %9716 = vst [vmem:[#allocation91_spill] sm:$0xff] %v6073_v7  ;;  %v289_v7 = vmul.f32 %v5951_v50, %v240_v60 }
  0x9c   : > { %9717 = vst [vmem:[#allocation92_spill] sm:$0xff] %v6077_v6  ;;  %v287_v6 = vmul.f32 %v5948_v49, %v240_v60 }
  0x9d   : > { %9718 = vst [vmem:[#allocation93_spill] sm:$0xff] %v6081_v5  ;;  %v285_v5 = vmul.f32 %v5933_v44, %v240_v60 }
  0x9e   : > { %9719 = vst [vmem:[#allocation94_spill] sm:$0xff] %v6085_v4  ;;  %v283_v4 = vmul.f32 %v5930_v43, %v240_v60 }
  0x9f   : > { %9720 = vst [vmem:[#allocation95_spill] sm:$0xff] %v6089_v3  ;;  %v281_v3 = vmul.f32 %v5927_v42, %v240_v60 }
  0xa0   : > { %9721 = vst [vmem:[#allocation96_spill] sm:$0xff] %v6093_v2  ;;  %v279_v2 = vmul.f32 %v5912_v37, %v240_v60 }
  0xa1   : > { %9722 = vst [vmem:[#allocation97_spill] sm:$0xff] %v6097_v1  ;;  %v175_v1 = vpop.permute.xlu0 %174 }
  0xa2   : > { %9723 = vst [vmem:[#allocation98_spill] sm:$0xff] %v6101_v0  ;;  %v277_v0 = vmul.f32 %v5909_v36, %v240_v60  ;;  %v182_v15 = vmul.f32 %v6128_v38, %v175_v1  ;;  %v184_v14 = vmul.f32 %v6065_v19, %v175_v1  ;;  %v186_v13 = vmul.f32 %v5867_v21, %v175_v1 }
  0xa3   : > { %9724 = vst [vmem:[#allocation99_spill] sm:$0xff] %v6105_v20  ;;  %v275_v20 = vmul.f32 %v5906_v35, %v240_v60  ;;  %v188_v12 = vmul.f32 %v5870_v22, %v175_v1  ;;  %v190_v11 = vmul.f32 %v5873_v23, %v175_v1  ;;  %v192_v10 = vmul.f32 %v5876_v24, %v175_v1 }
  0xa4   : > { %9725 = vst [vmem:[#allocation100_spill] sm:$0xff] %v6109_v62  ;;  %v273_v62 = vmul.f32 %v5903_v34, %v240_v60  ;;  %v194_v51 = vmul.f32 %v5879_v25, %v175_v1  ;;  %v196_v9 = vmul.f32 %v5882_v26, %v175_v1  ;;  %v202_v19 = vmul.f32 %v5891_v29, %v175_v1 }
  0xa5   : > { %9726 = vst [vmem:[#allocation101_spill] sm:$0xff] %v6113_v61  ;;  %v271_v61 = vmul.f32 %v5900_v33, %v240_v60  ;;  %v198_v60 = vmul.f32 %v5885_v27, %v175_v1  ;;  %v206_v21 = vmul.f32 %v5897_v32, %v175_v1  ;;  %v208_v22 = vmul.f32 %v5900_v33, %v175_v1 }
  0xa6   : > { %9727 = vst [vmem:[#allocation102_spill] sm:$0xff] %v6128_v38  ;;  %v200_v38 = vmul.f32 %v5888_v28, %v175_v1  ;;  %v210_v23 = vmul.f32 %v5903_v34, %v175_v1  ;;  %v212_v24 = vmul.f32 %v5906_v35, %v175_v1  ;;  %v214_v25 = vmul.f32 %v5909_v36, %v175_v1 }
  0xa7   : > { %9728 = vst [vmem:[#allocation103_spill] sm:$0xff] %v6146_v31  ;;  %v204_v31 = vmul.f32 %v5894_v30, %v175_v1  ;;  %v216_v26 = vmul.f32 %v5912_v37, %v175_v1  ;;  %v218_v27 = vmul.f32 %v5927_v42, %v175_v1  ;;  %v220_v28 = vmul.f32 %v5930_v43, %v175_v1 }
  0xa8   : > { %v222_v29 = vmul.f32 %v5933_v44, %v175_v1  ;;  %v224_v30 = vmul.f32 %v5948_v49, %v175_v1  ;;  %v226_v32 = vmul.f32 %v5951_v50, %v175_v1  ;;  %v228_v33 = vmul.f32 %v5969_v56, %v175_v1 }
  0xa9   : > { %v230_v34 = vmul.f32 %v5972_v57, %v175_v1  ;;  %v232_v35 = vmul.f32 %v5975_v58, %v175_v1  ;;  %v6172_v63 = vadd.f32 %v247_v59, %v182_v15  ;;  %v6174_v36 = vadd.f32 %v249_v55, %v184_v14  ;;  %v6204_v15 = vpop.permute.xlu2 %818  ;;  %v9774_v55 = vld [vmem:[#allocation36_spill] sm:$0xff] }
  0xaa   : > { %v6176_v37 = vadd.f32 %v251_v54, %v186_v13  ;;  %v6178_v42 = vadd.f32 %v253_v53, %v188_v12  ;;  %v6180_v43 = vadd.f32 %v255_v52, %v190_v11  ;;  %v6182_v44 = vadd.f32 %v257_v48, %v192_v10  ;;  %9745 = vst [vmem:[#allocation120_spill] sm:$0xff] %v6204_v15  ;;  %v9773_v53 = vld [vmem:[#allocation35_spill] sm:$0xff] }
  0xab   : > { %9729 = vst [vmem:[#allocation104_spill] sm:$0xff] %v6172_v63  ;;  %v6184_v49 = vadd.f32 %v259_v47, %v194_v51  ;;  %v6186_v50 = vadd.f32 %v261_v46, %v196_v9  ;;  %v6188_v56 = vadd.f32 %v263_v45, %v198_v60  ;;  %v6190_v57 = vadd.f32 %v265_v41, %v200_v38  ;;  %v9771_v47 = vld [vmem:[#allocation33_spill] sm:$0xff]  ;;  %v9772_v51 = vld [vmem:[#allocation34_spill] sm:$0xff]  ;;  %v9777_v60 = vld [vmem:[#allocation39_spill] sm:$0xff] }
  0xac   : > { %9730 = vst [vmem:[#allocation105_spill] sm:$0xff] %v6174_v36  ;;  %v6192_v1 = vadd.f32 %v267_v40, %v202_v19  ;;  %v6194_v14 = vadd.f32 %v269_v39, %v204_v31  ;;  %v6196_v13 = vadd.f32 %v271_v61, %v206_v21  ;;  %v6198_v12 = vadd.f32 %v273_v62, %v208_v22  ;;  %v245_v39 = vpop.permute.xlu1 %244  ;;  %v9775_v61 = vld [vmem:[#allocation37_spill] sm:$0xff] }
  0xad   : > { %9731 = vst [vmem:[#allocation106_spill] sm:$0xff] %v6176_v37  ;;  %v6200_v11 = vadd.f32 %v275_v20, %v210_v23  ;;  %v6202_v10 = vadd.f32 %v277_v0, %v212_v24  ;;  %v6206_v9 = vadd.f32 %v279_v2, %v214_v25  ;;  %v6208_v45 = vadd.f32 %v281_v3, %v216_v26  ;;  %v9754_v0 = vld [vmem:[#allocation78_spill] sm:$0xff]  ;;  %v9765_v26 = vld [vmem:[#allocation27_spill] sm:$0xff] }
  0xae   : > { %9732 = vst [vmem:[#allocation107_spill] sm:$0xff] %v6178_v42  ;;  %v6210_v38 = vadd.f32 %v283_v4, %v218_v27  ;;  %v6212_v19 = vadd.f32 %v285_v5, %v220_v28  ;;  %v6214_v40 = vadd.f32 %v287_v6, %v222_v29  ;;  %v6216_v21 = vadd.f32 %v289_v7, %v224_v30  ;;  %v9755_v24 = vld [vmem:[#allocation62_spill] sm:$0xff]  ;;  %v9760_v5 = vld [vmem:[#allocation67_spill] sm:$0xff]  ;;  %v9762_v7 = vld [vmem:[#allocation56_spill] sm:$0xff] }
  0xaf   : > { %9733 = vst [vmem:[#allocation108_spill] sm:$0xff] %v6180_v43  ;;  %v6218_v22 = vadd.f32 %v291_v8, %v226_v32  ;;  %v6220_v23 = vadd.f32 %v293_v18, %v228_v33  ;;  %v6224_v41 = vmul.f32 %v9755_v24, %v9754_v0  ;;  %v6228_v2 = vmul.f32 %v5975_v58, %v9754_v0  ;;  %v9764_v18 = vld [vmem:[#allocation89_spill] sm:$0xff]  ;;  %v9766_v28 = vld [vmem:[#allocation28_spill] sm:$0xff]  ;;  %v9776_v20 = vld [vmem:[#allocation38_spill] sm:$0xff] }
  0xb0   : > { %9734 = vst [vmem:[#allocation109_spill] sm:$0xff] %v6182_v44  ;;  %v6230_v3 = vadd.f32 %v295_v17, %v230_v34  ;;  %v6232_v4 = vadd.f32 %v297_v16, %v232_v35  ;;  %v6236_v6 = vmul.f32 %v9760_v5, %v9754_v0  ;;  %v6240_v8 = vmul.f32 %v9762_v7, %v9754_v0  ;;  %v9767_v30 = vld [vmem:[#allocation29_spill] sm:$0xff]  ;;  %v9768_v17 = vld [vmem:[#allocation30_spill] sm:$0xff]  ;;  %v9769_v16 = vld [vmem:[#allocation31_spill] sm:$0xff] }
  0xb1   : > { %9735 = vst [vmem:[#allocation110_spill] sm:$0xff] %v6184_v49  ;;  %v248_v25 = vmul.f32 %v9764_v18, %v245_v39  ;;  %v250_v27 = vmul.f32 %v9765_v26, %v245_v39  ;;  %v252_v29 = vmul.f32 %v9766_v28, %v245_v39  ;;  %v254_v32 = vmul.f32 %v9767_v30, %v245_v39  ;;  %v9770_v35 = vld [vmem:[#allocation32_spill] sm:$0xff]  ;;  %v6276_v43 = vpop.permute.xlu2 %1153  ;;  %v9788_v42 = vld [vmem:[#allocation102_spill] sm:$0xff] }
  0xb2   : > { %9736 = vst [vmem:[#allocation111_spill] sm:$0xff] %v6186_v50  ;;  %v256_v33 = vmul.f32 %v9768_v17, %v245_v39  ;;  %v258_v34 = vmul.f32 %v9769_v16, %v245_v39  ;;  %v260_v46 = vmul.f32 %v9770_v35, %v245_v39  ;;  %v262_v48 = vmul.f32 %v9771_v47, %v245_v39  ;;  %v9778_v7 = vld [vmem:[#allocation40_spill] sm:$0xff] }
  0xb3   : > { %9737 = vst [vmem:[#allocation112_spill] sm:$0xff] %v6188_v56  ;;  %v264_v52 = vmul.f32 %v9772_v51, %v245_v39  ;;  %v266_v54 = vmul.f32 %v9773_v53, %v245_v39  ;;  %v268_v59 = vmul.f32 %v9774_v55, %v245_v39  ;;  %v270_v62 = vmul.f32 %v9775_v61, %v245_v39 }
  0xb4   : > { %9738 = vst [vmem:[#allocation113_spill] sm:$0xff] %v6190_v57  ;;  %v272_v31 = vmul.f32 %v9776_v20, %v245_v39  ;;  %v274_v0 = vmul.f32 %v9777_v60, %v245_v39  ;;  %v9786_v57 = vld [vmem:[#allocation61_spill] sm:$0xff]  ;;  %v6268_v50 = vmul.f32 %v9755_v24, %v245_v39  ;;  %v6271_v49 = vmul.f32 %v5975_v58, %v245_v39 }
  0xb5   : > { %9739 = vst [vmem:[#allocation114_spill] sm:$0xff] %v6192_v1  ;;  %v6265_v56 = vmul.f32 %v9786_v57, %v245_v39  ;;  %v6274_v44 = vmul.f32 %v9760_v5, %v245_v39 }
  0xb6   : > { %9740 = vst [vmem:[#allocation115_spill] sm:$0xff] %v6194_v14  ;;  %v9785_v14 = vld [vmem:[#allocation55_spill] sm:$0xff] }
  0xb7   : > { %9741 = vst [vmem:[#allocation116_spill] sm:$0xff] %v6196_v13  ;;  %v290_v1 = vmul.f32 %v9785_v14, %v245_v39 }
  0xb8   : > { %9742 = vst [vmem:[#allocation117_spill] sm:$0xff] %v6198_v12  ;;  %v9784_v12 = vld [vmem:[#allocation54_spill] sm:$0xff] }
  0xb9   : > { %9743 = vst [vmem:[#allocation118_spill] sm:$0xff] %v6200_v11  ;;  %v288_v13 = vmul.f32 %v9784_v12, %v245_v39 }
  0xba   : > { %9744 = vst [vmem:[#allocation119_spill] sm:$0xff] %v6202_v10  ;;  %v9783_v10 = vld [vmem:[#allocation49_spill] sm:$0xff] }
  0xbb   : > { %9746 = vst [vmem:[#allocation121_spill] sm:$0xff] %v6206_v9  ;;  %v286_v11 = vmul.f32 %v9783_v10, %v245_v39 }
  0xbc   : > { %9747 = vst [vmem:[#allocation122_spill] sm:$0xff] %v6208_v45  ;;  %v9782_v45 = vld [vmem:[#allocation48_spill] sm:$0xff] }
  0xbd   : > { %9748 = vst [vmem:[#allocation123_spill] sm:$0xff] %v6210_v38  ;;  %v180_v38 = vpop.permute.xlu0 %179  ;;  %v284_v9 = vmul.f32 %v9782_v45, %v245_v39 }
  0xbe   : > { %9749 = vst [vmem:[#allocation124_spill] sm:$0xff] %v6212_v19  ;;  %v183_v37 = vmul.f32 %v9788_v42, %v180_v38  ;;  %v185_v36 = vmul.f32 %v9764_v18, %v180_v38  ;;  %v187_v63 = vmul.f32 %v9765_v26, %v180_v38  ;;  %v189_v15 = vmul.f32 %v9766_v28, %v180_v38 }
  0xbf   : > { %9750 = vst [vmem:[#allocation125_spill] sm:$0xff] %v6214_v40  ;;  %v9781_v40 = vld [vmem:[#allocation47_spill] sm:$0xff]  ;;  %v201_v5 = vmul.f32 %v9772_v51, %v180_v38  ;;  %v203_v42 = vmul.f32 %v9773_v53, %v180_v38  ;;  %v205_v18 = vmul.f32 %v9774_v55, %v180_v38  ;;  %v207_v26 = vmul.f32 %v9775_v61, %v180_v38 }
  0xc0   : > { %9751 = vst [vmem:[#allocation126_spill] sm:$0xff] %v6216_v21  ;;  %v282_v19 = vmul.f32 %v9781_v40, %v245_v39  ;;  %v209_v28 = vmul.f32 %v9776_v20, %v180_v38  ;;  %v221_v51 = vmul.f32 %v9782_v45, %v180_v38  ;;  %v223_v53 = vmul.f32 %v9783_v10, %v180_v38 }
  0xc1   : > { %9752 = vst [vmem:[#allocation127_spill] sm:$0xff] %v6218_v22  ;;  %v9780_v22 = vld [vmem:[#allocation42_spill] sm:$0xff]  ;;  %v225_v55 = vmul.f32 %v9784_v12, %v180_v38  ;;  %v227_v61 = vmul.f32 %v9785_v14, %v180_v38  ;;  %v229_v20 = vmul.f32 %v9786_v57, %v180_v38  ;;  %v6308_v45 = vadd.f32 %v252_v29, %v187_v63 }
  0xc2   : > { %9753 = vst [vmem:[#allocation128_spill] sm:$0xff] %v6220_v23  ;;  %v280_v21 = vmul.f32 %v9780_v22, %v245_v39  ;;  %v6310_v10 = vadd.f32 %v254_v32, %v189_v15  ;;  %v6326_v63 = vadd.f32 %v270_v62, %v205_v18  ;;  %v6328_v15 = vadd.f32 %v272_v31, %v207_v26  ;;  %v6352_v32 = vpop.permute.xlu2 %1275  ;;  %v6399_v31 = vld [vmem:[%s5847_s21 + $0x46] ss:$0 sm:$0xff]  ;;  %v6430_v18 = vld [vmem:[%s5847_s21 + $0x4b] ss:$0 sm:$0xff] }
  0xc3   : > { %9756 = vst [vmem:[#allocation78_spill] sm:$0xff] %v6224_v41  ;;  %v197_v41 = vmul.f32 %v9770_v35, %v180_v38  ;;  %v217_v35 = vmul.f32 %v9780_v22, %v180_v38  ;;  %v6384_v62 = vadd.f32 %v6265_v56, %v227_v61  ;;  %v6405_v56 = vld [vmem:[%s5847_s21 + $0x48] ss:$0 sm:$0xff]  ;;  %v6433_v26 = vld [vmem:[%s5847_s21 + $0x4c] ss:$0 sm:$0xff] }
  0xc4   : > { %9757 = vst [vmem:[#allocation62_spill] sm:$0xff] %v6228_v2  ;;  %v195_v2 = vmul.f32 %v9769_v16, %v180_v38 }
  0xc5   : > { %9758 = vst [vmem:[#allocation129_spill] sm:$0xff] %v6230_v3  ;;  %v9779_v3 = vld [vmem:[#allocation41_spill] sm:$0xff]  ;;  %v6318_v22 = vadd.f32 %v262_v48, %v197_v41  ;;  %v6336_v41 = vld [vmem:[%s5847_s21 + $0x3b] ss:$0 sm:$0xff]  ;;  %v6350_v29 = vadd.f32 %v282_v19, %v217_v35  ;;  %v6368_v19 = vadd.f32 %v286_v11, %v221_v51  ;;  %v6372_v48 = vadd.f32 %v290_v1, %v225_v55  ;;  %v6396_v11 = vld [vmem:[%s5847_s21 + $0x45] ss:$0 sm:$0xff] }
  0xc6   : > { %9759 = vst [vmem:[#allocation130_spill] sm:$0xff] %v6232_v4  ;;  %v276_v4 = vmul.f32 %v9778_v7, %v245_v39  ;;  %v278_v23 = vmul.f32 %v9779_v3, %v245_v39  ;;  %v199_v39 = vmul.f32 %v9771_v47, %v180_v38  ;;  %v215_v16 = vmul.f32 %v9779_v3, %v180_v38  ;;  %v5544_v51 = vld [vmem:[%s5847_s21 + $0x53] ss:$0 sm:$0xff] }
  0xc7   : > { %9761 = vst [vmem:[#allocation67_spill] sm:$0xff] %v6236_v6  ;;  %v193_v6 = vmul.f32 %v9768_v17, %v180_v38  ;;  %v213_v17 = vmul.f32 %v9778_v7, %v180_v38  ;;  %v219_v47 = vmul.f32 %v9781_v40, %v180_v38  ;;  %v233_v7 = vmul.f32 %v5975_v58, %v180_v38 }
  0xc8   : > { %9763 = vst [vmem:[#allocation56_spill] sm:$0xff] %v6240_v8  ;;  %v191_v8 = vmul.f32 %v9767_v30, %v180_v38  ;;  %v211_v30 = vmul.f32 %v9777_v60, %v180_v38  ;;  %v231_v60 = vmul.f32 %v9755_v24, %v180_v38  ;;  %v6304_v3 = vadd.f32 %v248_v25, %v183_v37  ;;  %v6333_v24 = vld [vmem:[%s5847_s21 + $0x3a] ss:$0 sm:$0xff] }
  0xc9   : > { %9787 = vst [vmem:[#allocation89_spill] sm:$0xff] %v6276_v43  ;;  %v6306_v40 = vadd.f32 %v250_v27, %v185_v36  ;;  %v6314_v14 = vadd.f32 %v258_v34, %v193_v6  ;;  %v6316_v57 = vadd.f32 %v260_v46, %v195_v2  ;;  %v6320_v58 = vadd.f32 %v264_v52, %v199_v39  ;;  %v6339_v2 = vld [vmem:[%s5847_s21 + $0x3c] ss:$0 sm:$0xff]  ;;  %v6342_v6 = vld [vmem:[%s5847_s21 + $0x3d] ss:$0 sm:$0xff] }
  0xca   : > { %v6312_v12 = vadd.f32 %v256_v33, %v191_v8  ;;  %v6322_v37 = vadd.f32 %v266_v54, %v201_v5  ;;  %v6324_v36 = vadd.f32 %v268_v59, %v203_v42  ;;  %v6330_v38 = vadd.f32 %v274_v0, %v209_v28  ;;  %9789 = vst [vmem:[#allocation27_spill] sm:$0xff] %v6333_v24  ;;  %v6355_v33 = vld [vmem:[%s5847_s21 + $0x3e] ss:$0 sm:$0xff]  ;;  %v6358_v34 = vld [vmem:[%s5847_s21 + $0x3f] ss:$0 sm:$0xff] }
  0xcb   : > { %9790 = vst [vmem:[#allocation28_spill] sm:$0xff] %v6336_v41  ;;  %v6344_v8 = vadd.f32 %v276_v4, %v211_v30  ;;  %v6346_v25 = vadd.f32 %v278_v23, %v213_v17  ;;  %v6348_v27 = vadd.f32 %v280_v21, %v215_v16  ;;  %v6361_v46 = vld [vmem:[%s5847_s21 + $0x40] ss:$0 sm:$0xff]  ;;  %v6364_v4 = vld [vmem:[%s5847_s21 + $0x41] ss:$0 sm:$0xff]  ;;  %v6366_v23 = vadd.f32 %v284_v9, %v219_v47 }
  0xcc   : > { %9791 = vst [vmem:[#allocation29_spill] sm:$0xff] %v6339_v2  ;;  %v6370_v21 = vadd.f32 %v288_v13, %v223_v53  ;;  %v6375_v52 = vld [vmem:[%s5847_s21 + $0x42] ss:$0 sm:$0xff]  ;;  %v6378_v54 = vld [vmem:[%s5847_s21 + $0x43] ss:$0 sm:$0xff]  ;;  %v6387_v9 = vadd.f32 %v6268_v50, %v229_v20  ;;  %v6390_v13 = vadd.f32 %v6271_v49, %v231_v60  ;;  %v6393_v1 = vadd.f32 %v6274_v44, %v233_v7 }
  0xcd   : > { %9792 = vst [vmem:[#allocation30_spill] sm:$0xff] %v6342_v6  ;;  %v6381_v59 = vld [vmem:[%s5847_s21 + $0x44] ss:$0 sm:$0xff]  ;;  %v6402_v0 = vld [vmem:[%s5847_s21 + $0x47] ss:$0 sm:$0xff]  ;;  %v6415_v49 = vmul.f32 %v6333_v24, %v6352_v32  ;;  %v6419_v44 = vmul.f32 %v6336_v41, %v6352_v32  ;;  %v6423_v5 = vmul.f32 %v6339_v2, %v6352_v32  ;;  %v6427_v42 = vmul.f32 %v6342_v6, %v6352_v32  ;;  %v580_v24 = vpop.permute.xlu0 %579 }
  0xce   : > { %9793 = vst [vmem:[#allocation31_spill] sm:$0xff] %v6355_v33  ;;  %v6408_v39 = vld [vmem:[%s5847_s21 + $0x49] ss:$0 sm:$0xff]  ;;  %v6411_v50 = vld [vmem:[%s5847_s21 + $0x4a] ss:$0 sm:$0xff]  ;;  %v6440_v30 = vmul.f32 %v6355_v33, %v6352_v32  ;;  %v6444_v17 = vmul.f32 %v6358_v34, %v6352_v32  ;;  %v6448_v16 = vmul.f32 %v6361_v46, %v6352_v32  ;;  %v6452_v35 = vmul.f32 %v6364_v4, %v6352_v32 }
  0xcf   : > { %9794 = vst [vmem:[#allocation32_spill] sm:$0xff] %v6358_v34  ;;  %v6436_v28 = vld [vmem:[%s5847_s21 + $0x4d] ss:$0 sm:$0xff]  ;;  %v6455_v47 = vld [vmem:[%s5847_s21 + $0x4e] ss:$0 sm:$0xff]  ;;  %v6460_v53 = vmul.f32 %v6375_v52, %v6352_v32  ;;  %v6464_v55 = vmul.f32 %v6378_v54, %v6352_v32  ;;  %v6468_v61 = vmul.f32 %v6381_v59, %v6352_v32  ;;  %v6472_v20 = vmul.f32 %v6396_v11, %v6352_v32 }
  0xd0   : > { %9795 = vst [vmem:[#allocation33_spill] sm:$0xff] %v6361_v46  ;;  %v6475_v60 = vld [vmem:[%s5847_s21 + $0x1c] ss:$0 sm:$0xff]  ;;  %v6478_v7 = vld [vmem:[%s5847_s21 + $0x1d] ss:$0 sm:$0xff] }
  0xd1   : > { %9796 = vst [vmem:[#allocation34_spill] sm:$0xff] %v6364_v4  ;;  %v6481_v43 = vld [vmem:[%s5847_s21 + $0x4f] ss:$0 sm:$0xff]  ;;  %v6644_v46 = vld [vmem:[%s5847_s21 + $0x30] ss:$0 sm:$0xff] }
  0xd2   : > { %9797 = vst [vmem:[#allocation35_spill] sm:$0xff] %v6375_v52  ;;  %v6641_v4 = vld [vmem:[%s5847_s21 + $0x2f] ss:$0 sm:$0xff]  ;;  %v6647_v34 = vld [vmem:[%s5847_s21 + $0x31] ss:$0 sm:$0xff] }
  0xd3   : > { %9798 = vst [vmem:[#allocation36_spill] sm:$0xff] %v6378_v54 }
  0xd4   : > { %9799 = vst [vmem:[#allocation37_spill] sm:$0xff] %v6381_v59 }
  0xd5   : > { %9800 = vst [vmem:[#allocation38_spill] sm:$0xff] %v6396_v11 }
  0xd6   : > { %9801 = vst [vmem:[#allocation39_spill] sm:$0xff] %v6399_v31 }
  0xd7   : > { %9802 = vst [vmem:[#allocation40_spill] sm:$0xff] %v6402_v0 }
  0xd8   : > { %9803 = vst [vmem:[#allocation41_spill] sm:$0xff] %v6405_v56 }
  0xd9   : > { %9804 = vst [vmem:[#allocation42_spill] sm:$0xff] %v6408_v39 }
  0xda   : > { %9805 = vst [vmem:[#allocation47_spill] sm:$0xff] %v6411_v50 }
  0xdb   : > { %9806 = vst [vmem:[#allocation48_spill] sm:$0xff] %v6415_v49  ;;  %v6536_v49 = vld [vmem:[%s5847_s21 + $0x21] ss:$0 sm:$0xff] }
  0xdc   : > { %9807 = vst [vmem:[#allocation49_spill] sm:$0xff] %v6419_v44  ;;  %v6533_v44 = vmul.f32 %v6436_v28, %v6352_v32 }
  0xdd   : > { %9808 = vst [vmem:[#allocation54_spill] sm:$0xff] %v6423_v5  ;;  %v6529_v5 = vmul.f32 %v6433_v26, %v6352_v32 }
  0xde   : > { %9809 = vst [vmem:[#allocation55_spill] sm:$0xff] %v6427_v42  ;;  %v6514_v42 = vld [vmem:[%s5847_s21 + $0x20] ss:$0 sm:$0xff] }
  0xdf   : > { %9810 = vst [vmem:[#allocation61_spill] sm:$0xff] %v6430_v18 }
  0xe0   : > { %9811 = vst [vmem:[#allocation102_spill] sm:$0xff] %v6433_v26  ;;  %v6561_v26 = vld [vmem:[%s5847_s21 + $0x24] ss:$0 sm:$0xff] }
  0xe1   : > { %9812 = vst [vmem:[#allocation131_spill] sm:$0xff] %v6436_v28  ;;  %v6558_v28 = vld [vmem:[%s5847_s21 + $0x23] ss:$0 sm:$0xff] }
  0xe2   : > { %9813 = vst [vmem:[#allocation132_spill] sm:$0xff] %v6440_v30  ;;  %v6508_v30 = vld [vmem:[%s5847_s21 + $0x1e] ss:$0 sm:$0xff] }
  0xe3   : > { %9814 = vst [vmem:[#allocation133_spill] sm:$0xff] %v6444_v17  ;;  %v6505_v17 = vpop.permute.xlu1 %584 }
  0xe4   : > { %9815 = vst [vmem:[#allocation134_spill] sm:$0xff] %v6448_v16  ;;  %v6503_v16 = vmul.f32 %v6408_v39, %v6352_v32  ;;  %v6539_v39 = vld [vmem:[%s5847_s21 + $0x22] ss:$0 sm:$0xff]  ;;  %v6630_v59 = vmul.f32 %v6558_v28, %v6505_v17  ;;  %v6634_v54 = vmul.f32 %v6561_v26, %v6505_v17 }
  0xe5   : > { %9816 = vst [vmem:[#allocation135_spill] sm:$0xff] %v6452_v35  ;;  %v6491_v35 = vmul.f32 %v6399_v31, %v6352_v32  ;;  %v6622_v31 = vld [vmem:[%s5847_s21 + $0x2e] ss:$0 sm:$0xff]  ;;  %v6626_v11 = vmul.f32 %v6539_v39, %v6505_v17 }
  0xe6   : > { %9817 = vst [vmem:[#allocation136_spill] sm:$0xff] %v6455_v47 }
  0xe7   : > { %9818 = vst [vmem:[#allocation137_spill] sm:$0xff] %v6460_v53  ;;  %v6484_v53 = vld [vmem:[%s5847_s21 + $0x50] ss:$0 sm:$0xff] }
  0xe8   : > { %9819 = vst [vmem:[#allocation138_spill] sm:$0xff] %v6464_v55  ;;  %v6487_v55 = vld [vmem:[%s5847_s21 + $0x51] ss:$0 sm:$0xff] }
  0xe9   : > { %9820 = vst [vmem:[#allocation139_spill] sm:$0xff] %v6468_v61  ;;  %v6495_v61 = vmul.f32 %v6402_v0, %v6352_v32  ;;  %v6619_v0 = vld [vmem:[%s5847_s21 + $0x2d] ss:$0 sm:$0xff] }
  0xea   : > { %9821 = vst [vmem:[#allocation140_spill] sm:$0xff] %v6472_v20  ;;  %v6499_v20 = vmul.f32 %v6405_v56, %v6352_v32  ;;  %v6616_v56 = vld [vmem:[%s5847_s21 + $0x2c] ss:$0 sm:$0xff] }
  0xeb   : > { %9822 = vst [vmem:[#allocation141_spill] sm:$0xff] %v6481_v43 }
  0xec   : > { %9823 = vst [vmem:[#allocation142_spill] sm:$0xff] %v6484_v53 }
  0xed   : > { %9824 = vst [vmem:[#allocation143_spill] sm:$0xff] %v6487_v55 }
  0xee   : > { %9825 = vst [vmem:[#allocation144_spill] sm:$0xff] %v6491_v35  ;;  %v6511_v35 = vld [vmem:[%s5847_s21 + $0x1f] ss:$0 sm:$0xff] }
  0xef   : > { %9826 = vst [vmem:[#allocation145_spill] sm:$0xff] %v6495_v61  ;;  %v6517_v61 = vld [vmem:[%s5847_s21 + $0x52] ss:$0 sm:$0xff] }
  0xf0   : > { %9827 = vst [vmem:[#allocation146_spill] sm:$0xff] %v6499_v20  ;;  %v6521_v20 = vmul.f32 %v6411_v50, %v6352_v32  ;;  %v6613_v50 = vmul.f32 %v6536_v49, %v6505_v17 }
  0xf1   : > { %9828 = vst [vmem:[#allocation147_spill] sm:$0xff] %v6503_v16  ;;  %v6525_v16 = vmul.f32 %v6430_v18, %v6352_v32  ;;  %v6609_v18 = vmul.f32 %v6514_v42, %v6505_v17 }
  0xf2   : > { %9829 = vst [vmem:[#allocation148_spill] sm:$0xff] %v6508_v30 }
  0xf3   : > { %9830 = vst [vmem:[#allocation149_spill] sm:$0xff] %v6511_v35 }
  0xf4   : > { %9831 = vst [vmem:[#allocation150_spill] sm:$0xff] %v6514_v42 }
  0xf5   : > { %9832 = vst [vmem:[#allocation151_spill] sm:$0xff] %v6517_v61 }
  0xf6   : > { %9833 = vst [vmem:[#allocation152_spill] sm:$0xff] %v6521_v20  ;;  %v6543_v20 = vmul.f32 %v6455_v47, %v6352_v32  ;;  %v6564_v47 = vld [vmem:[%s5847_s21 + $0x25] ss:$0 sm:$0xff] }
  0xf7   : > { %9834 = vst [vmem:[#allocation153_spill] sm:$0xff] %v6525_v16  ;;  %v6547_v16 = vmul.f32 %v6481_v43, %v6352_v32  ;;  %v6588_v43 = vmul.f32 %v6478_v7, %v6505_v17  ;;  %v6638_v52 = vmul.f32 %v6564_v47, %v6505_v17 }
  0xf8   : > { %9835 = vst [vmem:[#allocation154_spill] sm:$0xff] %v6529_v5  ;;  %v6551_v5 = vmul.f32 %v6484_v53, %v6352_v32  ;;  %v6584_v53 = vmul.f32 %v6475_v60, %v6505_v17 }
  0xf9   : > { %9836 = vst [vmem:[#allocation155_spill] sm:$0xff] %v6533_v44  ;;  %v6555_v44 = vmul.f32 %v6487_v55, %v6352_v32  ;;  %v6577_v55 = vld [vmem:[%s5847_s21 + $0x27] ss:$0 sm:$0xff] }
  0xfa   : > { %9837 = vst [vmem:[#allocation156_spill] sm:$0xff] %v6536_v49  ;;  %v6655_v6 = vmul.f32 %v6577_v55, %v6505_v17 }
  0xfb   : > { %9838 = vst [vmem:[#allocation157_spill] sm:$0xff] %v6539_v39 }
  0xfc   : > { %9839 = vst [vmem:[#allocation158_spill] sm:$0xff] %v6543_v20  ;;  %v6568_v20 = vmul.f32 %v6517_v61, %v6352_v32  ;;  %v6605_v61 = vmul.f32 %v6511_v35, %v6505_v17 }
  0xfd   : > { %9840 = vst [vmem:[#allocation159_spill] sm:$0xff] %v6547_v16  ;;  %v6571_v16 = vmul.f32 %v5544_v51, %v6352_v32  ;;  %v6594_v32 = vld [vmem:[%s5847_s21 + $0x2a] ss:$0 sm:$0xff]  ;;  %v6597_v51 = vld [vmem:[%s5847_s21 + $0x2b] ss:$0 sm:$0xff] }
  0xfe   : > { %9841 = vst [vmem:[#allocation160_spill] sm:$0xff] %v6551_v5  ;;  %v6574_v5 = vld [vmem:[%s5847_s21 + $0x26] ss:$0 sm:$0xff] }
  0xff   : > { %9842 = vst [vmem:[#allocation161_spill] sm:$0xff] %v6555_v44  ;;  %v6580_v44 = vld [vmem:[%s5847_s21 + $0x28] ss:$0 sm:$0xff]  ;;  %v6651_v33 = vmul.f32 %v6574_v5, %v6505_v17 }
 0x100   : > { %9843 = vst [vmem:[#allocation162_spill] sm:$0xff] %v6558_v28  ;;  %v6659_v2 = vmul.f32 %v6580_v44, %v6505_v17 }
 0x101   : > { %9844 = vst [vmem:[#allocation163_spill] sm:$0xff] %v6561_v26 }
 0x102   : > { %9845 = vst [vmem:[#allocation164_spill] sm:$0xff] %v6564_v47 }
 0x103   : > { %9846 = vst [vmem:[#allocation165_spill] sm:$0xff] %v6568_v20  ;;  %v6591_v20 = vld [vmem:[%s5847_s21 + $0x29] ss:$0 sm:$0xff] }
 0x104   : > { %9847 = vst [vmem:[#allocation166_spill] sm:$0xff] %v6571_v16  ;;  %v6601_v16 = vmul.f32 %v6508_v30, %v6505_v17  ;;  %v6663_v41 = vmul.f32 %v6591_v20, %v6505_v17 }
 0x105   : > { %9848 = vst [vmem:[#allocation167_spill] sm:$0xff] %v6574_v5 }
 0x106   : > { %9849 = vst [vmem:[#allocation168_spill] sm:$0xff] %v6577_v55 }
 0x107   : > { %9850 = vst [vmem:[#allocation169_spill] sm:$0xff] %v6580_v44 }
 0x108   : > { %9851 = vst [vmem:[#allocation170_spill] sm:$0xff] %v6591_v20 }
 0x109   : > { %9852 = vst [vmem:[#allocation171_spill] sm:$0xff] %v6594_v32 }
 0x10a   : > { %9853 = vst [vmem:[#allocation172_spill] sm:$0xff] %v6597_v51 }
 0x10b   : > { %9854 = vst [vmem:[#allocation173_spill] sm:$0xff] %v6605_v61  ;;  %v6735_v61 = vmul.f32 %v6511_v35, %v580_v24 }
 0x10c   : > { %9855 = vst [vmem:[#allocation174_spill] sm:$0xff] %v6609_v18 }
 0x10d   : > { %9856 = vst [vmem:[#allocation175_spill] sm:$0xff] %v6613_v50  ;;  %v6695_v50 = vmul.f32 %v6622_v31, %v6505_v17 }
 0x10e   : > { %9857 = vst [vmem:[#allocation176_spill] sm:$0xff] %v6616_v56 }
 0x10f   : > { %9858 = vst [vmem:[#allocation177_spill] sm:$0xff] %v6619_v0 }
 0x110   : > { %9859 = vst [vmem:[#allocation178_spill] sm:$0xff] %v6622_v31 }
 0x111   : > { %9860 = vst [vmem:[#allocation179_spill] sm:$0xff] %v6626_v11  ;;  %v6691_v11 = vld [vmem:[%s5847_s21 + $0x35] ss:$0 sm:$0xff] }
 0x112   : > { %9861 = vst [vmem:[#allocation180_spill] sm:$0xff] %v6630_v59  ;;  %v6672_v59 = vld [vmem:[%s5847_s21 + $0x34] ss:$0 sm:$0xff] }
 0x113   : > { %9862 = vst [vmem:[#allocation181_spill] sm:$0xff] %v6634_v54  ;;  %v6669_v54 = vld [vmem:[%s5847_s21 + $0x33] ss:$0 sm:$0xff] }
 0x114   : > { %9863 = vst [vmem:[#allocation182_spill] sm:$0xff] %v6638_v52  ;;  %v6666_v52 = vld [vmem:[%s5847_s21 + $0x32] ss:$0 sm:$0xff]  ;;  %v6715_v18 = vmul.f32 %v6669_v54, %v6505_v17 }
 0x115   : > { %9864 = vst [vmem:[#allocation183_spill] sm:$0xff] %v6641_v4 }
 0x116   : > { %9865 = vst [vmem:[#allocation184_spill] sm:$0xff] %v6644_v46 }
 0x117   : > { %9866 = vst [vmem:[#allocation185_spill] sm:$0xff] %v6647_v34 }
 0x118   : > { %9867 = vst [vmem:[#allocation186_spill] sm:$0xff] %v6651_v33  ;;  %v6676_v33 = vmul.f32 %v6594_v32, %v6505_v17 }
 0x119   : > { %9868 = vst [vmem:[#allocation187_spill] sm:$0xff] %v6655_v6  ;;  %v6680_v6 = vmul.f32 %v6597_v51, %v6505_v17 }
 0x11a   : > { %9869 = vst [vmem:[#allocation188_spill] sm:$0xff] %v6659_v2  ;;  %v6684_v2 = vmul.f32 %v6616_v56, %v6505_v17 }
 0x11b   : > { %9870 = vst [vmem:[#allocation189_spill] sm:$0xff] %v6663_v41  ;;  %v6688_v41 = vmul.f32 %v6619_v0, %v6505_v17 }
 0x11c   : > { %9871 = vst [vmem:[#allocation190_spill] sm:$0xff] %v6666_v52 }
 0x11d   : > { %9872 = vst [vmem:[#allocation191_spill] sm:$0xff] %v6669_v54 }
 0x11e   : > { %9873 = vst [vmem:[#allocation192_spill] sm:$0xff] %v6672_v59 }
 0x11f   : > { %9874 = vst [vmem:[#allocation193_spill] sm:$0xff] %v6676_v33  ;;  %v6699_v33 = vmul.f32 %v6641_v4, %v6505_v17 }
 0x120   : > { %9875 = vst [vmem:[#allocation194_spill] sm:$0xff] %v6680_v6  ;;  %v6703_v6 = vmul.f32 %v6644_v46, %v6505_v17 }
 0x121   : > { %9876 = vst [vmem:[#allocation195_spill] sm:$0xff] %v6684_v2  ;;  %v6707_v2 = vmul.f32 %v6647_v34, %v6505_v17 }
 0x122   : > { %9877 = vst [vmem:[#allocation196_spill] sm:$0xff] %v6688_v41  ;;  %v6711_v41 = vmul.f32 %v6666_v52, %v6505_v17 }
 0x123   : > { %9878 = vst [vmem:[#allocation197_spill] sm:$0xff] %v6691_v11 }
 0x124   : > { %9879 = vst [vmem:[#allocation198_spill] sm:$0xff] %v6695_v50  ;;  %v6719_v50 = vmul.f32 %v6672_v59, %v6505_v17 }
 0x125   : > { %9880 = vst [vmem:[#allocation199_spill] sm:$0xff] %v6699_v33  ;;  %v6722_v33 = vmul.f32 %v6475_v60, %v580_v24  ;;  %v6744_v60 = vmul.f32 %v6539_v39, %v580_v24 }
 0x126   : > { %9881 = vst [vmem:[#allocation200_spill] sm:$0xff] %v6703_v6  ;;  %v6726_v6 = vmul.f32 %v6691_v11, %v6505_v17  ;;  %v6747_v17 = vmul.f32 %v6558_v28, %v580_v24 }
 0x127   : > { %9882 = vst [vmem:[#allocation201_spill] sm:$0xff] %v6707_v2  ;;  %v6729_v2 = vmul.f32 %v6478_v7, %v580_v24 }
 0x128   : > { %9883 = vst [vmem:[#allocation202_spill] sm:$0xff] %v6711_v41  ;;  %v6732_v41 = vmul.f32 %v6508_v30, %v580_v24 }
 0x129   : > { %9884 = vst [vmem:[#allocation203_spill] sm:$0xff] %v6715_v18  ;;  %v6738_v18 = vmul.f32 %v6514_v42, %v580_v24 }
 0x12a   : > { %9885 = vst [vmem:[#allocation204_spill] sm:$0xff] %v6719_v50  ;;  %v6741_v50 = vmul.f32 %v6536_v49, %v580_v24 }
 0x12b   : > { %9886 = vst [vmem:[#allocation205_spill] sm:$0xff] %v6722_v33 }
 0x12c   : > { %9887 = vst [vmem:[#allocation206_spill] sm:$0xff] %v6729_v2  ;;  %v6750_v2 = vmul.f32 %v6561_v26, %v580_v24 }
 0x12d   : > { %9888 = vst [vmem:[#allocation207_spill] sm:$0xff] %v6732_v41  ;;  %v6753_v41 = vmul.f32 %v6564_v47, %v580_v24 }
 0x12e   : > { %9889 = vst [vmem:[#allocation208_spill] sm:$0xff] %v6735_v61  ;;  %v6756_v61 = vmul.f32 %v6574_v5, %v580_v24 }
 0x12f   : > { %9890 = vst [vmem:[#allocation209_spill] sm:$0xff] %v6738_v18  ;;  %v6759_v18 = vmul.f32 %v6577_v55, %v580_v24 }
 0x130   : > { %9891 = vst [vmem:[#allocation210_spill] sm:$0xff] %v6741_v50  ;;  %v6762_v50 = vmul.f32 %v6580_v44, %v580_v24 }
 0x131   : > { %9892 = vst [vmem:[#allocation211_spill] sm:$0xff] %v6744_v60  ;;  %v6765_v60 = vmul.f32 %v6591_v20, %v580_v24 }
 0x132   : > { %9893 = vst [vmem:[#allocation212_spill] sm:$0xff] %v6747_v17  ;;  %v6768_v17 = vmul.f32 %v6594_v32, %v580_v24 }
 0x133   : > { %9894 = vst [vmem:[#allocation213_spill] sm:$0xff] %v6750_v2  ;;  %v6771_v2 = vmul.f32 %v6597_v51, %v580_v24 }
 0x134   : > { %9895 = vst [vmem:[#allocation214_spill] sm:$0xff] %v6753_v41  ;;  %v6774_v41 = vmul.f32 %v6616_v56, %v580_v24  ;;  %v9957_v56 = vld [vmem:[#allocation202_spill] sm:$0xff] }
 0x135   : > { %9896 = vst [vmem:[#allocation215_spill] sm:$0xff] %v6756_v61  ;;  %v6777_v61 = vmul.f32 %v6619_v0, %v580_v24  ;;  %v9944_v0 = vld [vmem:[#allocation182_spill] sm:$0xff] }
 0x136   : > { %9897 = vst [vmem:[#allocation216_spill] sm:$0xff] %v6759_v18  ;;  %v6780_v18 = vmul.f32 %v6622_v31, %v580_v24 }
 0x137   : > { %9898 = vst [vmem:[#allocation217_spill] sm:$0xff] %v6762_v50  ;;  %v6783_v50 = vmul.f32 %v6641_v4, %v580_v24  ;;  %v9941_v4 = vld [vmem:[#allocation179_spill] sm:$0xff] }
 0x138   : > { %9899 = vst [vmem:[#allocation218_spill] sm:$0xff] %v6765_v60  ;;  %v6786_v60 = vmul.f32 %v6644_v46, %v580_v24 }
 0x139   : > { %9900 = vst [vmem:[#allocation219_spill] sm:$0xff] %v6768_v17  ;;  %v6789_v17 = vmul.f32 %v6647_v34, %v580_v24 }
 0x13a   : > { %9901 = vst [vmem:[#allocation220_spill] sm:$0xff] %v6771_v2  ;;  %v6792_v2 = vmul.f32 %v6666_v52, %v580_v24 }
 0x13b   : > { %9902 = vst [vmem:[#allocation221_spill] sm:$0xff] %v6774_v41  ;;  %v6795_v41 = vmul.f32 %v6669_v54, %v580_v24 }
 0x13c   : > { %9903 = vst [vmem:[#allocation222_spill] sm:$0xff] %v6777_v61  ;;  %v6798_v61 = vmul.f32 %v6672_v59, %v580_v24 }
 0x13d   : > { %9904 = vst [vmem:[#allocation223_spill] sm:$0xff] %v6780_v18  ;;  %v6801_v18 = vmul.f32 %v6691_v11, %v580_v24  ;;  %v9918_v24 = vld [vmem:[#allocation85_spill] sm:$0xff] }
 0x13e   : > { %9905 = vst [vmem:[#allocation224_spill] sm:$0xff] %v6783_v50  ;;  %v9912_v50 = vld [vmem:[#allocation79_spill] sm:$0xff] }
 0x13f   : > { %9906 = vst [vmem:[#allocation225_spill] sm:$0xff] %v6786_v60  ;;  %v417_v33 = vadd.f32 %v9912_v50, %v6304_v3  ;;  %v9913_v60 = vld [vmem:[#allocation80_spill] sm:$0xff]  ;;  %v9919_v3 = vld [vmem:[#allocation86_spill] sm:$0xff] }
 0x140   : > { %9907 = vst [vmem:[#allocation226_spill] sm:$0xff] %v6789_v17  ;;  %v419_v46 = vadd.f32 %v9913_v60, %v6306_v40  ;;  %v9914_v17 = vld [vmem:[#allocation81_spill] sm:$0xff]  ;;  %v431_v50 = vadd.f32 %v9919_v3, %v6318_v22  ;;  %v9920_v40 = vld [vmem:[#allocation87_spill] sm:$0xff]  ;;  %v9926_v22 = vld [vmem:[#allocation94_spill] sm:$0xff] }
 0x141   : > { %9908 = vst [vmem:[#allocation227_spill] sm:$0xff] %v6792_v2  ;;  %v421_v34 = vadd.f32 %v9914_v17, %v6308_v45  ;;  %v9915_v2 = vld [vmem:[#allocation82_spill] sm:$0xff]  ;;  %v433_v60 = vadd.f32 %v9920_v40, %v6320_v58  ;;  %v9921_v45 = vld [vmem:[#allocation88_spill] sm:$0xff]  ;;  %v445_v3 = vadd.f32 %v9926_v22, %v6344_v8  ;;  %v9927_v58 = vld [vmem:[#allocation95_spill] sm:$0xff] }
 0x142   : > { %9909 = vst [vmem:[#allocation228_spill] sm:$0xff] %v6795_v41  ;;  %v423_v52 = vadd.f32 %v9915_v2, %v6310_v10  ;;  %v9916_v41 = vld [vmem:[#allocation83_spill] sm:$0xff]  ;;  %v435_v17 = vadd.f32 %v9921_v45, %v6322_v37  ;;  %v9922_v10 = vld [vmem:[#allocation90_spill] sm:$0xff]  ;;  %v447_v40 = vadd.f32 %v9927_v58, %v6346_v25  ;;  %v9928_v37 = vld [vmem:[#allocation96_spill] sm:$0xff] }
 0x143   : > { %9910 = vst [vmem:[#allocation229_spill] sm:$0xff] %v6798_v61  ;;  %v425_v54 = vadd.f32 %v9916_v41, %v6312_v12  ;;  %v9917_v61 = vld [vmem:[#allocation84_spill] sm:$0xff]  ;;  %v437_v2 = vadd.f32 %v9922_v10, %v6324_v36  ;;  %v9923_v12 = vld [vmem:[#allocation91_spill] sm:$0xff]  ;;  %v449_v45 = vadd.f32 %v9928_v37, %v6348_v27  ;;  %v9929_v36 = vld [vmem:[#allocation97_spill] sm:$0xff] }
 0x144   : > { %9911 = vst [vmem:[#allocation230_spill] sm:$0xff] %v6801_v18  ;;  %v427_v59 = vadd.f32 %v9917_v61, %v6314_v14  ;;  %v429_v18 = vadd.f32 %v9918_v24, %v6316_v57  ;;  %v439_v41 = vadd.f32 %v9923_v12, %v6326_v63  ;;  %v9924_v14 = vld [vmem:[#allocation92_spill] sm:$0xff]  ;;  %v9925_v57 = vld [vmem:[#allocation93_spill] sm:$0xff]  ;;  %v451_v10 = vadd.f32 %v9929_v36, %v6350_v29  ;;  %v9930_v63 = vld [vmem:[#allocation98_spill] sm:$0xff] }
 0x145   : > { %v441_v61 = vadd.f32 %v9924_v14, %v6328_v15  ;;  %v443_v24 = vadd.f32 %v9925_v57, %v6330_v38  ;;  %v453_v12 = vadd.f32 %v9930_v63, %v6366_v23  ;;  %v9931_v15 = vld [vmem:[#allocation99_spill] sm:$0xff]  ;;  %v9932_v38 = vld [vmem:[#allocation100_spill] sm:$0xff]  ;;  %v9933_v8 = vld [vmem:[#allocation101_spill] sm:$0xff] }
 0x146   : > { %v455_v14 = vadd.f32 %v9931_v15, %v6368_v19  ;;  %v457_v57 = vadd.f32 %v9932_v38, %v6370_v21  ;;  %v459_v22 = vadd.f32 %v9933_v8, %v6372_v48  ;;  %v9934_v25 = vld [vmem:[#allocation78_spill] sm:$0xff]  ;;  %v9936_v29 = vld [vmem:[#allocation67_spill] sm:$0xff]  ;;  %v9937_v23 = vld [vmem:[#allocation56_spill] sm:$0xff]  ;;  %v640_v19 = vadd.f32 %v6584_v53, %v417_v33 }
 0x147   : > { %v461_v58 = vadd.f32 %v9934_v25, %v6384_v62  ;;  %v9935_v27 = vld [vmem:[#allocation62_spill] sm:$0xff]  ;;  %v465_v36 = vadd.f32 %v9936_v29, %v6390_v13  ;;  %v467_v63 = vadd.f32 %v9937_v23, %v6393_v1  ;;  %v642_v15 = vadd.f32 %v6588_v43, %v419_v46  ;;  %v9938_v38 = vld [vmem:[#allocation173_spill] sm:$0xff]  ;;  %v9940_v62 = vld [vmem:[#allocation175_spill] sm:$0xff]  ;;  %v702_v46 = vpop.permute.xlu0 %701 }
 0x148   : > { %v463_v37 = vadd.f32 %v9935_v27, %v6387_v9  ;;  %v644_v21 = vadd.f32 %v6601_v16, %v421_v34  ;;  %v646_v48 = vadd.f32 %v9938_v38, %v423_v52  ;;  %v9939_v8 = vld [vmem:[#allocation174_spill] sm:$0xff]  ;;  %v650_v25 = vadd.f32 %v9940_v62, %v427_v59  ;;  %v9942_v27 = vld [vmem:[#allocation180_spill] sm:$0xff]  ;;  %v9943_v13 = vld [vmem:[#allocation181_spill] sm:$0xff] }
 0x149   : > { %v648_v11 = vadd.f32 %v9939_v8, %v425_v54  ;;  %v652_v9 = vadd.f32 %v9941_v4, %v429_v18  ;;  %v654_v31 = vadd.f32 %v9942_v27, %v431_v50  ;;  %v656_v29 = vadd.f32 %v9943_v13, %v433_v60  ;;  %v9945_v23 = vld [vmem:[#allocation186_spill] sm:$0xff]  ;;  %v9946_v53 = vld [vmem:[#allocation187_spill] sm:$0xff]  ;;  %v9947_v34 = vld [vmem:[#allocation188_spill] sm:$0xff] }
 0x14a   : > { %v658_v1 = vadd.f32 %v9944_v0, %v435_v17  ;;  %v660_v33 = vadd.f32 %v9945_v23, %v437_v2  ;;  %v662_v43 = vadd.f32 %v9946_v53, %v439_v41  ;;  %v664_v16 = vadd.f32 %v9947_v34, %v441_v61  ;;  %v9948_v52 = vld [vmem:[#allocation189_spill] sm:$0xff]  ;;  %v9950_v59 = vld [vmem:[#allocation194_spill] sm:$0xff]  ;;  %v9951_v4 = vld [vmem:[#allocation195_spill] sm:$0xff] }
 0x14b   : > { %v666_v38 = vadd.f32 %v9948_v52, %v443_v24  ;;  %v9949_v54 = vld [vmem:[#allocation193_spill] sm:$0xff]  ;;  %v670_v62 = vadd.f32 %v9950_v59, %v447_v40  ;;  %v672_v18 = vadd.f32 %v9951_v4, %v449_v45  ;;  %v9952_v50 = vld [vmem:[#allocation196_spill] sm:$0xff]  ;;  %v9953_v60 = vld [vmem:[#allocation198_spill] sm:$0xff]  ;;  %v684_v61 = vadd.f32 %v9957_v56, %v461_v58 }
 0x14c   : > { %v668_v8 = vadd.f32 %v9949_v54, %v445_v3  ;;  %v674_v27 = vadd.f32 %v9952_v50, %v451_v10  ;;  %v676_v13 = vadd.f32 %v9953_v60, %v453_v12  ;;  %v9954_v0 = vld [vmem:[#allocation199_spill] sm:$0xff]  ;;  %v9955_v2 = vld [vmem:[#allocation200_spill] sm:$0xff]  ;;  %v9956_v41 = vld [vmem:[#allocation201_spill] sm:$0xff]  ;;  %v690_v40 = vadd.f32 %v6726_v6, %v467_v63 }
 0x14d   : > { %v678_v17 = vadd.f32 %v9954_v0, %v455_v14  ;;  %v680_v23 = vadd.f32 %v9955_v2, %v457_v57  ;;  %v682_v53 = vadd.f32 %v9956_v41, %v459_v22  ;;  %v9958_v34 = vld [vmem:[#allocation203_spill] sm:$0xff]  ;;  %v9959_v52 = vld [vmem:[#allocation204_spill] sm:$0xff]  ;;  %v705_v45 = vmul.f32 %v6478_v7, %v702_v46  ;;  %v6896_v59 = vld [vmem:[%s5847_s21 + $0x36] ss:$0 sm:$0xff] }
 0x14e   : > { %v686_v24 = vadd.f32 %v9958_v34, %v463_v37  ;;  %v688_v3 = vadd.f32 %v9959_v52, %v465_v36  ;;  %v707_v10 = vmul.f32 %v6508_v30, %v702_v46  ;;  %v709_v12 = vmul.f32 %v6511_v35, %v702_v46  ;;  %9960 = vst [vmem:[#allocation79_spill] sm:$0xff] %v6896_v59  ;;  %v9961_v50 = vld [vmem:[#allocation176_spill] sm:$0xff]  ;;  %v9962_v0 = vld [vmem:[#allocation177_spill] sm:$0xff]  ;;  %v9963_v41 = vld [vmem:[#allocation178_spill] sm:$0xff] }
 0x14f   : > { %v711_v14 = vmul.f32 %v6514_v42, %v702_v46  ;;  %v713_v57 = vmul.f32 %v6536_v49, %v702_v46  ;;  %v715_v22 = vmul.f32 %v6539_v39, %v702_v46  ;;  %v717_v56 = vmul.f32 %v6558_v28, %v702_v46  ;;  %v9964_v52 = vld [vmem:[#allocation183_spill] sm:$0xff]  ;;  %v9967_v28 = vld [vmem:[#allocation190_spill] sm:$0xff]  ;;  %v9969_v49 = vld [vmem:[#allocation192_spill] sm:$0xff] }
 0x150   : > { %v719_v58 = vmul.f32 %v6561_v26, %v702_v46  ;;  %v721_v37 = vmul.f32 %v6564_v47, %v702_v46  ;;  %v723_v6 = vmul.f32 %v6574_v5, %v702_v46  ;;  %v725_v7 = vmul.f32 %v6577_v55, %v702_v46  ;;  %v9965_v47 = vld [vmem:[#allocation184_spill] sm:$0xff]  ;;  %v9966_v26 = vld [vmem:[#allocation185_spill] sm:$0xff]  ;;  %v9968_v39 = vld [vmem:[#allocation191_spill] sm:$0xff] }
 0x151   : > { %v727_v36 = vmul.f32 %v6580_v44, %v702_v46  ;;  %v729_v63 = vmul.f32 %v6591_v20, %v702_v46  ;;  %v731_v54 = vmul.f32 %v6594_v32, %v702_v46  ;;  %v733_v4 = vmul.f32 %v6597_v51, %v702_v46  ;;  %v9970_v35 = vld [vmem:[#allocation197_spill] sm:$0xff] }
 0x152   : > { %v735_v60 = vmul.f32 %v9961_v50, %v702_v46  ;;  %v737_v2 = vmul.f32 %v9962_v0, %v702_v46  ;;  %v739_v34 = vmul.f32 %v9963_v41, %v702_v46  ;;  %v741_v5 = vmul.f32 %v9964_v52, %v702_v46 }
 0x153   : > { %v743_v55 = vmul.f32 %v9965_v47, %v702_v46  ;;  %v745_v44 = vmul.f32 %v9966_v26, %v702_v46  ;;  %v747_v20 = vmul.f32 %v9967_v28, %v702_v46  ;;  %v749_v32 = vmul.f32 %v9968_v39, %v702_v46 }
 0x154   : > { %v751_v42 = vmul.f32 %v9969_v49, %v702_v46  ;;  %v753_v51 = vmul.f32 %v9970_v35, %v702_v46  ;;  %v755_v50 = vmul.f32 %v6896_v59, %v702_v46  ;;  %v757_v30 = vadd.f32 %v705_v45, %v640_v19 }
 0x155   : > { %v759_v0 = vadd.f32 %v707_v10, %v642_v15  ;;  %v761_v41 = vadd.f32 %v709_v12, %v644_v21  ;;  %v763_v52 = vadd.f32 %v711_v14, %v646_v48  ;;  %v765_v47 = vadd.f32 %v713_v57, %v648_v11 }
 0x156   : > { %v767_v26 = vadd.f32 %v715_v22, %v650_v25  ;;  %v769_v28 = vadd.f32 %v717_v56, %v652_v9  ;;  %v771_v39 = vadd.f32 %v719_v58, %v654_v31  ;;  %v773_v49 = vadd.f32 %v721_v37, %v656_v29  ;;  %v6910_v9 = vpop.permute.xlu1 %813  ;;  %v9985_v56 = vld [vmem:[#allocation170_spill] sm:$0xff]  ;;  %v9986_v37 = vld [vmem:[#allocation171_spill] sm:$0xff] }
 0x157   : > { %v775_v35 = vadd.f32 %v723_v6, %v658_v1  ;;  %v777_v46 = vadd.f32 %v725_v7, %v660_v33  ;;  %v779_v59 = vadd.f32 %v727_v36, %v662_v43  ;;  %v781_v19 = vadd.f32 %v729_v63, %v664_v16  ;;  %9971 = vst [vmem:[#allocation80_spill] sm:$0xff] %v6910_v9  ;;  %v9972_v1 = vld [vmem:[#allocation120_spill] sm:$0xff]  ;;  %v9974_v16 = vld [vmem:[#allocation149_spill] sm:$0xff]  ;;  %v9994_v9 = vld [vmem:[#allocation190_spill] sm:$0xff] }
 0x158   : > { %v783_v45 = vadd.f32 %v731_v54, %v666_v38  ;;  %v785_v10 = vadd.f32 %v733_v4, %v668_v8  ;;  %v787_v15 = vadd.f32 %v735_v60, %v670_v62  ;;  %v789_v12 = vadd.f32 %v737_v2, %v672_v18  ;;  %v9973_v33 = vld [vmem:[#allocation148_spill] sm:$0xff]  ;;  %v9975_v8 = vld [vmem:[#allocation150_spill] sm:$0xff]  ;;  %v9980_v18 = vld [vmem:[#allocation163_spill] sm:$0xff] }
 0x159   : > { %v791_v21 = vadd.f32 %v739_v34, %v674_v27  ;;  %v793_v14 = vadd.f32 %v741_v5, %v676_v13  ;;  %v795_v48 = vadd.f32 %v743_v55, %v678_v17  ;;  %v797_v11 = vadd.f32 %v745_v44, %v680_v23  ;;  %v9976_v5 = vld [vmem:[#allocation156_spill] sm:$0xff]  ;;  %v9977_v44 = vld [vmem:[#allocation157_spill] sm:$0xff]  ;;  %v9982_v23 = vld [vmem:[#allocation167_spill] sm:$0xff] }
 0x15a   : > { %v799_v57 = vadd.f32 %v747_v20, %v682_v53  ;;  %v801_v22 = vadd.f32 %v749_v32, %v684_v61  ;;  %v803_v25 = vadd.f32 %v751_v42, %v686_v24  ;;  %v805_v31 = vadd.f32 %v753_v51, %v688_v3  ;;  %v9978_v42 = vld [vmem:[#allocation162_spill] sm:$0xff]  ;;  %v6925_v51 = vld [vmem:[%s5847_s21 + $0x37] ss:$0 sm:$0xff]  ;;  %v9981_v13 = vld [vmem:[#allocation164_spill] sm:$0xff] }
 0x15b   : > { %v807_v29 = vadd.f32 %v755_v50, %v690_v40  ;;  %v822_v43 = vmul.f32 %v9973_v33, %v9972_v1  ;;  %v824_v38 = vmul.f32 %v9974_v16, %v9972_v1  ;;  %v826_v62 = vmul.f32 %v9975_v8, %v9972_v1  ;;  %9979 = vst [vmem:[#allocation81_spill] sm:$0xff] %v6925_v51  ;;  %v9983_v61 = vld [vmem:[#allocation168_spill] sm:$0xff]  ;;  %v9984_v3 = vld [vmem:[#allocation169_spill] sm:$0xff]  ;;  %v9990_v60 = vld [vmem:[#allocation178_spill] sm:$0xff] }
 0x15c   : > { %v828_v55 = vmul.f32 %v9976_v5, %v9972_v1  ;;  %v830_v20 = vmul.f32 %v9977_v44, %v9972_v1  ;;  %v832_v32 = vmul.f32 %v9978_v42, %v9972_v1  ;;  %v834_v27 = vmul.f32 %v9980_v18, %v9972_v1  ;;  %v9987_v7 = vld [vmem:[#allocation172_spill] sm:$0xff]  ;;  %v9989_v4 = vld [vmem:[#allocation177_spill] sm:$0xff]  ;;  %v9991_v34 = vld [vmem:[#allocation183_spill] sm:$0xff] }
 0x15d   : > { %v836_v17 = vmul.f32 %v9981_v13, %v9972_v1  ;;  %v838_v53 = vmul.f32 %v9982_v23, %v9972_v1  ;;  %v840_v24 = vmul.f32 %v9983_v61, %v9972_v1  ;;  %v842_v40 = vmul.f32 %v9984_v3, %v9972_v1  ;;  %v9988_v63 = vld [vmem:[#allocation176_spill] sm:$0xff]  ;;  %v9993_v5 = vld [vmem:[#allocation185_spill] sm:$0xff] }
 0x15e   : > { %v844_v58 = vmul.f32 %v9985_v56, %v9972_v1  ;;  %v846_v6 = vmul.f32 %v9986_v37, %v9972_v1  ;;  %v848_v36 = vmul.f32 %v9987_v7, %v9972_v1  ;;  %v850_v54 = vmul.f32 %v9988_v63, %v9972_v1  ;;  %v9992_v16 = vld [vmem:[#allocation184_spill] sm:$0xff]  ;;  %v9995_v63 = vld [vmem:[#allocation191_spill] sm:$0xff] }
 0x15f   : > { %v852_v50 = vmul.f32 %v9989_v4, %v9972_v1  ;;  %v854_v2 = vmul.f32 %v9990_v60, %v9972_v1  ;;  %v856_v33 = vmul.f32 %v9991_v34, %v9972_v1  ;;  %v858_v8 = vmul.f32 %v9992_v16, %v9972_v1  ;;  %v9996_v4 = vld [vmem:[#allocation192_spill] sm:$0xff]  ;;  %v9997_v60 = vld [vmem:[#allocation197_spill] sm:$0xff]  ;;  %v9998_v34 = vld [vmem:[#allocation79_spill] sm:$0xff] }
 0x160   : > { %v860_v44 = vmul.f32 %v9993_v5, %v9972_v1  ;;  %v862_v7 = vmul.f32 %v9994_v9, %v9972_v1  ;;  %v864_v37 = vmul.f32 %v9995_v63, %v9972_v1  ;;  %v866_v56 = vmul.f32 %v9996_v4, %v9972_v1 }
 0x161   : > { %v868_v3 = vmul.f32 %v9997_v60, %v9972_v1  ;;  %v870_v61 = vmul.f32 %v9998_v34, %v9972_v1  ;;  %v872_v16 = vmul.f32 %v6925_v51, %v9972_v1  ;;  %v874_v5 = vadd.f32 %v822_v43, %v757_v30  ;;  %v6968_v30 = vld [vmem:[%s5847_s21 + $0x38] ss:$0 sm:$0xff]  ;;  %v1042_v43 = vpop.permute.xlu1 %1041 }
 0x162   : > { %v876_v23 = vadd.f32 %v824_v38, %v759_v0  ;;  %v878_v13 = vadd.f32 %v826_v62, %v761_v41  ;;  %v880_v9 = vadd.f32 %v828_v55, %v763_v52  ;;  %v882_v18 = vadd.f32 %v830_v20, %v765_v47  ;;  %9999 = vst [vmem:[#allocation82_spill] sm:$0xff] %v6968_v30 }
 0x163   : > { %v884_v42 = vadd.f32 %v832_v32, %v767_v26  ;;  %v886_v63 = vadd.f32 %v834_v27, %v769_v28  ;;  %v888_v4 = vadd.f32 %v836_v17, %v771_v39  ;;  %v890_v60 = vadd.f32 %v838_v53, %v773_v49  ;;  %v6971_v26 = vld [vmem:[%s5847_s21 + $0x39] ss:$0 sm:$0xff]  ;;  %v10008_v53 = vld [vmem:[#allocation33_spill] sm:$0xff] }
 0x164   : > { %v892_v34 = vadd.f32 %v840_v24, %v775_v35  ;;  %v894_v1 = vadd.f32 %v842_v40, %v777_v46  ;;  %v896_v51 = vadd.f32 %v844_v58, %v779_v59  ;;  %v898_v0 = vadd.f32 %v846_v6, %v781_v19  ;;  %10000 = vst [vmem:[#allocation83_spill] sm:$0xff] %v6971_v26  ;;  %v6973_v35 = vpop.permute.xlu0 %1036  ;;  %v10011_v40 = vld [vmem:[#allocation36_spill] sm:$0xff]  ;;  %v10012_v58 = vld [vmem:[#allocation37_spill] sm:$0xff]  ;;  %v10013_v6 = vld [vmem:[#allocation38_spill] sm:$0xff] }
 0x165   : > { %v900_v38 = vadd.f32 %v848_v36, %v783_v45  ;;  %v902_v41 = vadd.f32 %v850_v54, %v785_v10  ;;  %v904_v62 = vadd.f32 %v852_v50, %v787_v15  ;;  %v906_v52 = vadd.f32 %v854_v2, %v789_v12  ;;  %10001 = vst [vmem:[#allocation84_spill] sm:$0xff] %v6973_v35  ;;  %v10002_v45 = vld [vmem:[#allocation27_spill] sm:$0xff]  ;;  %v10003_v15 = vld [vmem:[#allocation28_spill] sm:$0xff] }
 0x166   : > { %v908_v55 = vadd.f32 %v856_v33, %v791_v21  ;;  %v910_v20 = vadd.f32 %v858_v8, %v793_v14  ;;  %v912_v47 = vadd.f32 %v860_v44, %v795_v48  ;;  %v914_v28 = vadd.f32 %v862_v7, %v797_v11  ;;  %v10004_v21 = vld [vmem:[#allocation29_spill] sm:$0xff]  ;;  %v10005_v48 = vld [vmem:[#allocation30_spill] sm:$0xff]  ;;  %v10006_v11 = vld [vmem:[#allocation31_spill] sm:$0xff] }
 0x167   : > { %v916_v32 = vadd.f32 %v864_v37, %v799_v57  ;;  %v918_v39 = vadd.f32 %v866_v56, %v801_v22  ;;  %v920_v49 = vadd.f32 %v868_v3, %v803_v25  ;;  %v922_v59 = vadd.f32 %v870_v61, %v805_v31  ;;  %v10007_v22 = vld [vmem:[#allocation32_spill] sm:$0xff]  ;;  %v10009_v31 = vld [vmem:[#allocation34_spill] sm:$0xff]  ;;  %v10010_v61 = vld [vmem:[#allocation35_spill] sm:$0xff] }
 0x168   : > { %v924_v46 = vadd.f32 %v872_v16, %v807_v29  ;;  %v1045_v27 = vmul.f32 %v6968_v30, %v1042_v43  ;;  %v1047_v19 = vmul.f32 %v6971_v26, %v1042_v43  ;;  %v1049_v10 = vmul.f32 %v10002_v45, %v1042_v43  ;;  %v10014_v36 = vld [vmem:[#allocation39_spill] sm:$0xff]  ;;  %v10015_v50 = vld [vmem:[#allocation40_spill] sm:$0xff]  ;;  %v10016_v33 = vld [vmem:[#allocation41_spill] sm:$0xff] }
 0x169   : > { %v1051_v12 = vmul.f32 %v10003_v15, %v1042_v43  ;;  %v1053_v14 = vmul.f32 %v10004_v21, %v1042_v43  ;;  %v1055_v17 = vmul.f32 %v10005_v48, %v1042_v43  ;;  %v1057_v57 = vmul.f32 %v10006_v11, %v1042_v43  ;;  %v10017_v8 = vld [vmem:[#allocation42_spill] sm:$0xff]  ;;  %v10018_v30 = vld [vmem:[#allocation47_spill] sm:$0xff]  ;;  %v10022_v48 = vld [vmem:[#allocation136_spill] sm:$0xff] }
 0x16a   : > { %v1059_v25 = vmul.f32 %v10007_v22, %v1042_v43  ;;  %v1061_v24 = vmul.f32 %v10008_v53, %v1042_v43  ;;  %v1063_v29 = vmul.f32 %v10009_v31, %v1042_v43  ;;  %v1065_v3 = vmul.f32 %v10010_v61, %v1042_v43  ;;  %v10019_v53 = vld [vmem:[#allocation61_spill] sm:$0xff]  ;;  %v10020_v22 = vld [vmem:[#allocation102_spill] sm:$0xff]  ;;  %v10021_v11 = vld [vmem:[#allocation131_spill] sm:$0xff] }
 0x16b   : > { %v1067_v56 = vmul.f32 %v10011_v40, %v1042_v43  ;;  %v1069_v37 = vmul.f32 %v10012_v58, %v1042_v43  ;;  %v1071_v7 = vmul.f32 %v10013_v6, %v1042_v43  ;;  %v1073_v54 = vmul.f32 %v10014_v36, %v1042_v43  ;;  %v10023_v21 = vld [vmem:[#allocation141_spill] sm:$0xff]  ;;  %v10024_v15 = vld [vmem:[#allocation142_spill] sm:$0xff]  ;;  %v10025_v45 = vld [vmem:[#allocation143_spill] sm:$0xff] }
 0x16c   : > { %v1075_v2 = vmul.f32 %v10015_v50, %v1042_v43  ;;  %v1077_v16 = vmul.f32 %v10016_v33, %v1042_v43  ;;  %v1079_v44 = vmul.f32 %v10017_v8, %v1042_v43  ;;  %v1081_v35 = vmul.f32 %v10018_v30, %v1042_v43 }
 0x16d   : > { %v1083_v31 = vmul.f32 %v10019_v53, %v1042_v43  ;;  %v1085_v61 = vmul.f32 %v10020_v22, %v1042_v43  ;;  %v1087_v40 = vmul.f32 %v10021_v11, %v1042_v43  ;;  %v1089_v58 = vmul.f32 %v10022_v48, %v1042_v43 }
 0x16e   : > { %v1091_v6 = vmul.f32 %v10023_v21, %v1042_v43  ;;  %v1093_v36 = vmul.f32 %v10024_v15, %v1042_v43  ;;  %v1095_v50 = vmul.f32 %v10025_v45, %v1042_v43  ;;  %v1097_v26 = vadd.f32 %v1045_v27, %v874_v5  ;;  %v1159_v5 = vpop.permute.xlu0 %1158 }
 0x16f   : > { %v1099_v33 = vadd.f32 %v1047_v19, %v876_v23  ;;  %v1101_v8 = vadd.f32 %v1049_v10, %v878_v13  ;;  %v1103_v30 = vadd.f32 %v1051_v12, %v880_v9  ;;  %v1105_v53 = vadd.f32 %v1053_v14, %v882_v18 }
 0x170   : > { %v1107_v22 = vadd.f32 %v1055_v17, %v884_v42  ;;  %v1109_v11 = vadd.f32 %v1057_v57, %v886_v63  ;;  %v1111_v48 = vadd.f32 %v1059_v25, %v888_v4  ;;  %v1113_v21 = vadd.f32 %v1061_v24, %v890_v60  ;;  %v10026_v25 = vld [vmem:[#allocation83_spill] sm:$0xff] }
 0x171   : > { %v1115_v15 = vadd.f32 %v1063_v29, %v892_v34  ;;  %v1117_v43 = vadd.f32 %v1065_v3, %v894_v1  ;;  %v1119_v45 = vadd.f32 %v1067_v56, %v896_v51  ;;  %v1121_v27 = vadd.f32 %v1069_v37, %v898_v0  ;;  %v10027_v34 = vld [vmem:[#allocation27_spill] sm:$0xff]  ;;  %v10028_v51 = vld [vmem:[#allocation28_spill] sm:$0xff]  ;;  %v10029_v0 = vld [vmem:[#allocation29_spill] sm:$0xff] }
 0x172   : > { %v1123_v19 = vadd.f32 %v1071_v7, %v900_v38  ;;  %v1125_v23 = vadd.f32 %v1073_v54, %v902_v41  ;;  %v1127_v10 = vadd.f32 %v1075_v2, %v904_v62  ;;  %v1129_v13 = vadd.f32 %v1077_v16, %v906_v52  ;;  %v10030_v41 = vld [vmem:[#allocation30_spill] sm:$0xff]  ;;  %v10031_v52 = vld [vmem:[#allocation31_spill] sm:$0xff]  ;;  %v10037_v29 = vld [vmem:[#allocation37_spill] sm:$0xff] }
 0x173   : > { %v1131_v9 = vadd.f32 %v1079_v44, %v908_v55  ;;  %v1133_v12 = vadd.f32 %v1081_v35, %v910_v20  ;;  %v1135_v14 = vadd.f32 %v1083_v31, %v912_v47  ;;  %v1137_v18 = vadd.f32 %v1085_v61, %v914_v28  ;;  %v10032_v20 = vld [vmem:[#allocation32_spill] sm:$0xff]  ;;  %v10033_v28 = vld [vmem:[#allocation33_spill] sm:$0xff]  ;;  %v10035_v35 = vld [vmem:[#allocation35_spill] sm:$0xff] }
 0x174   : > { %v1139_v17 = vadd.f32 %v1087_v40, %v916_v32  ;;  %v1141_v42 = vadd.f32 %v1089_v58, %v918_v39  ;;  %v1143_v57 = vadd.f32 %v1091_v6, %v920_v49  ;;  %v1145_v63 = vadd.f32 %v1093_v36, %v922_v59  ;;  %v10034_v39 = vld [vmem:[#allocation34_spill] sm:$0xff]  ;;  %v10039_v56 = vld [vmem:[#allocation39_spill] sm:$0xff]  ;;  %v10040_v37 = vld [vmem:[#allocation40_spill] sm:$0xff] }
 0x175   : > { %v1147_v4 = vadd.f32 %v1095_v50, %v924_v46  ;;  %v1162_v60 = vmul.f32 %v10026_v25, %v1159_v5  ;;  %v1164_v1 = vmul.f32 %v10027_v34, %v1159_v5  ;;  %v1166_v24 = vmul.f32 %v10028_v51, %v1159_v5  ;;  %v10036_v46 = vld [vmem:[#allocation36_spill] sm:$0xff]  ;;  %v10038_v3 = vld [vmem:[#allocation38_spill] sm:$0xff]  ;;  %v10041_v7 = vld [vmem:[#allocation41_spill] sm:$0xff]  ;;  %v7027_v25 = vpop.permute.xlu1 %1270 }
 0x176   : > { %v1168_v38 = vmul.f32 %v10029_v0, %v1159_v5  ;;  %v1170_v62 = vmul.f32 %v10030_v41, %v1159_v5  ;;  %v1172_v55 = vmul.f32 %v10031_v52, %v1159_v5  ;;  %v1174_v47 = vmul.f32 %v10032_v20, %v1159_v5  ;;  %v10042_v54 = vld [vmem:[#allocation42_spill] sm:$0xff]  ;;  %v10043_v2 = vld [vmem:[#allocation47_spill] sm:$0xff]  ;;  %v10044_v44 = vld [vmem:[#allocation61_spill] sm:$0xff]  ;;  %10052 = vst [vmem:[#allocation85_spill] sm:$0xff] %v7027_v25 }
 0x177   : > { %v1176_v32 = vmul.f32 %v10033_v28, %v1159_v5  ;;  %v1178_v49 = vmul.f32 %v10034_v39, %v1159_v5  ;;  %v1180_v59 = vmul.f32 %v10035_v35, %v1159_v5  ;;  %v1182_v31 = vmul.f32 %v10036_v46, %v1159_v5  ;;  %v10045_v51 = vld [vmem:[#allocation102_spill] sm:$0xff]  ;;  %v10046_v41 = vld [vmem:[#allocation131_spill] sm:$0xff]  ;;  %v10047_v20 = vld [vmem:[#allocation136_spill] sm:$0xff] }
 0x178   : > { %v1184_v61 = vmul.f32 %v10037_v29, %v1159_v5  ;;  %v1186_v40 = vmul.f32 %v10038_v3, %v1159_v5  ;;  %v1188_v58 = vmul.f32 %v10039_v56, %v1159_v5  ;;  %v1190_v6 = vmul.f32 %v10040_v37, %v1159_v5  ;;  %v10048_v39 = vld [vmem:[#allocation141_spill] sm:$0xff]  ;;  %v10049_v46 = vld [vmem:[#allocation142_spill] sm:$0xff]  ;;  %v10050_v3 = vld [vmem:[#allocation143_spill] sm:$0xff] }
 0x179   : > { %v1192_v36 = vmul.f32 %v10041_v7, %v1159_v5  ;;  %v1194_v50 = vmul.f32 %v10042_v54, %v1159_v5  ;;  %v1196_v16 = vmul.f32 %v10043_v2, %v1159_v5  ;;  %v1198_v34 = vmul.f32 %v10044_v44, %v1159_v5  ;;  %v10051_v37 = vld [vmem:[#allocation151_spill] sm:$0xff] }
 0x17a   : > { %v1200_v0 = vmul.f32 %v10045_v51, %v1159_v5  ;;  %v1202_v52 = vmul.f32 %v10046_v41, %v1159_v5  ;;  %v1204_v28 = vmul.f32 %v10047_v20, %v1159_v5  ;;  %v1206_v35 = vmul.f32 %v10048_v39, %v1159_v5 }
 0x17b   : > { %v1208_v29 = vmul.f32 %v10049_v46, %v1159_v5  ;;  %v1210_v56 = vmul.f32 %v10050_v3, %v1159_v5  ;;  %v1212_v7 = vmul.f32 %v10051_v37, %v1159_v5  ;;  %v1214_v54 = vadd.f32 %v1162_v60, %v1097_v26 }
 0x17c   : > { %v1216_v2 = vadd.f32 %v1164_v1, %v1099_v33  ;;  %v1218_v44 = vadd.f32 %v1166_v24, %v1101_v8  ;;  %v1220_v51 = vadd.f32 %v1168_v38, %v1103_v30  ;;  %v1222_v41 = vadd.f32 %v1170_v62, %v1105_v53 }
 0x17d   : > { %v1224_v20 = vadd.f32 %v1172_v55, %v1107_v22  ;;  %v1226_v39 = vadd.f32 %v1174_v47, %v1109_v11  ;;  %v1228_v46 = vadd.f32 %v1176_v32, %v1111_v48  ;;  %v1230_v3 = vadd.f32 %v1178_v49, %v1113_v21  ;;  %v10053_v32 = vld [vmem:[#allocation48_spill] sm:$0xff]  ;;  %v10054_v21 = vld [vmem:[#allocation49_spill] sm:$0xff]  ;;  %v10063_v49 = vld [vmem:[#allocation139_spill] sm:$0xff] }
 0x17e   : > { %v1232_v5 = vadd.f32 %v1180_v59, %v1115_v15  ;;  %v1234_v37 = vadd.f32 %v1182_v31, %v1117_v43  ;;  %v1236_v25 = vadd.f32 %v1184_v61, %v1119_v45  ;;  %v1238_v26 = vadd.f32 %v1186_v40, %v1121_v27  ;;  %v10055_v43 = vld [vmem:[#allocation54_spill] sm:$0xff]  ;;  %v10056_v27 = vld [vmem:[#allocation55_spill] sm:$0xff]  ;;  %v10064_v31 = vld [vmem:[#allocation140_spill] sm:$0xff] }
 0x17f   : > { %v1240_v60 = vadd.f32 %v1188_v58, %v1123_v19  ;;  %v1242_v1 = vadd.f32 %v1190_v6, %v1125_v23  ;;  %v1244_v33 = vadd.f32 %v1192_v36, %v1127_v10  ;;  %v1246_v8 = vadd.f32 %v1194_v50, %v1129_v13  ;;  %v10057_v23 = vld [vmem:[#allocation132_spill] sm:$0xff]  ;;  %v10058_v13 = vld [vmem:[#allocation133_spill] sm:$0xff]  ;;  %v1390_v50 = vpop.permute.xlu1 %1389 }
 0x180   : > { %v1248_v24 = vadd.f32 %v1196_v16, %v1131_v9  ;;  %v1250_v30 = vadd.f32 %v1198_v34, %v1133_v12  ;;  %v1252_v38 = vadd.f32 %v1200_v0, %v1135_v14  ;;  %v1254_v53 = vadd.f32 %v1202_v52, %v1137_v18  ;;  %v10059_v12 = vld [vmem:[#allocation134_spill] sm:$0xff]  ;;  %v10060_v18 = vld [vmem:[#allocation135_spill] sm:$0xff]  ;;  %v10065_v40 = vld [vmem:[#allocation144_spill] sm:$0xff] }
 0x181   : > { %v1256_v62 = vadd.f32 %v1204_v28, %v1139_v17  ;;  %v1258_v22 = vadd.f32 %v1206_v35, %v1141_v42  ;;  %v1260_v55 = vadd.f32 %v1208_v29, %v1143_v57  ;;  %v1262_v11 = vadd.f32 %v1210_v56, %v1145_v63  ;;  %v10061_v42 = vld [vmem:[#allocation137_spill] sm:$0xff]  ;;  %v10062_v63 = vld [vmem:[#allocation138_spill] sm:$0xff]  ;;  %v10068_v0 = vld [vmem:[#allocation147_spill] sm:$0xff] }
 0x182   : > { %v1264_v47 = vadd.f32 %v1212_v7, %v1147_v4  ;;  %v1331_v48 = vadd.f32 %v10053_v32, %v1214_v54  ;;  %v1333_v15 = vadd.f32 %v10054_v21, %v1216_v2  ;;  %v1335_v45 = vadd.f32 %v10055_v43, %v1218_v44  ;;  %v10066_v6 = vld [vmem:[#allocation145_spill] sm:$0xff]  ;;  %v10067_v16 = vld [vmem:[#allocation146_spill] sm:$0xff]  ;;  %v10069_v28 = vld [vmem:[#allocation152_spill] sm:$0xff] }
 0x183   : > { %v1337_v19 = vadd.f32 %v10056_v27, %v1220_v51  ;;  %v1339_v10 = vadd.f32 %v10057_v23, %v1222_v41  ;;  %v1341_v9 = vadd.f32 %v10058_v13, %v1224_v20  ;;  %v1343_v14 = vadd.f32 %v10059_v12, %v1226_v39  ;;  %v10070_v29 = vld [vmem:[#allocation153_spill] sm:$0xff]  ;;  %v10071_v7 = vld [vmem:[#allocation154_spill] sm:$0xff]  ;;  %v10072_v2 = vld [vmem:[#allocation155_spill] sm:$0xff] }
 0x184   : > { %v1345_v17 = vadd.f32 %v10060_v18, %v1228_v46  ;;  %v1347_v57 = vadd.f32 %v10061_v42, %v1230_v3  ;;  %v1349_v4 = vadd.f32 %v10062_v63, %v1232_v5  ;;  %v1351_v59 = vadd.f32 %v10063_v49, %v1234_v37  ;;  %v10073_v51 = vld [vmem:[#allocation158_spill] sm:$0xff]  ;;  %v10074_v41 = vld [vmem:[#allocation159_spill] sm:$0xff]  ;;  %v10075_v39 = vld [vmem:[#allocation160_spill] sm:$0xff] }
 0x185   : > { %v1353_v61 = vadd.f32 %v10064_v31, %v1236_v25  ;;  %v1355_v58 = vadd.f32 %v10065_v40, %v1238_v26  ;;  %v1357_v36 = vadd.f32 %v10066_v6, %v1240_v60  ;;  %v1359_v34 = vadd.f32 %v10067_v16, %v1242_v1  ;;  %v10076_v3 = vld [vmem:[#allocation161_spill] sm:$0xff]  ;;  %v10078_v60 = vld [vmem:[#allocation166_spill] sm:$0xff] }
 0x186   : > { %v1361_v52 = vadd.f32 %v10068_v0, %v1244_v33  ;;  %v1363_v35 = vadd.f32 %v10069_v28, %v1246_v8  ;;  %v1365_v56 = vadd.f32 %v10070_v29, %v1248_v24  ;;  %v1367_v54 = vadd.f32 %v10071_v7, %v1250_v30  ;;  %v10077_v37 = vld [vmem:[#allocation165_spill] sm:$0xff]  ;;  %v10079_v7 = vld [vmem:[#allocation104_spill] sm:$0xff] }
 0x187   : > { %v1369_v44 = vadd.f32 %v10072_v2, %v1252_v38  ;;  %v1371_v25 = vadd.f32 %v10073_v51, %v1254_v53  ;;  %v1373_v20 = vadd.f32 %v10074_v41, %v1256_v62  ;;  %v1375_v46 = vadd.f32 %v10075_v39, %v1258_v22  ;;  %v10082_v51 = vld [vmem:[#allocation44_spill] sm:$0xff]  ;;  %v10083_v41 = vld [vmem:[#allocation106_spill] sm:$0xff] }
 0x188   : > { %v1377_v5 = vadd.f32 %v10076_v3, %v1260_v55  ;;  %v1379_v26 = vadd.f32 %v10077_v37, %v1262_v11  ;;  %v1381_v1 = vadd.f32 %v10078_v60, %v1264_v47  ;;  %v1393_v33 = vadd.f32 %v1390_v50, %v1331_v48  ;;  %v10086_v3 = vld [vmem:[#allocation46_spill] sm:$0xff]  ;;  %v10087_v37 = vld [vmem:[#allocation108_spill] sm:$0xff] }
 0x189   : > { %v1395_v8 = vadd.f32 %v1390_v50, %v1333_v15  ;;  %v1397_v32 = vadd.f32 %v1390_v50, %v1335_v45  ;;  %v1399_v24 = vadd.f32 %v1390_v50, %v1337_v19  ;;  %v1401_v30 = vadd.f32 %v1390_v50, %v1339_v10 }
 0x18a   : > { %v1403_v21 = vadd.f32 %v1390_v50, %v1341_v9  ;;  %v1405_v38 = vadd.f32 %v1390_v50, %v1343_v14  ;;  %v1407_v43 = vadd.f32 %v1390_v50, %v1345_v17  ;;  %v1409_v53 = vadd.f32 %v1390_v50, %v1347_v57 }
 0x18b   : > { %v7056_v27 = vadd.f32 %v1390_v50, %v1349_v4  ;;  %v7058_v62 = vadd.f32 %v1390_v50, %v1351_v59  ;;  %v7060_v22 = vadd.f32 %v1390_v50, %v1353_v61  ;;  %v7062_v55 = vadd.f32 %v1390_v50, %v1355_v58 }
 0x18c   : > { %v7064_v11 = vadd.f32 %v1390_v50, %v1357_v36  ;;  %v7066_v47 = vadd.f32 %v1390_v50, %v1359_v34  ;;  %v7068_v48 = vadd.f32 %v1390_v50, %v1361_v52  ;;  %v7070_v15 = vadd.f32 %v1390_v50, %v1363_v35 }
 0x18d   : > { %v7072_v45 = vadd.f32 %v1390_v50, %v1365_v56  ;;  %v7074_v19 = vadd.f32 %v1390_v50, %v1367_v54  ;;  %v7076_v23 = vadd.f32 %v1390_v50, %v1369_v44  ;;  %v7078_v10 = vadd.f32 %v1390_v50, %v1371_v25  ;;  %v10080_v54 = vld [vmem:[#allocation43_spill] sm:$0xff]  ;;  %v10081_v44 = vld [vmem:[#allocation105_spill] sm:$0xff] }
 0x18e   : > { %v7080_v13 = vadd.f32 %v1390_v50, %v1373_v20  ;;  %v1445_v9 = vmax.f32 %v1393_v33, 0.0  ;;  %v1447_v12 = vmax.f32 %v1395_v8, 0.0  ;;  %v7082_v14 = vadd.f32 %v1390_v50, %v1375_v46  ;;  %v10084_v20 = vld [vmem:[#allocation45_spill] sm:$0xff]  ;;  %v10085_v46 = vld [vmem:[#allocation107_spill] sm:$0xff] }
 0x18f   : > { %v7084_v18 = vadd.f32 %v1390_v50, %v1377_v5  ;;  %v1449_v17 = vmax.f32 %v1397_v32, 0.0  ;;  %v1451_v42 = vmax.f32 %v1399_v24, 0.0  ;;  %v7086_v57 = vadd.f32 %v1390_v50, %v1379_v26  ;;  %v10088_v26 = vld [vmem:[#allocation50_spill] sm:$0xff]  ;;  %v10090_v33 = vld [vmem:[#allocation51_spill] sm:$0xff]  ;;  %v10092_v24 = vld [vmem:[#allocation52_spill] sm:$0xff] }
 0x190   : > { %v7088_v63 = vadd.f32 %v1390_v50, %v1381_v1  ;;  %v1453_v4 = vmax.f32 %v1401_v30, 0.0  ;;  %v1455_v49 = vmax.f32 %v1403_v21, 0.0  ;;  %1499 = vst [vmem:[%s7090_s23 + $0x8] sm:$0xff] %v1445_v9  ;;  %v1457_v59 = vmax.f32 %v1405_v38, 0.0  ;;  %v10089_v1 = vld [vmem:[#allocation109_spill] sm:$0xff]  ;;  %v10091_v32 = vld [vmem:[#allocation110_spill] sm:$0xff] }
 0x191   : > { %v1459_v31 = vmax.f32 %v1407_v43, 0.0  ;;  %v1461_v61 = vmax.f32 %v1409_v53, 0.0  ;;  %v1463_v40 = vmax.f32 %v7056_v27, 0.0  ;;  %1501 = vst [vmem:[%s7090_s23 + $0x18] sm:$0xff] %v1447_v12  ;;  %v1465_v58 = vmax.f32 %v7058_v62, 0.0  ;;  %v10093_v21 = vld [vmem:[#allocation111_spill] sm:$0xff] }
 0x192   : > { %v1467_v6 = vmax.f32 %v7060_v22, 0.0  ;;  %v1469_v36 = vmax.f32 %v7062_v55, 0.0  ;;  %v1471_v50 = vmax.f32 %v7064_v11, 0.0  ;;  %1503 = vst [vmem:[%s7090_s23 + $0x28] sm:$0xff] %v1449_v17  ;;  %v1473_v16 = vmax.f32 %v7066_v47, 0.0  ;;  %v10094_v38 = vld [vmem:[#allocation53_spill] sm:$0xff] }
 0x193   : > { %v1475_v34 = vmax.f32 %v7068_v48, 0.0  ;;  %v1477_v0 = vmax.f32 %v7070_v15, 0.0  ;;  %v1479_v52 = vmax.f32 %v7072_v45, 0.0  ;;  %1505 = vst [vmem:[%s7090_s23 + $0x38] sm:$0xff] %v1451_v42  ;;  %v1481_v28 = vmax.f32 %v7074_v19, 0.0  ;;  %v10095_v53 = vld [vmem:[#allocation112_spill] sm:$0xff] }
 0x194   : > { %v1483_v35 = vmax.f32 %v7076_v23, 0.0  ;;  %v1485_v29 = vmax.f32 %v7078_v10, 0.0  ;;  %v1487_v56 = vmax.f32 %v7080_v13, 0.0  ;;  %1507 = vst [vmem:[%s7090_s23 + $0x48] sm:$0xff] %v1453_v4  ;;  %v416_v2 = vadd.f32 %v10080_v54, %v10079_v7  ;;  %v10096_v27 = vld [vmem:[#allocation57_spill] sm:$0xff]  ;;  %v10098_v55 = vld [vmem:[#allocation58_spill] sm:$0xff] }
 0x195   : > { %1509 = vst [vmem:[%s7090_s23 + $0x58] sm:$0xff] %v1455_v49  ;;  %v418_v25 = vadd.f32 %v10082_v51, %v10081_v44  ;;  %v420_v39 = vadd.f32 %v10084_v20, %v10083_v41  ;;  %v422_v5 = vadd.f32 %v10086_v3, %v10085_v46  ;;  %v424_v60 = vadd.f32 %v10088_v26, %v10087_v37  ;;  %v10097_v22 = vld [vmem:[#allocation113_spill] sm:$0xff]  ;;  %v10099_v47 = vld [vmem:[#allocation114_spill] sm:$0xff]  ;;  %v10100_v48 = vld [vmem:[#allocation59_spill] sm:$0xff] }
 0x196   : > { %1511 = vst [vmem:[%s7090_s23 + $0x68] sm:$0xff] %v1457_v59  ;;  %v426_v8 = vadd.f32 %v10090_v33, %v10089_v1  ;;  %v428_v30 = vadd.f32 %v10092_v24, %v10091_v32  ;;  %v430_v43 = vadd.f32 %v10094_v38, %v10093_v21  ;;  %v432_v62 = vadd.f32 %v10096_v27, %v10095_v53  ;;  %v10101_v12 = vld [vmem:[#allocation115_spill] sm:$0xff]  ;;  %v10102_v17 = vld [vmem:[#allocation60_spill] sm:$0xff]  ;;  %v10105_v7 = vld [vmem:[#allocation117_spill] sm:$0xff] }
 0x197   : > { %1513 = vst [vmem:[%s7090_s23 + $0x78] sm:$0xff] %v1459_v31  ;;  %v434_v11 = vadd.f32 %v10098_v55, %v10097_v22  ;;  %v436_v9 = vadd.f32 %v10100_v48, %v10099_v47  ;;  %v438_v42 = vadd.f32 %v10102_v17, %v10101_v12  ;;  %v10103_v4 = vld [vmem:[#allocation116_spill] sm:$0xff]  ;;  %v10104_v49 = vld [vmem:[#allocation63_spill] sm:$0xff]  ;;  %v10107_v44 = vld [vmem:[#allocation118_spill] sm:$0xff]  ;;  %v1491_v45 = vmax.f32 %v7084_v18, 0.0 }
 0x198   : > { %1515 = vst [vmem:[%s7090_s23 + $0x88] sm:$0xff] %v1461_v61  ;;  %v440_v59 = vadd.f32 %v10104_v49, %v10103_v4  ;;  %v10106_v54 = vld [vmem:[#allocation64_spill] sm:$0xff]  ;;  %v10108_v51 = vld [vmem:[#allocation65_spill] sm:$0xff]  ;;  %v10109_v20 = vld [vmem:[#allocation119_spill] sm:$0xff] }
 0x199   : > { %v442_v31 = vadd.f32 %v10106_v54, %v10105_v7  ;;  %v444_v41 = vadd.f32 %v10108_v51, %v10107_v44  ;;  %v10110_v46 = vld [vmem:[#allocation66_spill] sm:$0xff]  ;;  %1517 = vst [vmem:[%s7090_s23 + $0x98] sm:$0xff] %v1463_v40  ;;  %v10111_v37 = vld [vmem:[#allocation121_spill] sm:$0xff]  ;;  %v10112_v26 = vld [vmem:[#allocation68_spill] sm:$0xff] }
 0x19a   : > { %v446_v3 = vadd.f32 %v10110_v46, %v10109_v20  ;;  %v448_v1 = vadd.f32 %v10112_v26, %v10111_v37  ;;  %v10113_v33 = vld [vmem:[#allocation122_spill] sm:$0xff]  ;;  %v10114_v32 = vld [vmem:[#allocation69_spill] sm:$0xff]  ;;  %v10115_v24 = vld [vmem:[#allocation123_spill] sm:$0xff]  ;;  %1519 = vst [vmem:[%s7090_s23 + $0xa8] sm:$0xff] %v1465_v58 }
 0x19b   : > { %v450_v61 = vadd.f32 %v10114_v32, %v10113_v33  ;;  %v10116_v21 = vld [vmem:[#allocation70_spill] sm:$0xff]  ;;  %v10117_v53 = vld [vmem:[#allocation124_spill] sm:$0xff]  ;;  %v10118_v27 = vld [vmem:[#allocation71_spill] sm:$0xff]  ;;  %1521 = vst [vmem:[%s7090_s23 + $0xb8] sm:$0xff] %v1467_v6 }
 0x19c   : > { %v452_v38 = vadd.f32 %v10116_v21, %v10115_v24  ;;  %v454_v22 = vadd.f32 %v10118_v27, %v10117_v53  ;;  %v10119_v55 = vld [vmem:[#allocation125_spill] sm:$0xff]  ;;  %v10120_v47 = vld [vmem:[#allocation72_spill] sm:$0xff]  ;;  %v10121_v12 = vld [vmem:[#allocation126_spill] sm:$0xff]  ;;  %1523 = vst [vmem:[%s7090_s23 + $0xc8] sm:$0xff] %v1469_v36 }
 0x19d   : > { %v456_v48 = vadd.f32 %v10120_v47, %v10119_v55  ;;  %v10122_v17 = vld [vmem:[#allocation73_spill] sm:$0xff]  ;;  %v10123_v4 = vld [vmem:[#allocation127_spill] sm:$0xff]  ;;  %v10124_v49 = vld [vmem:[#allocation74_spill] sm:$0xff]  ;;  %1525 = vst [vmem:[%s7090_s23 + $0xd8] sm:$0xff] %v1471_v50 }
 0x19e   : > { %v458_v40 = vadd.f32 %v10122_v17, %v10121_v12  ;;  %v460_v7 = vadd.f32 %v10124_v49, %v10123_v4  ;;  %v10125_v54 = vld [vmem:[#allocation128_spill] sm:$0xff]  ;;  %v10126_v44 = vld [vmem:[#allocation75_spill] sm:$0xff]  ;;  %v10127_v20 = vld [vmem:[#allocation129_spill] sm:$0xff]  ;;  %1527 = vst [vmem:[%s7090_s23 + $0xe8] sm:$0xff] %v1473_v16 }
 0x19f   : > { %v462_v51 = vadd.f32 %v10126_v44, %v10125_v54  ;;  %v10128_v46 = vld [vmem:[#allocation76_spill] sm:$0xff]  ;;  %v10129_v26 = vld [vmem:[#allocation130_spill] sm:$0xff]  ;;  %v10130_v33 = vld [vmem:[#allocation77_spill] sm:$0xff]  ;;  %1529 = vst [vmem:[%s7090_s23 + $0xf8] sm:$0xff] %v1475_v34 }
 0x1a0   : > { %v464_v37 = vadd.f32 %v10128_v46, %v10127_v20  ;;  %v466_v58 = vadd.f32 %v10130_v33, %v10129_v26  ;;  %v10131_v32 = vld [vmem:[#allocation205_spill] sm:$0xff]  ;;  %v10132_v21 = vld [vmem:[#allocation206_spill] sm:$0xff]  ;;  %v10133_v27 = vld [vmem:[#allocation207_spill] sm:$0xff]  ;;  %1531 = vst [vmem:[%s7090_s23 + $0x108] sm:$0xff] %v1477_v0 }
 0x1a1   : > { %v7170_v24 = vadd.f32 %v10131_v32, %v416_v2  ;;  %v7173_v53 = vadd.f32 %v10132_v21, %v418_v25  ;;  %v7177_v55 = vadd.f32 %v10133_v27, %v420_v39  ;;  %v10134_v47 = vld [vmem:[#allocation208_spill] sm:$0xff]  ;;  %v10135_v6 = vld [vmem:[#allocation209_spill] sm:$0xff]  ;;  %v10136_v4 = vld [vmem:[#allocation210_spill] sm:$0xff]  ;;  %1533 = vst [vmem:[%s7090_s23 + $0x118] sm:$0xff] %v1479_v52  ;;  %v1493_v52 = vmax.f32 %v7086_v57, 0.0 }
 0x1a2   : > { %v7180_v12 = vadd.f32 %v10134_v47, %v422_v5  ;;  %v7183_v17 = vadd.f32 %v10135_v6, %v424_v60  ;;  %v7186_v49 = vadd.f32 %v10136_v4, %v426_v8  ;;  %v10137_v2 = vld [vmem:[#allocation211_spill] sm:$0xff]  ;;  %v10138_v25 = vld [vmem:[#allocation212_spill] sm:$0xff]  ;;  %v10139_v36 = vld [vmem:[#allocation213_spill] sm:$0xff]  ;;  %1535 = vst [vmem:[%s7090_s23 + $0x128] sm:$0xff] %v1481_v28 }
 0x1a3   : > { %v7190_v54 = vadd.f32 %v10137_v2, %v428_v30  ;;  %v7193_v44 = vadd.f32 %v10138_v25, %v430_v43  ;;  %v7196_v39 = vadd.f32 %v10139_v36, %v432_v62  ;;  %v10140_v20 = vld [vmem:[#allocation214_spill] sm:$0xff]  ;;  %v10141_v60 = vld [vmem:[#allocation215_spill] sm:$0xff]  ;;  %v10142_v8 = vld [vmem:[#allocation216_spill] sm:$0xff]  ;;  %1537 = vst [vmem:[%s7090_s23 + $0x138] sm:$0xff] %v1483_v35 }
 0x1a4   : > { %v7199_v5 = vadd.f32 %v10140_v20, %v434_v11  ;;  %v7203_v46 = vadd.f32 %v10141_v60, %v436_v9  ;;  %v7206_v26 = vadd.f32 %v10142_v8, %v438_v42  ;;  %v10143_v50 = vld [vmem:[#allocation217_spill] sm:$0xff]  ;;  %v10144_v33 = vld [vmem:[#allocation218_spill] sm:$0xff]  ;;  %v10145_v62 = vld [vmem:[#allocation219_spill] sm:$0xff]  ;;  %1539 = vst [vmem:[%s7090_s23 + $0x148] sm:$0xff] %v1485_v29 }
 0x1a5   : > { %v7209_v30 = vadd.f32 %v10143_v50, %v440_v59  ;;  %v7212_v43 = vadd.f32 %v10144_v33, %v442_v31  ;;  %v7216_v32 = vadd.f32 %v10145_v62, %v444_v41  ;;  %v10146_v11 = vld [vmem:[#allocation220_spill] sm:$0xff]  ;;  %v10147_v16 = vld [vmem:[#allocation221_spill] sm:$0xff]  ;;  %v10148_v42 = vld [vmem:[#allocation222_spill] sm:$0xff]  ;;  %1541 = vst [vmem:[%s7090_s23 + $0x158] sm:$0xff] %v1487_v56 }
 0x1a6   : > { %v7219_v21 = vadd.f32 %v10146_v11, %v446_v3  ;;  %v7222_v9 = vadd.f32 %v10147_v16, %v448_v1  ;;  %v7225_v27 = vadd.f32 %v10148_v42, %v450_v61  ;;  %v10149_v59 = vld [vmem:[#allocation223_spill] sm:$0xff]  ;;  %v10150_v31 = vld [vmem:[#allocation224_spill] sm:$0xff]  ;;  %v10151_v3 = vld [vmem:[#allocation225_spill] sm:$0xff]  ;;  %1545 = vst [vmem:[%s7090_s23 + $0x178] sm:$0xff] %v1491_v45 }
 0x1a7   : > { %v7231_v34 = vadd.f32 %v10149_v59, %v452_v38  ;;  %v7234_v41 = vadd.f32 %v10150_v31, %v454_v22  ;;  %v7237_v47 = vadd.f32 %v10151_v3, %v456_v48  ;;  %v10152_v1 = vld [vmem:[#allocation226_spill] sm:$0xff]  ;;  %v10153_v15 = vld [vmem:[#allocation227_spill] sm:$0xff]  ;;  %v10154_v61 = vld [vmem:[#allocation228_spill] sm:$0xff]  ;;  %1547 = vst [vmem:[%s7090_s23 + $0x188] sm:$0xff] %v1493_v52 }
 0x1a8   : > { %v7240_v6 = vadd.f32 %v10152_v1, %v458_v40  ;;  %v7246_v0 = vadd.f32 %v10153_v15, %v460_v7  ;;  %v7249_v38 = vadd.f32 %v10154_v61, %v462_v51  ;;  %v10155_v22 = vld [vmem:[#allocation229_spill] sm:$0xff]  ;;  %v10156_v48 = vld [vmem:[#allocation230_spill] sm:$0xff]  ;;  %v1489_v40 = vmax.f32 %v7082_v14, 0.0  ;;  %v10158_v23 = vld [vmem:[#allocation103_spill] sm:$0xff] }
 0x1a9   : > { %v7252_v4 = vadd.f32 %v10155_v22, %v464_v37  ;;  %v7255_v2 = vadd.f32 %v10156_v48, %v466_v58  ;;  %v1495_v7 = vmax.f32 %v7088_v63, 0.0  ;;  %v5575_v19 = vld [vmem:[%s5847_s21 + $0x1d] ss:$0 sm:$0xff]  ;;  %v5576_v18 = vld [vmem:[%s5847_s21 + $0x1e] ss:$0 sm:$0xff]  ;;  %v10160_v25 = vld [vmem:[#allocation163_spill] sm:$0xff] }
 0x1aa   : > { %1543 = vst [vmem:[%s7090_s23 + $0x168] sm:$0xff] %v1489_v40  ;;  %v704_v14 = vmul.f32 %v5575_v19, %v10158_v23  ;;  %v706_v57 = vmul.f32 %v5576_v18, %v10158_v23  ;;  %v5577_v28 = vld [vmem:[%s5847_s21 + $0x1f] ss:$0 sm:$0xff]  ;;  %v5578_v35 = vld [vmem:[%s5847_s21 + $0x20] ss:$0 sm:$0xff]  ;;  %v718_v36 = vmul.f32 %v10160_v25, %v10158_v23  ;;  %v10161_v20 = vld [vmem:[#allocation164_spill] sm:$0xff] }
 0x1ab   : > { %10157 = vst [vmem:[#allocation86_spill] sm:$0xff] %v7255_v2  ;;  %v708_v10 = vmul.f32 %v5577_v28, %v10158_v23  ;;  %v710_v63 = vmul.f32 %v5578_v35, %v10158_v23  ;;  %v5579_v29 = vld [vmem:[%s5847_s21 + $0x21] ss:$0 sm:$0xff]  ;;  %v5580_v56 = vld [vmem:[%s5847_s21 + $0x22] ss:$0 sm:$0xff]  ;;  %v10159_v37 = vld [vmem:[#allocation162_spill] sm:$0xff]  ;;  %v720_v60 = vmul.f32 %v10161_v20, %v10158_v23 }
 0x1ac   : > { %1549 = vst [vmem:[%s7090_s23 + $0x198] sm:$0xff] %v1495_v7  ;;  %v712_v13 = vmul.f32 %v5579_v29, %v10158_v23  ;;  %v714_v51 = vmul.f32 %v5580_v56, %v10158_v23  ;;  %v716_v58 = vmul.f32 %v10159_v37, %v10158_v23  ;;  %v10162_v8 = vld [vmem:[#allocation167_spill] sm:$0xff]  ;;  %v10163_v33 = vld [vmem:[#allocation168_spill] sm:$0xff]  ;;  %v10164_v11 = vld [vmem:[#allocation169_spill] sm:$0xff] }
 0x1ad   : > { %v722_v50 = vmul.f32 %v10162_v8, %v10158_v23  ;;  %v724_v62 = vmul.f32 %v10163_v33, %v10158_v23  ;;  %v726_v16 = vmul.f32 %v10164_v11, %v10158_v23  ;;  %v10165_v42 = vld [vmem:[#allocation170_spill] sm:$0xff]  ;;  %v10166_v31 = vld [vmem:[#allocation171_spill] sm:$0xff]  ;;  %v10167_v1 = vld [vmem:[#allocation172_spill] sm:$0xff] }
 0x1ae   : > { %v728_v59 = vmul.f32 %v10165_v42, %v10158_v23  ;;  %v730_v3 = vmul.f32 %v10166_v31, %v10158_v23  ;;  %v732_v15 = vmul.f32 %v10167_v1, %v10158_v23  ;;  %v10168_v61 = vld [vmem:[#allocation176_spill] sm:$0xff]  ;;  %v10169_v48 = vld [vmem:[#allocation177_spill] sm:$0xff]  ;;  %v10170_v45 = vld [vmem:[#allocation178_spill] sm:$0xff] }
 0x1af   : > { %v734_v22 = vmul.f32 %v10168_v61, %v10158_v23  ;;  %v736_v40 = vmul.f32 %v10169_v48, %v10158_v23  ;;  %v738_v52 = vmul.f32 %v10170_v45, %v10158_v23  ;;  %v10171_v7 = vld [vmem:[#allocation183_spill] sm:$0xff]  ;;  %v10172_v37 = vld [vmem:[#allocation184_spill] sm:$0xff]  ;;  %v10173_v20 = vld [vmem:[#allocation185_spill] sm:$0xff] }
 0x1b0   : > { %v740_v19 = vmul.f32 %v10171_v7, %v10158_v23  ;;  %v742_v25 = vmul.f32 %v10172_v37, %v10158_v23  ;;  %v744_v8 = vmul.f32 %v10173_v20, %v10158_v23  ;;  %v10174_v33 = vld [vmem:[#allocation190_spill] sm:$0xff]  ;;  %v10175_v42 = vld [vmem:[#allocation191_spill] sm:$0xff]  ;;  %v10176_v1 = vld [vmem:[#allocation192_spill] sm:$0xff]  ;;  %v7330_v37 = vadd.f32 %v704_v14, %v7170_v24 }
 0x1b1   : > { %v746_v11 = vmul.f32 %v10174_v33, %v10158_v23  ;;  %v748_v31 = vmul.f32 %v10175_v42, %v10158_v23  ;;  %v750_v61 = vmul.f32 %v10176_v1, %v10158_v23  ;;  %v10177_v48 = vld [vmem:[#allocation197_spill] sm:$0xff]  ;;  %v10178_v7 = vld [vmem:[#allocation79_spill] sm:$0xff]  ;;  %v7333_v20 = vadd.f32 %v706_v57, %v7173_v53  ;;  %v10180_v14 = vld [vmem:[#allocation80_spill] sm:$0xff] }
 0x1b2   : > { %v752_v45 = vmul.f32 %v10177_v48, %v10158_v23  ;;  %v754_v2 = vmul.f32 %v10178_v7, %v10158_v23  ;;  %v7336_v33 = vadd.f32 %v708_v10, %v7177_v55  ;;  %v7339_v42 = vadd.f32 %v710_v63, %v7180_v12  ;;  %v5581_v10 = vld [vmem:[%s5847_s21 + $0x23] ss:$0 sm:$0xff]  ;;  %v5582_v63 = vld [vmem:[%s5847_s21 + $0x24] ss:$0 sm:$0xff] }
 0x1b3   : > { %v7342_v1 = vadd.f32 %v712_v13, %v7183_v17  ;;  %v7345_v48 = vadd.f32 %v714_v51, %v7186_v49  ;;  %v7348_v23 = vadd.f32 %v716_v58, %v7190_v54  ;;  %v7351_v24 = vadd.f32 %v718_v36, %v7193_v44  ;;  %v5583_v13 = vld [vmem:[%s5847_s21 + $0x25] ss:$0 sm:$0xff]  ;;  %v5586_v51 = vld [vmem:[%s5847_s21 + $0x28] ss:$0 sm:$0xff]  ;;  %v5587_v36 = vld [vmem:[%s5847_s21 + $0x29] ss:$0 sm:$0xff] }
 0x1b4   : > { %v7354_v53 = vadd.f32 %v720_v60, %v7196_v39  ;;  %v7357_v55 = vadd.f32 %v722_v50, %v7199_v5  ;;  %v7360_v12 = vadd.f32 %v724_v62, %v7203_v46  ;;  %v7363_v17 = vadd.f32 %v726_v16, %v7206_v26  ;;  %v5588_v50 = vld [vmem:[%s5847_s21 + $0x2a] ss:$0 sm:$0xff]  ;;  %v5589_v16 = vld [vmem:[%s5847_s21 + $0x2b] ss:$0 sm:$0xff] }
 0x1b5   : > { %v7366_v49 = vadd.f32 %v728_v59, %v7209_v30  ;;  %v7369_v54 = vadd.f32 %v730_v3, %v7212_v43  ;;  %v7372_v44 = vadd.f32 %v732_v15, %v7216_v32  ;;  %v7375_v39 = vadd.f32 %v734_v22, %v7219_v21  ;;  %v5590_v3 = vld [vmem:[%s5847_s21 + $0x2c] ss:$0 sm:$0xff]  ;;  %v5591_v22 = vld [vmem:[%s5847_s21 + $0x2d] ss:$0 sm:$0xff] }
 0x1b6   : > { %v7378_v5 = vadd.f32 %v736_v40, %v7222_v9  ;;  %v7381_v46 = vadd.f32 %v738_v52, %v7225_v27  ;;  %v7384_v26 = vadd.f32 %v740_v19, %v7231_v34  ;;  %v7387_v30 = vadd.f32 %v742_v25, %v7234_v41  ;;  %v10179_v34 = vld [vmem:[#allocation86_spill] sm:$0xff]  ;;  %v5592_v52 = vld [vmem:[%s5847_s21 + $0x2e] ss:$0 sm:$0xff]  ;;  %v5593_v25 = vld [vmem:[%s5847_s21 + $0x2f] ss:$0 sm:$0xff] }
 0x1b7   : > { %v7390_v43 = vadd.f32 %v744_v8, %v7237_v47  ;;  %v7393_v32 = vadd.f32 %v746_v11, %v7240_v6  ;;  %v7396_v21 = vadd.f32 %v748_v31, %v7246_v0  ;;  %v7399_v9 = vadd.f32 %v750_v61, %v7249_v38  ;;  %v5594_v11 = vld [vmem:[%s5847_s21 + $0x30] ss:$0 sm:$0xff]  ;;  %v5595_v61 = vld [vmem:[%s5847_s21 + $0x31] ss:$0 sm:$0xff] }
 0x1b8   : > { %v7402_v27 = vadd.f32 %v752_v45, %v7252_v4  ;;  %v7405_v41 = vadd.f32 %v754_v2, %v10179_v34  ;;  %v821_v47 = vmul.f32 %v5576_v18, %v10180_v14  ;;  %v823_v6 = vmul.f32 %v5577_v28, %v10180_v14  ;;  %v5584_v28 = vld [vmem:[%s5847_s21 + $0x26] ss:$0 sm:$0xff]  ;;  %v5596_v34 = vld [vmem:[%s5847_s21 + $0x32] ss:$0 sm:$0xff] }
 0x1b9   : > { %v825_v57 = vmul.f32 %v5578_v35, %v10180_v14  ;;  %v827_v0 = vmul.f32 %v5579_v29, %v10180_v14  ;;  %v829_v38 = vmul.f32 %v5580_v56, %v10180_v14  ;;  %v831_v4 = vmul.f32 %v5581_v10, %v10180_v14  ;;  %v5585_v29 = vld [vmem:[%s5847_s21 + $0x27] ss:$0 sm:$0xff] }
 0x1ba   : > { %v833_v2 = vmul.f32 %v5582_v63, %v10180_v14  ;;  %v835_v18 = vmul.f32 %v5583_v13, %v10180_v14  ;;  %v837_v35 = vmul.f32 %v5584_v28, %v10180_v14  ;;  %v839_v56 = vmul.f32 %v5585_v29, %v10180_v14  ;;  %v5597_v63 = vld [vmem:[%s5847_s21 + $0x33] ss:$0 sm:$0xff]  ;;  %v5598_v28 = vld [vmem:[%s5847_s21 + $0x34] ss:$0 sm:$0xff] }
 0x1bb   : > { %v841_v58 = vmul.f32 %v5586_v51, %v10180_v14  ;;  %v843_v60 = vmul.f32 %v5587_v36, %v10180_v14  ;;  %v845_v62 = vmul.f32 %v5588_v50, %v10180_v14  ;;  %v847_v59 = vmul.f32 %v5589_v16, %v10180_v14  ;;  %v5599_v51 = vld [vmem:[%s5847_s21 + $0x35] ss:$0 sm:$0xff] }
 0x1bc   : > { %v849_v15 = vmul.f32 %v5590_v3, %v10180_v14  ;;  %v851_v40 = vmul.f32 %v5591_v22, %v10180_v14  ;;  %v853_v19 = vmul.f32 %v5592_v52, %v10180_v14  ;;  %v855_v8 = vmul.f32 %v5593_v25, %v10180_v14  ;;  %v10181_v16 = vld [vmem:[#allocation81_spill] sm:$0xff] }
 0x1bd   : > { %v857_v31 = vmul.f32 %v5594_v11, %v10180_v14  ;;  %v859_v45 = vmul.f32 %v5595_v61, %v10180_v14  ;;  %v861_v10 = vmul.f32 %v5596_v34, %v10180_v14  ;;  %v863_v13 = vmul.f32 %v5597_v63, %v10180_v14  ;;  %v7592_v34 = vld [vmem:[%s5847_s21 + $0x45] ss:$0 sm:$0xff]  ;;  %v7597_v63 = vld [vmem:[%s5847_s21 + $0x46] ss:$0 sm:$0xff] }
 0x1be   : > { %v865_v29 = vmul.f32 %v5598_v28, %v10180_v14  ;;  %v867_v36 = vmul.f32 %v5599_v51, %v10180_v14  ;;  %v869_v50 = vmul.f32 %v10178_v7, %v10180_v14  ;;  %v871_v3 = vmul.f32 %v10181_v16, %v10180_v14  ;;  %10196 = vst [vmem:[#allocation99_spill] sm:$0xff] %v7592_v34  ;;  %v7602_v28 = vld [vmem:[%s5847_s21 + $0x47] ss:$0 sm:$0xff]  ;;  %v7607_v51 = vld [vmem:[%s5847_s21 + $0x48] ss:$0 sm:$0xff] }
 0x1bf   : > { %v7455_v22 = vadd.f32 %v821_v47, %v7330_v37  ;;  %v7458_v52 = vadd.f32 %v823_v6, %v7333_v20  ;;  %v7461_v25 = vadd.f32 %v825_v57, %v7336_v33  ;;  %v7464_v11 = vadd.f32 %v827_v0, %v7339_v42  ;;  %v7542_v57 = vld [vmem:[%s5847_s21 + $0x3b] ss:$0 sm:$0xff]  ;;  %10197 = vst [vmem:[#allocation100_spill] sm:$0xff] %v7597_v63 }
 0x1c0   : > { %v7467_v61 = vadd.f32 %v829_v38, %v7342_v1  ;;  %v7470_v7 = vadd.f32 %v831_v4, %v7345_v48  ;;  %v7473_v14 = vadd.f32 %v833_v2, %v7348_v23  ;;  %v7476_v37 = vadd.f32 %v835_v18, %v7351_v24  ;;  %10186 = vst [vmem:[#allocation88_spill] sm:$0xff] %v7542_v57  ;;  %v7552_v38 = vld [vmem:[%s5847_s21 + $0x3d] ss:$0 sm:$0xff]  ;;  %v7557_v2 = vld [vmem:[%s5847_s21 + $0x3e] ss:$0 sm:$0xff] }
 0x1c1   : > { %v7479_v20 = vadd.f32 %v837_v35, %v7354_v53  ;;  %v7482_v33 = vadd.f32 %v839_v56, %v7357_v55  ;;  %v7485_v42 = vadd.f32 %v841_v58, %v7360_v12  ;;  %v7488_v1 = vadd.f32 %v843_v60, %v7363_v17  ;;  %10188 = vst [vmem:[#allocation91_spill] sm:$0xff] %v7552_v38  ;;  %v7562_v35 = vld [vmem:[%s5847_s21 + $0x3f] ss:$0 sm:$0xff]  ;;  %v7567_v58 = vld [vmem:[%s5847_s21 + $0x40] ss:$0 sm:$0xff] }
 0x1c2   : > { %v7491_v48 = vadd.f32 %v845_v62, %v7366_v49  ;;  %v7494_v23 = vadd.f32 %v847_v59, %v7369_v54  ;;  %v7497_v24 = vadd.f32 %v849_v15, %v7372_v44  ;;  %v7500_v53 = vadd.f32 %v851_v40, %v7375_v39  ;;  %10189 = vst [vmem:[#allocation92_spill] sm:$0xff] %v7557_v2  ;;  %v7572_v62 = vld [vmem:[%s5847_s21 + $0x41] ss:$0 sm:$0xff]  ;;  %v7577_v15 = vld [vmem:[%s5847_s21 + $0x42] ss:$0 sm:$0xff] }
 0x1c3   : > { %v7503_v55 = vadd.f32 %v853_v19, %v7378_v5  ;;  %v7506_v12 = vadd.f32 %v855_v8, %v7381_v46  ;;  %v7509_v17 = vadd.f32 %v857_v31, %v7384_v26  ;;  %v7512_v49 = vadd.f32 %v859_v45, %v7387_v30  ;;  %v10182_v30 = vld [vmem:[#allocation84_spill] sm:$0xff]  ;;  %10190 = vst [vmem:[#allocation93_spill] sm:$0xff] %v7562_v35  ;;  %v7582_v19 = vld [vmem:[%s5847_s21 + $0x43] ss:$0 sm:$0xff]  ;;  %v7587_v31 = vld [vmem:[%s5847_s21 + $0x44] ss:$0 sm:$0xff] }
 0x1c4   : > { %v7515_v54 = vadd.f32 %v861_v10, %v7390_v43  ;;  %v7518_v44 = vadd.f32 %v863_v13, %v7393_v32  ;;  %v7521_v39 = vadd.f32 %v865_v29, %v7396_v21  ;;  %v7524_v5 = vadd.f32 %v867_v36, %v7399_v9  ;;  %v10183_v43 = vld [vmem:[#allocation82_spill] sm:$0xff]  ;;  %v10184_v32 = vld [vmem:[#allocation83_spill] sm:$0xff]  ;;  %10191 = vst [vmem:[#allocation94_spill] sm:$0xff] %v7567_v58 }
 0x1c5   : > { %v7527_v46 = vadd.f32 %v869_v50, %v7402_v27  ;;  %v7530_v26 = vadd.f32 %v871_v3, %v7405_v41  ;;  %v1044_v47 = vmul.f32 %v10183_v43, %v10182_v30  ;;  %v1046_v6 = vmul.f32 %v10184_v32, %v10182_v30  ;;  %v7537_v21 = vld [vmem:[%s5847_s21 + $0x3a] ss:$0 sm:$0xff]  ;;  %v7547_v41 = vld [vmem:[%s5847_s21 + $0x3c] ss:$0 sm:$0xff]  ;;  %10192 = vst [vmem:[#allocation95_spill] sm:$0xff] %v7572_v62 }
 0x1c6   : > { %10185 = vst [vmem:[#allocation87_spill] sm:$0xff] %v7537_v21  ;;  %v1048_v9 = vmul.f32 %v7537_v21, %v10182_v30  ;;  %v1050_v27 = vmul.f32 %v7542_v57, %v10182_v30  ;;  %v1052_v0 = vmul.f32 %v7547_v41, %v10182_v30  ;;  %v1054_v4 = vmul.f32 %v7552_v38, %v10182_v30  ;;  %v7612_v50 = vld [vmem:[%s5847_s21 + $0x49] ss:$0 sm:$0xff]  ;;  %v7617_v3 = vld [vmem:[%s5847_s21 + $0x4a] ss:$0 sm:$0xff] }
 0x1c7   : > { %10187 = vst [vmem:[#allocation90_spill] sm:$0xff] %v7547_v41  ;;  %v1056_v18 = vmul.f32 %v7557_v2, %v10182_v30  ;;  %v1058_v56 = vmul.f32 %v7562_v35, %v10182_v30  ;;  %v1060_v60 = vmul.f32 %v7567_v58, %v10182_v30  ;;  %v1062_v59 = vmul.f32 %v7572_v62, %v10182_v30  ;;  %v7647_v62 = vld [vmem:[%s5847_s21 + $0x50] ss:$0 sm:$0xff]  ;;  %v7652_v58 = vld [vmem:[%s5847_s21 + $0x51] ss:$0 sm:$0xff] }
 0x1c8   : > { %10193 = vst [vmem:[#allocation96_spill] sm:$0xff] %v7577_v15  ;;  %v1064_v40 = vmul.f32 %v7577_v15, %v10182_v30  ;;  %v1066_v8 = vmul.f32 %v7582_v19, %v10182_v30  ;;  %v1068_v45 = vmul.f32 %v7587_v31, %v10182_v30  ;;  %v1070_v10 = vmul.f32 %v7592_v34, %v10182_v30  ;;  %v7627_v34 = vld [vmem:[%s5847_s21 + $0x4c] ss:$0 sm:$0xff]  ;;  %v7642_v15 = vld [vmem:[%s5847_s21 + $0x4f] ss:$0 sm:$0xff] }
 0x1c9   : > { %10194 = vst [vmem:[#allocation97_spill] sm:$0xff] %v7582_v19  ;;  %v1072_v13 = vmul.f32 %v7597_v63, %v10182_v30  ;;  %v1074_v29 = vmul.f32 %v7602_v28, %v10182_v30  ;;  %v1076_v36 = vmul.f32 %v7607_v51, %v10182_v30  ;;  %v1078_v16 = vmul.f32 %v7612_v50, %v10182_v30  ;;  %v7622_v63 = vld [vmem:[%s5847_s21 + $0x4b] ss:$0 sm:$0xff]  ;;  %v7637_v19 = vld [vmem:[%s5847_s21 + $0x4e] ss:$0 sm:$0xff] }
 0x1ca   : > { %10195 = vst [vmem:[#allocation98_spill] sm:$0xff] %v7587_v31  ;;  %v1080_v43 = vmul.f32 %v7617_v3, %v10182_v30  ;;  %v7632_v31 = vld [vmem:[%s5847_s21 + $0x4d] ss:$0 sm:$0xff]  ;;  %v1096_v35 = vadd.f32 %v1044_v47, %v7455_v22  ;;  %v1098_v2 = vadd.f32 %v1046_v6, %v7458_v52  ;;  %v1102_v38 = vadd.f32 %v1050_v27, %v7464_v11 }
 0x1cb   : > { %10198 = vst [vmem:[#allocation101_spill] sm:$0xff] %v7602_v28  ;;  %v1082_v28 = vmul.f32 %v7622_v63, %v10182_v30  ;;  %v1106_v41 = vadd.f32 %v1054_v4, %v7470_v7  ;;  %v1108_v57 = vadd.f32 %v1056_v18, %v7473_v14  ;;  %v1112_v21 = vadd.f32 %v1060_v60, %v7479_v20 }
 0x1cc   : > { %10199 = vst [vmem:[#allocation78_spill] sm:$0xff] %v7607_v51  ;;  %v1084_v51 = vmul.f32 %v7627_v34, %v10182_v30  ;;  %v1116_v22 = vadd.f32 %v1064_v40, %v7485_v42  ;;  %v1118_v52 = vadd.f32 %v1066_v8, %v7488_v1  ;;  %v1122_v11 = vadd.f32 %v1070_v10, %v7494_v23  ;;  %v10220_v4 = vld [vmem:[#allocation95_spill] sm:$0xff]  ;;  %v10225_v10 = vld [vmem:[#allocation100_spill] sm:$0xff] }
 0x1cd   : > { %10200 = vst [vmem:[#allocation62_spill] sm:$0xff] %v7612_v50  ;;  %v1086_v50 = vmul.f32 %v7632_v31, %v10182_v30  ;;  %v1126_v7 = vadd.f32 %v1074_v29, %v7500_v53  ;;  %v1128_v14 = vadd.f32 %v1076_v36, %v7503_v55  ;;  %v1132_v20 = vadd.f32 %v1080_v43, %v7509_v17  ;;  %v10212_v55 = vld [vmem:[#allocation89_spill] sm:$0xff]  ;;  %v10213_v17 = vld [vmem:[#allocation87_spill] sm:$0xff] }
 0x1ce   : > { %10201 = vst [vmem:[#allocation67_spill] sm:$0xff] %v7617_v3  ;;  %v1088_v3 = vmul.f32 %v7637_v19, %v10182_v30  ;;  %v1136_v42 = vadd.f32 %v1084_v51, %v7515_v54  ;;  %v10214_v54 = vld [vmem:[#allocation88_spill] sm:$0xff]  ;;  %v1177_v18 = vmul.f32 %v10220_v4, %v10212_v55 }
 0x1cf   : > { %10202 = vst [vmem:[#allocation56_spill] sm:$0xff] %v7622_v63  ;;  %v1090_v63 = vmul.f32 %v7642_v15, %v10182_v30  ;;  %v1138_v1 = vadd.f32 %v1086_v50, %v7518_v44  ;;  %v1165_v44 = vmul.f32 %v10214_v54, %v10212_v55 }
 0x1d0   : > { %10203 = vst [vmem:[#allocation173_spill] sm:$0xff] %v7627_v34  ;;  %v1092_v34 = vmul.f32 %v7647_v62, %v10182_v30 }
 0x1d1   : > { %10204 = vst [vmem:[#allocation174_spill] sm:$0xff] %v7632_v31  ;;  %v1094_v31 = vmul.f32 %v7652_v58, %v10182_v30  ;;  %v1114_v30 = vadd.f32 %v1062_v59, %v7482_v33  ;;  %v1134_v33 = vadd.f32 %v1082_v28, %v7512_v49  ;;  %v7680_v23 = vadd.f32 %v1090_v63, %v7524_v5  ;;  %v10216_v5 = vld [vmem:[#allocation91_spill] sm:$0xff]  ;;  %v10222_v59 = vld [vmem:[#allocation97_spill] sm:$0xff]  ;;  %v10223_v8 = vld [vmem:[#allocation98_spill] sm:$0xff] }
 0x1d2   : > { %10205 = vst [vmem:[#allocation175_spill] sm:$0xff] %v7637_v19  ;;  %v1100_v19 = vadd.f32 %v1048_v9, %v7461_v25  ;;  %v1120_v25 = vadd.f32 %v1068_v45, %v7491_v48  ;;  %v1140_v48 = vadd.f32 %v1088_v3, %v7521_v39  ;;  %v1163_v49 = vmul.f32 %v10213_v17, %v10212_v55  ;;  %v10215_v39 = vld [vmem:[#allocation90_spill] sm:$0xff]  ;;  %v10224_v45 = vld [vmem:[#allocation99_spill] sm:$0xff] }
 0x1d3   : > { %10206 = vst [vmem:[#allocation179_spill] sm:$0xff] %v7642_v15  ;;  %v1104_v15 = vadd.f32 %v1052_v0, %v7467_v61  ;;  %v1124_v61 = vadd.f32 %v1072_v13, %v7497_v24  ;;  %v7683_v24 = vadd.f32 %v1092_v34, %v7527_v46  ;;  %v7686_v53 = vadd.f32 %v1094_v31, %v7530_v26  ;;  %v10217_v46 = vld [vmem:[#allocation92_spill] sm:$0xff]  ;;  %v10218_v26 = vld [vmem:[#allocation93_spill] sm:$0xff]  ;;  %v10227_v29 = vld [vmem:[#allocation78_spill] sm:$0xff] }
 0x1d4   : > { %10207 = vst [vmem:[#allocation180_spill] sm:$0xff] %v7647_v62  ;;  %v1110_v62 = vadd.f32 %v1058_v56, %v7476_v37  ;;  %v1130_v37 = vadd.f32 %v1078_v16, %v7506_v12  ;;  %v1161_v12 = vmul.f32 %v10184_v32, %v10212_v55  ;;  %v1167_v47 = vmul.f32 %v10215_v39, %v10212_v55  ;;  %v10219_v32 = vld [vmem:[#allocation94_spill] sm:$0xff]  ;;  %v10221_v56 = vld [vmem:[#allocation96_spill] sm:$0xff]  ;;  %v10226_v13 = vld [vmem:[#allocation101_spill] sm:$0xff] }
 0x1d5   : > { %10208 = vst [vmem:[#allocation181_spill] sm:$0xff] %v7652_v58  ;;  %v1169_v6 = vmul.f32 %v10216_v5, %v10212_v55  ;;  %v1171_v9 = vmul.f32 %v10217_v46, %v10212_v55  ;;  %v1173_v27 = vmul.f32 %v10218_v26, %v10212_v55  ;;  %v1175_v0 = vmul.f32 %v10219_v32, %v10212_v55  ;;  %v10228_v36 = vld [vmem:[#allocation62_spill] sm:$0xff]  ;;  %v10229_v16 = vld [vmem:[#allocation67_spill] sm:$0xff] }
 0x1d6   : > { %10209 = vst [vmem:[#allocation182_spill] sm:$0xff] %v7680_v23  ;;  %v1179_v60 = vmul.f32 %v10221_v56, %v10212_v55  ;;  %v1181_v40 = vmul.f32 %v10222_v59, %v10212_v55  ;;  %v1183_v31 = vmul.f32 %v10223_v8, %v10212_v55  ;;  %v1185_v34 = vmul.f32 %v10224_v45, %v10212_v55  ;;  %v10230_v43 = vld [vmem:[#allocation56_spill] sm:$0xff] }
 0x1d7   : > { %10210 = vst [vmem:[#allocation186_spill] sm:$0xff] %v7683_v24  ;;  %v1187_v63 = vmul.f32 %v10225_v10, %v10212_v55  ;;  %v1189_v28 = vmul.f32 %v10226_v13, %v10212_v55  ;;  %v1191_v51 = vmul.f32 %v10227_v29, %v10212_v55  ;;  %v1193_v50 = vmul.f32 %v10228_v36, %v10212_v55  ;;  %v10231_v24 = vld [vmem:[#allocation173_spill] sm:$0xff] }
 0x1d8   : > { %10211 = vst [vmem:[#allocation187_spill] sm:$0xff] %v7686_v53  ;;  %v1195_v3 = vmul.f32 %v10229_v16, %v10212_v55  ;;  %v1197_v53 = vmul.f32 %v10230_v43, %v10212_v55  ;;  %v1199_v45 = vmul.f32 %v10231_v24, %v10212_v55  ;;  %v10232_v10 = vld [vmem:[#allocation174_spill] sm:$0xff]  ;;  %v7738_v16 = vmul.f32 %v7652_v58, %v10212_v55  ;;  %v7741_v43 = vld [vmem:[%s5847_s21 + $0x52] ss:$0 sm:$0xff] }
 0x1d9   : > { %v1201_v8 = vmul.f32 %v10232_v10, %v10212_v55  ;;  %v10233_v13 = vld [vmem:[#allocation175_spill] sm:$0xff]  ;;  %10237 = vst [vmem:[#allocation189_spill] sm:$0xff] %v7741_v43  ;;  %v7745_v24 = vmul.f32 %v7741_v43, %v10212_v55  ;;  %v1213_v10 = vadd.f32 %v1161_v12, %v1096_v35  ;;  %v1215_v23 = vadd.f32 %v1163_v49, %v1098_v2  ;;  %v10239_v43 = vld [vmem:[#allocation85_spill] sm:$0xff]  ;;  %v10241_v12 = vld [vmem:[#allocation88_spill] sm:$0xff] }
 0x1da   : > { %v1203_v59 = vmul.f32 %v10233_v13, %v10212_v55  ;;  %v10234_v29 = vld [vmem:[#allocation179_spill] sm:$0xff]  ;;  %10236 = vst [vmem:[#allocation188_spill] sm:$0xff] %v7738_v16  ;;  %v1217_v32 = vadd.f32 %v1165_v44, %v1100_v19  ;;  %v1219_v13 = vadd.f32 %v1167_v47, %v1102_v38  ;;  %v1221_v26 = vadd.f32 %v1169_v6, %v1104_v15  ;;  %v10245_v49 = vld [vmem:[#allocation93_spill] sm:$0xff] }
 0x1db   : > { %v1205_v56 = vmul.f32 %v10234_v29, %v10212_v55  ;;  %v10235_v36 = vld [vmem:[#allocation180_spill] sm:$0xff]  ;;  %10238 = vst [vmem:[#allocation193_spill] sm:$0xff] %v7745_v24  ;;  %v1223_v46 = vadd.f32 %v1171_v9, %v1106_v41  ;;  %v1225_v29 = vadd.f32 %v1173_v27, %v1108_v57  ;;  %v1227_v5 = vadd.f32 %v1175_v0, %v1110_v62  ;;  %v10242_v57 = vld [vmem:[#allocation90_spill] sm:$0xff] }
 0x1dc   : > { %v1207_v4 = vmul.f32 %v10235_v36, %v10212_v55  ;;  %v1229_v39 = vadd.f32 %v1177_v18, %v1112_v21  ;;  %v1231_v36 = vadd.f32 %v1179_v60, %v1114_v30  ;;  %v1233_v54 = vadd.f32 %v1181_v40, %v1116_v22  ;;  %v10240_v55 = vld [vmem:[#allocation87_spill] sm:$0xff]  ;;  %v10244_v22 = vld [vmem:[#allocation92_spill] sm:$0xff] }
 0x1dd   : > { %v1235_v17 = vadd.f32 %v1183_v31, %v1118_v52  ;;  %v1237_v58 = vadd.f32 %v1185_v34, %v1120_v25  ;;  %v7747_v16 = vadd.f32 %v1187_v63, %v1122_v11  ;;  %v1278_v24 = vmul.f32 %v10240_v55, %v10239_v43  ;;  %v10243_v21 = vld [vmem:[#allocation91_spill] sm:$0xff]  ;;  %v7769_v25 = vpop.permute.xlu0 %1384  ;;  %v10247_v6 = vld [vmem:[#allocation182_spill] sm:$0xff] }
 0x1de   : > { %v1280_v35 = vmul.f32 %v10241_v12, %v10239_v43  ;;  %v7753_v2 = vadd.f32 %v1189_v28, %v1124_v61  ;;  %v7755_v38 = vadd.f32 %v1191_v51, %v1126_v7  ;;  %v1282_v41 = vmul.f32 %v10242_v57, %v10239_v43  ;;  %v10252_v31 = vld [vmem:[#allocation99_spill] sm:$0xff] }
 0x1df   : > { %v1284_v62 = vmul.f32 %v10243_v21, %v10239_v43  ;;  %v7761_v15 = vadd.f32 %v1193_v50, %v1128_v14  ;;  %v7763_v19 = vadd.f32 %v1195_v3, %v1130_v37  ;;  %v7765_v30 = vadd.f32 %v1197_v53, %v1132_v20  ;;  %v10246_v37 = vld [vmem:[#allocation94_spill] sm:$0xff] }
 0x1e0   : > { %v1286_v52 = vmul.f32 %v10244_v22, %v10239_v43  ;;  %v7771_v11 = vadd.f32 %v1199_v45, %v1134_v33  ;;  %v7773_v61 = vadd.f32 %v1201_v8, %v1136_v42  ;;  %v7775_v7 = vadd.f32 %v1203_v59, %v1138_v1  ;;  %v10248_v33 = vld [vmem:[#allocation95_spill] sm:$0xff]  ;;  %v10249_v1 = vld [vmem:[#allocation96_spill] sm:$0xff]  ;;  %v10250_v59 = vld [vmem:[#allocation97_spill] sm:$0xff] }
 0x1e1   : > { %v1288_v44 = vmul.f32 %v10245_v49, %v10239_v43  ;;  %v7779_v14 = vadd.f32 %v1205_v56, %v1140_v48  ;;  %v1290_v20 = vmul.f32 %v10246_v37, %v10239_v43  ;;  %v1330_v53 = vadd.f32 %v1278_v24, %v1213_v10  ;;  %v10251_v8 = vld [vmem:[#allocation98_spill] sm:$0xff]  ;;  %v10253_v10 = vld [vmem:[#allocation100_spill] sm:$0xff] }
 0x1e2   : > { %v1332_v47 = vadd.f32 %v1280_v35, %v1215_v23  ;;  %v7784_v9 = vadd.f32 %v1207_v4, %v10247_v6  ;;  %v1292_v27 = vmul.f32 %v10248_v33, %v10239_v43  ;;  %v1334_v42 = vadd.f32 %v1282_v41, %v1217_v32  ;;  %v10255_v21 = vld [vmem:[#allocation78_spill] sm:$0xff]  ;;  %v10258_v33 = vld [vmem:[#allocation56_spill] sm:$0xff] }
 0x1e3   : > { %v1336_v0 = vadd.f32 %v1284_v62, %v1219_v13  ;;  %v1294_v18 = vmul.f32 %v10249_v1, %v10239_v43  ;;  %v1338_v60 = vadd.f32 %v1286_v52, %v1221_v26  ;;  %v1392_v48 = vadd.f32 %v7769_v25, %v1330_v53  ;;  %v10254_v13 = vld [vmem:[#allocation101_spill] sm:$0xff] }
 0x1e4   : > { %v1394_v56 = vadd.f32 %v7769_v25, %v1332_v47  ;;  %v1296_v24 = vmul.f32 %v10250_v59, %v10239_v43  ;;  %v1340_v23 = vadd.f32 %v1288_v44, %v1223_v46  ;;  %v1396_v4 = vadd.f32 %v7769_v25, %v1334_v42  ;;  %v10259_v1 = vld [vmem:[#allocation173_spill] sm:$0xff] }
 0x1e5   : > { %v1398_v40 = vadd.f32 %v7769_v25, %v1336_v0  ;;  %v1298_v32 = vmul.f32 %v10251_v8, %v10239_v43  ;;  %v1300_v45 = vmul.f32 %v10252_v31, %v10239_v43  ;;  %v1342_v34 = vadd.f32 %v1290_v20, %v1225_v29  ;;  %v10257_v20 = vld [vmem:[#allocation67_spill] sm:$0xff] }
 0x1e6   : > { %v1400_v26 = vadd.f32 %v7769_v25, %v1338_v60  ;;  %v1302_v63 = vmul.f32 %v10253_v10, %v10239_v43  ;;  %v1304_v46 = vmul.f32 %v10254_v13, %v10239_v43  ;;  %v1344_v28 = vadd.f32 %v1292_v27, %v1227_v5  ;;  %v10262_v31 = vld [vmem:[#allocation179_spill] sm:$0xff]  ;;  %v10263_v10 = vld [vmem:[#allocation180_spill] sm:$0xff] }
 0x1e7   : > { %v1402_v51 = vadd.f32 %v7769_v25, %v1340_v23  ;;  %v1346_v50 = vadd.f32 %v1294_v18, %v1229_v39  ;;  %v1404_v3 = vadd.f32 %v7769_v25, %v1342_v34  ;;  %v1444_v55 = vmax.f32 %v1392_v48, 0.0  ;;  %v10256_v39 = vld [vmem:[#allocation62_spill] sm:$0xff] }
 0x1e8   : > { %v1446_v12 = vmax.f32 %v1394_v56, 0.0  ;;  %v1348_v35 = vadd.f32 %v1296_v24, %v1231_v36  ;;  %v1406_v29 = vadd.f32 %v7769_v25, %v1344_v28  ;;  %v1448_v57 = vmax.f32 %v1396_v4, 0.0  ;;  %v10260_v56 = vld [vmem:[#allocation174_spill] sm:$0xff]  ;;  %v10261_v4 = vld [vmem:[#allocation175_spill] sm:$0xff]  ;;  %v10264_v28 = vld [vmem:[#allocation181_spill] sm:$0xff] }
 0x1e9   : > { %v1450_v41 = vmax.f32 %v1398_v40, 0.0  ;;  %v1306_v62 = vmul.f32 %v10255_v21, %v10239_v43  ;;  %v1350_v22 = vadd.f32 %v1298_v32, %v1233_v54  ;;  %v1408_v5 = vadd.f32 %v7769_v25, %v1346_v50  ;;  %1498 = vst [vmem:[%s7090_s23] sm:$0xff] %v1444_v55  ;;  %v10265_v55 = vld [vmem:[#allocation189_spill] sm:$0xff] }
 0x1ea   : > { %v1452_v52 = vmax.f32 %v1400_v26, 0.0  ;;  %v1308_v49 = vmul.f32 %v10256_v39, %v10239_v43  ;;  %v1352_v44 = vadd.f32 %v1300_v45, %v1235_v17  ;;  %v1410_v36 = vadd.f32 %v7769_v25, %v1348_v35  ;;  %1500 = vst [vmem:[%s7090_s23 + $0x10] sm:$0xff] %v1446_v12 }
 0x1eb   : > { %v1454_v37 = vmax.f32 %v1402_v51, 0.0  ;;  %v1310_v53 = vmul.f32 %v10257_v20, %v10239_v43  ;;  %v1354_v47 = vadd.f32 %v1302_v63, %v1237_v58  ;;  %v1412_v54 = vadd.f32 %v7769_v25, %v1350_v22  ;;  %1502 = vst [vmem:[%s7090_s23 + $0x20] sm:$0xff] %v1448_v57  ;;  %v5625_v57 = vld [vmem:[%s5847_s21 + $0x53] ss:$0 sm:$0xff]  ;;  %v10266_v22 = vld [vmem:[#allocation186_spill] sm:$0xff] }
 0x1ec   : > { %v1456_v6 = vmax.f32 %v1404_v3, 0.0  ;;  %v1312_v27 = vmul.f32 %v10258_v33, %v10239_v43  ;;  %v1356_v42 = vadd.f32 %v1304_v46, %v7747_v16  ;;  %v1414_v17 = vadd.f32 %v7769_v25, %v1352_v44  ;;  %1504 = vst [vmem:[%s7090_s23 + $0x30] sm:$0xff] %v1450_v41  ;;  %v10268_v44 = vld [vmem:[#allocation187_spill] sm:$0xff] }
 0x1ed   : > { %v1458_v0 = vmax.f32 %v1406_v29, 0.0  ;;  %v1314_v18 = vmul.f32 %v10259_v1, %v10239_v43  ;;  %v1358_v58 = vadd.f32 %v1306_v62, %v7753_v2  ;;  %v1416_v60 = vadd.f32 %v7769_v25, %v1354_v47  ;;  %1506 = vst [vmem:[%s7090_s23 + $0x40] sm:$0xff] %v1452_v52 }
 0x1ee   : > { %v1460_v48 = vmax.f32 %v1408_v5, 0.0  ;;  %v1316_v59 = vmul.f32 %v10260_v56, %v10239_v43  ;;  %v1360_v16 = vadd.f32 %v1308_v49, %v7755_v38  ;;  %v1418_v24 = vadd.f32 %v7769_v25, %v1356_v42  ;;  %1508 = vst [vmem:[%s7090_s23 + $0x50] sm:$0xff] %v1454_v37  ;;  %v10267_v5 = vld [vmem:[#allocation188_spill] sm:$0xff] }
 0x1ef   : > { %v1462_v23 = vmax.f32 %v1410_v36, 0.0  ;;  %v1318_v40 = vmul.f32 %v10261_v4, %v10239_v43  ;;  %v1362_v2 = vadd.f32 %v1310_v53, %v7761_v15  ;;  %v1420_v8 = vadd.f32 %v7769_v25, %v1358_v58  ;;  %1510 = vst [vmem:[%s7090_s23 + $0x60] sm:$0xff] %v1456_v6  ;;  %v10269_v36 = vld [vmem:[#allocation193_spill] sm:$0xff] }
 0x1f0   : > { %v1464_v32 = vmax.f32 %v1412_v54, 0.0  ;;  %v1320_v45 = vmul.f32 %v10262_v31, %v10239_v43  ;;  %v1364_v38 = vadd.f32 %v1312_v27, %v7763_v19  ;;  %v1422_v34 = vadd.f32 %v7769_v25, %v1360_v16  ;;  %1512 = vst [vmem:[%s7090_s23 + $0x70] sm:$0xff] %v1458_v0 }
 0x1f1   : > { %v1466_v26 = vmax.f32 %v1414_v17, 0.0  ;;  %v1322_v63 = vmul.f32 %v10263_v10, %v10239_v43  ;;  %v1366_v15 = vadd.f32 %v1314_v18, %v7765_v30  ;;  %v1424_v13 = vadd.f32 %v7769_v25, %v1362_v2  ;;  %1514 = vst [vmem:[%s7090_s23 + $0x80] sm:$0xff] %v1460_v48 }
 0x1f2   : > { %v1468_v46 = vmax.f32 %v1416_v60, 0.0  ;;  %v1324_v51 = vmul.f32 %v10264_v28, %v10239_v43  ;;  %v1368_v19 = vadd.f32 %v1316_v59, %v7771_v11  ;;  %v1426_v50 = vadd.f32 %v7769_v25, %v1364_v38  ;;  %1516 = vst [vmem:[%s7090_s23 + $0x90] sm:$0xff] %v1462_v23 }
 0x1f3   : > { %v1470_v3 = vmax.f32 %v1418_v24, 0.0  ;;  %v1326_v12 = vmul.f32 %v10265_v55, %v10239_v43  ;;  %v1370_v30 = vadd.f32 %v1318_v40, %v7773_v61  ;;  %v1428_v35 = vadd.f32 %v7769_v25, %v1366_v15  ;;  %1518 = vst [vmem:[%s7090_s23 + $0xa0] sm:$0xff] %v1464_v32 }
 0x1f4   : > { %v1472_v29 = vmax.f32 %v1420_v8, 0.0  ;;  %v1328_v41 = vmul.f32 %v5625_v57, %v10239_v43  ;;  %v1372_v11 = vadd.f32 %v1320_v45, %v7775_v7  ;;  %v1430_v21 = vadd.f32 %v7769_v25, %v1368_v19  ;;  %1520 = vst [vmem:[%s7090_s23 + $0xb0] sm:$0xff] %v1466_v26 }
 0x1f5   : > { %v1474_v62 = vmax.f32 %v1422_v34, 0.0  ;;  %v1261_v52 = vadd.f32 %v10267_v5, %v10266_v22  ;;  %v1374_v61 = vadd.f32 %v1322_v63, %v7779_v14  ;;  %v1432_v39 = vadd.f32 %v7769_v25, %v1370_v30  ;;  %1522 = vst [vmem:[%s7090_s23 + $0xc0] sm:$0xff] %v1468_v46 }
 0x1f6   : > { %v1476_v49 = vmax.f32 %v1424_v13, 0.0  ;;  %v1263_v43 = vadd.f32 %v10269_v36, %v10268_v44  ;;  %v1376_v7 = vadd.f32 %v1324_v51, %v7784_v9  ;;  %v1434_v37 = vadd.f32 %v7769_v25, %v1372_v11  ;;  %1524 = vst [vmem:[%s7090_s23 + $0xd0] sm:$0xff] %v1470_v3 }
 0x1f7   : > { %v1478_v20 = vmax.f32 %v1426_v50, 0.0  ;;  %v1378_v53 = vadd.f32 %v1326_v12, %v1261_v52  ;;  %v1436_v14 = vadd.f32 %v7769_v25, %v1374_v61  ;;  %v1480_v47 = vmax.f32 %v1428_v35, 0.0  ;;  %1526 = vst [vmem:[%s7090_s23 + $0xe0] sm:$0xff] %v1472_v29 }
 0x1f8   : > { %v1380_v54 = vadd.f32 %v1328_v41, %v1263_v43  ;;  %v1438_v6 = vadd.f32 %v7769_v25, %v1376_v7  ;;  %v1482_v33 = vmax.f32 %v1430_v21, 0.0  ;;  %1528 = vst [vmem:[%s7090_s23 + $0xf0] sm:$0xff] %v1474_v62  ;;  %v1484_v27 = vmax.f32 %v1432_v39, 0.0 }
 0x1f9   : > { %v1440_v9 = vadd.f32 %v7769_v25, %v1378_v53  ;;  %1530 = vst [vmem:[%s7090_s23 + $0x100] sm:$0xff] %v1476_v49  ;;  %v1486_v17 = vmax.f32 %v1434_v37, 0.0  ;;  %v1488_v0 = vmax.f32 %v1436_v14, 0.0 }
 0x1fa   : > { %v1442_v42 = vadd.f32 %v7769_v25, %v1380_v54  ;;  %1532 = vst [vmem:[%s7090_s23 + $0x110] sm:$0xff] %v1478_v20  ;;  %v1490_v1 = vmax.f32 %v1438_v6, 0.0 }
 0x1fb   : > { %1534 = vst [vmem:[%s7090_s23 + $0x120] sm:$0xff] %v1480_v47  ;;  %v1492_v18 = vmax.f32 %v1440_v9, 0.0 }
 0x1fc   : > { %1536 = vst [vmem:[%s7090_s23 + $0x130] sm:$0xff] %v1482_v33  ;;  %v1494_v58 = vmax.f32 %v1442_v42, 0.0 }
 0x1fd   : > { %1538 = vst [vmem:[%s7090_s23 + $0x140] sm:$0xff] %v1484_v27 }
 0x1fe   : > { %1540 = vst [vmem:[%s7090_s23 + $0x150] sm:$0xff] %v1486_v17  ;;  %62 = sbr.rel (!%p60_p0) target bundleno = 22 (0x16), region = 193 }
 0x1ff   : > { %1542 = vst [vmem:[%s7090_s23 + $0x160] sm:$0xff] %v1488_v0 }
 0x200   : > { %1544 = vst [vmem:[%s7090_s23 + $0x170] sm:$0xff] %v1490_v1 }
 0x201   : > { %1546 = vst [vmem:[%s7090_s23 + $0x180] sm:$0xff] %v1492_v18 }
 0x202   : > { %1548 = vst [vmem:[%s7090_s23 + $0x190] sm:$0xff] %v1494_v58 }
 0x203 LB: > { %s4787_s25 = smul.u32 832, %s5657_s24  ;;  %s5657_s24 = sphi %s7894_s24, %s1555_s24  }
 0x204   : > { %s1744_s26 = smul.u32 208, %s5657_s24  ;;  %s1555_s24 = sadd.s32 1, %s5657_s24  }
 0x205   : > { %s7901_s27 = scalar_lea.vmem [#allocation2], %s4787_s25  ;;  %p1552_p1 = scmp.ge.s32.totalorder %s1555_s24, 13  }
 0x206   : > { %s7921_s0 = scalar_lea.vmem [#allocation3], %s1744_s26  ;;  %s8068_s2 = smov (%p1552_p1), 0  }
 0x209   : > { %v1559_v25 = vld [vmem:[%s7901_s27] sm:$0xff]  ;;  %v1561_v60 = vld [vmem:[%s7901_s27 + $0x10] sm:$0xff]  ;;  %v1560_v16 = vld [vmem:[%s7901_s27 + $0x8] sm:$0xff] }
 0x20a   : > { %v4790_v48 = vld [vmem:[%s7901_s27 + $0x1a0] sm:$0xff]  ;;  %v4792_v56 = vld [vmem:[%s7901_s27 + $0x1b0] sm:$0xff]  ;;  %v1562_v24 = vld [vmem:[%s7901_s27 + $0x18] sm:$0xff] }
 0x20b   : > { %v1666_v59 = vmax.f32 %v1559_v25, %v4790_v48  ;;  %v1668_v23 = vmax.f32 %v1561_v60, %v4792_v56  ;;  %v4791_v4 = vld [vmem:[%s7901_s27 + $0x1a8] sm:$0xff]  ;;  %v4793_v40 = vld [vmem:[%s7901_s27 + $0x1b8] sm:$0xff]  ;;  %v1563_v2 = vld [vmem:[%s7901_s27 + $0x20] sm:$0xff] }
 0x20c   : > { %v1667_v8 = vmax.f32 %v1560_v16, %v4791_v4  ;;  %v1669_v32 = vmax.f32 %v1562_v24, %v4793_v40  ;;  %v1565_v31 = vld [vmem:[%s7901_s27 + $0x30] sm:$0xff]  ;;  %v4794_v45 = vld [vmem:[%s7901_s27 + $0x1c0] sm:$0xff]  ;;  %v1564_v63 = vld [vmem:[%s7901_s27 + $0x28] sm:$0xff] }
 0x20d   : > { %v4796_v38 = vld [vmem:[%s7901_s27 + $0x1d0] sm:$0xff]  ;;  %v1718_v34 = vmax.f32 %v1666_v59, %v1668_v23  ;;  %v1670_v26 = vmax.f32 %v1563_v2, %v4794_v45  ;;  %v1566_v15 = vld [vmem:[%s7901_s27 + $0x38] sm:$0xff]  ;;  %v4795_v13 = vld [vmem:[%s7901_s27 + $0x1c8] sm:$0xff] }
 0x20e   : > { %v1672_v10 = vmax.f32 %v1565_v31, %v4796_v38  ;;  %v1719_v46 = vmax.f32 %v1667_v8, %v1669_v32  ;;  %v4797_v28 = vld [vmem:[%s7901_s27 + $0x1d8] sm:$0xff]  ;;  %v1671_v51 = vmax.f32 %v1564_v63, %v4795_v13  ;;  %v1567_v19 = vld [vmem:[%s7901_s27 + $0x40] sm:$0xff]  ;;  %v1569_v50 = vld [vmem:[%s7901_s27 + $0x50] sm:$0xff] }
 0x20f   : > { %1746 = vst [vmem:[%s7921_s0] sm:$0xff] %v1718_v34  ;;  %v1673_v55 = vmax.f32 %v1566_v15, %v4797_v28  ;;  %v4798_v12 = vld [vmem:[%s7901_s27 + $0x1e0] sm:$0xff]  ;;  %v4800_v30 = vld [vmem:[%s7901_s27 + $0x1f0] sm:$0xff]  ;;  %v1568_v35 = vld [vmem:[%s7901_s27 + $0x48] sm:$0xff] }
 0x210   : > { %v1720_v3 = vmax.f32 %v1670_v26, %v1672_v10  ;;  %1747 = vst [vmem:[%s7921_s0 + $0x8] sm:$0xff] %v1719_v46  ;;  %v1674_v29 = vmax.f32 %v1567_v19, %v4798_v12  ;;  %v1676_v57 = vmax.f32 %v1569_v50, %v4800_v30  ;;  %v1570_v41 = vld [vmem:[%s7901_s27 + $0x58] sm:$0xff]  ;;  %v4799_v11 = vld [vmem:[%s7901_s27 + $0x1e8] sm:$0xff]  ;;  %v1571_v52 = vld [vmem:[%s7901_s27 + $0x60] sm:$0xff] }
 0x211   : > { %v4801_v21 = vld [vmem:[%s7901_s27 + $0x1f8] sm:$0xff]  ;;  %v1721_v62 = vmax.f32 %v1671_v51, %v1673_v55  ;;  %v1675_v22 = vmax.f32 %v1568_v35, %v4799_v11  ;;  %v1573_v61 = vld [vmem:[%s7901_s27 + $0x70] sm:$0xff]  ;;  %v4802_v39 = vld [vmem:[%s7901_s27 + $0x200] sm:$0xff] }
 0x212   : > { %1748 = vst [vmem:[%s7921_s0 + $0x10] sm:$0xff] %v1720_v3  ;;  %v1677_v5 = vmax.f32 %v1570_v41, %v4801_v21  ;;  %v1722_v49 = vmax.f32 %v1674_v29, %v1676_v57  ;;  %v4804_v44 = vld [vmem:[%s7901_s27 + $0x210] sm:$0xff]  ;;  %v1678_v36 = vmax.f32 %v1571_v52, %v4802_v39  ;;  %v1572_v43 = vld [vmem:[%s7901_s27 + $0x68] sm:$0xff]  ;;  %v1574_v7 = vld [vmem:[%s7901_s27 + $0x78] sm:$0xff] }
 0x213   : > { %1749 = vst [vmem:[%s7921_s0 + $0x18] sm:$0xff] %v1721_v62  ;;  %v1680_v20 = vmax.f32 %v1573_v61, %v4804_v44  ;;  %v4803_v53 = vld [vmem:[%s7901_s27 + $0x208] sm:$0xff]  ;;  %v4805_v14 = vld [vmem:[%s7901_s27 + $0x218] sm:$0xff]  ;;  %v1575_v47 = vld [vmem:[%s7901_s27 + $0x80] sm:$0xff] }
 0x214   : > { %v1723_v37 = vmax.f32 %v1675_v22, %v1677_v5  ;;  %1750 = vst [vmem:[%s7921_s0 + $0x20] sm:$0xff] %v1722_v49  ;;  %v1679_v54 = vmax.f32 %v1572_v43, %v4803_v53  ;;  %v1681_v6 = vmax.f32 %v1574_v7, %v4805_v14  ;;  %v1577_v33 = vld [vmem:[%s7901_s27 + $0x90] sm:$0xff]  ;;  %v4806_v9 = vld [vmem:[%s7901_s27 + $0x220] sm:$0xff]  ;;  %v1576_v1 = vld [vmem:[%s7901_s27 + $0x88] sm:$0xff] }
 0x215   : > { %v4808_v27 = vld [vmem:[%s7901_s27 + $0x230] sm:$0xff]  ;;  %v1724_v42 = vmax.f32 %v1678_v36, %v1680_v20  ;;  %v1682_v17 = vmax.f32 %v1575_v47, %v4806_v9  ;;  %v1578_v18 = vld [vmem:[%s7901_s27 + $0x98] sm:$0xff]  ;;  %v4807_v58 = vld [vmem:[%s7901_s27 + $0x228] sm:$0xff] }
 0x216   : > { %1751 = vst [vmem:[%s7921_s0 + $0x28] sm:$0xff] %v1723_v37  ;;  %v1684_v0 = vmax.f32 %v1577_v33, %v4808_v27  ;;  %v1725_v25 = vmax.f32 %v1679_v54, %v1681_v6  ;;  %v4809_v60 = vld [vmem:[%s7901_s27 + $0x238] sm:$0xff]  ;;  %v1683_v48 = vmax.f32 %v1576_v1, %v4807_v58  ;;  %v1579_v56 = vld [vmem:[%s7901_s27 + $0xa0] sm:$0xff]  ;;  %v1581_v59 = vld [vmem:[%s7901_s27 + $0xb0] sm:$0xff] }
 0x217   : > { %1752 = vst [vmem:[%s7921_s0 + $0x30] sm:$0xff] %v1724_v42  ;;  %v1685_v24 = vmax.f32 %v1578_v18, %v4809_v60  ;;  %v4810_v23 = vld [vmem:[%s7901_s27 + $0x240] sm:$0xff]  ;;  %v4812_v4 = vld [vmem:[%s7901_s27 + $0x250] sm:$0xff]  ;;  %v1580_v40 = vld [vmem:[%s7901_s27 + $0xa8] sm:$0xff] }
 0x218   : > { %v1726_v16 = vmax.f32 %v1682_v17, %v1684_v0  ;;  %1753 = vst [vmem:[%s7921_s0 + $0x38] sm:$0xff] %v1725_v25  ;;  %v1686_v2 = vmax.f32 %v1579_v56, %v4810_v23  ;;  %v1688_v8 = vmax.f32 %v1581_v59, %v4812_v4  ;;  %v1582_v32 = vld [vmem:[%s7901_s27 + $0xb8] sm:$0xff]  ;;  %v4811_v31 = vld [vmem:[%s7901_s27 + $0x248] sm:$0xff]  ;;  %v1583_v10 = vld [vmem:[%s7901_s27 + $0xc0] sm:$0xff] }
 0x219   : > { %v4813_v45 = vld [vmem:[%s7901_s27 + $0x258] sm:$0xff]  ;;  %v1727_v38 = vmax.f32 %v1683_v48, %v1685_v24  ;;  %v1687_v34 = vmax.f32 %v1580_v40, %v4811_v31  ;;  %v1585_v63 = vld [vmem:[%s7901_s27 + $0xd0] sm:$0xff]  ;;  %v4814_v15 = vld [vmem:[%s7901_s27 + $0x260] sm:$0xff] }
 0x21a   : > { %1754 = vst [vmem:[%s7921_s0 + $0x40] sm:$0xff] %v1726_v16  ;;  %v1689_v26 = vmax.f32 %v1582_v32, %v4813_v45  ;;  %v1728_v13 = vmax.f32 %v1686_v2, %v1688_v8  ;;  %v4816_v46 = vld [vmem:[%s7901_s27 + $0x270] sm:$0xff]  ;;  %v1690_v28 = vmax.f32 %v1583_v10, %v4814_v15  ;;  %v1584_v51 = vld [vmem:[%s7901_s27 + $0xc8] sm:$0xff]  ;;  %v1586_v19 = vld [vmem:[%s7901_s27 + $0xd8] sm:$0xff] }
 0x21b   : > { %1755 = vst [vmem:[%s7921_s0 + $0x48] sm:$0xff] %v1727_v38  ;;  %v1692_v3 = vmax.f32 %v1585_v63, %v4816_v46  ;;  %v4815_v55 = vld [vmem:[%s7901_s27 + $0x268] sm:$0xff]  ;;  %v4817_v12 = vld [vmem:[%s7901_s27 + $0x278] sm:$0xff]  ;;  %v1587_v30 = vld [vmem:[%s7901_s27 + $0xe0] sm:$0xff] }
 0x21c   : > { %v1729_v50 = vmax.f32 %v1687_v34, %v1689_v26  ;;  %1756 = vst [vmem:[%s7921_s0 + $0x50] sm:$0xff] %v1728_v13  ;;  %v1691_v35 = vmax.f32 %v1584_v51, %v4815_v55  ;;  %v1693_v29 = vmax.f32 %v1586_v19, %v4817_v12  ;;  %v1589_v57 = vld [vmem:[%s7901_s27 + $0xf0] sm:$0xff]  ;;  %v4818_v41 = vld [vmem:[%s7901_s27 + $0x280] sm:$0xff]  ;;  %v1588_v5 = vld [vmem:[%s7901_s27 + $0xe8] sm:$0xff] }
 0x21d   : > { %v4820_v11 = vld [vmem:[%s7901_s27 + $0x290] sm:$0xff]  ;;  %v1730_v21 = vmax.f32 %v1690_v28, %v1692_v3  ;;  %v1694_v62 = vmax.f32 %v1587_v30, %v4818_v41  ;;  %v1590_v52 = vld [vmem:[%s7901_s27 + $0xf8] sm:$0xff]  ;;  %v4819_v61 = vld [vmem:[%s7901_s27 + $0x288] sm:$0xff] }
 0x21e   : > { %1757 = vst [vmem:[%s7921_s0 + $0x58] sm:$0xff] %v1729_v50  ;;  %v1696_v22 = vmax.f32 %v1589_v57, %v4820_v11  ;;  %v1731_v39 = vmax.f32 %v1691_v35, %v1693_v29  ;;  %v4821_v49 = vld [vmem:[%s7901_s27 + $0x298] sm:$0xff]  ;;  %v1695_v44 = vmax.f32 %v1588_v5, %v4819_v61  ;;  %v1591_v36 = vld [vmem:[%s7901_s27 + $0x100] sm:$0xff]  ;;  %v1593_v43 = vld [vmem:[%s7901_s27 + $0x110] sm:$0xff] }
 0x21f   : > { %1758 = vst [vmem:[%s7921_s0 + $0x60] sm:$0xff] %v1730_v21  ;;  %v1697_v37 = vmax.f32 %v1590_v52, %v4821_v49  ;;  %v4822_v20 = vld [vmem:[%s7901_s27 + $0x2a0] sm:$0xff]  ;;  %v4824_v53 = vld [vmem:[%s7901_s27 + $0x2b0] sm:$0xff]  ;;  %v1592_v14 = vld [vmem:[%s7901_s27 + $0x108] sm:$0xff] }
 0x220   : > { %v1732_v7 = vmax.f32 %v1694_v62, %v1696_v22  ;;  %1759 = vst [vmem:[%s7921_s0 + $0x68] sm:$0xff] %v1731_v39  ;;  %v1698_v47 = vmax.f32 %v1591_v36, %v4822_v20  ;;  %v1700_v54 = vmax.f32 %v1593_v43, %v4824_v53  ;;  %v1594_v6 = vld [vmem:[%s7901_s27 + $0x118] sm:$0xff]  ;;  %v4823_v33 = vld [vmem:[%s7901_s27 + $0x2a8] sm:$0xff]  ;;  %v1595_v0 = vld [vmem:[%s7901_s27 + $0x120] sm:$0xff] }
 0x221   : > { %v4825_v9 = vld [vmem:[%s7901_s27 + $0x2b8] sm:$0xff]  ;;  %v1733_v27 = vmax.f32 %v1695_v44, %v1697_v37  ;;  %v1699_v42 = vmax.f32 %v1592_v14, %v4823_v33  ;;  %v1597_v1 = vld [vmem:[%s7901_s27 + $0x130] sm:$0xff]  ;;  %v4826_v18 = vld [vmem:[%s7901_s27 + $0x2c0] sm:$0xff] }
 0x222   : > { %1760 = vst [vmem:[%s7921_s0 + $0x70] sm:$0xff] %v1732_v7  ;;  %v1701_v17 = vmax.f32 %v1594_v6, %v4825_v9  ;;  %v1734_v58 = vmax.f32 %v1698_v47, %v1700_v54  ;;  %v4828_v25 = vld [vmem:[%s7901_s27 + $0x2d0] sm:$0xff]  ;;  %v1702_v60 = vmax.f32 %v1595_v0, %v4826_v18  ;;  %v1596_v48 = vld [vmem:[%s7901_s27 + $0x128] sm:$0xff]  ;;  %v1598_v56 = vld [vmem:[%s7901_s27 + $0x138] sm:$0xff] }
 0x223   : > { %1761 = vst [vmem:[%s7921_s0 + $0x78] sm:$0xff] %v1733_v27  ;;  %v1704_v16 = vmax.f32 %v1597_v1, %v4828_v25  ;;  %v4827_v24 = vld [vmem:[%s7901_s27 + $0x2c8] sm:$0xff]  ;;  %v4829_v23 = vld [vmem:[%s7901_s27 + $0x2d8] sm:$0xff]  ;;  %v1599_v4 = vld [vmem:[%s7901_s27 + $0x140] sm:$0xff] }
 0x224   : > { %v1735_v59 = vmax.f32 %v1699_v42, %v1701_v17  ;;  %1762 = vst [vmem:[%s7921_s0 + $0x80] sm:$0xff] %v1734_v58  ;;  %v1703_v40 = vmax.f32 %v1596_v48, %v4827_v24  ;;  %v1705_v2 = vmax.f32 %v1598_v56, %v4829_v23  ;;  %v1601_v8 = vld [vmem:[%s7901_s27 + $0x150] sm:$0xff]  ;;  %v4830_v32 = vld [vmem:[%s7901_s27 + $0x2e0] sm:$0xff]  ;;  %v1600_v26 = vld [vmem:[%s7901_s27 + $0x148] sm:$0xff] }
 0x225   : > { %v4832_v31 = vld [vmem:[%s7901_s27 + $0x2f0] sm:$0xff]  ;;  %v1736_v45 = vmax.f32 %v1702_v60, %v1704_v16  ;;  %v1706_v38 = vmax.f32 %v1599_v4, %v4830_v32  ;;  %v1602_v10 = vld [vmem:[%s7901_s27 + $0x158] sm:$0xff]  ;;  %v4831_v63 = vld [vmem:[%s7901_s27 + $0x2e8] sm:$0xff] }
 0x226   : > { %1763 = vst [vmem:[%s7921_s0 + $0x88] sm:$0xff] %v1735_v59  ;;  %v1708_v34 = vmax.f32 %v1601_v8, %v4832_v31  ;;  %v1737_v15 = vmax.f32 %v1703_v40, %v1705_v2  ;;  %v4833_v13 = vld [vmem:[%s7901_s27 + $0x2f8] sm:$0xff]  ;;  %v1707_v46 = vmax.f32 %v1600_v26, %v4831_v63  ;;  %v1603_v28 = vld [vmem:[%s7901_s27 + $0x160] sm:$0xff]  ;;  %v1605_v51 = vld [vmem:[%s7901_s27 + $0x170] sm:$0xff] }
 0x227   : > { %1764 = vst [vmem:[%s7921_s0 + $0x90] sm:$0xff] %v1736_v45  ;;  %v1709_v50 = vmax.f32 %v1602_v10, %v4833_v13  ;;  %v4834_v3 = vld [vmem:[%s7901_s27 + $0x300] sm:$0xff]  ;;  %v4836_v55 = vld [vmem:[%s7901_s27 + $0x310] sm:$0xff]  ;;  %v1604_v12 = vld [vmem:[%s7901_s27 + $0x168] sm:$0xff] }
 0x228   : > { %v1738_v19 = vmax.f32 %v1706_v38, %v1708_v34  ;;  %1765 = vst [vmem:[%s7921_s0 + $0x98] sm:$0xff] %v1737_v15  ;;  %v1710_v30 = vmax.f32 %v1603_v28, %v4834_v3  ;;  %v1712_v35 = vmax.f32 %v1605_v51, %v4836_v55  ;;  %v1606_v29 = vld [vmem:[%s7901_s27 + $0x178] sm:$0xff]  ;;  %v4835_v57 = vld [vmem:[%s7901_s27 + $0x308] sm:$0xff]  ;;  %v1607_v22 = vld [vmem:[%s7901_s27 + $0x180] sm:$0xff] }
 0x229   : > { %v4837_v41 = vld [vmem:[%s7901_s27 + $0x318] sm:$0xff]  ;;  %v1739_v11 = vmax.f32 %v1707_v46, %v1709_v50  ;;  %v1711_v21 = vmax.f32 %v1604_v12, %v4835_v57  ;;  %v1609_v5 = vld [vmem:[%s7901_s27 + $0x190] sm:$0xff]  ;;  %v4838_v52 = vld [vmem:[%s7901_s27 + $0x320] sm:$0xff] }
 0x22a   : > { %1766 = vst [vmem:[%s7921_s0 + $0xa0] sm:$0xff] %v1738_v19  ;;  %v1713_v62 = vmax.f32 %v1606_v29, %v4837_v41  ;;  %v1740_v61 = vmax.f32 %v1710_v30, %v1712_v35  ;;  %v4840_v39 = vld [vmem:[%s7901_s27 + $0x330] sm:$0xff]  ;;  %v1714_v49 = vmax.f32 %v1607_v22, %v4838_v52  ;;  %v1608_v44 = vld [vmem:[%s7901_s27 + $0x188] sm:$0xff]  ;;  %v1610_v36 = vld [vmem:[%s7901_s27 + $0x198] sm:$0xff] }
 0x22b   : > { %1767 = vst [vmem:[%s7921_s0 + $0xa8] sm:$0xff] %v1739_v11  ;;  %v1716_v7 = vmax.f32 %v1609_v5, %v4840_v39  ;;  %v4839_v37 = vld [vmem:[%s7901_s27 + $0x328] sm:$0xff]  ;;  %v4841_v20 = vld [vmem:[%s7901_s27 + $0x338] sm:$0xff]  ;;  %v8041_v6 = vld [vmem:[%s9396_s3] sm:$0xff] (%p1552_p1) }
 0x22c   : > { %v1741_v43 = vmax.f32 %v1711_v21, %v1713_v62  ;;  %1768 = vst [vmem:[%s7921_s0 + $0xb0] sm:$0xff] %v1740_v61  ;;  %v1715_v53 = vmax.f32 %v1608_v44, %v4839_v37  ;;  %v1717_v14 = vmax.f32 %v1610_v36, %v4841_v20  ;;  %1554 = sbr.rel (!%p1552_p1) target bundleno = 515 (0x203), region = 204  ;;  %v8046_v33 = vld [vmem:[%s9396_s3 + $0x8] sm:$0xff] (%p1552_p1)  ;;  %v8051_v9 = vld [vmem:[%s9396_s3 + $0x10] sm:$0xff] (%p1552_p1)  ;;  %v8056_v27 = vld [vmem:[%s9396_s3 + $0x18] sm:$0xff] (%p1552_p1) }
 0x22d   : > { %v1742_v47 = vmax.f32 %v1714_v49, %v1716_v7  ;;  %v8061_v42 = vld [vmem:[%s9397_s4] sm:$0xff] (%p1552_p1)  ;;  %v8066_v17 = vld [vmem:[%s9397_s4 + $0x8] sm:$0xff] (%p1552_p1) }
 0x22e   : > { %1769 = vst [vmem:[%s7921_s0 + $0xb8] sm:$0xff] %v1741_v43  ;;  %v1743_v54 = vmax.f32 %v1715_v53, %v1717_v14 }
 0x22f   : > { %1770 = vst [vmem:[%s7921_s0 + $0xc0] sm:$0xff] %v1742_v47 }
 0x230   : > { %1771 = vst [vmem:[%s7921_s0 + $0xc8] sm:$0xff] %v1743_v54 }
 0x231 LB: > { %s1784_s3 = smul.u32 208, %s5661_s2  ;;  %vm1832_vm0 = vcmask 130048   ;;  %v5672_v5 = vmov 0   ;;  %s5661_s2 = sphi %s8068_s2, %s1783_s2  }
 0x232   : > { %5626 = vset.pattern.permute.xlu0 %v5672_v5  ;;  %s1887_s4 = smul.u32 176, %s5661_s2  ;;  %s1783_s2 = sadd.s32 1, %s5661_s2  }
 0x233   : > { %s8074_s20 = scalar_lea.vmem [#allocation3], %s1784_s3  ;;  %1824 = vperm.xlu0 %5626, %v8061_v42   ;;  %p1780_p2 = scmp.ge.s32.totalorder %s1783_s2, 11  }
 0x234   : > { %s8370_s21 = scalar_lea.vmem [#allocation4], %s1887_s4  ;;  %s8419_s22 = smov (%p1780_p2), 0  }
 0x237   : > { %v4875_v0 = vld [vmem:[%s8074_s20 + $0x1c8] sm:$0xff]  ;;  %v4877_v1 = vld [vmem:[%s8074_s20 + $0x1d8] sm:$0xff]  ;;  %v4874_v18 = vld [vmem:[%s8074_s20 + $0x1c0] sm:$0xff] }
 0x238   : > { %1915 = vmatpush.msra.mxu2 %v4875_v0  ;;  %1952 = vmatpush.msra.mxu3 %v4877_v1  ;;  %v4876_v58 = vld [vmem:[%s8074_s20 + $0x1d0] sm:$0xff]  ;;  %v8081_v25 = vld [vmem:[%s8074_s20 + $0x1e8] sm:$0xff]  ;;  %v4873_v60 = vld [vmem:[%s8074_s20 + $0x1b8] sm:$0xff] }
 0x239   : > { %1839 = vmatpush.msra.mxu0 %v4873_v60  ;;  %v4872_v48 = vld [vmem:[%s8074_s20 + $0x1b0] sm:$0xff]  ;;  %1876 = vmatpush.msra.mxu1 %v4875_v0  ;;  %v8086_v56 = vld [vmem:[%s8074_s20 + $0x1e0] sm:$0xff]  ;;  %v4853_v59 = vld [vmem:[%s8074_s20 + $0x1a8] sm:$0xff] }
 0x23a   : > { %1916 = vmatpush.msra.mxu2 %v4874_v18  ;;  %1953 = vmatpush.msra.mxu3 %v4876_v58  ;;  %v4852_v16 = vld [vmem:[%s8074_s20 + $0x1a0] sm:$0xff]  ;;  %v4871_v24 = vld [vmem:[%s8074_s20 + $0x108] sm:$0xff]  ;;  %v8097_v23 = vld [vmem:[%s8074_s20 + $0xf8] sm:$0xff] }
 0x23b   : > { %1840 = vmatpush.msra.mxu0 %v4872_v48  ;;  %4878 = vmatmul.msk.f32.vlgmr.msra.gmra.mxu3 %vm1832_vm0, %v8046_v33  ;;  %v4870_v4 = vld [vmem:[%s8074_s20 + $0x100] sm:$0xff]  ;;  %v8102_v40 = vld [vmem:[%s8074_s20 + $0xf0] sm:$0xff]  ;;  %v4867_v2 = vld [vmem:[%s8074_s20 + $0xe8] sm:$0xff] }
 0x23c   : > { %2028 = vmatpush.msrb.mxu3 %v8081_v25  ;;  %1917 = vmatpush.msra.mxu2 %v4873_v60  ;;  %v8107_v8 = vld [vmem:[%s8074_s20 + $0x128] sm:$0xff]  ;;  %v4866_v32 = vld [vmem:[%s8074_s20 + $0xe0] sm:$0xff]  ;;  %v4847_v45 = vld [vmem:[%s8074_s20 + $0xd8] sm:$0xff] }
 0x23d   : > { %1841 = vmatpush.msra.mxu0 %v4853_v59  ;;  %1877 = vmatpush.msra.mxu1 %v4874_v18  ;;  %v8113_v31 = vld [vmem:[%s8074_s20 + $0x120] sm:$0xff]  ;;  %v8119_v38 = vld [vmem:[%s8074_s20 + $0x118] sm:$0xff]  ;;  %v4846_v34 = vld [vmem:[%s8074_s20 + $0xd0] sm:$0xff] }
 0x23e   : > { %2029 = vmatpush.msrb.mxu3 %v8086_v56  ;;  %1918 = vmatpush.msra.mxu2 %v4872_v48  ;;  %v4865_v26 = vld [vmem:[%s8074_s20 + $0x38] sm:$0xff]  ;;  %v8125_v10 = vld [vmem:[%s8074_s20 + $0x110] sm:$0xff]  ;;  %v8130_v63 = vld [vmem:[%s8074_s20 + $0x28] sm:$0xff] }
 0x23f   : > { %1842 = vmatpush.msra.mxu0 %v4852_v16  ;;  %1991 = vmatpush.msrb.mxu1 %v4877_v1  ;;  %v4864_v15 = vld [vmem:[%s8074_s20 + $0x30] sm:$0xff]  ;;  %v8136_v13 = vld [vmem:[%s8074_s20 + $0x20] sm:$0xff]  ;;  %v4861_v46 = vld [vmem:[%s8074_s20 + $0x18] sm:$0xff] }
 0x240   : > { %2067 = vmatpush.msra.mxu3 %v8081_v25  ;;  %1919 = vmatpush.msra.mxu2 %v4871_v24  ;;  %v8141_v28 = vld [vmem:[%s8074_s20 + $0x58] sm:$0xff]  ;;  %v4860_v51 = vld [vmem:[%s8074_s20 + $0x10] sm:$0xff]  ;;  %v1787_v50 = vld [vmem:[%s8074_s20 + $0x8] sm:$0xff] }
 0x241   : > { %1843 = vmatpush.msra.mxu0 %v8097_v23  ;;  %1992 = vmatpush.msrb.mxu1 %v4876_v58  ;;  %v8149_v19 = vld [vmem:[%s8074_s20 + $0x50] sm:$0xff]  ;;  %v8157_v3 = vld [vmem:[%s8074_s20 + $0x48] sm:$0xff]  ;;  %v4941_v55 = vld [vmem:[%s8074_s20 + $0x1f8] sm:$0xff] }
 0x242   : > { %2068 = vmatpush.msra.mxu3 %v8086_v56  ;;  %1920 = vmatpush.msra.mxu2 %v4870_v4  ;;  %v8163_v12 = vld [vmem:[%s8074_s20 + $0x40] sm:$0xff]  ;;  %v4940_v35 = vld [vmem:[%s8074_s20 + $0x1f0] sm:$0xff]  ;;  %v8175_v29 = vld [vmem:[%s8074_s20 + $0x218] sm:$0xff] }
 0x243   : > { %1844 = vmatpush.msra.mxu0 %v8102_v40  ;;  %1993 = vmatpush.msrb.mxu1 %v4875_v0  ;;  %v1786_v30 = vld [vmem:[%s8074_s20] sm:$0xff]  ;;  %v4937_v57 = vld [vmem:[%s8074_s20 + $0x138] sm:$0xff]  ;;  %v8184_v41 = vld [vmem:[%s8074_s20 + $0x210] sm:$0xff] }
 0x244   : > { %2069 = vmatpush.msra.mxu3 %v4877_v1  ;;  %1921 = vmatpush.msra.mxu2 %v8097_v23  ;;  %v4936_v11 = vld [vmem:[%s8074_s20 + $0x130] sm:$0xff]  ;;  %v4983_v21 = vld [vmem:[%s8074_s20 + $0x208] sm:$0xff]  ;;  %v4982_v62 = vld [vmem:[%s8074_s20 + $0x200] sm:$0xff] }
 0x245   : > { %1845 = vmatpush.msra.mxu0 %v4867_v2  ;;  %1994 = vmatpush.msrb.mxu1 %v4874_v18  ;;  %v8196_v22 = vld [vmem:[%s8074_s20 + $0x158] sm:$0xff]  ;;  %v8204_v52 = vld [vmem:[%s8074_s20 + $0x150] sm:$0xff]  ;;  %v8211_v61 = vld [vmem:[%s8074_s20 + $0x148] sm:$0xff] }
 0x246   : > { %2070 = vmatpush.msra.mxu3 %v4876_v58  ;;  %1922 = vmatpush.msra.mxu2 %v8102_v40  ;;  %v4931_v39 = vld [vmem:[%s8074_s20 + $0x68] sm:$0xff]  ;;  %v8217_v49 = vld [vmem:[%s8074_s20 + $0x140] sm:$0xff]  ;;  %v8243_v7 = vld [vmem:[%s8074_s20 + $0x78] sm:$0xff] }
 0x247   : > { %1846 = vmatpush.msra.mxu0 %v4866_v32  ;;  %1995 = vmatpush.msrb.mxu1 %v8119_v38  ;;  %v4930_v44 = vld [vmem:[%s8074_s20 + $0x60] sm:$0xff]  ;;  %v8231_v36 = vld [vmem:[%s8074_s20 + $0x88] sm:$0xff]  ;;  %v8254_v20 = vld [vmem:[%s8074_s20 + $0x70] sm:$0xff] }
 0x248   : > { %2071 = vmatpush.msra.mxu3 %v8107_v8  ;;  %1923 = vmatpush.msra.mxu2 %v4867_v2  ;;  %v8236_v43 = vld [vmem:[%s8074_s20 + $0x80] sm:$0xff]  ;;  %v4987_v37 = vld [vmem:[%s8074_s20 + $0x228] sm:$0xff]  ;;  %v5029_v14 = vld [vmem:[%s8074_s20 + $0x238] sm:$0xff] }
 0x249   : > { %1847 = vmatpush.msra.mxu0 %v4847_v45  ;;  %1996 = vmatpush.msrb.mxu1 %v8125_v10  ;;  %v4986_v53 = vld [vmem:[%s8074_s20 + $0x220] sm:$0xff]  ;;  %v5028_v47 = vld [vmem:[%s8074_s20 + $0x230] sm:$0xff]  ;;  %v5031_v54 = vld [vmem:[%s8074_s20 + $0x248] sm:$0xff] }
 0x24a   : > { %2072 = vmatpush.msra.mxu3 %v8113_v31  ;;  %1924 = vmatpush.msra.mxu2 %v4866_v32  ;;  %v5030_v0 = vld [vmem:[%s8074_s20 + $0x240] sm:$0xff]  ;;  %v8272_v1 = vld [vmem:[%s8074_s20 + $0x168] sm:$0xff]  ;;  %v8277_v18 = vld [vmem:[%s8074_s20 + $0x258] sm:$0xff] }
 0x24b   : > { %1848 = vmatpush.msra.mxu0 %v4846_v34  ;;  %1997 = vmatpush.msrb.mxu1 %v4871_v24  ;;  %v8281_v58 = vld [vmem:[%s8074_s20 + $0x160] sm:$0xff]  ;;  %v8286_v60 = vld [vmem:[%s8074_s20 + $0x250] sm:$0xff]  ;;  %v8307_v16 = vld [vmem:[%s8074_s20 + $0x98] sm:$0xff] }
 0x24c   : > { %2073 = vmatpush.msra.mxu3 %v8119_v38  ;;  %1925 = vmatpush.msra.mxu2 %v4865_v26  ;;  %v5024_v48 = vld [vmem:[%s8074_s20 + $0x170] sm:$0xff]  ;;  %v5018_v2 = vld [vmem:[%s8074_s20 + $0xa0] sm:$0xff]  ;;  %v5075_v45 = vld [vmem:[%s8074_s20 + $0x268] sm:$0xff] }
 0x24d   : > { %1849 = vmatpush.msra.mxu0 %v8130_v63  ;;  %4879 = vmatmul.msk.f32.gmra.mxu3 %vm1832_vm0, %v8056_v27  ;;  %v5068_v59 = vld [vmem:[%s8074_s20 + $0x190] sm:$0xff]  ;;  %v5062_v32 = vld [vmem:[%s8074_s20 + $0xc0] sm:$0xff] }
 0x24e   : > { %2074 = vmatpush.msra.mxu3 %v8125_v10  ;;  %1926 = vmatpush.msra.mxu2 %v4864_v15  ;;  %v5074_v34 = vld [vmem:[%s8074_s20 + $0x260] sm:$0xff] }
 0x24f   : > { %1850 = vmatpush.msra.mxu0 %v8136_v13  ;;  %1998 = vmatpush.msrb.mxu1 %v4870_v4 }
 0x250   : > { %2075 = vmatpush.msra.mxu3 %v4871_v24  ;;  %1927 = vmatpush.msra.mxu2 %v8130_v63  ;;  %v5067_v24 = vld [vmem:[%s8074_s20 + $0x188] sm:$0xff] }
 0x251   : > { %1851 = vmatpush.msra.mxu0 %v4861_v46  ;;  %4858 = vmatmul.msk.f32.vlgmr.msra.gmra.mxu1 %vm1832_vm0, %v8046_v33 }
 0x252   : > { %2076 = vmatpush.msra.mxu3 %v4870_v4  ;;  %1928 = vmatpush.msra.mxu2 %v8136_v13  ;;  %v5019_v4 = vld [vmem:[%s8074_s20 + $0xa8] sm:$0xff] }
 0x253   : > { %1852 = vmatpush.msra.mxu0 %v4860_v51  ;;  %1999 = vmatpush.msrb.mxu1 %v8097_v23  ;;  %v4996_v23 = vld [vmem:[%s8074_s20 + $0x90] sm:$0xff] }
 0x254   : > { %2077 = vmatpush.msra.mxu3 %v8141_v28  ;;  %1929 = vmatpush.msra.mxu2 %v4861_v46 }
 0x255   : > { %1853 = vmatpush.msra.mxu0 %v1787_v50  ;;  %2000 = vmatpush.msrb.mxu1 %v8102_v40  ;;  %v5066_v40 = vld [vmem:[%s8074_s20 + $0x180] sm:$0xff] }
 0x256   : > { %2078 = vmatpush.msra.mxu3 %v8149_v19  ;;  %1930 = vmatpush.msra.mxu2 %v4860_v51 }
 0x257   : > { %1931 = vmatmul.f32.vlgmr.msra.gmra.mxu2 %v8041_v6  ;;  %1854 = vmatpush.msra.mxu0 %v1786_v30 }
 0x258   : > { %2079 = vmatpush.msra.mxu3 %v8157_v3  ;;  %2143 = vmatpush.msrb.mxu2 %v4941_v55 }
 0x259   : > { %2001 = vmatpush.msrb.mxu1 %v8157_v3  ;;  %1855 = vmatmul.f32.vlgmr.msra.gmra.mxu0 %v8041_v6 }
 0x25a   : > { %2080 = vmatpush.msra.mxu3 %v8163_v12  ;;  %2144 = vmatpush.msrb.mxu2 %v4940_v35 }
 0x25b   : > { %2002 = vmatpush.msrb.mxu1 %v8163_v12  ;;  %4900 = vmatmul.msk.f32.vlgmr.msrb.gmra.mxu3 %vm1832_vm0, %v8046_v33 }
 0x25c   : > { %2081 = vmatpush.msra.mxu3 %v4865_v26  ;;  %2145 = vmatpush.msrb.mxu2 %v8081_v25  ;;  %v5025_v25 = vld [vmem:[%s8074_s20 + $0x178] sm:$0xff] }
 0x25d   : > { %4859 = vmatmul.msk.f32.gmra.mxu1 %vm1832_vm0, %v8056_v27  ;;  %2104 = vmatpush.msrb.mxu0 %v4941_v55 }
 0x25e   : > { %2082 = vmatpush.msra.mxu3 %v4864_v15  ;;  %2146 = vmatpush.msrb.mxu2 %v8086_v56  ;;  %v5069_v56 = vld [vmem:[%s8074_s20 + $0x198] sm:$0xff] }
 0x25f   : > { %1934 = vmatmul.f32.gmra.mxu2 %v8051_v9  ;;  %2003 = vmatpush.msrb.mxu1 %v4865_v26 }
 0x260   : > { %2295 = vmatpush.msrb.mxu3 %v8175_v29  ;;  %2147 = vmatpush.msrb.mxu2 %v4937_v57 }
 0x261   : > { %2004 = vmatpush.msrb.mxu1 %v4864_v15  ;;  %2105 = vmatpush.msrb.mxu0 %v4940_v35 }
 0x262   : > { %2296 = vmatpush.msrb.mxu3 %v8184_v41  ;;  %2148 = vmatpush.msrb.mxu2 %v4936_v11 }
 0x263   : > { %2005 = vmatpush.msrb.mxu1 %v8130_v63  ;;  %2219 = vmatpush.msra.mxu0 %v4983_v21 }
 0x264   : > { %2297 = vmatpush.msrb.mxu3 %v4983_v21  ;;  %2149 = vmatpush.msrb.mxu2 %v8107_v8 }
 0x265   : > { %1858 = vmatmul.f32.gmra.mxu0 %v8051_v9  ;;  %2006 = vmatpush.msrb.mxu1 %v8136_v13 }
 0x266   : > { %2298 = vmatpush.msrb.mxu3 %v4982_v62  ;;  %2150 = vmatpush.msrb.mxu2 %v8113_v31 }
 0x267   : > { %2220 = vmatpush.msra.mxu0 %v4982_v62  ;;  %2007 = vmatmul.f32.vlgmr.msrb.gmra.mxu1 %v8041_v6 }
 0x268   : > { %2299 = vmatpush.msrb.mxu3 %v8196_v22  ;;  %2151 = vmatpush.msrb.mxu2 %v8119_v38  ;;  %v5060_v38 = vld [vmem:[%s8074_s20 + $0xb0] sm:$0xff] }
 0x269   : > { %4901 = vmatmul.msk.f32.gmra.mxu3 %vm1832_vm0, %v8056_v27  ;;  %2221 = vmatpush.msra.mxu0 %v4941_v55 }
 0x26a   : > { %2300 = vmatpush.msrb.mxu3 %v8204_v52  ;;  %2180 = vmatpush.msra.mxu1 %v4983_v21 }
 0x26b   : > { %2152 = vmatpush.msrb.mxu2 %v8125_v10  ;;  %2222 = vmatpush.msra.mxu0 %v4940_v35 }
 0x26c   : > { %2301 = vmatpush.msrb.mxu3 %v8211_v61  ;;  %2181 = vmatpush.msra.mxu1 %v4982_v62 }
 0x26d   : > { %2153 = vmatpush.msrb.mxu2 %v4931_v39  ;;  %2223 = vmatpush.msra.mxu0 %v8211_v61 }
 0x26e   : > { %2302 = vmatpush.msrb.mxu3 %v8217_v49  ;;  %4922 = vmatmul.msk.f32.vlgmr.msrb.gmra.mxu0 %vm1832_vm0, %v8046_v33 }
 0x26f   : > { %2154 = vmatpush.msrb.mxu2 %v4930_v44  ;;  %2224 = vmatpush.msra.mxu0 %v8217_v49 }
 0x270   : > { %2303 = vmatpush.msrb.mxu3 %v4937_v57  ;;  %2010 = vmatmul.f32.gmra.mxu1 %v8051_v9 }
 0x271   : > { %2083 = vmatmul.f32.vlgmr.msra.gmra.mxu3 %v8041_v6  ;;  %1829 = vperm.xlu0 %5626, %v8066_v17  }
 0x272   : > { %2155 = vmatpush.msrb.mxu2 %v8141_v28  ;;  %2225 = vmatpush.msra.mxu0 %v4937_v57 }
 0x273   : > { %2304 = vmatpush.msrb.mxu3 %v4936_v11  ;;  %2256 = vmatpush.msrb.mxu1 %v8175_v29 }
 0x274   : > { %2156 = vmatpush.msrb.mxu2 %v8149_v19  ;;  %2226 = vmatpush.msra.mxu0 %v4936_v11 }
 0x275   : > { %2305 = vmatpush.msrb.mxu3 %v8231_v36  ;;  %2257 = vmatpush.msrb.mxu1 %v8184_v41 }
 0x276   : > { %2157 = vmatpush.msrb.mxu2 %v8157_v3  ;;  %2227 = vmatpush.msra.mxu0 %v8107_v8  ;;  %v5063_v8 = vld [vmem:[%s8074_s20 + $0xc8] sm:$0xff] }
 0x277   : > { %2306 = vmatpush.msrb.mxu3 %v8236_v43  ;;  %4923 = vmatmul.msk.f32.gmra.mxu0 %vm1832_vm0, %v8056_v27 }
 0x278   : > { %2158 = vmatpush.msrb.mxu2 %v8163_v12  ;;  %2228 = vmatpush.msra.mxu0 %v8113_v31  ;;  %v5061_v31 = vld [vmem:[%s8074_s20 + $0xb8] sm:$0xff] }
 0x279   : > { %2307 = vmatpush.msrb.mxu3 %v8243_v7  ;;  %2159 = vmatmul.f32.vlgmr.msrb.gmra.mxu2 %v8041_v6 }
 0x27a   : > { %2086 = vmatmul.f32.gmra.mxu3 %v8051_v9  ;;  %4944 = vmatmul.msk.f32.vlgmr.msra.gmra.mxu1 %vm1832_vm0, %v8046_v33 }
 0x27b   : > { %2332 = vmatpush.msra.mxu2 %v4987_v37  ;;  %2229 = vmatpush.msra.mxu0 %v8243_v7 }
 0x27c   : > { %2308 = vmatpush.msrb.mxu3 %v8254_v20  ;;  %2371 = vmatpush.msra.mxu1 %v4987_v37 }
 0x27d   : > { %2333 = vmatpush.msra.mxu2 %v4986_v53  ;;  %2230 = vmatpush.msra.mxu0 %v8254_v20 }
 0x27e   : > { %2309 = vmatpush.msrb.mxu3 %v4931_v39  ;;  %2372 = vmatpush.msra.mxu1 %v4986_v53 }
 0x27f   : > { %2447 = vmatpush.msrb.mxu2 %v5029_v14  ;;  %2231 = vmatpush.msra.mxu0 %v4931_v39 }
 0x280   : > { %2310 = vmatpush.msrb.mxu3 %v4930_v44  ;;  %2373 = vmatpush.msra.mxu1 %v8175_v29 }
 0x281   : > { %2448 = vmatpush.msrb.mxu2 %v5028_v47  ;;  %2232 = vmatpush.msra.mxu0 %v4930_v44 }
 0x282   : > { %2484 = vmatpush.msra.mxu3 %v5031_v54  ;;  %2374 = vmatpush.msra.mxu1 %v8184_v41 }
 0x283   : > { %2449 = vmatpush.msrb.mxu2 %v4987_v37  ;;  %4945 = vmatmul.msk.f32.gmra.mxu1 %vm1832_vm0, %v8056_v27 }
 0x284   : > { %2162 = vmatmul.f32.gmra.mxu2 %v8051_v9  ;;  %2311 = vmatmul.f32.vlgmr.msrb.gmra.mxu3 %v8041_v6 }
 0x285   : > { %2485 = vmatpush.msra.mxu3 %v5030_v0  ;;  %2233 = vmatpush.msra.mxu0 %v8141_v28 }
 0x286   : > { %2375 = vmatpush.msra.mxu1 %v8272_v1  ;;  %2450 = vmatpush.msrb.mxu2 %v4986_v53 }
 0x287   : > { %2599 = vmatpush.msrb.mxu3 %v8277_v18  ;;  %2234 = vmatpush.msra.mxu0 %v8149_v19 }
 0x288   : > { %2376 = vmatpush.msra.mxu1 %v8281_v58  ;;  %2451 = vmatpush.msrb.mxu2 %v5025_v25 }
 0x289   : > { %2600 = vmatpush.msrb.mxu3 %v8286_v60  ;;  %2408 = vmatpush.msrb.mxu0 %v5029_v14 }
 0x28a   : > { %2377 = vmatpush.msra.mxu1 %v8196_v22  ;;  %2452 = vmatpush.msrb.mxu2 %v5024_v48 }
 0x28b   : > { %2601 = vmatpush.msrb.mxu3 %v5031_v54  ;;  %2235 = vmatmul.f32.vlgmr.msra.gmra.mxu0 %v8041_v6 }
 0x28c   : > { %2409 = vmatpush.msrb.mxu0 %v5028_v47  ;;  %2378 = vmatpush.msra.mxu1 %v8204_v52 }
 0x28d   : > { %2453 = vmatpush.msrb.mxu2 %v8272_v1  ;;  %2602 = vmatpush.msrb.mxu3 %v5030_v0 }
 0x28e   : > { %2523 = vmatpush.msra.mxu0 %v5031_v54  ;;  %4966 = vmatmul.msk.f32.vlgmr.msrb.gmra.mxu1 %vm1832_vm0, %v8046_v33 }
 0x28f   : > { %2314 = vmatmul.f32.gmra.mxu3 %v8051_v9  ;;  %2379 = vmatpush.msra.mxu1 %v8211_v61 }
 0x290   : > { %2454 = vmatpush.msrb.mxu2 %v8281_v58  ;;  %2524 = vmatpush.msra.mxu0 %v5030_v0 }
 0x291   : > { %2603 = vmatpush.msrb.mxu3 %v5069_v56  ;;  %4988 = vmatmul.msk.f32.vlgmr.msra.gmra.mxu2 %vm1832_vm0, %v8046_v33 }
 0x292   : > { %2380 = vmatpush.msra.mxu1 %v8217_v49  ;;  %2455 = vmatpush.msrb.mxu2 %v8196_v22 }
 0x293   : > { %2525 = vmatpush.msra.mxu0 %v5029_v14  ;;  %2604 = vmatpush.msrb.mxu3 %v5068_v59 }
 0x294   : > { %2381 = vmatpush.msra.mxu1 %v8307_v16  ;;  %2456 = vmatpush.msrb.mxu2 %v8204_v52 }
 0x295   : > { %2526 = vmatpush.msra.mxu0 %v5028_v47  ;;  %2605 = vmatpush.msrb.mxu3 %v5067_v24 }
 0x296   : > { %2238 = vmatmul.f32.gmra.mxu0 %v8051_v9  ;;  %2382 = vmatpush.msra.mxu1 %v4996_v23 }
 0x297   : > { %2457 = vmatpush.msrb.mxu2 %v5019_v4  ;;  %2527 = vmatpush.msra.mxu0 %v5067_v24 }
 0x298   : > { %2606 = vmatpush.msrb.mxu3 %v5066_v40  ;;  %4967 = vmatmul.msk.f32.gmra.mxu1 %vm1832_vm0, %v8056_v27 }
 0x299   : > { %5032 = vmatmul.msk.f32.vlgmr.msra.gmra.mxu3 %vm1832_vm0, %v8046_v33  ;;  %2383 = vmatpush.msra.mxu1 %v8231_v36 }
 0x29a   : > { %2458 = vmatpush.msrb.mxu2 %v5018_v2  ;;  %2528 = vmatpush.msra.mxu0 %v5066_v40 }
 0x29b   : > { %2607 = vmatpush.msrb.mxu3 %v5025_v25  ;;  %4989 = vmatmul.msk.f32.gmra.mxu2 %vm1832_vm0, %v8056_v27 }
 0x29c   : > { %2384 = vmatpush.msra.mxu1 %v8236_v43  ;;  %2459 = vmatpush.msrb.mxu2 %v8307_v16 }
 0x29d   : > { %2529 = vmatpush.msra.mxu0 %v5025_v25  ;;  %2608 = vmatpush.msrb.mxu3 %v5024_v48 }
 0x29e   : > { %2385 = vmatpush.msra.mxu1 %v8243_v7  ;;  %2460 = vmatpush.msrb.mxu2 %v4996_v23 }
 0x29f   : > { %2530 = vmatpush.msra.mxu0 %v5024_v48  ;;  %2609 = vmatpush.msrb.mxu3 %v5063_v8 }
 0x2a0   : > { %5010 = vmatmul.msk.f32.vlgmr.msrb.gmra.mxu0 %vm1832_vm0, %v8046_v33  ;;  %2386 = vmatpush.msra.mxu1 %v8254_v20 }
 0x2a1   : > { %2461 = vmatpush.msrb.mxu2 %v8231_v36  ;;  %2531 = vmatpush.msra.mxu0 %v8272_v1 }
 0x2a2   : > { %2610 = vmatpush.msrb.mxu3 %v5062_v32  ;;  %2387 = vmatmul.f32.vlgmr.msra.gmra.mxu1 %v8041_v6 }
 0x2a3   : > { %5033 = vmatmul.msk.f32.gmra.mxu3 %vm1832_vm0, %v8056_v27  ;;  %2462 = vmatpush.msrb.mxu2 %v8236_v43 }
 0x2a4   : > { %2532 = vmatpush.msra.mxu0 %v8281_v58  ;;  %2611 = vmatpush.msrb.mxu3 %v5061_v31 }
 0x2a5   : > { %2463 = vmatmul.f32.vlgmr.msrb.gmra.mxu2 %v8041_v6  ;;  %2560 = vmatpush.msrb.mxu1 %v8277_v18  ;;  %v8365_v46 = vpop.permute.xlu0 %1824 }
 0x2a6   : > { %2636 = vmatpush.msra.mxu2 %v5075_v45  ;;  %2533 = vmatpush.msra.mxu0 %v5061_v31 }
 0x2a7   : > { %2612 = vmatpush.msrb.mxu3 %v5060_v38  ;;  %2561 = vmatpush.msrb.mxu1 %v8286_v60 }
 0x2a8   : > { %2534 = vmatpush.msra.mxu0 %v5060_v38  ;;  %2637 = vmatpush.msra.mxu2 %v5074_v34 }
 0x2a9   : > { %2613 = vmatpush.msrb.mxu3 %v5019_v4  ;;  %5011 = vmatmul.msk.f32.gmra.mxu0 %vm1832_vm0, %v8056_v27 }
 0x2aa   : > { %2535 = vmatpush.msra.mxu0 %v5019_v4  ;;  %2390 = vmatmul.f32.gmra.mxu1 %v8051_v9 }
 0x2ab   : > { %2614 = vmatpush.msrb.mxu3 %v5018_v2 }
 0x2ac   : > { %2615 = vmatmul.f32.vlgmr.msrb.gmra.mxu3 %v8041_v6  ;;  %2536 = vmatpush.msra.mxu0 %v5018_v2 }
 0x2ad   : > { %2466 = vmatmul.f32.gmra.mxu2 %v8051_v9 }
 0x2ae   : > { %2537 = vmatpush.msra.mxu0 %v8307_v16 }
 0x2b0   : > { %2538 = vmatpush.msra.mxu0 %v4996_v23 }
 0x2b1   : > { %2539 = vmatmul.f32.vlgmr.msra.gmra.mxu0 %v8041_v6 }
 0x2b2   : > { %5054 = vmatmul.msk.f32.vlgmr.msrb.gmra.mxu1 %vm1832_vm0, %v8046_v33 }
 0x2b4   : > { %2618 = vmatmul.f32.gmra.mxu3 %v8051_v9 }
 0x2b5   : > { %5076 = vmatmul.msk.f32.vlgmr.msra.gmra.mxu2 %vm1832_vm0, %v8046_v33 }
 0x2b9   : > { %2542 = vmatmul.f32.gmra.mxu0 %v8051_v9 }
 0x2ba   : > { %5055 = vmatmul.msk.f32.gmra.mxu1 %vm1832_vm0, %v8056_v27 }
 0x2bd   : > { %5077 = vmatmul.msk.f32.gmra.mxu2 %vm1832_vm0, %v8056_v27 }
 0x2be   : > { %v1955_v26 = vpop.f32.mrf.mxu3 }
 0x2ce   : > { %v1879_v10 = vpop.f32.mrf.mxu1 }
 0x2d0   : > { %v1958_v63 = vpop.f32.mrf.mxu3 }
 0x2d6   : > { %v1856_v15 = vpop.f32.mrf.mxu0 }
 0x2d7   : > { %v1857_v51 = vadd.f32 %v1856_v15, %v8365_v46 }
 0x2d9   : > { %v1880_v50 = vadd.f32 %v1879_v10, %v1857_v51 }
 0x2da   : > { %v1932_v13 = vpop.f32.mrf.mxu2  ;;  %v1882_v28 = vpop.f32.mrf.mxu1 }
 0x2db   : > { %v1933_v19 = vadd.f32 %v1932_v13, %v8365_v46  ;;  %v1885_v55 = vmax.f32 %v1880_v50, 0.0 }
 0x2dd   : > { %v1956_v3 = vadd.f32 %v1955_v26, %v1933_v19  ;;  %1889 = vst [vmem:[%s8370_s21] sm:$0xff] %v1885_v55 }
 0x2de   : > { %v2031_v30 = vpop.f32.mrf.mxu3 }
 0x2df   : > { %v1961_v12 = vmax.f32 %v1956_v3, 0.0 }
 0x2e1   : > { %4880 = vst [vmem:[%s8370_s21 + $0x10] sm:$0xff] %v1961_v12 }
 0x2e2   : > { %v1859_v35 = vpop.f32.mrf.mxu0  ;;  %v1935_v29 = vpop.f32.mrf.mxu2 }
 0x2e3   : > { %v8374_v57 = vpop.permute.xlu0 %1829 }
 0x2e4   : > { %v1860_v41 = vadd.f32 %v1859_v35, %v8374_v57  ;;  %v1936_v11 = vadd.f32 %v1935_v29, %v8374_v57  ;;  %v2008_v21 = vpop.f32.mrf.mxu1 }
 0x2e5   : > { %v2009_v62 = vadd.f32 %v2008_v21, %v8365_v46 }
 0x2e6   : > { %v1883_v22 = vadd.f32 %v1882_v28, %v1860_v41  ;;  %v1959_v5 = vadd.f32 %v1958_v63, %v1936_v11 }
 0x2e7   : > { %v2032_v52 = vadd.f32 %v2031_v30, %v2009_v62 }
 0x2e8   : > { %v1886_v61 = vmax.f32 %v1883_v22, 0.0  ;;  %v1962_v39 = vmax.f32 %v1959_v5, 0.0 }
 0x2e9   : > { %v2037_v49 = vmax.f32 %v2032_v52, 0.0 }
 0x2ea   : > { %1890 = vst [vmem:[%s8370_s21 + $0x8] sm:$0xff] %v1886_v61 }
 0x2eb   : > { %4881 = vst [vmem:[%s8370_s21 + $0x18] sm:$0xff] %v1962_v39  ;;  %v2107_v53 = vpop.f32.mrf.mxu0 }
 0x2ec   : > { %v2034_v44 = vpop.f32.mrf.mxu3  ;;  %4902 = vst [vmem:[%s8370_s21 + $0x20] sm:$0xff] %v2037_v49 }
 0x2ed   : > { %v2011_v36 = vpop.f32.mrf.mxu1 }
 0x2ee   : > { %v2012_v43 = vadd.f32 %v2011_v36, %v8374_v57 }
 0x2f0   : > { %v2035_v7 = vadd.f32 %v2034_v44, %v2012_v43 }
 0x2f2   : > { %v2038_v37 = vmax.f32 %v2035_v7, 0.0 }
 0x2f4   : > { %4903 = vst [vmem:[%s8370_s21 + $0x28] sm:$0xff] %v2038_v37  ;;  %v2084_v20 = vpop.f32.mrf.mxu3  ;;  %v2110_v60 = vpop.f32.mrf.mxu0 }
 0x2f5   : > { %v2085_v14 = vadd.f32 %v2084_v20, %v8365_v46 }
 0x2f7   : > { %v2108_v47 = vadd.f32 %v2107_v53, %v2085_v14  ;;  %v2183_v54 = vpop.f32.mrf.mxu1 }
 0x2f9   : > { %v2113_v0 = vmax.f32 %v2108_v47, 0.0 }
 0x2fb   : > { %4924 = vst [vmem:[%s8370_s21 + $0x30] sm:$0xff] %v2113_v0 }
 0x2fc   : > { %v2160_v1 = vpop.f32.mrf.mxu2 }
 0x2fd   : > { %v2087_v18 = vpop.f32.mrf.mxu3  ;;  %v2161_v58 = vadd.f32 %v2160_v1, %v8365_v46 }
 0x2fe   : > { %v2088_v25 = vadd.f32 %v2087_v18, %v8374_v57 }
 0x2ff   : > { %v2184_v48 = vadd.f32 %v2183_v54, %v2161_v58 }
 0x300   : > { %v2111_v56 = vadd.f32 %v2110_v60, %v2088_v25  ;;  %v2186_v16 = vpop.f32.mrf.mxu1 }
 0x301   : > { %v2189_v59 = vmax.f32 %v2184_v48, 0.0 }
 0x302   : > { %v2114_v24 = vmax.f32 %v2111_v56, 0.0 }
 0x303   : > { %4946 = vst [vmem:[%s8370_s21 + $0x40] sm:$0xff] %v2189_v59 }
 0x304   : > { %4925 = vst [vmem:[%s8370_s21 + $0x38] sm:$0xff] %v2114_v24 }
 0x307   : > { %v2163_v23 = vpop.f32.mrf.mxu2  ;;  %v2312_v32 = vpop.f32.mrf.mxu3 }
 0x308   : > { %v2164_v4 = vadd.f32 %v2163_v23, %v8374_v57  ;;  %v2236_v40 = vpop.f32.mrf.mxu0  ;;  %v2313_v26 = vadd.f32 %v2312_v32, %v8365_v46 }
 0x309   : > { %v2237_v2 = vadd.f32 %v2236_v40, %v8365_v46 }
 0x30a   : > { %v2187_v8 = vadd.f32 %v2186_v16, %v2164_v4 }
 0x30b   : > { %v2259_v31 = vpop.f32.mrf.mxu1 }
 0x30c   : > { %v2190_v45 = vmax.f32 %v2187_v8, 0.0  ;;  %v2260_v38 = vadd.f32 %v2259_v31, %v2237_v2 }
 0x30e   : > { %4947 = vst [vmem:[%s8370_s21 + $0x48] sm:$0xff] %v2190_v45  ;;  %v2265_v34 = vmax.f32 %v2260_v38, 0.0 }
 0x310   : > { %4968 = vst [vmem:[%s8370_s21 + $0x50] sm:$0xff] %v2265_v34 }
 0x312   : > { %v2315_v15 = vpop.f32.mrf.mxu3 }
 0x313   : > { %v2239_v10 = vpop.f32.mrf.mxu0  ;;  %v2316_v55 = vadd.f32 %v2315_v15, %v8374_v57 }
 0x314   : > { %v2240_v63 = vadd.f32 %v2239_v10, %v8374_v57  ;;  %v2335_v13 = vpop.f32.mrf.mxu2 }
 0x315   : > { %v2262_v28 = vpop.f32.mrf.mxu1  ;;  %v2336_v51 = vadd.f32 %v2335_v13, %v2313_v26 }
 0x316   : > { %v2263_v19 = vadd.f32 %v2262_v28, %v2240_v63 }
 0x317   : > { %v2341_v50 = vmax.f32 %v2336_v51, 0.0 }
 0x318   : > { %v2266_v3 = vmax.f32 %v2263_v19, 0.0 }
 0x319   : > { %4990 = vst [vmem:[%s8370_s21 + $0x60] sm:$0xff] %v2341_v50 }
 0x31a   : > { %4969 = vst [vmem:[%s8370_s21 + $0x58] sm:$0xff] %v2266_v3 }
 0x31c   : > { %v2487_v30 = vpop.f32.mrf.mxu3 }
 0x31d   : > { %v2411_v12 = vpop.f32.mrf.mxu0 }
 0x31e   : > { %v2338_v35 = vpop.f32.mrf.mxu2 }
 0x31f   : > { %v2339_v29 = vadd.f32 %v2338_v35, %v2316_v55  ;;  %v2388_v41 = vpop.f32.mrf.mxu1 }
 0x320   : > { %v2389_v11 = vadd.f32 %v2388_v41, %v8365_v46 }
 0x321   : > { %v2342_v21 = vmax.f32 %v2339_v29, 0.0 }
 0x322   : > { %v2412_v62 = vadd.f32 %v2411_v12, %v2389_v11 }
 0x323   : > { %4991 = vst [vmem:[%s8370_s21 + $0x68] sm:$0xff] %v2342_v21 }
 0x324   : > { %v2417_v22 = vmax.f32 %v2412_v62, 0.0 }
 0x326   : > { %5012 = vst [vmem:[%s8370_s21 + $0x70] sm:$0xff] %v2417_v22  ;;  %v2414_v5 = vpop.f32.mrf.mxu0  ;;  %v2490_v61 = vpop.f32.mrf.mxu3 }
 0x327   : > { %v2391_v52 = vpop.f32.mrf.mxu1 }
 0x328   : > { %v2392_v39 = vadd.f32 %v2391_v52, %v8374_v57  ;;  %v2464_v49 = vpop.f32.mrf.mxu2 }
 0x329   : > { %v2465_v44 = vadd.f32 %v2464_v49, %v8365_v46 }
 0x32a   : > { %v2415_v36 = vadd.f32 %v2414_v5, %v2392_v39 }
 0x32b   : > { %v2488_v43 = vadd.f32 %v2487_v30, %v2465_v44 }
 0x32c   : > { %v2418_v7 = vmax.f32 %v2415_v36, 0.0 }
 0x32d   : > { %v2493_v37 = vmax.f32 %v2488_v43, 0.0 }
 0x32e   : > { %5013 = vst [vmem:[%s8370_s21 + $0x78] sm:$0xff] %v2418_v7  ;;  %v2540_v20 = vpop.f32.mrf.mxu0 }
 0x32f   : > { %5034 = vst [vmem:[%s8370_s21 + $0x80] sm:$0xff] %v2493_v37  ;;  %v2541_v53 = vadd.f32 %v2540_v20, %v8365_v46  ;;  %v2563_v14 = vpop.f32.mrf.mxu1  ;;  %v2616_v1 = vpop.f32.mrf.mxu3 }
 0x330   : > { %v2467_v47 = vpop.f32.mrf.mxu2  ;;  %v2617_v25 = vadd.f32 %v2616_v1, %v8365_v46 }
 0x331   : > { %v2468_v54 = vadd.f32 %v2467_v47, %v8374_v57  ;;  %v2564_v0 = vadd.f32 %v2563_v14, %v2541_v53 }
 0x333   : > { %v2491_v18 = vadd.f32 %v2490_v61, %v2468_v54  ;;  %v2569_v58 = vmax.f32 %v2564_v0, 0.0 }
 0x335   : > { %v2494_v60 = vmax.f32 %v2491_v18, 0.0  ;;  %5056 = vst [vmem:[%s8370_s21 + $0x90] sm:$0xff] %v2569_v58 }
 0x336   : > { %v2543_v48 = vpop.f32.mrf.mxu0 }
 0x337   : > { %5035 = vst [vmem:[%s8370_s21 + $0x88] sm:$0xff] %v2494_v60  ;;  %v2544_v56 = vadd.f32 %v2543_v48, %v8374_v57  ;;  %v2566_v59 = vpop.f32.mrf.mxu1  ;;  %v2619_v2 = vpop.f32.mrf.mxu3 }
 0x338   : > { %v2639_v16 = vpop.f32.mrf.mxu2  ;;  %v2620_v8 = vadd.f32 %v2619_v2, %v8374_v57 }
 0x339   : > { %v2567_v24 = vadd.f32 %v2566_v59, %v2544_v56  ;;  %v2640_v23 = vadd.f32 %v2639_v16, %v2617_v25 }
 0x33b   : > { %v2570_v4 = vmax.f32 %v2567_v24, 0.0  ;;  %v2645_v40 = vmax.f32 %v2640_v23, 0.0 }
 0x33d   : > { %5057 = vst [vmem:[%s8370_s21 + $0x98] sm:$0xff] %v2570_v4 }
 0x33e   : > { %5078 = vst [vmem:[%s8370_s21 + $0xa0] sm:$0xff] %v2645_v40 }
 0x340   : > { %v2642_v32 = vpop.f32.mrf.mxu2 }
 0x341   : > { %v2643_v46 = vadd.f32 %v2642_v32, %v2620_v8  ;;  %1782 = sbr.rel (!%p1780_p2) target bundleno = 561 (0x231), region = 215 }
 0x343   : > { %v2646_v31 = vmax.f32 %v2643_v46, 0.0 }
 0x345   : > { %5079 = vst [vmem:[%s8370_s21 + $0xa8] sm:$0xff] %v2646_v31 }
 0x346 LB: > { %s5081_s23 = smul.u32 352, %s5665_s22  ;;  %s5665_s22 = sphi %s8419_s22, %s2656_s22  }
 0x347   : > { %s2733_s24 = smul.u32 80, %s5665_s22  ;;  %s2656_s22 = sadd.s32 1, %s5665_s22  }
 0x348   : > { %s8426_s25 = scalar_lea.vmem [#allocation4], %s5081_s23  ;;  %p2653_p3 = scmp.ge.s32.totalorder %s2656_s22, 5  }
 0x349   : > { %s8446_s26 = scalar_lea.vmem [#allocation5], %s2733_s24  ;;  %s8513_s19 = smov (%p2653_p3), 0  }
 0x34c   : > { %v2660_v6 = vld [vmem:[%s8426_s25] sm:$0xff]  ;;  %v2662_v33 = vld [vmem:[%s8426_s25 + $0x10] sm:$0xff]  ;;  %v2661_v17 = vld [vmem:[%s8426_s25 + $0x8] sm:$0xff] }
 0x34d   : > { %v5084_v9 = vld [vmem:[%s8426_s25 + $0xb0] sm:$0xff]  ;;  %v5086_v27 = vld [vmem:[%s8426_s25 + $0xc0] sm:$0xff]  ;;  %v2663_v57 = vld [vmem:[%s8426_s25 + $0x18] sm:$0xff] }
 0x34e   : > { %v2703_v42 = vmax.f32 %v2660_v6, %v5084_v9  ;;  %v2705_v45 = vmax.f32 %v2662_v33, %v5086_v27  ;;  %v5085_v38 = vld [vmem:[%s8426_s25 + $0xb8] sm:$0xff]  ;;  %v5087_v34 = vld [vmem:[%s8426_s25 + $0xc8] sm:$0xff]  ;;  %v2664_v26 = vld [vmem:[%s8426_s25 + $0x20] sm:$0xff] }
 0x34f   : > { %v2704_v10 = vmax.f32 %v2661_v17, %v5085_v38  ;;  %v2706_v63 = vmax.f32 %v2663_v57, %v5087_v34  ;;  %v2666_v15 = vld [vmem:[%s8426_s25 + $0x30] sm:$0xff]  ;;  %v5090_v28 = vld [vmem:[%s8426_s25 + $0xe0] sm:$0xff]  ;;  %v2665_v3 = vld [vmem:[%s8426_s25 + $0x28] sm:$0xff] }
 0x350   : > { %v5088_v13 = vld [vmem:[%s8426_s25 + $0xd0] sm:$0xff]  ;;  %v2723_v51 = vmax.f32 %v2703_v42, %v2705_v45  ;;  %v2709_v50 = vmax.f32 %v2666_v15, %v5090_v28  ;;  %v2667_v55 = vld [vmem:[%s8426_s25 + $0x38] sm:$0xff]  ;;  %v5091_v35 = vld [vmem:[%s8426_s25 + $0xe8] sm:$0xff] }
 0x351   : > { %v2707_v19 = vmax.f32 %v2664_v26, %v5088_v13  ;;  %v5089_v12 = vld [vmem:[%s8426_s25 + $0xd8] sm:$0xff]  ;;  %v2724_v30 = vmax.f32 %v2704_v10, %v2706_v63  ;;  %v2668_v41 = vld [vmem:[%s8426_s25 + $0x40] sm:$0xff]  ;;  %v2670_v11 = vld [vmem:[%s8426_s25 + $0x50] sm:$0xff]  ;;  %v2710_v62 = vmax.f32 %v2667_v55, %v5091_v35 }
 0x352   : > { %v2708_v29 = vmax.f32 %v2665_v3, %v5089_v12  ;;  %2735 = vst [vmem:[%s8446_s26] sm:$0xff] %v2723_v51  ;;  %v5092_v22 = vld [vmem:[%s8426_s25 + $0xf0] sm:$0xff]  ;;  %v5094_v5 = vld [vmem:[%s8426_s25 + $0x100] sm:$0xff]  ;;  %v2669_v52 = vld [vmem:[%s8426_s25 + $0x48] sm:$0xff] }
 0x353   : > { %v2725_v21 = vmax.f32 %v2707_v19, %v2709_v50  ;;  %2736 = vst [vmem:[%s8446_s26 + $0x8] sm:$0xff] %v2724_v30  ;;  %v2711_v61 = vmax.f32 %v2668_v41, %v5092_v22  ;;  %v2713_v39 = vmax.f32 %v2670_v11, %v5094_v5  ;;  %v2671_v49 = vld [vmem:[%s8426_s25 + $0x58] sm:$0xff]  ;;  %v5095_v36 = vld [vmem:[%s8426_s25 + $0x108] sm:$0xff]  ;;  %v2672_v20 = vld [vmem:[%s8426_s25 + $0x60] sm:$0xff] }
 0x354   : > { %v5093_v44 = vld [vmem:[%s8426_s25 + $0xf8] sm:$0xff]  ;;  %v2726_v43 = vmax.f32 %v2708_v29, %v2710_v62  ;;  %v2714_v37 = vmax.f32 %v2671_v49, %v5095_v36  ;;  %v2674_v53 = vld [vmem:[%s8426_s25 + $0x70] sm:$0xff]  ;;  %v5098_v54 = vld [vmem:[%s8426_s25 + $0x120] sm:$0xff] }
 0x355   : > { %2737 = vst [vmem:[%s8446_s26 + $0x10] sm:$0xff] %v2725_v21  ;;  %v2712_v7 = vmax.f32 %v2669_v52, %v5093_v44  ;;  %v5096_v14 = vld [vmem:[%s8426_s25 + $0x110] sm:$0xff]  ;;  %v2727_v47 = vmax.f32 %v2711_v61, %v2713_v39  ;;  %v2673_v1 = vld [vmem:[%s8426_s25 + $0x68] sm:$0xff]  ;;  %v2675_v18 = vld [vmem:[%s8426_s25 + $0x78] sm:$0xff]  ;;  %v2717_v25 = vmax.f32 %v2674_v53, %v5098_v54 }
 0x356   : > { %v2715_v0 = vmax.f32 %v2672_v20, %v5096_v14  ;;  %2738 = vst [vmem:[%s8446_s26 + $0x18] sm:$0xff] %v2726_v43  ;;  %v5097_v60 = vld [vmem:[%s8426_s25 + $0x118] sm:$0xff]  ;;  %v5099_v48 = vld [vmem:[%s8426_s25 + $0x128] sm:$0xff]  ;;  %v2676_v56 = vld [vmem:[%s8426_s25 + $0x80] sm:$0xff] }
 0x357   : > { %v2728_v58 = vmax.f32 %v2712_v7, %v2714_v37  ;;  %2739 = vst [vmem:[%s8446_s26 + $0x20] sm:$0xff] %v2727_v47  ;;  %v2716_v59 = vmax.f32 %v2673_v1, %v5097_v60  ;;  %v2718_v16 = vmax.f32 %v2675_v18, %v5099_v48  ;;  %v2678_v24 = vld [vmem:[%s8426_s25 + $0x90] sm:$0xff]  ;;  %v5102_v4 = vld [vmem:[%s8426_s25 + $0x140] sm:$0xff]  ;;  %v2677_v32 = vld [vmem:[%s8426_s25 + $0x88] sm:$0xff] }
 0x358   : > { %v5100_v23 = vld [vmem:[%s8426_s25 + $0x130] sm:$0xff]  ;;  %v2729_v40 = vmax.f32 %v2715_v0, %v2717_v25  ;;  %v2721_v8 = vmax.f32 %v2678_v24, %v5102_v4  ;;  %v2679_v46 = vld [vmem:[%s8426_s25 + $0x98] sm:$0xff]  ;;  %v5103_v33 = vld [vmem:[%s8426_s25 + $0x148] sm:$0xff] }
 0x359   : > { %2740 = vst [vmem:[%s8446_s26 + $0x28] sm:$0xff] %v2728_v58  ;;  %v2719_v2 = vmax.f32 %v2676_v56, %v5100_v23  ;;  %v5101_v31 = vld [vmem:[%s8426_s25 + $0x138] sm:$0xff]  ;;  %v2730_v6 = vmax.f32 %v2716_v59, %v2718_v16  ;;  %v2722_v42 = vmax.f32 %v2679_v46, %v5103_v33  ;;  %v8486_v57 = vld [vmem:[%s9398_s5] sm:$0xff] (%p2653_p3)  ;;  %v8491_v45 = vld [vmem:[%s9398_s5 + $0x8] sm:$0xff] (%p2653_p3) }
 0x35a   : > { %v2720_v9 = vmax.f32 %v2677_v32, %v5101_v31  ;;  %2741 = vst [vmem:[%s8446_s26 + $0x30] sm:$0xff] %v2729_v40  ;;  %2655 = sbr.rel (!%p2653_p3) target bundleno = 838 (0x346), region = 226  ;;  %v8496_v38 = vld [vmem:[%s9398_s5 + $0x10] sm:$0xff] (%p2653_p3)  ;;  %v8501_v34 = vld [vmem:[%s9398_s5 + $0x18] sm:$0xff] (%p2653_p3)  ;;  %v8506_v26 = vld [vmem:[%s9399_s6] sm:$0xff] (%p2653_p3) }
 0x35b   : > { %v2731_v27 = vmax.f32 %v2719_v2, %v2721_v8  ;;  %2742 = vst [vmem:[%s8446_s26 + $0x38] sm:$0xff] %v2730_v6  ;;  %v8511_v10 = vld [vmem:[%s9399_s6 + $0x8] sm:$0xff] (%p2653_p3) }
 0x35c   : > { %v2732_v17 = vmax.f32 %v2720_v9, %v2722_v42 }
 0x35d   : > { %2743 = vst [vmem:[%s8446_s26 + $0x40] sm:$0xff] %v2731_v27 }
 0x35e   : > { %2744 = vst [vmem:[%s8446_s26 + $0x48] sm:$0xff] %v2732_v17 }
 0x35f LB: > { %s2757_s5 = smul.u32 80, %s5669_s19  ;;  %v5673_v61 = vmov 0   ;;  %s5669_s19 = sphi %s8513_s19, %s2756_s19  }
 0x360   : > { %5627 = vset.pattern.permute.xlu0 %v5673_v61  ;;  %s2860_s6 = smul.u32 48, %s5669_s19  ;;  %s2756_s19 = sadd.s32 1, %s5669_s19  }
 0x361   : > { %s8519_s1 = scalar_lea.vmem [#allocation5], %s2757_s5  ;;  %2797 = vperm.xlu0 %5627, %v8506_v26   ;;  %p2753_p4 = scmp.ge.s32.totalorder %s2756_s19, 3  }
 0x362   : > { %s2861_s2 = scalar_lea.vmem [#allocation6], %s2860_s6 }
 0x365   : > { %v5117_v63 = vld [vmem:[%s8519_s1 + $0xb8] sm:$0xff]  ;;  %v5119_v15 = vld [vmem:[%s8519_s1 + $0xc8] sm:$0xff]  ;;  %v5116_v13 = vld [vmem:[%s8519_s1 + $0xb0] sm:$0xff] }
 0x366   : > { %2812 = vmatpush.msra.mxu0 %v5117_v63  ;;  %2849 = vmatpush.msra.mxu1 %v5119_v15  ;;  %v5118_v28 = vld [vmem:[%s8519_s1 + $0xc0] sm:$0xff]  ;;  %v5159_v51 = vld [vmem:[%s8519_s1 + $0xd8] sm:$0xff]  ;;  %v5115_v19 = vld [vmem:[%s8519_s1 + $0xa8] sm:$0xff] }
 0x367   : > { %2888 = vmatpush.msra.mxu2 %v5119_v15  ;;  %2925 = vmatpush.msra.mxu3 %v5159_v51  ;;  %v5158_v50 = vld [vmem:[%s8519_s1 + $0xd0] sm:$0xff]  ;;  %v5114_v3 = vld [vmem:[%s8519_s1 + $0xa0] sm:$0xff]  ;;  %v5113_v55 = vld [vmem:[%s8519_s1 + $0x78] sm:$0xff] }
 0x368   : > { %2813 = vmatpush.msra.mxu0 %v5116_v13  ;;  %2850 = vmatpush.msra.mxu1 %v5118_v28  ;;  %v5161_v12 = vld [vmem:[%s8519_s1 + $0xe8] sm:$0xff]  ;;  %v5112_v35 = vld [vmem:[%s8519_s1 + $0x70] sm:$0xff]  ;;  %v5132_v29 = vld [vmem:[%s8519_s1 + $0x80] sm:$0xff] }
 0x369   : > { %2889 = vmatpush.msra.mxu2 %v5118_v28  ;;  %2926 = vmatpush.msra.mxu3 %v5158_v50  ;;  %v5133_v30 = vld [vmem:[%s8519_s1 + $0x88] sm:$0xff]  ;;  %v5155_v41 = vld [vmem:[%s8519_s1 + $0x98] sm:$0xff]  ;;  %v5160_v21 = vld [vmem:[%s8519_s1 + $0xe0] sm:$0xff] }
 0x36a   : > { %2964 = vmatpush.msrb.mxu1 %v5159_v51  ;;  %2814 = vmatpush.msra.mxu0 %v5115_v19  ;;  %v5111_v11 = vld [vmem:[%s8519_s1 + $0x68] sm:$0xff]  ;;  %v5154_v62 = vld [vmem:[%s8519_s1 + $0x90] sm:$0xff]  ;;  %v5110_v22 = vld [vmem:[%s8519_s1 + $0x60] sm:$0xff] }
 0x36b   : > { %2890 = vmatpush.msra.mxu2 %v5117_v63  ;;  %5140 = vmatmul.msk.f32.vlgmr.msra.gmra.mxu3 %vm1832_vm0, %v8491_v45  ;;  %v5109_v5 = vld [vmem:[%s8519_s1 + $0x58] sm:$0xff]  ;;  %v5108_v52 = vld [vmem:[%s8519_s1 + $0x50] sm:$0xff]  ;;  %v5107_v39 = vld [vmem:[%s8519_s1 + $0x28] sm:$0xff] }
 0x36c   : > { %2965 = vmatpush.msrb.mxu1 %v5158_v50  ;;  %2815 = vmatpush.msra.mxu0 %v5114_v3  ;;  %v5127_v49 = vld [vmem:[%s8519_s1 + $0x38] sm:$0xff]  ;;  %v5106_v44 = vld [vmem:[%s8519_s1 + $0x20] sm:$0xff]  ;;  %v5126_v36 = vld [vmem:[%s8519_s1 + $0x30] sm:$0xff] }
 0x36d   : > { %2891 = vmatpush.msra.mxu2 %v5116_v13  ;;  %3001 = vmatpush.msrb.mxu3 %v5161_v12  ;;  %v5149_v43 = vld [vmem:[%s8519_s1 + $0x48] sm:$0xff]  ;;  %v5105_v7 = vld [vmem:[%s8519_s1 + $0x18] sm:$0xff]  ;;  %v5148_v37 = vld [vmem:[%s8519_s1 + $0x40] sm:$0xff] }
 0x36e   : > { %2966 = vmatpush.msrb.mxu1 %v5119_v15  ;;  %2816 = vmatpush.msra.mxu0 %v5113_v55  ;;  %v5104_v20 = vld [vmem:[%s8519_s1 + $0x10] sm:$0xff]  ;;  %v2760_v53 = vld [vmem:[%s8519_s1 + $0x8] sm:$0xff]  ;;  %v2759_v14 = vld [vmem:[%s8519_s1] sm:$0xff] }
 0x36f   : > { %2892 = vmatpush.msra.mxu2 %v5133_v30  ;;  %5120 = vmatmul.msk.f32.vlgmr.msra.gmra.mxu1 %vm1832_vm0, %v8491_v45  ;;  %v5171_v3 = vld [vmem:[%s9400_s7 + $0xa8] sm:$0xff] (%p2753_p4) }
 0x370   : > { %2967 = vmatpush.msrb.mxu1 %v5118_v28  ;;  %2817 = vmatpush.msra.mxu0 %v5112_v35 }
 0x371   : > { %2893 = vmatpush.msra.mxu2 %v5132_v29  ;;  %3002 = vmatpush.msrb.mxu3 %v5160_v21 }
 0x372   : > { %2968 = vmatpush.msrb.mxu1 %v5155_v41  ;;  %2818 = vmatpush.msra.mxu0 %v5111_v11  ;;  %v5167_v41 = vld [vmem:[%s9400_s7 + $0x88] sm:$0xff] (%p2753_p4) }
 0x373   : > { %2894 = vmatpush.msra.mxu2 %v5113_v55  ;;  %5141 = vmatmul.msk.f32.gmra.mxu3 %vm1832_vm0, %v8501_v34 }
 0x374   : > { %2969 = vmatpush.msrb.mxu1 %v5154_v62  ;;  %2819 = vmatpush.msra.mxu0 %v5110_v22  ;;  %v5174_v62 = vld [vmem:[%s9400_s7 + $0xc0] sm:$0xff] (%p2753_p4) }
 0x375   : > { %2895 = vmatpush.msra.mxu2 %v5112_v35  ;;  %2802 = vperm.xlu0 %5627, %v8511_v10  }
 0x376   : > { %2970 = vmatpush.msrb.mxu1 %v5133_v30  ;;  %2820 = vmatpush.msra.mxu0 %v5109_v5  ;;  %v5173_v30 = vld [vmem:[%s9400_s7 + $0xb8] sm:$0xff] (%p2753_p4)  ;;  %v5179_v5 = vld [vmem:[%s9400_s7 + $0xe8] sm:$0xff] (%p2753_p4) }
 0x377   : > { %2896 = vmatpush.msra.mxu2 %v5111_v11  ;;  %5121 = vmatmul.msk.f32.gmra.mxu1 %vm1832_vm0, %v8501_v34 }
 0x378   : > { %2971 = vmatpush.msrb.mxu1 %v5132_v29  ;;  %2821 = vmatpush.msra.mxu0 %v5108_v52  ;;  %v5178_v29 = vld [vmem:[%s9400_s7 + $0xe0] sm:$0xff] (%p2753_p4)  ;;  %v5168_v52 = vld [vmem:[%s9400_s7 + $0x90] sm:$0xff] (%p2753_p4) }
 0x379   : > { %2897 = vmatpush.msra.mxu2 %v5110_v22  ;;  %v3017_v22 = vld [vmem:[%s9400_s7 + $0x8] sm:$0xff] (%p2753_p4) }
 0x37a   : > { %2972 = vmatpush.msrb.mxu1 %v5113_v55  ;;  %2822 = vmatpush.msra.mxu0 %v5107_v39  ;;  %v5172_v55 = vld [vmem:[%s9400_s7 + $0xb0] sm:$0xff] (%p2753_p4) }
 0x37b   : > { %2898 = vmatpush.msra.mxu2 %v5127_v49  ;;  %5162 = vmatmul.msk.f32.vlgmr.msrb.gmra.mxu3 %vm1832_vm0, %v8491_v45 }
 0x37c   : > { %2973 = vmatpush.msrb.mxu1 %v5112_v35  ;;  %2823 = vmatpush.msra.mxu0 %v5106_v44  ;;  %v3016_v35 = vld [vmem:[%s9400_s7] sm:$0xff] (%p2753_p4) }
 0x37d   : > { %2899 = vmatpush.msra.mxu2 %v5126_v36 }
 0x37e   : > { %2974 = vmatpush.msrb.mxu1 %v5149_v43  ;;  %2824 = vmatpush.msra.mxu0 %v5105_v7  ;;  %v5176_v43 = vld [vmem:[%s9400_s7 + $0xd0] sm:$0xff] (%p2753_p4) }
 0x37f   : > { %2900 = vmatpush.msra.mxu2 %v5107_v39 }
 0x380   : > { %2975 = vmatpush.msrb.mxu1 %v5148_v37  ;;  %2825 = vmatpush.msra.mxu0 %v5104_v20  ;;  %v5181_v37 = vld [vmem:[%s9400_s7 + $0xf8] sm:$0xff] (%p2753_p4) }
 0x381   : > { %2901 = vmatpush.msra.mxu2 %v5106_v44 }
 0x382   : > { %2976 = vmatpush.msrb.mxu1 %v5127_v49  ;;  %2826 = vmatpush.msra.mxu0 %v2760_v53  ;;  %v3018_v49 = vld [vmem:[%s9400_s7 + $0x10] sm:$0xff] (%p2753_p4)  ;;  %v3020_v53 = vld [vmem:[%s9400_s7 + $0x20] sm:$0xff] (%p2753_p4) }
 0x383   : > { %2902 = vmatpush.msra.mxu2 %v5105_v7  ;;  %5163 = vmatmul.msk.f32.gmra.mxu3 %vm1832_vm0, %v8501_v34  ;;  %v3019_v7 = vld [vmem:[%s9400_s7 + $0x18] sm:$0xff] (%p2753_p4) }
 0x384   : > { %2977 = vmatpush.msrb.mxu1 %v5126_v36  ;;  %2827 = vmatpush.msra.mxu0 %v2759_v14  ;;  %v5169_v36 = vld [vmem:[%s9400_s7 + $0x98] sm:$0xff] (%p2753_p4)  ;;  %v5214_v14 = vld [vmem:[%s9400_s7 + $0x100] sm:$0xff] (%p2753_p4) }
 0x385   : > { %2903 = vmatpush.msra.mxu2 %v5104_v20  ;;  %2828 = vmatmul.f32.vlgmr.msra.gmra.mxu0 %v8486_v57  ;;  %v5170_v20 = vld [vmem:[%s9400_s7 + $0xa0] sm:$0xff] (%p2753_p4) }
 0x386   : > { %2904 = vmatmul.f32.vlgmr.msra.gmra.mxu2 %v8486_v57  ;;  %2978 = vmatpush.msrb.mxu1 %v5107_v39  ;;  %v5175_v39 = vld [vmem:[%s9400_s7 + $0xc8] sm:$0xff] (%p2753_p4) }
 0x388   : > { %2979 = vmatpush.msrb.mxu1 %v5106_v44  ;;  %v5180_v44 = vld [vmem:[%s9400_s7 + $0xf0] sm:$0xff] (%p2753_p4) }
 0x389   : > { %2980 = vmatmul.f32.vlgmr.msrb.gmra.mxu1 %v8486_v57  ;;  %v5177_v57 = vld [vmem:[%s9400_s7 + $0xd8] sm:$0xff] (%p2753_p4) }
 0x38d   : > { %2831 = vmatmul.f32.gmra.mxu0 %v8496_v38 }
 0x38e   : > { %2907 = vmatmul.f32.gmra.mxu2 %v8496_v38 }
 0x391   : > { %2983 = vmatmul.f32.gmra.mxu1 %v8496_v38  ;;  %v5166_v38 = vld [vmem:[%s9400_s7 + $0x80] sm:$0xff] (%p2753_p4) }
 0x3d3   : > { %v2798_v18 = vpop.permute.xlu0 %2797 }
 0x3e7   : > { %v2803_v4 = vpop.permute.xlu0 %2802 }
 0x3ec   : > { %v2852_v54 = vpop.f32.mrf.mxu1 }
 0x3ee   : > { %v2928_v47 = vpop.f32.mrf.mxu3 }
 0x3f4   : > { %v2855_v1 = vpop.f32.mrf.mxu1 }
 0x3f6   : > { %v2931_v0 = vpop.f32.mrf.mxu3 }
 0x3fe   : > { %v3004_v60 = vpop.f32.mrf.mxu3 }
 0x402   : > { %v2829_v58 = vpop.f32.mrf.mxu0 }
 0x403   : > { %v2830_v25 = vadd.f32 %v2829_v58, %v2798_v18  ;;  %v5279_v58 = vld [vmem:[%s9400_s7 + $0x208] sm:$0xff] (%p2753_p4) }
 0x405   : > { %v2853_v48 = vadd.f32 %v2852_v54, %v2830_v25  ;;  %v5278_v54 = vld [vmem:[%s9400_s7 + $0x200] sm:$0xff] (%p2753_p4)  ;;  %v3022_v25 = vld [vmem:[%s9400_s7 + $0x30] sm:$0xff] (%p2753_p4) }
 0x406   : > { %v2981_v56 = vpop.f32.mrf.mxu1  ;;  %v3007_v9 = vpop.f32.mrf.mxu3 }
 0x407   : > { %v2858_v59 = vmax.f32 %v2853_v48, 0.0  ;;  %v2982_v16 = vadd.f32 %v2981_v56, %v2798_v18  ;;  %v5248_v48 = vld [vmem:[%s9400_s7 + $0x190] sm:$0xff] (%p2753_p4) }
 0x408   :  { %v5280_v56 = vld [vmem:[%s9400_s7 + $0x210] sm:$0xff] (%p2753_p4) }
 0x409   : > { %2862 = vst [vmem:[%s2861_s2] sm:$0xff] %v2858_v59  ;;  %v3005_v24 = vadd.f32 %v3004_v60, %v2982_v16  ;;  %v2905_v23 = vpop.f32.mrf.mxu2  ;;  %v5216_v60 = vld [vmem:[%s9400_s7 + $0x110] sm:$0xff] (%p2753_p4)  ;;  %v3023_v59 = vld [vmem:[%s9400_s7 + $0x38] sm:$0xff] (%p2753_p4) }
 0x40a   : > { %v2906_v40 = vadd.f32 %v2905_v23, %v2798_v18  ;;  %v2832_v2 = vpop.f32.mrf.mxu0  ;;  %v5247_v18 = vld [vmem:[%s9400_s7 + $0x188] sm:$0xff] (%p2753_p4)  ;;  %v5217_v16 = vld [vmem:[%s9400_s7 + $0x118] sm:$0xff] (%p2753_p4) }
 0x40b   : > { %v3010_v8 = vmax.f32 %v3005_v24, 0.0  ;;  %v2833_v32 = vadd.f32 %v2832_v2, %v2803_v4  ;;  %v5249_v24 = vld [vmem:[%s9400_s7 + $0x198] sm:$0xff] (%p2753_p4)  ;;  %v5250_v2 = vld [vmem:[%s9400_s7 + $0x1a0] sm:$0xff] (%p2753_p4) }
 0x40c   : > { %v2929_v46 = vadd.f32 %v2928_v47, %v2906_v40  ;;  %v5246_v47 = vld [vmem:[%s9400_s7 + $0x180] sm:$0xff] (%p2753_p4)  ;;  %v5281_v23 = vld [vmem:[%s9400_s7 + $0x218] sm:$0xff] (%p2753_p4) }
 0x40d   : > { %5164 = vst [vmem:[%s2861_s2 + $0x20] sm:$0xff] %v3010_v8  ;;  %v2856_v31 = vadd.f32 %v2855_v1, %v2833_v32  ;;  %v5215_v1 = vld [vmem:[%s9400_s7 + $0x108] sm:$0xff] (%p2753_p4)  ;;  %v5218_v40 = vld [vmem:[%s9400_s7 + $0x120] sm:$0xff] (%p2753_p4) }
 0x40e   : > { %v2934_v6 = vmax.f32 %v2929_v46, 0.0  ;;  %v2984_v33 = vpop.f32.mrf.mxu1  ;;  %v5282_v8 = vld [vmem:[%s9400_s7 + $0x220] sm:$0xff] (%p2753_p4)  ;;  %v3025_v32 = vld [vmem:[%s9400_s7 + $0x48] sm:$0xff] (%p2753_p4) }
 0x40f   : > { %v2859_v27 = vmax.f32 %v2856_v31, 0.0  ;;  %v2985_v42 = vadd.f32 %v2984_v33, %v2803_v4  ;;  %v5219_v46 = vld [vmem:[%s9400_s7 + $0x128] sm:$0xff] (%p2753_p4)  ;;  %v3026_v33 = vld [vmem:[%s9400_s7 + $0x50] sm:$0xff] (%p2753_p4) }
 0x410   : > { %5142 = vst [vmem:[%s2861_s2 + $0x10] sm:$0xff] %v2934_v6  ;;  %v5251_v31 = vld [vmem:[%s9400_s7 + $0x1a8] sm:$0xff] (%p2753_p4) }
 0x411   : > { %2863 = vst [vmem:[%s2861_s2 + $0x8] sm:$0xff] %v2859_v27  ;;  %v3008_v17 = vadd.f32 %v3007_v9, %v2985_v42  ;;  %v2908_v63 = vpop.f32.mrf.mxu2  ;;  %v5283_v6 = vld [vmem:[%s9400_s7 + $0x228] sm:$0xff] (%p2753_p4)  ;;  %v5220_v9 = vld [vmem:[%s9400_s7 + $0x130] sm:$0xff] (%p2753_p4) }
 0x412   : > { %v2909_v15 = vadd.f32 %v2908_v63, %v2803_v4  ;;  %v3024_v4 = vld [vmem:[%s9400_s7 + $0x40] sm:$0xff] (%p2753_p4)  ;;  %v5252_v27 = vld [vmem:[%s9400_s7 + $0x1b0] sm:$0xff] (%p2753_p4)  ;;  %v5221_v63 = vld [vmem:[%s9400_s7 + $0x138] sm:$0xff] (%p2753_p4) }
 0x413   : > { %v3011_v13 = vmax.f32 %v3008_v17, 0.0  ;;  %v5284_v42 = vld [vmem:[%s9400_s7 + $0x230] sm:$0xff] (%p2753_p4)  ;;  %v3027_v17 = vld [vmem:[%s9400_s7 + $0x58] sm:$0xff] (%p2753_p4) }
 0x414   : > { %v2932_v28 = vadd.f32 %v2931_v0, %v2909_v15  ;;  %2755 = sbr.rel (!%p2753_p4) target bundleno = 863 (0x35f), region = 237  ;;  %v3021_v0 = vld [vmem:[%s9400_s7 + $0x28] sm:$0xff] (%p2753_p4)  ;;  %v5253_v15 = vld [vmem:[%s9400_s7 + $0x1b8] sm:$0xff] (%p2753_p4) }
 0x415   : > { %5165 = vst [vmem:[%s2861_s2 + $0x28] sm:$0xff] %v3011_v13  ;;  %v5285_v13 = vld [vmem:[%s9400_s7 + $0x238] sm:$0xff] (%p2753_p4) }
 0x416   : > { %v2935_v51 = vmax.f32 %v2932_v28, 0.0 }
 0x418   : > { %5143 = vst [vmem:[%s2861_s2 + $0x18] sm:$0xff] %v2935_v51  ;;  %v3028_v51 = vld [vmem:[%s9400_s7 + $0x60] sm:$0xff] (%p2753_p4) }
 0x41f   :  { %v3053_v19 = vld [vmem:[#allocation6 + $0x18] sm:$0xff]  ;;  %v3052_v50 = vld [vmem:[#allocation6 + $0x10] sm:$0xff]  ;;  %v3033_v12 = vld [vmem:[#allocation6 + $0x8] sm:$0xff] }
 0x420   :  { %5438 = vmatpush.msra.mxu1 %v3053_v19  ;;  %5439 = vmatpush.msra.mxu2 %v3053_v19  ;;  %v3032_v45 = vld [vmem:[#allocation6] sm:$0xff]  ;;  %v3300_v34 = vld [vmem:[#allocation6 + $0x28] sm:$0xff]  ;;  %v3449_v10 = vld [vmem:[#allocation6 + $0x38] sm:$0xff] }
 0x421   :  { %5440 = vmatpush.msra.mxu3 %v3053_v19  ;;  %3117 = vmatpush.msra.mxu0 %v3053_v19  ;;  %v3299_v26 = vld [vmem:[#allocation6 + $0x20] sm:$0xff]  ;;  %v3448_v11 = vld [vmem:[#allocation6 + $0x30] sm:$0xff]  ;;  %v3598_v21 = vld [vmem:[#allocation6 + $0x48] sm:$0xff] }
 0x422   :  { %5441 = vmatpush.msra.mxu1 %v3052_v50  ;;  %5442 = vmatpush.msra.mxu2 %v3052_v50  ;;  %v3597_v61 = vld [vmem:[#allocation6 + $0x40] sm:$0xff]  ;;  %v3747_v28 = vld [vmem:[#allocation6 + $0x58] sm:$0xff]  ;;  %v5222_v19 = vld [vmem:[%s9400_s7 + $0x140] sm:$0xff] }
 0x423   :  { %5187 = vmatmul.msk.f32.vlgmr.msra.gmra.mxu1 %vm1832_vm0, %v5171_v3  ;;  %5188 = vmatmul.msk.f32.vlgmr.msra.gmra.mxu2 %vm1832_vm0, %v5172_v55  ;;  %v5254_v3 = vld [vmem:[%s9400_s7 + $0x1c0] sm:$0xff] }
 0x424   :  { %5443 = vmatpush.msra.mxu3 %v3052_v50  ;;  %3230 = vmatpush.msrb.mxu1 %v3033_v12  ;;  %v5286_v55 = vld [vmem:[%s9400_s7 + $0x240] sm:$0xff]  ;;  %v3896_v12 = vld [vmem:[#allocation6 + $0x68] sm:$0xff] }
 0x425   :  { %5193 = vmatmul.msk.f32.vlgmr.msra.gmra.mxu3 %vm1832_vm0, %v5177_v57  ;;  %3118 = vmatpush.msra.mxu0 %v3052_v50  ;;  %v3746_v50 = vld [vmem:[#allocation6 + $0x50] sm:$0xff]  ;;  %v4045_v57 = vld [vmem:[#allocation6 + $0x78] sm:$0xff] }
 0x426   :  { %3231 = vmatpush.msrb.mxu1 %v3032_v45  ;;  %5182 = vmatmul.msk.f32.vlgmr.msra.gmra.mxu0 %vm1832_vm0, %v5166_v38  ;;  %v3029_v45 = vld [vmem:[%s9400_s7 + $0x68] sm:$0xff] }
 0x427   :  { %3363 = vmatpush.msrb.mxu2 %v3300_v34  ;;  %3512 = vmatpush.msrb.mxu3 %v3449_v10  ;;  %v5223_v38 = vld [vmem:[%s9400_s7 + $0x148] sm:$0xff]  ;;  %v4194_v10 = vld [vmem:[#allocation6 + $0x88] sm:$0xff] }
 0x428   :  { %3661 = vmatpush.msrb.mxu0 %v3598_v21  ;;  %3810 = vmatpush.msra.mxu1 %v3747_v28  ;;  %v5255_v34 = vld [vmem:[%s9400_s7 + $0x1c8] sm:$0xff]  ;;  %v5288_v21 = vld [vmem:[%s9400_s7 + $0x250] sm:$0xff]  ;;  %v4332_v28 = vld [vmem:[%s9401_s8 + $0x40] sm:$0xff] }
 0x429   :  { %3364 = vmatpush.msrb.mxu2 %v3299_v26  ;;  %3513 = vmatpush.msrb.mxu3 %v3448_v11  ;;  %v5287_v26 = vld [vmem:[%s9400_s7 + $0x248] sm:$0xff]  ;;  %v5256_v11 = vld [vmem:[%s9400_s7 + $0x1d0] sm:$0xff] }
 0x42a   :  { %3662 = vmatpush.msrb.mxu0 %v3597_v61  ;;  %3811 = vmatpush.msra.mxu1 %v3746_v50  ;;  %v5257_v61 = vld [vmem:[%s9400_s7 + $0x1d8] sm:$0xff] }
 0x42b   :  { %5189 = vmatmul.msk.f32.gmra.mxu2 %vm1832_vm0, %v5173_v30  ;;  %5198 = vmatmul.msk.f32.vlgmr.msrb.gmra.mxu1 %vm1832_vm0, %v3016_v35  ;;  %v3030_v30 = vld [vmem:[%s9400_s7 + $0x70] sm:$0xff] }
 0x42c   :  { %3959 = vmatpush.msra.mxu2 %v3896_v12  ;;  %4108 = vmatpush.msra.mxu3 %v4045_v57  ;;  %v5224_v35 = vld [vmem:[%s9400_s7 + $0x150] sm:$0xff] }
 0x42d   :  { %5194 = vmatmul.msk.f32.gmra.mxu3 %vm1832_vm0, %v5178_v29  ;;  %4257 = vmatpush.msra.mxu0 %v4194_v10  ;;  %v4339_v29 = vld [vmem:[%s9401_s8 + $0x78] sm:$0xff]  ;;  %v5374_v10 = vld [vmem:[%s9400_s7 + $0x380] sm:$0xff] }
 0x42e   :  { %5183 = vmatmul.msk.f32.gmra.mxu0 %vm1832_vm0, %v5167_v41  ;;  %v5674_v41 = vmov 0  }
 0x42f   :  { %5628 = vset.pattern.permute.xlu0 %v5674_v41  ;;  %5629 = vset.pattern.permute.xlu1 %v5674_v41 }
 0x430   :  { %4417 = vperm.xlu0 %5628, %v4339_v29   ;;  %5630 = vset.pattern.permute.xlu2 %v5674_v41 }
 0x433   :  { %5190 = vmatmul.msk.f32.gmra.mxu2 %vm1832_vm0, %v5174_v62  ;;  %5199 = vmatmul.msk.f32.gmra.mxu1 %vm1832_vm0, %v3017_v22  ;;  %v3031_v22 = vld [vmem:[%s9400_s7 + $0x78] sm:$0xff] }
 0x435   :  { %5195 = vmatmul.msk.f32.gmra.mxu3 %vm1832_vm0, %v5179_v5  ;;  %v5225_v5 = vld [vmem:[%s9400_s7 + $0x158] sm:$0xff] }
 0x436   :  { %5184 = vmatmul.msk.f32.gmra.mxu0 %vm1832_vm0, %v5168_v52  ;;  %v4338_v52 = vld [vmem:[%s9401_s8 + $0x70] sm:$0xff] }
 0x438   :  { %4412 = vperm.xlu0 %5628, %v4338_v52   ;;  %v5343_v52 = vld [vmem:[%s9400_s7 + $0x308] sm:$0xff] }
 0x43b   :  { %5191 = vmatmul.msk.f32.gmra.mxu2 %vm1832_vm0, %v5175_v39  ;;  %5200 = vmatmul.msk.f32.gmra.mxu1 %vm1832_vm0, %v3018_v49  ;;  %v5289_v49 = vld [vmem:[%s9400_s7 + $0x258] sm:$0xff] }
 0x43d   :  { %5196 = vmatmul.msk.f32.gmra.mxu3 %vm1832_vm0, %v5180_v44 }
 0x43e   :  { %5185 = vmatmul.msk.f32.gmra.mxu0 %vm1832_vm0, %v5169_v36 }
 0x443   :  { %5192 = vmatmul.msk.f32.gmra.mxu2 %vm1832_vm0, %v5176_v43  ;;  %5201 = vmatmul.msk.f32.gmra.mxu1 %vm1832_vm0, %v3019_v7  ;;  %v5226_v7 = vld [vmem:[%s9400_s7 + $0x160] sm:$0xff] }
 0x445   :  { %5197 = vmatmul.msk.f32.gmra.mxu3 %vm1832_vm0, %v5181_v37  ;;  %v5310_v37 = vld [vmem:[%s9400_s7 + $0x280] sm:$0xff] }
 0x446   :  { %5186 = vmatmul.msk.f32.gmra.mxu0 %vm1832_vm0, %v5170_v20  ;;  %v4333_v20 = vld [vmem:[%s9401_s8 + $0x48] sm:$0xff] }
 0x447   :  { %4387 = vperm.xlu0 %5628, %v4333_v20   ;;  %v5407_v20 = vld [vmem:[%s9400_s7 + $0x408] sm:$0xff] }
 0x44b   :  { %5202 = vmatmul.msk.f32.gmra.mxu1 %vm1832_vm0, %v3020_v53  ;;  %5230 = vmatmul.msk.f32.vlgmr.msrb.gmra.mxu2 %vm1832_vm0, %v5214_v14  ;;  %v3895_v53 = vld [vmem:[#allocation6 + $0x60] sm:$0xff]  ;;  %v5258_v14 = vld [vmem:[%s9400_s7 + $0x1e0] sm:$0xff] }
 0x44c   :  { %3960 = vmatpush.msra.mxu2 %v3895_v53 }
 0x44d   :  { %5262 = vmatmul.msk.f32.vlgmr.msrb.gmra.mxu3 %vm1832_vm0, %v5246_v47 }
 0x44e   :  { %5294 = vmatmul.msk.f32.vlgmr.msrb.gmra.mxu0 %vm1832_vm0, %v5278_v54  ;;  %v5290_v54 = vld [vmem:[%s9400_s7 + $0x260] sm:$0xff] }
 0x453   :  { %5203 = vmatmul.msk.f32.gmra.mxu1 %vm1832_vm0, %v3021_v0  ;;  %5231 = vmatmul.msk.f32.gmra.mxu2 %vm1832_vm0, %v5215_v1  ;;  %v4044_v0 = vld [vmem:[#allocation6 + $0x70] sm:$0xff] }
 0x454   :  { %4109 = vmatpush.msra.mxu3 %v4044_v0 }
 0x455   :  { %5263 = vmatmul.msk.f32.gmra.mxu3 %vm1832_vm0, %v5247_v18 }
 0x456   :  { %5295 = vmatmul.msk.f32.gmra.mxu0 %vm1832_vm0, %v5279_v58 }
 0x45b   :  { %5204 = vmatmul.msk.f32.gmra.mxu1 %vm1832_vm0, %v3022_v25  ;;  %5232 = vmatmul.msk.f32.gmra.mxu2 %vm1832_vm0, %v5216_v60  ;;  %v5227_v25 = vld [vmem:[%s9400_s7 + $0x168] sm:$0xff] }
 0x45c   :  { %v5311_v60 = vld [vmem:[%s9400_s7 + $0x288] sm:$0xff] }
 0x45d   :  { %5264 = vmatmul.msk.f32.gmra.mxu3 %vm1832_vm0, %v5248_v48  ;;  %v4337_v48 = vld [vmem:[%s9401_s8 + $0x68] sm:$0xff] }
 0x45e   :  { %5296 = vmatmul.msk.f32.gmra.mxu0 %vm1832_vm0, %v5280_v56  ;;  %v4330_v56 = vld [vmem:[%s9401_s8 + $0x30] sm:$0xff]  ;;  %4407 = vperm.xlu1 %5629, %v4337_v48  }
 0x45f   :  { %4372 = vperm.xlu0 %5628, %v4330_v56   ;;  %v5344_v48 = vld [vmem:[%s9400_s7 + $0x310] sm:$0xff] }
 0x463   :  { %5205 = vmatmul.msk.f32.gmra.mxu1 %vm1832_vm0, %v3023_v59  ;;  %5233 = vmatmul.msk.f32.gmra.mxu2 %vm1832_vm0, %v5217_v16  ;;  %v5259_v59 = vld [vmem:[%s9400_s7 + $0x1e8] sm:$0xff] }
 0x465   :  { %5265 = vmatmul.msk.f32.gmra.mxu3 %vm1832_vm0, %v5249_v24  ;;  %v5291_v24 = vld [vmem:[%s9400_s7 + $0x268] sm:$0xff] }
 0x466   :  { %5297 = vmatmul.msk.f32.gmra.mxu0 %vm1832_vm0, %v5281_v23  ;;  %v4193_v23 = vld [vmem:[#allocation6 + $0x80] sm:$0xff] }
 0x467   :  { %4258 = vmatpush.msra.mxu0 %v4193_v23  ;;  %v5408_v23 = vld [vmem:[%s9400_s7 + $0x410] sm:$0xff] }
 0x46b   :  { %5206 = vmatmul.msk.f32.gmra.mxu1 %vm1832_vm0, %v3024_v4  ;;  %5234 = vmatmul.msk.f32.gmra.mxu2 %vm1832_vm0, %v5218_v40 }
 0x46d   :  { %5266 = vmatmul.msk.f32.gmra.mxu3 %vm1832_vm0, %v5250_v2 }
 0x46e   :  { %5298 = vmatmul.msk.f32.gmra.mxu0 %vm1832_vm0, %v5282_v8  ;;  %v5228_v8 = vld [vmem:[%s9400_s7 + $0x170] sm:$0xff] }
 0x473   :  { %5207 = vmatmul.msk.f32.gmra.mxu1 %vm1832_vm0, %v3025_v32  ;;  %5235 = vmatmul.msk.f32.gmra.mxu2 %vm1832_vm0, %v5219_v46  ;;  %v5312_v32 = vld [vmem:[%s9400_s7 + $0x290] sm:$0xff]  ;;  %v4336_v46 = vld [vmem:[%s9401_s8 + $0x60] sm:$0xff] }
 0x474   :  { %4402 = vperm.xlu1 %5629, %v4336_v46  }
 0x475   :  { %5267 = vmatmul.msk.f32.gmra.mxu3 %vm1832_vm0, %v5251_v31  ;;  %v4327_v31 = vld [vmem:[%s9401_s8 + $0x18] sm:$0xff] }
 0x476   :  { %5299 = vmatmul.msk.f32.gmra.mxu0 %vm1832_vm0, %v5283_v6  ;;  %v5260_v6 = vld [vmem:[%s9400_s7 + $0x1f0] sm:$0xff]  ;;  %4357 = vperm.xlu0 %5628, %v4327_v31  }
 0x47b   :  { %5208 = vmatmul.msk.f32.gmra.mxu1 %vm1832_vm0, %v3026_v33  ;;  %5236 = vmatmul.msk.f32.gmra.mxu2 %vm1832_vm0, %v5220_v9  ;;  %v5292_v9 = vld [vmem:[%s9400_s7 + $0x270] sm:$0xff] }
 0x47c   :  { %4382 = vperm.xlu1 %5629, %v4332_v28  }
 0x47d   :  { %5268 = vmatmul.msk.f32.gmra.mxu3 %vm1832_vm0, %v5252_v27 }
 0x47e   :  { %5300 = vmatmul.msk.f32.gmra.mxu0 %vm1832_vm0, %v5284_v42 }
 0x483   :  { %5209 = vmatmul.msk.f32.gmra.mxu1 %vm1832_vm0, %v3027_v17  ;;  %5237 = vmatmul.msk.f32.gmra.mxu2 %vm1832_vm0, %v5221_v63  ;;  %v5229_v63 = vld [vmem:[%s9400_s7 + $0x178] sm:$0xff] }
 0x485   :  { %5269 = vmatmul.msk.f32.gmra.mxu3 %vm1832_vm0, %v5253_v15  ;;  %v5313_v15 = vld [vmem:[%s9400_s7 + $0x298] sm:$0xff] }
 0x486   :  { %5301 = vmatmul.msk.f32.gmra.mxu0 %vm1832_vm0, %v5285_v13  ;;  %v4335_v13 = vld [vmem:[%s9401_s8 + $0x58] sm:$0xff] }
 0x487   :  { %4397 = vperm.xlu2 %5630, %v4335_v13  }
 0x48b   :  { %5210 = vmatmul.msk.f32.gmra.mxu1 %vm1832_vm0, %v3028_v51  ;;  %5238 = vmatmul.msk.f32.gmra.mxu2 %vm1832_vm0, %v5222_v19  ;;  %v4324_v51 = vld [vmem:[%s9401_s8] sm:$0xff]  ;;  %v5261_v19 = vld [vmem:[%s9400_s7 + $0x1f8] sm:$0xff] }
 0x48c   :  { %4342 = vperm.xlu0 %5628, %v4324_v51   ;;  %v5409_v51 = vld [vmem:[%s9400_s7 + $0x418] sm:$0xff] }
 0x48d   :  { %5270 = vmatmul.msk.f32.gmra.mxu3 %vm1832_vm0, %v5254_v3  ;;  %v5293_v3 = vld [vmem:[%s9400_s7 + $0x278] sm:$0xff] }
 0x48e   :  { %5302 = vmatmul.msk.f32.gmra.mxu0 %vm1832_vm0, %v5286_v55 }
 0x493   :  { %5211 = vmatmul.msk.f32.gmra.mxu1 %vm1832_vm0, %v3029_v45  ;;  %5239 = vmatmul.msk.f32.gmra.mxu2 %vm1832_vm0, %v5223_v38  ;;  %v5314_v45 = vld [vmem:[%s9400_s7 + $0x2a0] sm:$0xff] }
 0x494   :  { %v5342_v38 = vld [vmem:[%s9400_s7 + $0x300] sm:$0xff] }
 0x495   :  { %5271 = vmatmul.msk.f32.gmra.mxu3 %vm1832_vm0, %v5255_v34  ;;  %v4334_v34 = vld [vmem:[%s9401_s8 + $0x50] sm:$0xff] }
 0x496   :  { %5303 = vmatmul.msk.f32.gmra.mxu0 %vm1832_vm0, %v5287_v26  ;;  %v4329_v26 = vld [vmem:[%s9401_s8 + $0x28] sm:$0xff]  ;;  %4392 = vperm.xlu2 %5630, %v4334_v34  }
 0x497   :  { %4367 = vperm.xlu1 %5629, %v4329_v26   ;;  %v5318_v26 = vld [vmem:[%s9400_s7 + $0x2c0] sm:$0xff] }
 0x49b   :  { %5212 = vmatmul.msk.f32.gmra.mxu1 %vm1832_vm0, %v3030_v30  ;;  %5240 = vmatmul.msk.f32.gmra.mxu2 %vm1832_vm0, %v5224_v35  ;;  %v5406_v35 = vld [vmem:[%s9400_s7 + $0x400] sm:$0xff] }
 0x49d   :  { %5272 = vmatmul.msk.f32.gmra.mxu3 %vm1832_vm0, %v5256_v11 }
 0x49e   :  { %5304 = vmatmul.msk.f32.gmra.mxu0 %vm1832_vm0, %v5288_v21 }
 0x4a0   :  { %v8834_v62 = vpop.f32.mrf.mxu1 }
 0x4a3   :  { %5213 = vmatmul.msk.f32.gmra.mxu1 %vm1832_vm0, %v3031_v22  ;;  %5241 = vmatmul.msk.f32.gmra.mxu2 %vm1832_vm0, %v5225_v5  ;;  %v8850_v39 = vpop.f32.mrf.mxu0  ;;  %v5315_v5 = vld [vmem:[%s9400_s7 + $0x2a8] sm:$0xff] }
 0x4a5   :  { %5273 = vmatmul.msk.f32.gmra.mxu3 %vm1832_vm0, %v5257_v61 }
 0x4a6   :  { %v8856_v44 = vpop.f32.mrf.mxu2  ;;  %5305 = vmatmul.msk.f32.gmra.mxu0 %vm1832_vm0, %v5289_v49  ;;  %v4326_v49 = vld [vmem:[%s9401_s8 + $0x10] sm:$0xff] }
 0x4a7   :  { %4352 = vperm.xlu1 %5629, %v4326_v49  }
 0x4a8   :  { %v8859_v36 = vpop.f32.mrf.mxu3  ;;  %v8861_v43 = vpop.f32.mrf.mxu1 }
 0x4a9   :  { %v3234_v29 = vadd.f32 %v8861_v43, %v8850_v39  ;;  %v4331_v39 = vld [vmem:[%s9401_s8 + $0x38] sm:$0xff]  ;;  %v5375_v43 = vld [vmem:[%s9400_s7 + $0x388] sm:$0xff] }
 0x4aa   :  { %4377 = vperm.xlu2 %5630, %v4331_v39   ;;  %v5347_v39 = vld [vmem:[%s9400_s7 + $0x328] sm:$0xff] }
 0x4ab   :  { %5242 = vmatmul.msk.f32.gmra.mxu2 %vm1832_vm0, %v5226_v7  ;;  %5326 = vmatmul.msk.f32.vlgmr.msra.gmra.mxu1 %vm1832_vm0, %v5310_v37  ;;  %v8877_v47 = vpop.f32.mrf.mxu0 }
 0x4ad   :  { %5274 = vmatmul.msk.f32.gmra.mxu3 %vm1832_vm0, %v5258_v14 }
 0x4ae   :  { %v8883_v1 = vpop.f32.mrf.mxu2  ;;  %5306 = vmatmul.msk.f32.gmra.mxu0 %vm1832_vm0, %v5290_v54 }
 0x4b0   :  { %v8886_v18 = vpop.f32.mrf.mxu3  ;;  %v8888_v58 = vpop.f32.mrf.mxu1 }
 0x4b1   :  { %v3237_v53 = vadd.f32 %v8888_v58, %v8877_v47  ;;  %v4328_v47 = vld [vmem:[%s9401_s8 + $0x20] sm:$0xff]  ;;  %v5376_v58 = vld [vmem:[%s9400_s7 + $0x390] sm:$0xff] }
 0x4b2   :  { %4362 = vperm.xlu2 %5630, %v4328_v47  }
 0x4b3   :  { %5243 = vmatmul.msk.f32.gmra.mxu2 %vm1832_vm0, %v5227_v25  ;;  %5327 = vmatmul.msk.f32.gmra.mxu1 %vm1832_vm0, %v5311_v60  ;;  %v8907_v16 = vpop.f32.mrf.mxu0  ;;  %v5316_v60 = vld [vmem:[%s9400_s7 + $0x2b0] sm:$0xff] }
 0x4b5   :  { %5275 = vmatmul.msk.f32.gmra.mxu3 %vm1832_vm0, %v5259_v59 }
 0x4b6   :  { %v8913_v4 = vpop.f32.mrf.mxu2  ;;  %5307 = vmatmul.msk.f32.gmra.mxu0 %vm1832_vm0, %v5291_v24 }
 0x4b8   :  { %v8916_v40 = vpop.f32.mrf.mxu3  ;;  %v8918_v2 = vpop.f32.mrf.mxu1 }
 0x4bb   :  { %5244 = vmatmul.msk.f32.gmra.mxu2 %vm1832_vm0, %v5228_v8  ;;  %5328 = vmatmul.msk.f32.gmra.mxu1 %vm1832_vm0, %v5312_v32  ;;  %v8937_v33 = vpop.f32.mrf.mxu0  ;;  %v3240_v8 = vadd.f32 %v8918_v2, %v8907_v16  ;;  %v4325_v16 = vld [vmem:[%s9401_s8 + $0x8] sm:$0xff]  ;;  %v5377_v2 = vld [vmem:[%s9400_s7 + $0x398] sm:$0xff] }
 0x4bc   :  { %4347 = vperm.xlu2 %5630, %v4325_v16   ;;  %v5413_v16 = vld [vmem:[%s9400_s7 + $0x438] sm:$0xff] }
 0x4bd   :  { %5276 = vmatmul.msk.f32.gmra.mxu3 %vm1832_vm0, %v5260_v6 }
 0x4be   :  { %v8943_v27 = vpop.f32.mrf.mxu2  ;;  %5308 = vmatmul.msk.f32.gmra.mxu0 %vm1832_vm0, %v5292_v9  ;;  %v5317_v9 = vld [vmem:[%s9400_s7 + $0x2b8] sm:$0xff] }
 0x4c0   :  { %v8946_v42 = vpop.f32.mrf.mxu3  ;;  %v8948_v17 = vpop.f32.mrf.mxu1 }
 0x4c3   :  { %5245 = vmatmul.msk.f32.gmra.mxu2 %vm1832_vm0, %v5229_v63  ;;  %5329 = vmatmul.msk.f32.gmra.mxu1 %vm1832_vm0, %v5313_v15  ;;  %v8970_v50 = vpop.f32.mrf.mxu0  ;;  %v5345_v63 = vld [vmem:[%s9400_s7 + $0x318] sm:$0xff] }
 0x4c5   :  { %5277 = vmatmul.msk.f32.gmra.mxu3 %vm1832_vm0, %v5261_v19  ;;  %v3243_v19 = vadd.f32 %v8948_v17, %v8937_v33  ;;  %v5378_v33 = vld [vmem:[%s9400_s7 + $0x3a0] sm:$0xff] }
 0x4c6   :  { %v8976_v55 = vpop.f32.mrf.mxu2  ;;  %5309 = vmatmul.msk.f32.gmra.mxu0 %vm1832_vm0, %v5293_v3 }
 0x4c8   :  { %v8979_v12 = vpop.f32.mrf.mxu3  ;;  %v8981_v57 = vpop.f32.mrf.mxu1 }
 0x4cb   :  { %5330 = vmatmul.msk.f32.gmra.mxu1 %vm1832_vm0, %v5314_v45  ;;  %5358 = vmatmul.msk.f32.vlgmr.msra.gmra.mxu2 %vm1832_vm0, %v5342_v38  ;;  %v3664_v30 = vpop.f32.mrf.mxu0 }
 0x4cd   :  { %5390 = vmatmul.msk.f32.vlgmr.msra.gmra.mxu3 %vm1832_vm0, %v5374_v10  ;;  %v5346_v10 = vld [vmem:[%s9400_s7 + $0x320] sm:$0xff] }
 0x4ce   :  { %v3366_v41 = vpop.f32.mrf.mxu2  ;;  %5422 = vmatmul.msk.f32.vlgmr.msra.gmra.mxu0 %vm1832_vm0, %v5406_v35 }
 0x4cf   :  { %v3414_v11 = vadd.f32 %v3366_v41, %v3234_v29  ;;  %v5410_v29 = vld [vmem:[%s9400_s7 + $0x420] sm:$0xff]  ;;  %v3246_v41 = vadd.f32 %v8981_v57, %v8970_v50  ;;  %v5379_v50 = vld [vmem:[%s9400_s7 + $0x3a8] sm:$0xff] }
 0x4d0   :  { %v9007_v21 = vpop.f32.mrf.mxu1  ;;  %v3515_v22 = vpop.f32.mrf.mxu3 }
 0x4d1   :  { %v3563_v61 = vadd.f32 %v3515_v22, %v3414_v11 }
 0x4d3   :  { %v9024_v7 = vadd.f32 %v3664_v30, %v3563_v61  ;;  %5331 = vmatmul.msk.f32.gmra.mxu1 %vm1832_vm0, %v5315_v5  ;;  %5359 = vmatmul.msk.f32.gmra.mxu2 %vm1832_vm0, %v5343_v52  ;;  %v3667_v37 = vpop.f32.mrf.mxu0  ;;  %v5319_v61 = vld [vmem:[%s9400_s7 + $0x2c8] sm:$0xff] }
 0x4d5   :  { %5391 = vmatmul.msk.f32.gmra.mxu3 %vm1832_vm0, %v5375_v43 }
 0x4d6   :  { %v3369_v14 = vpop.f32.mrf.mxu2  ;;  %5423 = vmatmul.msk.f32.gmra.mxu0 %vm1832_vm0, %v5407_v20  ;;  %v3249_v20 = vadd.f32 %v9007_v21, %v8834_v62  ;;  %v5380_v21 = vld [vmem:[%s9400_s7 + $0x3b0] sm:$0xff] }
 0x4d7   :  { %v3415_v54 = vadd.f32 %v3369_v14, %v3237_v53 }
 0x4d8   :  { %v9035_v0 = vpop.f32.mrf.mxu1  ;;  %v3518_v25 = vpop.f32.mrf.mxu3 }
 0x4d9   :  { %v3564_v56 = vadd.f32 %v3518_v25, %v3415_v54 }
 0x4db   :  { %v9049_v59 = vadd.f32 %v3667_v37, %v3564_v56  ;;  %5332 = vmatmul.msk.f32.gmra.mxu1 %vm1832_vm0, %v5316_v60  ;;  %5360 = vmatmul.msk.f32.gmra.mxu2 %vm1832_vm0, %v5344_v48  ;;  %v3670_v24 = vpop.f32.mrf.mxu0  ;;  %v5411_v37 = vld [vmem:[%s9400_s7 + $0x428] sm:$0xff]  ;;  %v5320_v60 = vld [vmem:[%s9400_s7 + $0x2d0] sm:$0xff] }
 0x4dc   :  { %v5348_v48 = vld [vmem:[%s9400_s7 + $0x330] sm:$0xff] }
 0x4dd   :  { %5392 = vmatmul.msk.f32.gmra.mxu3 %vm1832_vm0, %v5376_v58 }
 0x4de   :  { %v3372_v32 = vpop.f32.mrf.mxu2  ;;  %5424 = vmatmul.msk.f32.gmra.mxu0 %vm1832_vm0, %v5408_v23 }
 0x4df   :  { %v3416_v46 = vadd.f32 %v3372_v32, %v3240_v8 }
 0x4e0   :  { %v9060_v31 = vpop.f32.mrf.mxu1  ;;  %v3521_v6 = vpop.f32.mrf.mxu3 }
 0x4e1   :  { %v3565_v15 = vadd.f32 %v3521_v6, %v3416_v46  ;;  %v5321_v6 = vld [vmem:[%s9400_s7 + $0x2d8] sm:$0xff] }
 0x4e3   :  { %v9074_v13 = vadd.f32 %v3670_v24, %v3565_v15  ;;  %5333 = vmatmul.msk.f32.gmra.mxu1 %vm1832_vm0, %v5317_v9  ;;  %5361 = vmatmul.msk.f32.gmra.mxu2 %vm1832_vm0, %v5345_v63  ;;  %v3673_v28 = vpop.f32.mrf.mxu0  ;;  %v5412_v24 = vld [vmem:[%s9400_s7 + $0x430] sm:$0xff]  ;;  %v5349_v9 = vld [vmem:[%s9400_s7 + $0x338] sm:$0xff] }
 0x4e5   :  { %5393 = vmatmul.msk.f32.gmra.mxu3 %vm1832_vm0, %v5377_v2  ;;  %v3255_v2 = vadd.f32 %v9060_v31, %v8883_v1  ;;  %v5382_v1 = vld [vmem:[%s9400_s7 + $0x3c0] sm:$0xff] }
 0x4e6   :  { %v3375_v3 = vpop.f32.mrf.mxu2  ;;  %5425 = vmatmul.msk.f32.gmra.mxu0 %vm1832_vm0, %v5409_v51 }
 0x4e7   :  { %v3417_v45 = vadd.f32 %v3375_v3, %v3243_v19 }
 0x4e8   :  { %v9085_v38 = vpop.f32.mrf.mxu1  ;;  %v3524_v34 = vpop.f32.mrf.mxu3 }
 0x4e9   :  { %v3566_v30 = vadd.f32 %v3524_v34, %v3417_v45  ;;  %v5322_v45 = vld [vmem:[%s9400_s7 + $0x2e0] sm:$0xff] }
 0x4ea   :  { %v5350_v34 = vld [vmem:[%s9400_s7 + $0x340] sm:$0xff] }
 0x4eb   :  { %v9096_v17 = vadd.f32 %v3673_v28, %v3566_v30  ;;  %5334 = vmatmul.msk.f32.gmra.mxu1 %vm1832_vm0, %v5318_v26  ;;  %5362 = vmatmul.msk.f32.gmra.mxu2 %vm1832_vm0, %v5346_v10  ;;  %v3676_v35 = vpop.f32.mrf.mxu0  ;;  %v5414_v30 = vld [vmem:[%s9400_s7 + $0x440] sm:$0xff] }
 0x4ed   :  { %5394 = vmatmul.msk.f32.gmra.mxu3 %vm1832_vm0, %v5378_v33  ;;  %v3258_v33 = vadd.f32 %v9085_v38, %v8913_v4  ;;  %v5383_v4 = vld [vmem:[%s9400_s7 + $0x3c8] sm:$0xff] }
 0x4ee   :  { %v3378_v11 = vpop.f32.mrf.mxu2  ;;  %5426 = vmatmul.msk.f32.gmra.mxu0 %vm1832_vm0, %v5410_v29 }
 0x4ef   :  { %v3418_v22 = vadd.f32 %v3378_v11, %v3246_v41 }
 0x4f0   :  { %v9107_v5 = vpop.f32.mrf.mxu1  ;;  %v3527_v52 = vpop.f32.mrf.mxu3 }
 0x4f1   :  { %v3567_v49 = vadd.f32 %v3527_v52, %v3418_v22  ;;  %v5323_v22 = vld [vmem:[%s9400_s7 + $0x2e8] sm:$0xff] }
 0x4f2   :  { %v5351_v52 = vld [vmem:[%s9400_s7 + $0x348] sm:$0xff] }
 0x4f3   :  { %v9118_v57 = vadd.f32 %v3676_v35, %v3567_v49  ;;  %5335 = vmatmul.msk.f32.gmra.mxu1 %vm1832_vm0, %v5319_v61  ;;  %5363 = vmatmul.msk.f32.gmra.mxu2 %vm1832_vm0, %v5347_v39  ;;  %v3679_v43 = vpop.f32.mrf.mxu0  ;;  %v5415_v49 = vld [vmem:[%s9400_s7 + $0x448] sm:$0xff] }
 0x4f5   :  { %5395 = vmatmul.msk.f32.gmra.mxu3 %vm1832_vm0, %v5379_v50  ;;  %v3261_v50 = vadd.f32 %v9107_v5, %v8943_v27  ;;  %v5384_v27 = vld [vmem:[%s9400_s7 + $0x3d0] sm:$0xff] }
 0x4f6   :  { %v3381_v53 = vpop.f32.mrf.mxu2  ;;  %5427 = vmatmul.msk.f32.gmra.mxu0 %vm1832_vm0, %v5411_v37 }
 0x4f7   :  { %v3419_v14 = vadd.f32 %v3381_v53, %v3249_v20 }
 0x4f8   :  { %v3263_v54 = vpop.f32.mrf.mxu1  ;;  %v3530_v25 = vpop.f32.mrf.mxu3 }
 0x4f9   :  { %v9136_v56 = vadd.f32 %v3263_v54, %v8976_v55  ;;  %v3568_v62 = vadd.f32 %v3530_v25, %v3419_v14  ;;  %v3252_v55 = vadd.f32 %v9035_v0, %v8856_v44  ;;  %v5381_v44 = vld [vmem:[%s9400_s7 + $0x3b8] sm:$0xff]  ;;  %v5324_v14 = vld [vmem:[%s9400_s7 + $0x2f0] sm:$0xff] }
 0x4fa   :  { %v5352_v54 = vld [vmem:[%s9400_s7 + $0x350] sm:$0xff] }
 0x4fb   :  { %v9141_v47 = vadd.f32 %v3679_v43, %v3568_v62  ;;  %5336 = vmatmul.msk.f32.gmra.mxu1 %vm1832_vm0, %v5320_v60  ;;  %5364 = vmatmul.msk.f32.gmra.mxu2 %vm1832_vm0, %v5348_v48  ;;  %v3682_v58 = vpop.f32.mrf.mxu0  ;;  %v5416_v48 = vld [vmem:[%s9400_s7 + $0x450] sm:$0xff] }
 0x4fd   :  { %5396 = vmatmul.msk.f32.gmra.mxu3 %vm1832_vm0, %v5380_v21 }
 0x4fe   :  { %v3384_v23 = vpop.f32.mrf.mxu2  ;;  %5428 = vmatmul.msk.f32.gmra.mxu0 %vm1832_vm0, %v5412_v24 }
 0x4ff   :  { %v3420_v8 = vadd.f32 %v3384_v23, %v3252_v55  ;;  %v5325_v55 = vld [vmem:[%s9400_s7 + $0x2f8] sm:$0xff] }
 0x500   :  { %v9152_v32 = vpop.f32.mrf.mxu1  ;;  %v3533_v46 = vpop.f32.mrf.mxu3  ;;  %v5353_v23 = vld [vmem:[%s9400_s7 + $0x358] sm:$0xff] }
 0x501   :  { %v3569_v63 = vadd.f32 %v3533_v46, %v3420_v8  ;;  %v5385_v46 = vld [vmem:[%s9400_s7 + $0x3d8] sm:$0xff] }
 0x503   :  { %v9163_v0 = vadd.f32 %v3682_v58, %v3569_v63  ;;  %5337 = vmatmul.msk.f32.gmra.mxu1 %vm1832_vm0, %v5321_v6  ;;  %5365 = vmatmul.msk.f32.gmra.mxu2 %vm1832_vm0, %v5349_v9  ;;  %v3685_v15 = vpop.f32.mrf.mxu0  ;;  %v5417_v9 = vld [vmem:[%s9400_s7 + $0x458] sm:$0xff]  ;;  %v3267_v63 = vadd.f32 %v9152_v32, %v8859_v36  ;;  %v5386_v36 = vld [vmem:[%s9400_s7 + $0x3e0] sm:$0xff] }
 0x505   :  { %5397 = vmatmul.msk.f32.gmra.mxu3 %vm1832_vm0, %v5381_v44 }
 0x506   :  { %v3387_v28 = vpop.f32.mrf.mxu2  ;;  %5429 = vmatmul.msk.f32.gmra.mxu0 %vm1832_vm0, %v5413_v16 }
 0x507   :  { %v3421_v51 = vadd.f32 %v3387_v28, %v3255_v2  ;;  %v5354_v28 = vld [vmem:[%s9400_s7 + $0x360] sm:$0xff] }
 0x508   :  { %v9174_v19 = vpop.f32.mrf.mxu1  ;;  %v3536_v3 = vpop.f32.mrf.mxu3 }
 0x509   :  { %v3570_v26 = vadd.f32 %v3536_v3, %v3421_v51 }
 0x50b   :  { %v9185_v31 = vadd.f32 %v3685_v15, %v3570_v26  ;;  %5338 = vmatmul.msk.f32.gmra.mxu1 %vm1832_vm0, %v5322_v45  ;;  %5366 = vmatmul.msk.f32.gmra.mxu2 %vm1832_vm0, %v5350_v34  ;;  %v3688_v10 = vpop.f32.mrf.mxu0  ;;  %v5418_v34 = vld [vmem:[%s9400_s7 + $0x460] sm:$0xff]  ;;  %v3270_v26 = vadd.f32 %v9174_v19, %v8886_v18 }
 0x50d   :  { %5398 = vmatmul.msk.f32.gmra.mxu3 %vm1832_vm0, %v5382_v1 }
 0x50e   :  { %v3390_v35 = vpop.f32.mrf.mxu2  ;;  %5430 = vmatmul.msk.f32.gmra.mxu0 %vm1832_vm0, %v5414_v30 }
 0x50f   :  { %v3422_v29 = vadd.f32 %v3390_v35, %v3258_v33  ;;  %v5355_v33 = vld [vmem:[%s9400_s7 + $0x368] sm:$0xff] }
 0x510   :  { %v9196_v41 = vpop.f32.mrf.mxu1  ;;  %v3539_v11 = vpop.f32.mrf.mxu3 }
 0x511   :  { %v3571_v61 = vadd.f32 %v3539_v11, %v3422_v29  ;;  %v5387_v11 = vld [vmem:[%s9400_s7 + $0x3e8] sm:$0xff] }
 0x513   :  { %v9207_v38 = vadd.f32 %v3688_v10, %v3571_v61  ;;  %5339 = vmatmul.msk.f32.gmra.mxu1 %vm1832_vm0, %v5323_v22  ;;  %5367 = vmatmul.msk.f32.gmra.mxu2 %vm1832_vm0, %v5351_v52  ;;  %v3691_v39 = vpop.f32.mrf.mxu0  ;;  %v5419_v22 = vld [vmem:[%s9400_s7 + $0x468] sm:$0xff]  ;;  %v4438_v52 = vld [vmem:[%s9403_s10] sm:$0xff] }
 0x514   :  { %4442 = vperm.xlu1 %5629, %v4438_v52  }
 0x515   :  { %5399 = vmatmul.msk.f32.gmra.mxu3 %vm1832_vm0, %v5383_v4 }
 0x516   :  { %v3393_v43 = vpop.f32.mrf.mxu2  ;;  %5431 = vmatmul.msk.f32.gmra.mxu0 %vm1832_vm0, %v5415_v49 }
 0x517   :  { %v3423_v37 = vadd.f32 %v3393_v43, %v3261_v50  ;;  %v5356_v50 = vld [vmem:[%s9400_s7 + $0x370] sm:$0xff] }
 0x518   :  { %v9218_v20 = vpop.f32.mrf.mxu1  ;;  %v3542_v53 = vpop.f32.mrf.mxu3 }
 0x519   :  { %v3572_v25 = vadd.f32 %v3542_v53, %v3423_v37  ;;  %v5388_v53 = vld [vmem:[%s9400_s7 + $0x3f0] sm:$0xff] }
 0x51b   :  { %v9229_v5 = vadd.f32 %v3691_v39, %v3572_v25  ;;  %5340 = vmatmul.msk.f32.gmra.mxu1 %vm1832_vm0, %v5324_v14  ;;  %5368 = vmatmul.msk.f32.gmra.mxu2 %vm1832_vm0, %v5352_v54  ;;  %v3694_v60 = vpop.f32.mrf.mxu0  ;;  %v5420_v14 = vld [vmem:[%s9400_s7 + $0x470] sm:$0xff]  ;;  %v3276_v54 = vadd.f32 %v9218_v20, %v8946_v42 }
 0x51d   :  { %5400 = vmatmul.msk.f32.gmra.mxu3 %vm1832_vm0, %v5384_v27 }
 0x51e   :  { %v3396_v62 = vpop.f32.mrf.mxu2  ;;  %5432 = vmatmul.msk.f32.gmra.mxu0 %vm1832_vm0, %v5416_v48  ;;  %v5357_v48 = vld [vmem:[%s9400_s7 + $0x378] sm:$0xff] }
 0x51f   :  { %v3424_v21 = vadd.f32 %v3396_v62, %v9136_v56 }
 0x520   :  { %v9239_v58 = vpop.f32.mrf.mxu1  ;;  %v3545_v24 = vpop.f32.mrf.mxu3 }
 0x521   :  { %v3573_v8 = vadd.f32 %v3545_v24, %v3424_v21  ;;  %v5389_v24 = vld [vmem:[%s9400_s7 + $0x3f8] sm:$0xff] }
 0x523   :  { %v9250_v6 = vadd.f32 %v3694_v60, %v3573_v8  ;;  %5341 = vmatmul.msk.f32.gmra.mxu1 %vm1832_vm0, %v5325_v55  ;;  %5369 = vmatmul.msk.f32.gmra.mxu2 %vm1832_vm0, %v5353_v23  ;;  %v3697_v56 = vpop.f32.mrf.mxu0  ;;  %v5421_v55 = vld [vmem:[%s9400_s7 + $0x478] sm:$0xff]  ;;  %v3279_v23 = vadd.f32 %v9239_v58, %v8979_v12 }
 0x525   :  { %5401 = vmatmul.msk.f32.gmra.mxu3 %vm1832_vm0, %v5385_v46 }
 0x526   :  { %v3399_v44 = vpop.f32.mrf.mxu2  ;;  %5433 = vmatmul.msk.f32.gmra.mxu0 %vm1832_vm0, %v5417_v9 }
 0x527   :  { %v3425_v15 = vadd.f32 %v3399_v44, %v3267_v63 }
 0x528   :  { %v3548_v16 = vpop.f32.mrf.mxu3  ;;  %v3813_v2 = vpop.f32.mrf.mxu1 }
 0x529   :  { %v3574_v51 = vadd.f32 %v3548_v16, %v3425_v15  ;;  %v9265_v3 = vadd.f32 %v3813_v2, %v9024_v7  ;;  %v4439_v16 = vld [vmem:[%s9403_s10 + $0x8] sm:$0xff] }
 0x52a   :  { %4447 = vperm.xlu2 %5630, %v4439_v16  }
 0x52b   :  { %v9270_v32 = vadd.f32 %v3697_v56, %v3574_v51  ;;  %5370 = vmatmul.msk.f32.gmra.mxu2 %vm1832_vm0, %v5354_v28  ;;  %v3700_v45 = vpop.f32.mrf.mxu0 }
 0x52d   :  { %5402 = vmatmul.msk.f32.gmra.mxu3 %vm1832_vm0, %v5386_v36 }
 0x52e   :  { %v3402_v7 = vpop.f32.mrf.mxu2  ;;  %5434 = vmatmul.msk.f32.gmra.mxu0 %vm1832_vm0, %v5418_v34 }
 0x52f   :  { %v3426_v1 = vadd.f32 %v3402_v7, %v3270_v26 }
 0x530   :  { %v3551_v10 = vpop.f32.mrf.mxu3  ;;  %v3816_v30 = vpop.f32.mrf.mxu1 }
 0x531   :  { %v3575_v35 = vadd.f32 %v3551_v10, %v3426_v1  ;;  %v3862_v29 = vadd.f32 %v3816_v30, %v9049_v59  ;;  %v3273_v59 = vadd.f32 %v9196_v41, %v8916_v40 }
 0x533   :  { %v9287_v18 = vadd.f32 %v3700_v45, %v3575_v35  ;;  %5371 = vmatmul.msk.f32.gmra.mxu2 %vm1832_vm0, %v5355_v33  ;;  %v3703_v19 = vpop.f32.mrf.mxu0 }
 0x535   :  { %5403 = vmatmul.msk.f32.gmra.mxu3 %vm1832_vm0, %v5387_v11 }
 0x536   :  { %v3405_v61 = vpop.f32.mrf.mxu2  ;;  %5435 = vmatmul.msk.f32.gmra.mxu0 %vm1832_vm0, %v5419_v22 }
 0x537   :  { %v3427_v4 = vadd.f32 %v3405_v61, %v3273_v59 }
 0x538   :  { %v3554_v39 = vpop.f32.mrf.mxu3  ;;  %v3819_v49 = vpop.f32.mrf.mxu1 }
 0x539   :  { %v3576_v43 = vadd.f32 %v3554_v39, %v3427_v4  ;;  %v3863_v37 = vadd.f32 %v3819_v49, %v9074_v13 }
 0x53b   :  { %v9307_v40 = vadd.f32 %v3703_v19, %v3576_v43  ;;  %5372 = vmatmul.msk.f32.gmra.mxu2 %vm1832_vm0, %v5356_v50  ;;  %v3706_v41 = vpop.f32.mrf.mxu0 }
 0x53d   :  { %5404 = vmatmul.msk.f32.gmra.mxu3 %vm1832_vm0, %v5388_v53 }
 0x53e   :  { %v3408_v25 = vpop.f32.mrf.mxu2  ;;  %5436 = vmatmul.msk.f32.gmra.mxu0 %vm1832_vm0, %v5420_v14 }
 0x53f   :  { %v3428_v13 = vadd.f32 %v3408_v25, %v3276_v54 }
 0x540   :  { %v3557_v27 = vpop.f32.mrf.mxu3  ;;  %v3822_v60 = vpop.f32.mrf.mxu1 }
 0x541   :  { %v3577_v62 = vadd.f32 %v3557_v27, %v3428_v13  ;;  %v3864_v21 = vadd.f32 %v3822_v60, %v9096_v17 }
 0x543   :  { %v9324_v42 = vadd.f32 %v3706_v41, %v3577_v62  ;;  %5373 = vmatmul.msk.f32.gmra.mxu2 %vm1832_vm0, %v5357_v48  ;;  %v3709_v20 = vpop.f32.mrf.mxu0 }
 0x545   :  { %5405 = vmatmul.msk.f32.gmra.mxu3 %vm1832_vm0, %v5389_v24 }
 0x546   :  { %v3411_v8 = vpop.f32.mrf.mxu2  ;;  %5437 = vmatmul.msk.f32.gmra.mxu0 %vm1832_vm0, %v5421_v55 }
 0x547   :  { %v3429_v17 = vadd.f32 %v3411_v8, %v3279_v23 }
 0x548   :  { %v3560_v46 = vpop.f32.mrf.mxu3  ;;  %v3825_v56 = vpop.f32.mrf.mxu1 }
 0x549   :  { %v3578_v9 = vadd.f32 %v3560_v46, %v3429_v17  ;;  %v3865_v63 = vadd.f32 %v3825_v56, %v9118_v57 }
 0x54b   :  { %v9335_v44 = vadd.f32 %v3709_v20, %v3578_v9  ;;  %v4260_v15 = vpop.f32.mrf.mxu0 }
 0x54e   :  { %v3962_v2 = vpop.f32.mrf.mxu2 }
 0x54f   :  { %v4010_v12 = vadd.f32 %v3962_v2, %v9265_v3 }
 0x550   :  { %v3828_v58 = vpop.f32.mrf.mxu1  ;;  %v4111_v28 = vpop.f32.mrf.mxu3 }
 0x551   :  { %v3866_v51 = vadd.f32 %v3828_v58, %v9141_v47  ;;  %v4159_v36 = vadd.f32 %v4111_v28, %v4010_v12 }
 0x553   :  { %v9342_v45 = vadd.f32 %v4260_v15, %v4159_v36  ;;  %v4263_v34 = vpop.f32.mrf.mxu0 }
 0x556   :  { %v3965_v57 = vpop.f32.mrf.mxu2 }
 0x557   :  { %v4011_v26 = vadd.f32 %v3965_v57, %v3862_v29 }
 0x558   :  { %v3831_v7 = vpop.f32.mrf.mxu1  ;;  %v4114_v1 = vpop.f32.mrf.mxu3 }
 0x559   :  { %v3867_v10 = vadd.f32 %v3831_v7, %v9163_v0  ;;  %v4160_v30 = vadd.f32 %v4114_v1, %v4011_v26 }
 0x55b   :  { %v9345_v33 = vadd.f32 %v4263_v34, %v4160_v30  ;;  %v4266_v35 = vpop.f32.mrf.mxu0 }
 0x55e   :  { %v3968_v11 = vpop.f32.mrf.mxu2 }
 0x55f   :  { %v4012_v3 = vadd.f32 %v3968_v11, %v3863_v37 }
 0x560   :  { %v3834_v19 = vpop.f32.mrf.mxu1  ;;  %v4117_v22 = vpop.f32.mrf.mxu3 }
 0x561   :  { %v3868_v47 = vadd.f32 %v3834_v19, %v9185_v31  ;;  %v4161_v52 = vadd.f32 %v4117_v22, %v4012_v3 }
 0x563   :  { %v9348_v59 = vadd.f32 %v4266_v35, %v4161_v52  ;;  %v4269_v61 = vpop.f32.mrf.mxu0 }
 0x566   :  { %v3971_v4 = vpop.f32.mrf.mxu2 }
 0x567   :  { %v4013_v29 = vadd.f32 %v3971_v4, %v3864_v21 }
 0x568   :  { %v3837_v39 = vpop.f32.mrf.mxu1  ;;  %v4120_v49 = vpop.f32.mrf.mxu3 }
 0x569   :  { %v3869_v0 = vadd.f32 %v3837_v39, %v9207_v38  ;;  %v4162_v50 = vadd.f32 %v4120_v49, %v4013_v29  ;;  %v4418_v29 = vpop.permute.xlu0 %4417 }
 0x56b   :  { %v9351_v43 = vadd.f32 %v4269_v61, %v4162_v50  ;;  %v4272_v53 = vpop.f32.mrf.mxu0  ;;  %v4408_v50 = vpop.permute.xlu1 %4407 }
 0x56e   :  { %v3974_v41 = vpop.f32.mrf.mxu2 }
 0x56f   :  { %v4014_v37 = vadd.f32 %v3974_v41, %v3865_v63 }
 0x570   :  { %v4123_v14 = vpop.f32.mrf.mxu3  ;;  %v3840_v17 = vpop.f32.mrf.mxu1 }
 0x571   :  { %v4163_v54 = vadd.f32 %v4123_v14, %v4014_v37  ;;  %v4413_v14 = vpop.permute.xlu0 %4412 }
 0x573   :  { %v9353_v25 = vadd.f32 %v4272_v53, %v4163_v54  ;;  %v4275_v31 = vpop.f32.mrf.mxu0  ;;  %v4398_v53 = vpop.permute.xlu2 %4397 }
 0x576   :  { %v3977_v13 = vpop.f32.mrf.mxu2 }
 0x577   :  { %v4015_v27 = vadd.f32 %v3977_v13, %v3866_v51 }
 0x578   :  { %v4126_v60 = vpop.f32.mrf.mxu3  ;;  %v3843_v58 = vpop.f32.mrf.mxu1 }
 0x579   :  { %v4164_v48 = vadd.f32 %v4126_v60, %v4015_v27 }
 0x57b   :  { %v9355_v62 = vadd.f32 %v4275_v31, %v4164_v48  ;;  %v4278_v21 = vpop.f32.mrf.mxu0 }
 0x57e   :  { %v3980_v24 = vpop.f32.mrf.mxu2 }
 0x57f   :  { %v4016_v38 = vadd.f32 %v3980_v24, %v3867_v10 }
 0x580   :  { %v4129_v20 = vpop.f32.mrf.mxu3  ;;  %v3846_v7 = vpop.f32.mrf.mxu1 }
 0x581   :  { %v4165_v55 = vadd.f32 %v4129_v20, %v4016_v38  ;;  %v4403_v38 = vpop.permute.xlu1 %4402 }
 0x583   :  { %v9357_v23 = vadd.f32 %v4278_v21, %v4165_v55  ;;  %v4281_v8 = vpop.f32.mrf.mxu0  ;;  %v4393_v55 = vpop.permute.xlu2 %4392 }
 0x586   :  { %v3983_v46 = vpop.f32.mrf.mxu2 }
 0x587   :  { %v4017_v56 = vadd.f32 %v3983_v46, %v3868_v47 }
 0x588   :  { %v4132_v9 = vpop.f32.mrf.mxu3  ;;  %v3849_v11 = vpop.f32.mrf.mxu1 }
 0x589   :  { %v4166_v63 = vadd.f32 %v4132_v9, %v4017_v56  ;;  %v3873_v48 = vadd.f32 %v3849_v11, %v9287_v18  ;;  %v3870_v18 = vadd.f32 %v3840_v17, %v9229_v5 }
 0x58b   :  { %v9359_v15 = vadd.f32 %v4281_v8, %v4166_v63  ;;  %v4284_v16 = vpop.f32.mrf.mxu0  ;;  %v3872_v8 = vadd.f32 %v3846_v7, %v9270_v32 }
 0x58e   :  { %v3986_v2 = vpop.f32.mrf.mxu2 }
 0x58f   :  { %v4018_v12 = vadd.f32 %v3986_v2, %v3869_v0 }
 0x590   :  { %v4135_v28 = vpop.f32.mrf.mxu3  ;;  %v3852_v47 = vpop.f32.mrf.mxu1 }
 0x591   :  { %v4167_v51 = vadd.f32 %v4135_v28, %v4018_v12  ;;  %v3874_v27 = vadd.f32 %v3852_v47, %v9307_v40  ;;  %v4388_v28 = vpop.permute.xlu0 %4387 }
 0x593   :  { %v9361_v36 = vadd.f32 %v4284_v16, %v4167_v51  ;;  %v9363_v34 = vpop.f32.mrf.mxu0 }
 0x596   :  { %v3989_v57 = vpop.f32.mrf.mxu2 }
 0x598   :  { %v4138_v26 = vpop.f32.mrf.mxu3  ;;  %v3855_v49 = vpop.f32.mrf.mxu1 }
 0x599   :  { %v3875_v31 = vadd.f32 %v3855_v49, %v9324_v42  ;;  %v3871_v42 = vadd.f32 %v3843_v58, %v9250_v6  ;;  %v4373_v17 = vpop.permute.xlu0 %4372 }
 0x59b   :  { %v4290_v1 = vpop.f32.mrf.mxu0 }
 0x59e   :  { %v3992_v10 = vpop.f32.mrf.mxu2 }
 0x5a0   :  { %v4141_v30 = vpop.f32.mrf.mxu3  ;;  %v3858_v13 = vpop.f32.mrf.mxu1 }
 0x5a1   :  { %v3876_v21 = vadd.f32 %v3858_v13, %v9335_v44  ;;  %v4020_v44 = vadd.f32 %v3992_v10, %v3871_v42 }
 0x5a3   :  { %v4293_v35 = vpop.f32.mrf.mxu0 }
 0x5a6   :  { %v3995_v3 = vpop.f32.mrf.mxu2 }
 0x5a7   :  { %v4021_v2 = vadd.f32 %v3995_v3, %v3872_v8 }
 0x5a8   :  { %v4144_v19 = vpop.f32.mrf.mxu3 }
 0x5a9   :  { %v4170_v49 = vadd.f32 %v4144_v19, %v4021_v2 }
 0x5ab   :  { %v4296_v22 = vpop.f32.mrf.mxu0  ;;  %v4319_v58 = vadd.f32 %v4293_v35, %v4170_v49 }
 0x5ae   :  { %v3998_v52 = vpop.f32.mrf.mxu2 }
 0x5af   :  { %v4022_v46 = vadd.f32 %v3998_v52, %v3873_v48  ;;  %v4169_v52 = vadd.f32 %v4141_v30, %v4020_v44 }
 0x5b0   :  { %v4147_v61 = vpop.f32.mrf.mxu3 }
 0x5b1   :  { %v4171_v51 = vadd.f32 %v4147_v61, %v4022_v46  ;;  %v4318_v13 = vadd.f32 %v4290_v1, %v4169_v52  ;;  %v4358_v1 = vpop.permute.xlu0 %4357 }
 0x5b3   :  { %v4299_v4 = vpop.f32.mrf.mxu0  ;;  %v4430_v19 = vadd.f32 %v4393_v55, %v4318_v13 }
 0x5b6   :  { %v4001_v39 = vpop.f32.mrf.mxu2 }
 0x5b7   :  { %v4023_v24 = vadd.f32 %v4001_v39, %v3874_v27  ;;  %v4019_v39 = vadd.f32 %v3989_v57, %v3870_v18  ;;  %v4431_v57 = vadd.f32 %v4398_v53, %v4319_v58  ;;  %v4423_v53 = vadd.f32 %v4358_v1, %v9351_v43  ;;  %v4437_v43 = vld [vmem:[%s9402_s9 + $0x8] sm:$0xff] }
 0x5b8   :  { %v4150_v0 = vpop.f32.mrf.mxu3 }
 0x5b9   :  { %v4172_v40 = vadd.f32 %v4150_v0, %v4023_v24  ;;  %v4168_v6 = vadd.f32 %v4138_v26, %v4019_v39  ;;  %v4378_v0 = vpop.permute.xlu2 %4377 }
 0x5ba   :  { %v4427_v35 = vadd.f32 %v4378_v0, %v9359_v15  ;;  %v4343_v15 = vpop.permute.xlu0 %4342 }
 0x5bb   :  { %v4302_v37 = vpop.f32.mrf.mxu0  ;;  %v4321_v32 = vadd.f32 %v4299_v4, %v4172_v40  ;;  %v4317_v10 = vadd.f32 %v9363_v34, %v4168_v6  ;;  %v4426_v4 = vadd.f32 %v4373_v17, %v9357_v23  ;;  %v4420_v23 = vadd.f32 %v4343_v15, %v9342_v45 }
 0x5bd   :  { %v4433_v3 = vadd.f32 %v4408_v50, %v4321_v32  ;;  %v4429_v30 = vadd.f32 %v4388_v28, %v4317_v10 }
 0x5be   :  { %v4004_v41 = vpop.f32.mrf.mxu2 }
 0x5bf   :  { %v4024_v60 = vadd.f32 %v4004_v41, %v3875_v31  ;;  %v4320_v41 = vadd.f32 %v4296_v22, %v4171_v51  ;;  %v4383_v31 = vpop.permute.xlu1 %4382 }
 0x5c0   :  { %v4153_v54 = vpop.f32.mrf.mxu3  ;;  %v4428_v61 = vadd.f32 %v4383_v31, %v9361_v36 }
 0x5c1   :  { %v4173_v56 = vadd.f32 %v4153_v54, %v4024_v60  ;;  %v4432_v5 = vadd.f32 %v4403_v38, %v4320_v41  ;;  %v4363_v26 = vpop.permute.xlu2 %4362 }
 0x5c3   :  { %v4305_v16 = vpop.f32.mrf.mxu0  ;;  %v4322_v11 = vadd.f32 %v4302_v37, %v4173_v56 }
 0x5c5   :  { %v4434_v54 = vadd.f32 %v4413_v14, %v4322_v11 }
 0x5c6   :  { %v4007_v20 = vpop.f32.mrf.mxu2 }
 0x5c7   :  { %v4025_v9 = vadd.f32 %v4007_v20, %v3876_v21  ;;  %v4368_v22 = vpop.permute.xlu1 %4367 }
 0x5c8   :  { %v4156_v63 = vpop.f32.mrf.mxu3  ;;  %v4425_v34 = vadd.f32 %v4368_v22, %v9355_v62 }
 0x5c9   :  { %v4174_v12 = vadd.f32 %v4156_v63, %v4025_v9  ;;  %v4348_v36 = vpop.permute.xlu2 %4347 }
 0x5ca   :  { %v4421_v14 = vadd.f32 %v4348_v36, %v9345_v33 }
 0x5cb   :  { %v4323_v47 = vadd.f32 %v4305_v16, %v4174_v12 }
 0x5cd   :  { %v4435_v7 = vadd.f32 %v4418_v29, %v4323_v47  ;;  %v4424_v29 = vadd.f32 %v4363_v26, %v9353_v25  ;;  %v4436_v25 = vld [vmem:[%s9402_s9] sm:$0xff] }
 0x5cf   :  { %4450 = vmatpush.msrb.mxu1 %v4435_v7  ;;  %v4353_v50 = vpop.permute.xlu1 %4352 }
 0x5d0   :  { %v4422_v37 = vadd.f32 %v4353_v50, %v9348_v59 }
 0x5d1   :  { %4451 = vmatpush.msrb.mxu1 %v4434_v54  ;;  %v4448_v45 = vpop.permute.xlu2 %4447 }
 0x5d3   :  { %4452 = vmatpush.msrb.mxu1 %v4433_v3 }
 0x5d5   :  { %4453 = vmatpush.msrb.mxu1 %v4432_v5 }
 0x5d7   :  { %4454 = vmatpush.msrb.mxu1 %v4431_v57  ;;  %v4443_v59 = vpop.permute.xlu1 %4442 }
 0x5d9   :  { %4455 = vmatpush.msrb.mxu1 %v4430_v19 }
 0x5db   :  { %4456 = vmatpush.msrb.mxu1 %v4429_v30 }
 0x5dd   :  { %4457 = vmatpush.msrb.mxu1 %v4428_v61 }
 0x5df   :  { %4458 = vmatpush.msrb.mxu1 %v4427_v35 }
 0x5e1   :  { %4459 = vmatpush.msrb.mxu1 %v4426_v4 }
 0x5e3   :  { %4460 = vmatpush.msrb.mxu1 %v4425_v34 }
 0x5e5   :  { %4461 = vmatpush.msrb.mxu1 %v4424_v29 }
 0x5e7   :  { %4462 = vmatpush.msrb.mxu1 %v4423_v53 }
 0x5e9   :  { %4463 = vmatpush.msrb.mxu1 %v4422_v37 }
 0x5eb   :  { %4464 = vmatpush.msrb.mxu1 %v4421_v14 }
 0x5ed   :  { %4465 = vmatpush.msrb.mxu1 %v4420_v23 }
 0x5ee   :  { %4466 = vmatmul.f32.vlgmr.msrb.gmra.mxu1 %v4436_v25 }
 0x5f6   :  { %4469 = vmatmul.f32.gmra.mxu1 %v4437_v43 }
 0x66b   :  { %v4467_v62 = vpop.f32.mrf.mxu1 }
 0x66c   :  { %v4468_v27 = vadd.f32 %v4467_v62, %v4443_v59 }
 0x66e   :  { %4473 = vst [vmem:[%s9404_s11] sm:$0xff] %v4468_v27 }
 0x673   :  { %v4470_v33 = vpop.f32.mrf.mxu1 }
 0x674   :  { %v4471_v60 = vadd.f32 %v4470_v33, %v4448_v45 }
 0x676   :  { %4474 = vst [vmem:[%s9404_s11 + $0x8] sm:$0xff] %v4471_v60 }

</bundles_post_ra>
